<compile_context>
chip_gen: v6e
topology: v6e:2x2x1
jax: 0.10.0
libtpu: 0.0.40
codegen_flags: <defaults>
</compile_context>

<pallas_src>
import functools

import numpy as np
import jax
import jax.numpy as jnp
from jax import lax
from jax.experimental import pallas as pl
from jax.experimental.pallas import tpu as pltpu

EPS = 1e-5      # PyTorch BatchNorm2d default eps
LANE = 128      # TPU lane width


def _round_up(x, m):
    return (x + m - 1) // m * m


def _vmem_capacity_bytes():
    try:
        return int(pltpu.get_tpu_info().vmem_capacity_bytes)
    except Exception:
        return 64 * 1024 * 1024          # conservative fallback (v7x-sized)


# ----------------------------- Pallas kernels -----------------------------

def _pool_stats_kernel(x_ref, o_ref, st_ref):
    # x_ref: (1, 2*tho, Wo, 2*C) f32 -- adjacent W pixels packed on the lane axis.
    # o_ref: (1, tho, wp, C) bf16   -- wp = Wo+2, pad columns written as zeros.
    # st_ref: (1, 1, 1, 2*C) f32    -- [sum | sumsq] of the pooled tile (real pixels).
    c = o_ref.shape[-1]
    tho = o_ref.shape[1]
    wp = o_ref.shape[2]
    wo = wp - 2

    x = x_ref[0]
    h = jnp.maximum(x[:, :, :c], x[:, :, c:])                     # (2*tho, Wo, C)
    hr = h.reshape(tho, 2, h.shape[1], h.shape[2])                 # leading-dim split only
    o = jnp.maximum(hr[:, 0], hr[:, 1])                            # (tho, Wo, C) f32

    # write the pooled tile in the wp-strided layout with zeroed pad columns
    o_ref[0, :, 1:1 + wo, :] = o.astype(jnp.bfloat16)
    o_ref[0, :, 0:1, :] = jnp.zeros((tho, 1, c), jnp.bfloat16)
    o_ref[0, :, 1 + wo:, :] = jnp.zeros((tho, wp - wo - 1, c), jnp.bfloat16)

    # fused partial BatchNorm statistics of the pooled tensor (f32, real pixels only)
    s1 = jnp.sum(jnp.sum(o, axis=0), axis=0, keepdims=True)        # (1, C)
    s2 = jnp.sum(jnp.sum(o * o, axis=0), axis=0, keepdims=True)    # (1, C)
    st_ref[0, 0, :, :c] = s1
    st_ref[0, 0, :, c:] = s2


def _conv_bn3x3_kernel(*refs, relu, has_res, want_stats, wp, tho, m_chunk):
    # refs: a_flat, a_top, a_bot, mask, scale, shift, w9, bias, [res], out, [stats], y_scr
    a_ref, top_ref, bot_ref, mask_ref, scale_ref, shift_ref, w_ref, b_ref = refs[:8]
    idx = 8
    res_ref = None
    if has_res:
        res_ref = refs[idx]; idx += 1
    o_ref = refs[idx]; idx += 1
    st_ref = None
    if want_stats:
        st_ref = refs[idx]; idx += 1
    y_scr = refs[idx]

    cin = a_ref.shape[-1]
    cout = o_ref.shape[-1]
    rmain = tho * wp

    scale = scale_ref[...]                                          # (1, cin)
    shift = shift_ref[...]

    def xform(v, m):
        # fused BatchNorm affine (+ReLU); the mask re-zeroes the conv's zero padding.
        y = v.astype(jnp.float32) * scale + shift
        if relu:
            y = jnp.maximum(y, 0.0)
        return (y * m).astype(jnp.bfloat16)

    # dummy leading row + tail rows (only touched by discarded pad-column outputs)
    y_scr[pl.ds(0, 1), :] = jnp.zeros((1, cin), jnp.bfloat16)
    tail0 = 1 + (tho + 2) * wp
    tail = y_scr.shape[0] - tail0
    if tail > 0:
        y_scr[pl.ds(tail0, tail), :] = jnp.zeros((tail, cin), jnp.bfloat16)

    # assemble the spatially padded slab in VMEM (bf16, written once)
    y_scr[pl.ds(1, wp), :] = xform(top_ref[0, 0], mask_ref[0, pl.ds(0, wp), :])
    y_scr[pl.ds(1 + wp, rmain), :] = xform(a_ref[0], mask_ref[0, pl.ds(wp, rmain), :])
    y_scr[pl.ds(1 + wp + rmain, wp), :] = xform(bot_ref[0, 0],
                                                mask_ref[0, pl.ds(wp + rmain, wp), :])

    bias = b_ref[...]                                               # (1, cout)
    s1 = jnp.zeros((1, cout), jnp.float32)
    s2 = jnp.zeros((1, cout), jnp.float32)

    # 3x3 conv == 9 row-shifted 1x1 convs on the MXU; acc tiled over output rows so the
    # f32 accumulator for each chunk stays live in vregs across the 9 taps.
    for m0 in range(0, rmain, m_chunk):
        mr = min(m_chunk, rmain - m0)
        acc = jnp.zeros((mr, cout), jnp.float32)
        for k in range(9):
            ky, kx = divmod(k, 3)
            patch = y_scr[pl.ds(m0 + ky * wp + kx, mr), :]          # (mr, cin) bf16
            acc = acc + jnp.dot(patch, w_ref[k], preferred_element_type=jnp.float32)

        omask = mask_ref[0, pl.ds(wp + m0, mr), :]                  # (mr, 1)
        out = jnp.where(omask > 0.0, acc + bias, 0.0)               # pad columns -> 0

        if want_stats:
            s1 = s1 + jnp.sum(out, axis=0, keepdims=True)
            s2 = s2 + jnp.sum(out * out, axis=0, keepdims=True)
        if has_res:
            out = out + res_ref[0, pl.ds(m0, mr), :].astype(jnp.float32)

        o_ref[0, pl.ds(m0, mr), :] = out.astype(o_ref.dtype)

    if want_stats:
        st_ref[0, 0, :, :cout] = s1
        st_ref[0, 0, :, cout:] = s2


# ----------------------------- pallas_call wrappers -----------------------------

def _maxpool_stats(x_packed, tho, wp, vmem_limit):
    """Fused 2x2 max-pool (wp-strided bf16 output) + per-tile partial (sum, sumsq)."""
    N, H, Wo, C2 = x_packed.shape
    C = C2 // 2
    Ho = H // 2
    T = Ho // tho
    return pl.pallas_call(
        _pool_stats_kernel,
        grid=(N, T),
        in_specs=[pl.BlockSpec((1, 2 * tho, Wo, C2), lambda n, t: (n, t, 0, 0))],
        out_specs=(pl.BlockSpec((1, tho, wp, C), lambda n, t: (n, t, 0, 0)),
                   pl.BlockSpec((1, 1, 1, 2 * C), lambda n, t: (n, t, 0, 0))),
        out_shape=(jax.ShapeDtypeStruct((N, Ho, wp, C), jnp.bfloat16),
                   jax.ShapeDtypeStruct((N, T, 1, 2 * C), jnp.float32)),
        compiler_params=pltpu.CompilerParams(
            dimension_semantics=("parallel", "parallel"),
            vmem_limit_bytes=vmem_limit),
    )(x_packed)


def _conv_bn3x3(a_flat, a_rows, mask, scale, shift, w9, bias, *, tho, wp, relu,
                residual=None, want_stats=False, vmem_limit=None):
    """Fused BN(+ReLU) -> 3x3 conv (+bias, +residual, +partial stats), halo via index_map."""
    N, R, cin = a_flat.shape
    Ho = a_rows.shape[1]
    cout = w9.shape[-1]
    T = Ho // tho
    rmain = tho * wp
    rin = (tho + 2) * wp
    rscr = _round_up(rin + 2, 8)

    m_cap = max(8, ((128 * 1024) // (cout * 4)) // 8 * 8)
    m_chunk = max(1, min(rmain, 256, m_cap))

    in_specs = [
        pl.BlockSpec((1, rmain, cin), lambda n, t: (n, t, 0)),
        pl.BlockSpec((1, 1, wp, cin),
                     lambda n, t: (n, jnp.maximum(t * tho - 1, 0), 0, 0)),
        pl.BlockSpec((1, 1, wp, cin),
                     lambda n, t: (n, jnp.minimum((t + 1) * tho, Ho - 1), 0, 0)),
        pl.BlockSpec((1, rin, 1), lambda n, t: (t, 0, 0)),
        pl.BlockSpec((1, cin), lambda n, t: (0, 0)),
        pl.BlockSpec((1, cin), lambda n, t: (0, 0)),
        pl.BlockSpec((9, cin, cout), lambda n, t: (0, 0, 0)),
        pl.BlockSpec((1, cout), lambda n, t: (0, 0)),
    ]
    inputs = [a_flat, a_rows, a_rows, mask, scale, shift, w9, bias]
    if residual is not None:
        in_specs.append(pl.BlockSpec((1, rmain, cout), lambda n, t: (n, t, 0)))
        inputs.append(residual)

    out_shape = [jax.ShapeDtypeStruct((N, R, cout), jnp.bfloat16)]
    out_specs = [pl.BlockSpec((1, rmain, cout), lambda n, t: (n, t, 0))]
    if want_stats:
        out_shape.append(jax.ShapeDtypeStruct((N, T, 1, 2 * cout), jnp.float32))
        out_specs.append(pl.BlockSpec((1, 1, 1, 2 * cout), lambda n, t: (n, t, 0, 0)))

    kern = functools.partial(_conv_bn3x3_kernel, relu=relu,
                             has_res=residual is not None,
                             want_stats=want_stats, wp=wp, tho=tho, m_chunk=m_chunk)
    return pl.pallas_call(
        kern,
        grid=(N, T),
        in_specs=in_specs,
        out_specs=tuple(out_specs) if want_stats else out_specs[0],
        out_shape=tuple(out_shape) if want_stats else out_shape[0],
        scratch_shapes=[pltpu.VMEM((rscr, cin), jnp.bfloat16)],
        compiler_params=pltpu.CompilerParams(
            dimension_semantics=("parallel", "parallel"),
            vmem_limit_bytes=vmem_limit),
    )(*inputs)


# ----------------------------- JAX glue (layout / params) -----------------------------

def _pick_tile_rows(Ho, Wo, wp, cin_p, cmid_p, cout_p, budget):
    """Largest legal row-tile whose full per-step working set fits the VMEM budget."""
    def conv_bytes(tho, cin, cout, has_res):
        rmain = tho * wp
        rin = (tho + 2) * wp
        a = rmain * cin * 2
        halo = 2 * wp * cin * 2
        msk = rin * LANE * 4                       # lane-padded (1-lane) mask block
        w = 9 * cin * cout * 2
        o = rmain * cout * 2
        res = rmain * cout * 2 if has_res else 0
        scr = _round_up(rin + 2, 8) * cin * 2
        return 2 * (a + halo + msk + w + o + res) + scr + (1 << 20)

    def pool_bytes(tho, cin):
        return 2 * (2 * tho * Wo * 2 * cin * 4 + tho * wp * cin * 2) + (1 << 20)

    def need(tho):
        return max(conv_bytes(tho, cin_p, cout_p, False),
                   conv_bytes(tho, cin_p, cmid_p, False),
                   conv_bytes(tho, cmid_p, cout_p, True),
                   pool_bytes(tho, cin_p))

    cands = [d for d in range(1, Ho + 1)
             if Ho % d == 0 and (d == Ho or (d * wp) % 8 == 0)]
    fitting = [d for d in cands if need(d) <= budget]
    return max(fitting) if fitting else min(cands)


def _make_mask(T, tho, wp, Ho, Wo):
    """1.0 at real padded-image positions, 0.0 at the conv's zero-padding (static)."""
    rin = (tho + 2) * wp
    q = np.arange(rin)
    rows = []
    for t in range(T):
        y = t * tho + q // wp       # padded row index
        x = q % wp                  # padded column index
        rows.append(((y >= 1) & (y <= Ho) & (x >= 1) & (x <= Wo)).astype(np.float32))
    # TODO(synk): generate this in-kernel (iota + compare) to drop the lane-sparse input.
    return jnp.asarray(np.stack(rows, 0)[..., None])                # (T, rin, 1)


def _bn_fold(stats, gamma, beta, count, cpad):
    """Fold training-mode BatchNorm (batch stats, biased var) into scale/shift."""
    g = jnp.pad(gamma, (0, cpad - gamma.shape[0]))
    b = jnp.pad(beta, (0, cpad - beta.shape[0]))
    s = jnp.sum(stats[:, :, 0, :cpad], axis=(0, 1))
    q = jnp.sum(stats[:, :, 0, cpad:], axis=(0, 1))
    mean = s / count
    var = jnp.maximum(q / count - mean * mean, 0.0)
    scale = g / jnp.sqrt(var + EPS)
    shift = b - mean * scale
    return scale.reshape(1, -1), shift.reshape(1, -1)


def _prep_conv(w, b, cin_p, cout_p):
    """(Cout, Cin, 3, 3) torch-layout weights -> (9, Cin_p, Cout_p) bf16 + padded f32 bias."""
    cout, cin, kh, kw = w.shape
    wm = jnp.transpose(w, (2, 3, 1, 0)).reshape(kh * kw, cin, cout)
    wm = jnp.pad(wm, ((0, 0), (0, cin_p - cin), (0, cout_p - cout))).astype(jnp.bfloat16)
    bm = jnp.pad(b, (0, cout_p - cout)).reshape(1, cout_p).astype(jnp.float32)
    return wm, bm


# ----------------------------- parameters -----------------------------

def _spectral_normalize(w, iters=50):
    # TODO(synk): PyTorch spectral_norm keeps persistent u/v and does 1 power iteration
    # per forward (15 at init); here we use the converged spectral norm of the init weight.
    co = w.shape[0]
    w2d = w.reshape(co, -1)
    u = jnp.full((co,), 1.0 / np.sqrt(co), dtype=w.dtype)
    v = w2d.T @ u
    for _ in range(iters):
        v = w2d.T @ u
        v = v / (jnp.linalg.norm(v) + 1e-12)
        u = w2d @ v
        u = u / (jnp.linalg.norm(u) + 1e-12)
    sigma = u @ (w2d @ v)
    return w / sigma


def init_down_params(key, in_channels, out_channels, kernel_size=3):
    mid = out_channels  # DoubleConv default mid_channels
    ks = jax.random.split(key, 12)

    def conv_params(kw, kb, cin, cout):
        w = 0.1 * jax.random.normal(kw, (cout, cin, kernel_size, kernel_size), jnp.float32)
        b = 0.1 * jax.random.normal(kb, (cout,), jnp.float32)
        return _spectral_normalize(w), b

    def bn_params(kg, kb, c):
        g = 1.0 + 0.1 * jax.random.normal(kg, (c,), jnp.float32)
        b = 0.1 * jax.random.normal(kb, (c,), jnp.float32)
        return g, b

    return {
        "bn_s": bn_params(ks[0], ks[1], in_channels),               # single_conv BN
        "conv_s": conv_params(ks[2], ks[3], in_channels, out_channels),
        "bn_1": bn_params(ks[4], ks[5], in_channels),               # double_conv block 1
        "conv_1": conv_params(ks[6], ks[7], in_channels, mid),
        "bn_2": bn_params(ks[8], ks[9], mid),                       # double_conv block 2
        "conv_2": conv_params(ks[10], ks[11], mid, out_channels),
    }


# ----------------------------- Down.forward -----------------------------

@jax.jit
def down_forward(x_nchw, params):
    N, Cin, H, W = x_nchw.shape
    assert H % 2 == 0 and W % 2 == 0
    Ho, Wo = H // 2, W // 2
    wp = Wo + 2

    cout_real = params["conv_s"][0].shape[0]
    cmid_real = params["conv_1"][0].shape[0]
    cin_p = _round_up(Cin, LANE)
    cmid_p = _round_up(cmid_real, LANE)
    cout_p = _round_up(cout_real, LANE)

    cap = _vmem_capacity_bytes()
    tho = _pick_tile_rows(Ho, Wo, wp, cin_p, cmid_p, cout_p, cap // 3)
    vmem_limit = int(cap * 0.75)
    T = Ho // tho
    count = float(N * Ho * Wo)

    # TODO(synk): the NCHW->NHWC transpose + channel zero-pad of x are still host-side XLA
    # copies; fusing them into the pool kernel would remove ~cin_p/Cin x HBM traffic on the
    # raw input when Cin << 128.
    x = jnp.transpose(x_nchw, (0, 2, 3, 1)).astype(jnp.float32)
    x = jnp.pad(x, ((0, 0), (0, 0), (0, 0), (0, cin_p - Cin)))
    xr = x.reshape(N, H, Wo, 2 * cin_p)                              # free reshape

    # fused 2x2 max-pool (wp-strided bf16 output) + partial BN statistics of p
    p_rows, p_stats = _maxpool_stats(xr, tho, wp, vmem_limit)        # (N, Ho, wp, cin_p)
    p_flat = p_rows.reshape(N, Ho * wp, cin_p)                       # free view
    mask = _make_mask(T, tho, wp, Ho, Wo)

    # shortcut = spectral_norm(Conv)(BN_s(p))
    gs, bs = params["bn_s"]
    ws, bws = params["conv_s"]
    scale_s, shift_s = _bn_fold(p_stats, gs, bs, count, cin_p)
    wsm, bsm = _prep_conv(ws, bws, cin_p, cout_p)
    shortcut = _conv_bn3x3(p_flat, p_rows, mask, scale_s, shift_s, wsm, bsm,
                           tho=tho, wp=wp, relu=False, vmem_limit=vmem_limit)

    # y1 = Conv(ReLU(BN_1(p))), with fused partial stats for BN_2
    g1, b1 = params["bn_1"]
    w1, bw1 = params["conv_1"]
    scale_1, shift_1 = _bn_fold(p_stats, g1, b1, count, cin_p)
    w1m, b1m = _prep_conv(w1, bw1, cin_p, cmid_p)
    y1, y1_stats = _conv_bn3x3(p_flat, p_rows, mask, scale_1, shift_1, w1m, b1m,
                               tho=tho, wp=wp, relu=True, want_stats=True,
                               vmem_limit=vmem_limit)
    y1_rows = y1.reshape(N, Ho, wp, cmid_p)                          # free view, no strip

    # out = Conv(ReLU(BN_2(y1))) + shortcut   (residual fused into the conv epilogue)
    g2, b2 = params["bn_2"]
    w2, bw2 = params["conv_2"]
    scale_2, shift_2 = _bn_fold(y1_stats, g2, b2, count, cmid_p)
    w2m, b2m = _prep_conv(w2, bw2, cmid_p, cout_p)
    out = _conv_bn3x3(y1, y1_rows, mask, scale_2, shift_2, w2m, b2m,
                      tho=tho, wp=wp, relu=True, residual=shortcut,
                      vmem_limit=vmem_limit)

    out = out.reshape(N, Ho, wp, cout_p)[:, :, 1:1 + Wo, :cout_real]
    return jnp.transpose(out, (0, 3, 1, 2)).astype(jnp.float32)      # NHWC -> NCHW


# pure-JAX reference (independent of the Pallas path) for a sanity check
def down_reference(x_nchw, params):
    x = jnp.transpose(x_nchw, (0, 2, 3, 1)).astype(jnp.float32)
    p = lax.reduce_window(x, -jnp.inf, lax.max, (1, 2, 2, 1), (1, 2, 2, 1), "VALID")

    def bn(t, g, b):
        m = t.mean(axis=(0, 1, 2))
        v = t.var(axis=(0, 1, 2))
        return (t - m) / jnp.sqrt(v + EPS) * g + b

    def conv(t, w, b):
        return lax.conv_general_dilated(
            t, jnp.transpose(w, (2, 3, 1, 0)), (1, 1), "SAME",
            dimension_numbers=("NHWC", "HWIO", "NHWC")) + b

    gs, bs = params["bn_s"]; ws, bws = params["conv_s"]
    sc = conv(bn(p, gs, bs), ws, bws)
    g1, b1 = params["bn_1"]; w1, bw1 = params["conv_1"]
    y1 = conv(jax.nn.relu(bn(p, g1, b1)), w1, bw1)
    g2, b2 = params["bn_2"]; w2, bw2 = params["conv_2"]
    y2 = conv(jax.nn.relu(bn(y1, g2, b2)), w2, bw2)
    return jnp.transpose(y2 + sc, (0, 3, 1, 2))


if __name__ == "__main__":
    key = jax.random.PRNGKey(0)
    kx, kp = jax.random.split(key)

    N, Cin, H, W = 2, 4, 16, 16
    Cout = 8
    x = jax.random.normal(kx, (N, Cin, H, W), jnp.float32)
    params = init_down_params(kp, Cin, Cout)

    out = jax.block_until_ready(down_forward(x, params))
    assert out.shape == (N, Cout, H // 2, W // 2), out.shape

    ref = jax.block_until_ready(down_reference(x, params))
    np.testing.assert_allclose(np.asarray(out), np.asarray(ref), rtol=4e-2, atol=4e-2)

    print("KERNEL_OK")
</pallas_src>

<mosaic_0001>
module attributes {stable_mosaic.version = 11 : i64} {
  func.func @_pool_stats_kernel(%arg0: i32, %arg1: i32, %arg2: memref<1x16x8x256xf32, #tpu.memory_space<vmem>>, %arg3: memref<1x8x10x128xbf16, #tpu.memory_space<vmem>>, %arg4: memref<1x1x1x256xf32, #tpu.memory_space<vmem>>) attributes {dimension_semantics = [#tpu.dimension_semantics<parallel>, #tpu.dimension_semantics<parallel>], iteration_bounds = array<i64: 2, 1>, scalar_prefetch = 0 : i64, scratch_operands = 0 : i64, tpu.core_type = #tpu.core_type<tc>, window_params = [{transform_indices = @transform_0, window_bounds = array<i64: 1, 16, 8, 256>}, {transform_indices = @transform_1, window_bounds = array<i64: 1, 8, 10, 128>}, {transform_indices = @transform_2, window_bounds = array<i64: 1, 1, 1, 256>}]} {
    %c0 = arith.constant 0 : index
    %c0_0 = arith.constant 0 : index
    %c0_1 = arith.constant 0 : index
    %c0_2 = arith.constant 0 : index
    %0 = vector.load %arg2[%c0, %c0_0, %c0_1, %c0_2] : memref<1x16x8x256xf32, #tpu.memory_space<vmem>>, vector<1x16x8x256xf32>
    %1 = vector.shape_cast %0 : vector<1x16x8x256xf32> to vector<16x8x256xf32>
    %2 = vector.extract_strided_slice %1 {offsets = [0, 0, 0], sizes = [16, 8, 128], strides = [1, 1, 1]} : vector<16x8x256xf32> to vector<16x8x128xf32>
    %3 = vector.extract_strided_slice %1 {offsets = [0, 0, 128], sizes = [16, 8, 128], strides = [1, 1, 1]} : vector<16x8x256xf32> to vector<16x8x128xf32>
    %4 = arith.maximumf %2, %3 : vector<16x8x128xf32>
    %5 = vector.shape_cast %4 : vector<16x8x128xf32> to vector<8x2x8x128xf32>
    %6 = vector.extract_strided_slice %5 {offsets = [0, 0, 0, 0], sizes = [8, 1, 8, 128], strides = [1, 1, 1, 1]} : vector<8x2x8x128xf32> to vector<8x1x8x128xf32>
    %7 = vector.shape_cast %6 : vector<8x1x8x128xf32> to vector<8x8x128xf32>
    %8 = vector.extract_strided_slice %5 {offsets = [0, 1, 0, 0], sizes = [8, 1, 8, 128], strides = [1, 1, 1, 1]} : vector<8x2x8x128xf32> to vector<8x1x8x128xf32>
    %9 = vector.shape_cast %8 : vector<8x1x8x128xf32> to vector<8x8x128xf32>
    %10 = arith.maximumf %7, %9 : vector<8x8x128xf32>
    %11 = arith.truncf %10 : vector<8x8x128xf32> to vector<8x8x128xbf16>
    %c0_3 = arith.constant 0 : index
    %c0_4 = arith.constant 0 : index
    %c1 = arith.constant 1 : index
    %c0_5 = arith.constant 0 : index
    %12 = vector.load %arg3[%c0_3, %c0_4, %c1, %c0_5] : memref<1x8x10x128xbf16, #tpu.memory_space<vmem>>, vector<1x8x8x128xbf16>
    %13 = vector.shape_cast %12 : vector<1x8x8x128xbf16> to vector<8x8x128xbf16>
    %14 = vector.shape_cast %11 : vector<8x8x128xbf16> to vector<1x8x8x128xbf16>
    tpu.vector_store %arg3[%c0_3, %c0_4, %c1, %c0_5], %14 {strides = array<i32>} : memref<1x8x10x128xbf16, #tpu.memory_space<vmem>>, vector<1x8x8x128xbf16>,
    %cst = arith.constant 0.000000e+00 : bf16
    %15 = vector.broadcast %cst : bf16 to vector<8x1x128xbf16>
    %c0_6 = arith.constant 0 : index
    %c0_7 = arith.constant 0 : index
    %c0_8 = arith.constant 0 : index
    %c0_9 = arith.constant 0 : index
    %16 = vector.load %arg3[%c0_6, %c0_7, %c0_8, %c0_9] : memref<1x8x10x128xbf16, #tpu.memory_space<vmem>>, vector<1x8x1x128xbf16>
    %17 = vector.shape_cast %16 : vector<1x8x1x128xbf16> to vector<8x1x128xbf16>
    %18 = vector.shape_cast %15 : vector<8x1x128xbf16> to vector<1x8x1x128xbf16>
    tpu.vector_store %arg3[%c0_6, %c0_7, %c0_8, %c0_9], %18 {strides = array<i32>} : memref<1x8x10x128xbf16, #tpu.memory_space<vmem>>, vector<1x8x1x128xbf16>,
    %cst_10 = arith.constant 0.000000e+00 : bf16
    %19 = vector.broadcast %cst_10 : bf16 to vector<8x1x128xbf16>
    %c0_11 = arith.constant 0 : index
    %c0_12 = arith.constant 0 : index
    %c9 = arith.constant 9 : index
    %c0_13 = arith.constant 0 : index
    %20 = vector.load %arg3[%c0_11, %c0_12, %c9, %c0_13] : memref<1x8x10x128xbf16, #tpu.memory_space<vmem>>, vector<1x8x1x128xbf16>
    %21 = vector.shape_cast %20 : vector<1x8x1x128xbf16> to vector<8x1x128xbf16>
    %22 = vector.shape_cast %19 : vector<8x1x128xbf16> to vector<1x8x1x128xbf16>
    tpu.vector_store %arg3[%c0_11, %c0_12, %c9, %c0_13], %22 {strides = array<i32>} : memref<1x8x10x128xbf16, #tpu.memory_space<vmem>>, vector<1x8x1x128xbf16>,
    %cst_14 = arith.constant dense<0.000000e+00> : vector<8x128xf32>
    %23 = vector.multi_reduction <add>, %10, %cst_14 [0] : vector<8x8x128xf32> to vector<8x128xf32>
    %cst_15 = arith.constant dense<0.000000e+00> : vector<128xf32>
    %24 = vector.multi_reduction <add>, %23, %cst_15 [0] : vector<8x128xf32> to vector<128xf32>
    %25 = vector.shape_cast %24 : vector<128xf32> to vector<1x128xf32>
    %26 = arith.mulf %10, %10 : vector<8x8x128xf32>
    %cst_16 = arith.constant dense<0.000000e+00> : vector<8x128xf32>
    %27 = vector.multi_reduction <add>, %26, %cst_16 [0] : vector<8x8x128xf32> to vector<8x128xf32>
    %cst_17 = arith.constant dense<0.000000e+00> : vector<128xf32>
    %28 = vector.multi_reduction <add>, %27, %cst_17 [0] : vector<8x128xf32> to vector<128xf32>
    %29 = vector.shape_cast %28 : vector<128xf32> to vector<1x128xf32>
    %c0_18 = arith.constant 0 : index
    %c0_19 = arith.constant 0 : index
    %c0_20 = arith.constant 0 : index
    %c0_21 = arith.constant 0 : index
    %30 = vector.load %arg4[%c0_18, %c0_19, %c0_20, %c0_21] : memref<1x1x1x256xf32, #tpu.memory_space<vmem>>, vector<1x1x1x128xf32>
    %31 = vector.shape_cast %30 : vector<1x1x1x128xf32> to vector<1x128xf32>
    %32 = vector.shape_cast %25 : vector<1x128xf32> to vector<1x1x1x128xf32>
    tpu.vector_store %arg4[%c0_18, %c0_19, %c0_20, %c0_21], %32 {strides = array<i32>} : memref<1x1x1x256xf32, #tpu.memory_space<vmem>>, vector<1x1x1x128xf32>,
    %c0_22 = arith.constant 0 : index
    %c0_23 = arith.constant 0 : index
    %c0_24 = arith.constant 0 : index
    %c128 = arith.constant 128 : index
    %33 = vector.load %arg4[%c0_22, %c0_23, %c0_24, %c128] : memref<1x1x1x256xf32, #tpu.memory_space<vmem>>, vector<1x1x1x128xf32>
    %34 = vector.shape_cast %33 : vector<1x1x1x128xf32> to vector<1x128xf32>
    %35 = vector.shape_cast %29 : vector<1x128xf32> to vector<1x1x1x128xf32>
    tpu.vector_store %arg4[%c0_22, %c0_23, %c0_24, %c128], %35 {strides = array<i32>} : memref<1x1x1x256xf32, #tpu.memory_space<vmem>>, vector<1x1x1x128xf32>,
    return
  }
  func.func @transform_0(%arg0: i32, %arg1: i32) -> (i32, i32, i32, i32) {
    %c0_i32 = arith.constant 0 : i32
    %c0_i32_0 = arith.constant 0 : i32
    %c0_i32_1 = arith.constant 0 : i32
    return %arg0, %arg1, %c0_i32, %c0_i32_0 : i32, i32, i32, i32
  }
  func.func @transform_1(%arg0: i32, %arg1: i32) -> (i32, i32, i32, i32) {
    %c0_i32 = arith.constant 0 : i32
    %c0_i32_0 = arith.constant 0 : i32
    %c0_i32_1 = arith.constant 0 : i32
    return %arg0, %arg1, %c0_i32, %c0_i32_0 : i32, i32, i32, i32
  }
  func.func @transform_2(%arg0: i32, %arg1: i32) -> (i32, i32, i32, i32) {
    %c0_i32 = arith.constant 0 : i32
    %c0_i32_0 = arith.constant 0 : i32
    %c0_i32_1 = arith.constant 0 : i32
    return %arg0, %arg1, %c0_i32, %c0_i32_0 : i32, i32, i32, i32
  }
}

module attributes {stable_mosaic.version = 11 : i64} {
  func.func @_conv_bn3x3_kernel(%arg0: i32, %arg1: i32, %arg2: memref<1x80x128xbf16, #tpu.memory_space<vmem>>, %arg3: memref<1x1x10x128xbf16, #tpu.memory_space<vmem>>, %arg4: memref<1x1x10x128xbf16, #tpu.memory_space<vmem>>, %arg5: memref<1x100x1xf32, #tpu.memory_space<vmem>>, %arg6: memref<1x128xf32, #tpu.memory_space<vmem>>, %arg7: memref<1x128xf32, #tpu.memory_space<vmem>>, %arg8: memref<9x128x128xbf16, #tpu.memory_space<vmem>>, %arg9: memref<1x128xf32, #tpu.memory_space<vmem>>, %arg10: memref<1x80x128xbf16, #tpu.memory_space<vmem>>, %arg11: memref<1x1x1x256xf32, #tpu.memory_space<vmem>>, %arg12: memref<104x128xbf16, #tpu.memory_space<vmem>>) attributes {dimension_semantics = [#tpu.dimension_semantics<parallel>, #tpu.dimension_semantics<parallel>], iteration_bounds = array<i64: 2, 1>, scalar_prefetch = 0 : i64, scratch_operands = 1 : i64, tpu.core_type = #tpu.core_type<tc>, window_params = [{transform_indices = @transform_0, window_bounds = array<i64: 1, 80, 128>}, {transform_indices = @transform_1, window_bounds = array<i64: 1, 1, 10, 128>}, {transform_indices = @transform_2, window_bounds = array<i64: 1, 1, 10, 128>}, {transform_indices = @transform_3, window_bounds = array<i64: 1, 100, 1>}, {pipeline_mode = #tpu.pipeline_mode<synchronous>, transform_indices = @transform_4, window_bounds = array<i64: 1, 128>}, {pipeline_mode = #tpu.pipeline_mode<synchronous>, transform_indices = @transform_5, window_bounds = array<i64: 1, 128>}, {pipeline_mode = #tpu.pipeline_mode<synchronous>, transform_indices = @transform_6, window_bounds = array<i64: 9, 128, 128>}, {pipeline_mode = #tpu.pipeline_mode<synchronous>, transform_indices = @transform_7, window_bounds = array<i64: 1, 128>}, {transform_indices = @transform_8, window_bounds = array<i64: 1, 80, 128>}, {transform_indices = @transform_9, window_bounds = array<i64: 1, 1, 1, 256>}]} {
    %c0 = arith.constant 0 : index
    %c0_0 = arith.constant 0 : index
    %0 = vector.load %arg6[%c0, %c0_0] : memref<1x128xf32, #tpu.memory_space<vmem>>, vector<1x128xf32>
    %c0_1 = arith.constant 0 : index
    %c0_2 = arith.constant 0 : index
    %1 = vector.load %arg7[%c0_1, %c0_2] : memref<1x128xf32, #tpu.memory_space<vmem>>, vector<1x128xf32>
    %cst = arith.constant 0.000000e+00 : bf16
    %2 = vector.broadcast %cst : bf16 to vector<1x128xbf16>
    %c0_3 = arith.constant 0 : index
    %c0_4 = arith.constant 0 : index
    %3 = vector.load %arg12[%c0_3, %c0_4] : memref<104x128xbf16, #tpu.memory_space<vmem>>, vector<1x128xbf16>
    tpu.vector_store %arg12[%c0_3, %c0_4], %2 {strides = array<i32>} : memref<104x128xbf16, #tpu.memory_space<vmem>>, vector<1x128xbf16>,
    %cst_5 = arith.constant 0.000000e+00 : bf16
    %4 = vector.broadcast %cst_5 : bf16 to vector<3x128xbf16>
    %c101 = arith.constant 101 : index
    %c0_6 = arith.constant 0 : index
    %5 = vector.load %arg12[%c101, %c0_6] : memref<104x128xbf16, #tpu.memory_space<vmem>>, vector<3x128xbf16>
    tpu.vector_store %arg12[%c101, %c0_6], %4 {strides = array<i32>} : memref<104x128xbf16, #tpu.memory_space<vmem>>, vector<3x128xbf16>,
    %c0_7 = arith.constant 0 : index
    %c0_8 = arith.constant 0 : index
    %c0_9 = arith.constant 0 : index
    %c0_10 = arith.constant 0 : index
    %6 = vector.load %arg3[%c0_7, %c0_8, %c0_9, %c0_10] : memref<1x1x10x128xbf16, #tpu.memory_space<vmem>>, vector<1x1x10x128xbf16>
    %7 = vector.shape_cast %6 : vector<1x1x10x128xbf16> to vector<10x128xbf16>
    %c0_11 = arith.constant 0 : index
    %c0_12 = arith.constant 0 : index
    %c0_13 = arith.constant 0 : index
    %8 = vector.load %arg5[%c0_11, %c0_12, %c0_13] : memref<1x100x1xf32, #tpu.memory_space<vmem>>, vector<1x10x1xf32>
    %9 = vector.shape_cast %8 : vector<1x10x1xf32> to vector<10x1xf32>
    %10 = arith.extf %7 : vector<10x128xbf16> to vector<10x128xf32>
    %11 = vector.broadcast %0 : vector<1x128xf32> to vector<10x128xf32>
    %12 = arith.mulf %10, %11 : vector<10x128xf32>
    %13 = vector.broadcast %1 : vector<1x128xf32> to vector<10x128xf32>
    %14 = arith.addf %12, %13 : vector<10x128xf32>
    %cst_14 = arith.constant 0.000000e+00 : f32
    %15 = vector.broadcast %cst_14 : f32 to vector<10x128xf32>
    %16 = arith.maximumf %14, %15 : vector<10x128xf32>
    %17 = vector.broadcast %9 : vector<10x1xf32> to vector<10x128xf32>
    %18 = arith.mulf %16, %17 : vector<10x128xf32>
    %19 = arith.truncf %18 : vector<10x128xf32> to vector<10x128xbf16>
    %c1 = arith.constant 1 : index
    %c0_15 = arith.constant 0 : index
    %20 = vector.load %arg12[%c1, %c0_15] : memref<104x128xbf16, #tpu.memory_space<vmem>>, vector<10x128xbf16>
    tpu.vector_store %arg12[%c1, %c0_15], %19 {strides = array<i32>} : memref<104x128xbf16, #tpu.memory_space<vmem>>, vector<10x128xbf16>,
    %c0_16 = arith.constant 0 : index
    %c0_17 = arith.constant 0 : index
    %c0_18 = arith.constant 0 : index
    %21 = vector.load %arg2[%c0_16, %c0_17, %c0_18] : memref<1x80x128xbf16, #tpu.memory_space<vmem>>, vector<1x80x128xbf16>
    %22 = vector.shape_cast %21 : vector<1x80x128xbf16> to vector<80x128xbf16>
    %c0_19 = arith.constant 0 : index
    %c10 = arith.constant 10 : index
    %c0_20 = arith.constant 0 : index
    %23 = vector.load %arg5[%c0_19, %c10, %c0_20] : memref<1x100x1xf32, #tpu.memory_space<vmem>>, vector<1x80x1xf32>
    %24 = vector.shape_cast %23 : vector<1x80x1xf32> to vector<80x1xf32>
    %25 = arith.extf %22 : vector<80x128xbf16> to vector<80x128xf32>
    %26 = vector.broadcast %0 : vector<1x128xf32> to vector<80x128xf32>
    %27 = arith.mulf %25, %26 : vector<80x128xf32>
    %28 = vector.broadcast %1 : vector<1x128xf32> to vector<80x128xf32>
    %29 = arith.addf %27, %28 : vector<80x128xf32>
    %cst_21 = arith.constant 0.000000e+00 : f32
    %30 = vector.broadcast %cst_21 : f32 to vector<80x128xf32>
    %31 = arith.maximumf %29, %30 : vector<80x128xf32>
    %32 = vector.broadcast %24 : vector<80x1xf32> to vector<80x128xf32>
    %33 = arith.mulf %31, %32 : vector<80x128xf32>
    %34 = arith.truncf %33 : vector<80x128xf32> to vector<80x128xbf16>
    %c11 = arith.constant 11 : index
    %c0_22 = arith.constant 0 : index
    %35 = vector.load %arg12[%c11, %c0_22] : memref<104x128xbf16, #tpu.memory_space<vmem>>, vector<80x128xbf16>
    tpu.vector_store %arg12[%c11, %c0_22], %34 {strides = array<i32>} : memref<104x128xbf16, #tpu.memory_space<vmem>>, vector<80x128xbf16>,
    %c0_23 = arith.constant 0 : index
    %c0_24 = arith.constant 0 : index
    %c0_25 = arith.constant 0 : index
    %c0_26 = arith.constant 0 : index
    %36 = vector.load %arg4[%c0_23, %c0_24, %c0_25, %c0_26] : memref<1x1x10x128xbf16, #tpu.memory_space<vmem>>, vector<1x1x10x128xbf16>
    %37 = vector.shape_cast %36 : vector<1x1x10x128xbf16> to vector<10x128xbf16>
    %c0_27 = arith.constant 0 : index
    %c90 = arith.constant 90 : index
    %c0_28 = arith.constant 0 : index
    %38 = vector.load %arg5[%c0_27, %c90, %c0_28] : memref<1x100x1xf32, #tpu.memory_space<vmem>>, vector<1x10x1xf32>
    %39 = vector.shape_cast %38 : vector<1x10x1xf32> to vector<10x1xf32>
    %40 = arith.extf %37 : vector<10x128xbf16> to vector<10x128xf32>
    %41 = vector.broadcast %0 : vector<1x128xf32> to vector<10x128xf32>
    %42 = arith.mulf %40, %41 : vector<10x128xf32>
    %43 = vector.broadcast %1 : vector<1x128xf32> to vector<10x128xf32>
    %44 = arith.addf %42, %43 : vector<10x128xf32>
    %cst_29 = arith.constant 0.000000e+00 : f32
    %45 = vector.broadcast %cst_29 : f32 to vector<10x128xf32>
    %46 = arith.maximumf %44, %45 : vector<10x128xf32>
    %47 = vector.broadcast %39 : vector<10x1xf32> to vector<10x128xf32>
    %48 = arith.mulf %46, %47 : vector<10x128xf32>
    %49 = arith.truncf %48 : vector<10x128xf32> to vector<10x128xbf16>
    %c91 = arith.constant 91 : index
    %c0_30 = arith.constant 0 : index
    %50 = vector.load %arg12[%c91, %c0_30] : memref<104x128xbf16, #tpu.memory_space<vmem>>, vector<10x128xbf16>
    tpu.vector_store %arg12[%c91, %c0_30], %49 {strides = array<i32>} : memref<104x128xbf16, #tpu.memory_space<vmem>>, vector<10x128xbf16>,
    %c0_31 = arith.constant 0 : index
    %c0_32 = arith.constant 0 : index
    %51 = vector.load %arg9[%c0_31, %c0_32] : memref<1x128xf32, #tpu.memory_space<vmem>>, vector<1x128xf32>
    %cst_33 = arith.constant 0.000000e+00 : f32
    %52 = vector.broadcast %cst_33 : f32 to vector<1x128xf32>
    %cst_34 = arith.constant 0.000000e+00 : f32
    %53 = vector.broadcast %cst_34 : f32 to vector<1x128xf32>
    %cst_35 = arith.constant 0.000000e+00 : f32
    %54 = vector.broadcast %cst_35 : f32 to vector<80x128xf32>
    %c0_36 = arith.constant 0 : index
    %c0_37 = arith.constant 0 : index
    %55 = vector.load %arg12[%c0_36, %c0_37] : memref<104x128xbf16, #tpu.memory_space<vmem>>, vector<80x128xbf16>
    %c0_38 = arith.constant 0 : index
    %c0_39 = arith.constant 0 : index
    %c0_40 = arith.constant 0 : index
    %56 = vector.load %arg8[%c0_38, %c0_39, %c0_40] : memref<9x128x128xbf16, #tpu.memory_space<vmem>>, vector<1x128x128xbf16>
    %57 = vector.shape_cast %56 : vector<1x128x128xbf16> to vector<128x128xbf16>
    %cst_41 = arith.constant dense<0.000000e+00> : vector<80x128xf32>
    %58 = tpu.matmul %55, %57, %cst_41 {dimension_numbers = #tpu.dot_dimension_numbers<[1], [0], [0], [1], [0, 0, 1, 1], [], []>} : vector<80x128xbf16>, vector<128x128xbf16>, vector<80x128xf32> -> vector<80x128xf32>
    %59 = arith.addf %54, %58 : vector<80x128xf32>
    %c1_42 = arith.constant 1 : index
    %c0_43 = arith.constant 0 : index
    %60 = vector.load %arg12[%c1_42, %c0_43] : memref<104x128xbf16, #tpu.memory_space<vmem>>, vector<80x128xbf16>
    %c1_44 = arith.constant 1 : index
    %c0_45 = arith.constant 0 : index
    %c0_46 = arith.constant 0 : index
    %61 = vector.load %arg8[%c1_44, %c0_45, %c0_46] : memref<9x128x128xbf16, #tpu.memory_space<vmem>>, vector<1x128x128xbf16>
    %62 = vector.shape_cast %61 : vector<1x128x128xbf16> to vector<128x128xbf16>
    %cst_47 = arith.constant dense<0.000000e+00> : vector<80x128xf32>
    %63 = tpu.matmul %60, %62, %cst_47 {dimension_numbers = #tpu.dot_dimension_numbers<[1], [0], [0], [1], [0, 0, 1, 1], [], []>} : vector<80x128xbf16>, vector<128x128xbf16>, vector<80x128xf32> -> vector<80x128xf32>
    %64 = arith.addf %59, %63 : vector<80x128xf32>
    %c2 = arith.constant 2 : index
    %c0_48 = arith.constant 0 : index
    %65 = vector.load %arg12[%c2, %c0_48] : memref<104x128xbf16, #tpu.memory_space<vmem>>, vector<80x128xbf16>
    %c2_49 = arith.constant 2 : index
    %c0_50 = arith.constant 0 : index
    %c0_51 = arith.constant 0 : index
    %66 = vector.load %arg8[%c2_49, %c0_50, %c0_51] : memref<9x128x128xbf16, #tpu.memory_space<vmem>>, vector<1x128x128xbf16>
    %67 = vector.shape_cast %66 : vector<1x128x128xbf16> to vector<128x128xbf16>
    %cst_52 = arith.constant dense<0.000000e+00> : vector<80x128xf32>
    %68 = tpu.matmul %65, %67, %cst_52 {dimension_numbers = #tpu.dot_dimension_numbers<[1], [0], [0], [1], [0, 0, 1, 1], [], []>} : vector<80x128xbf16>, vector<128x128xbf16>, vector<80x128xf32> -> vector<80x128xf32>
    %69 = arith.addf %64, %68 : vector<80x128xf32>
    %c10_53 = arith.constant 10 : index
    %c0_54 = arith.constant 0 : index
    %70 = vector.load %arg12[%c10_53, %c0_54] : memref<104x128xbf16, #tpu.memory_space<vmem>>, vector<80x128xbf16>
    %c3 = arith.constant 3 : index
    %c0_55 = arith.constant 0 : index
    %c0_56 = arith.constant 0 : index
    %71 = vector.load %arg8[%c3, %c0_55, %c0_56] : memref<9x128x128xbf16, #tpu.memory_space<vmem>>, vector<1x128x128xbf16>
    %72 = vector.shape_cast %71 : vector<1x128x128xbf16> to vector<128x128xbf16>
    %cst_57 = arith.constant dense<0.000000e+00> : vector<80x128xf32>
    %73 = tpu.matmul %70, %72, %cst_57 {dimension_numbers = #tpu.dot_dimension_numbers<[1], [0], [0], [1], [0, 0, 1, 1], [], []>} : vector<80x128xbf16>, vector<128x128xbf16>, vector<80x128xf32> -> vector<80x128xf32>
    %74 = arith.addf %69, %73 : vector<80x128xf32>
    %c11_58 = arith.constant 11 : index
    %c0_59 = arith.constant 0 : index
    %75 = vector.load %arg12[%c11_58, %c0_59] : memref<104x128xbf16, #tpu.memory_space<vmem>>, vector<80x128xbf16>
    %c4 = arith.constant 4 : index
    %c0_60 = arith.constant 0 : index
    %c0_61 = arith.constant 0 : index
    %76 = vector.load %arg8[%c4, %c0_60, %c0_61] : memref<9x128x128xbf16, #tpu.memory_space<vmem>>, vector<1x128x128xbf16>
    %77 = vector.shape_cast %76 : vector<1x128x128xbf16> to vector<128x128xbf16>
    %cst_62 = arith.constant dense<0.000000e+00> : vector<80x128xf32>
    %78 = tpu.matmul %75, %77, %cst_62 {dimension_numbers = #tpu.dot_dimension_numbers<[1], [0], [0], [1], [0, 0, 1, 1], [], []>} : vector<80x128xbf16>, vector<128x128xbf16>, vector<80x128xf32> -> vector<80x128xf32>
    %79 = arith.addf %74, %78 : vector<80x128xf32>
    %c12 = arith.constant 12 : index
    %c0_63 = arith.constant 0 : index
    %80 = vector.load %arg12[%c12, %c0_63] : memref<104x128xbf16, #tpu.memory_space<vmem>>, vector<80x128xbf16>
    %c5 = arith.constant 5 : index
    %c0_64 = arith.constant 0 : index
    %c0_65 = arith.constant 0 : index
    %81 = vector.load %arg8[%c5, %c0_64, %c0_65] : memref<9x128x128xbf16, #tpu.memory_space<vmem>>, vector<1x128x128xbf16>
    %82 = vector.shape_cast %81 : vector<1x128x128xbf16> to vector<128x128xbf16>
    %cst_66 = arith.constant dense<0.000000e+00> : vector<80x128xf32>
    %83 = tpu.matmul %80, %82, %cst_66 {dimension_numbers = #tpu.dot_dimension_numbers<[1], [0], [0], [1], [0, 0, 1, 1], [], []>} : vector<80x128xbf16>, vector<128x128xbf16>, vector<80x128xf32> -> vector<80x128xf32>
    %84 = arith.addf %79, %83 : vector<80x128xf32>
    %c20 = arith.constant 20 : index
    %c0_67 = arith.constant 0 : index
    %85 = vector.load %arg12[%c20, %c0_67] : memref<104x128xbf16, #tpu.memory_space<vmem>>, vector<80x128xbf16>
    %c6 = arith.constant 6 : index
    %c0_68 = arith.constant 0 : index
    %c0_69 = arith.constant 0 : index
    %86 = vector.load %arg8[%c6, %c0_68, %c0_69] : memref<9x128x128xbf16, #tpu.memory_space<vmem>>, vector<1x128x128xbf16>
    %87 = vector.shape_cast %86 : vector<1x128x128xbf16> to vector<128x128xbf16>
    %cst_70 = arith.constant dense<0.000000e+00> : vector<80x128xf32>
    %88 = tpu.matmul %85, %87, %cst_70 {dimension_numbers = #tpu.dot_dimension_numbers<[1], [0], [0], [1], [0, 0, 1, 1], [], []>} : vector<80x128xbf16>, vector<128x128xbf16>, vector<80x128xf32> -> vector<80x128xf32>
    %89 = arith.addf %84, %88 : vector<80x128xf32>
    %c21 = arith.constant 21 : index
    %c0_71 = arith.constant 0 : index
    %90 = vector.load %arg12[%c21, %c0_71] : memref<104x128xbf16, #tpu.memory_space<vmem>>, vector<80x128xbf16>
    %c7 = arith.constant 7 : index
    %c0_72 = arith.constant 0 : index
    %c0_73 = arith.constant 0 : index
    %91 = vector.load %arg8[%c7, %c0_72, %c0_73] : memref<9x128x128xbf16, #tpu.memory_space<vmem>>, vector<1x128x128xbf16>
    %92 = vector.shape_cast %91 : vector<1x128x128xbf16> to vector<128x128xbf16>
    %cst_74 = arith.constant dense<0.000000e+00> : vector<80x128xf32>
    %93 = tpu.matmul %90, %92, %cst_74 {dimension_numbers = #tpu.dot_dimension_numbers<[1], [0], [0], [1], [0, 0, 1, 1], [], []>} : vector<80x128xbf16>, vector<128x128xbf16>, vector<80x128xf32> -> vector<80x128xf32>
    %94 = arith.addf %89, %93 : vector<80x128xf32>
    %c22 = arith.constant 22 : index
    %c0_75 = arith.constant 0 : index
    %95 = vector.load %arg12[%c22, %c0_75] : memref<104x128xbf16, #tpu.memory_space<vmem>>, vector<80x128xbf16>
    %c8 = arith.constant 8 : index
    %c0_76 = arith.constant 0 : index
    %c0_77 = arith.constant 0 : index
    %96 = vector.load %arg8[%c8, %c0_76, %c0_77] : memref<9x128x128xbf16, #tpu.memory_space<vmem>>, vector<1x128x128xbf16>
    %97 = vector.shape_cast %96 : vector<1x128x128xbf16> to vector<128x128xbf16>
    %cst_78 = arith.constant dense<0.000000e+00> : vector<80x128xf32>
    %98 = tpu.matmul %95, %97, %cst_78 {dimension_numbers = #tpu.dot_dimension_numbers<[1], [0], [0], [1], [0, 0, 1, 1], [], []>} : vector<80x128xbf16>, vector<128x128xbf16>, vector<80x128xf32> -> vector<80x128xf32>
    %99 = arith.addf %94, %98 : vector<80x128xf32>
    %c0_79 = arith.constant 0 : index
    %c10_80 = arith.constant 10 : index
    %c0_81 = arith.constant 0 : index
    %100 = vector.load %arg5[%c0_79, %c10_80, %c0_81] : memref<1x100x1xf32, #tpu.memory_space<vmem>>, vector<1x80x1xf32>
    %101 = vector.shape_cast %100 : vector<1x80x1xf32> to vector<80x1xf32>
    %cst_82 = arith.constant 0.000000e+00 : f32
    %102 = vector.broadcast %cst_82 : f32 to vector<80x1xf32>
    %103 = arith.cmpf ogt, %101, %102 : vector<80x1xf32>
    %104 = vector.broadcast %51 : vector<1x128xf32> to vector<80x128xf32>
    %105 = arith.addf %99, %104 : vector<80x128xf32>
    %cst_83 = arith.constant 0.000000e+00 : f32
    %106 = vector.shape_cast %103 : vector<80x1xi1> to vector<80x1xi1>
    %107 = vector.broadcast %106 : vector<80x1xi1> to vector<80x128xi1>
    %108 = vector.broadcast %cst_83 : f32 to vector<80x128xf32>
    %109 = arith.select %107, %105, %108 : vector<80x128xi1>, vector<80x128xf32>
    %cst_84 = arith.constant dense<0.000000e+00> : vector<128xf32>
    %110 = vector.multi_reduction <add>, %109, %cst_84 [0] : vector<80x128xf32> to vector<128xf32>
    %111 = vector.shape_cast %110 : vector<128xf32> to vector<1x128xf32>
    %112 = arith.addf %52, %111 : vector<1x128xf32>
    %113 = arith.mulf %109, %109 : vector<80x128xf32>
    %cst_85 = arith.constant dense<0.000000e+00> : vector<128xf32>
    %114 = vector.multi_reduction <add>, %113, %cst_85 [0] : vector<80x128xf32> to vector<128xf32>
    %115 = vector.shape_cast %114 : vector<128xf32> to vector<1x128xf32>
    %116 = arith.addf %53, %115 : vector<1x128xf32>
    %117 = arith.truncf %109 : vector<80x128xf32> to vector<80x128xbf16>
    %c0_86 = arith.constant 0 : index
    %c0_87 = arith.constant 0 : index
    %c0_88 = arith.constant 0 : index
    %118 = vector.load %arg10[%c0_86, %c0_87, %c0_88] : memref<1x80x128xbf16, #tpu.memory_space<vmem>>, vector<1x80x128xbf16>
    %119 = vector.shape_cast %118 : vector<1x80x128xbf16> to vector<80x128xbf16>
    %120 = vector.shape_cast %117 : vector<80x128xbf16> to vector<1x80x128xbf16>
    tpu.vector_store %arg10[%c0_86, %c0_87, %c0_88], %120 {strides = array<i32>} : memref<1x80x128xbf16, #tpu.memory_space<vmem>>, vector<1x80x128xbf16>,
    %c0_89 = arith.constant 0 : index
    %c0_90 = arith.constant 0 : index
    %c0_91 = arith.constant 0 : index
    %c0_92 = arith.constant 0 : index
    %121 = vector.load %arg11[%c0_89, %c0_90, %c0_91, %c0_92] : memref<1x1x1x256xf32, #tpu.memory_space<vmem>>, vector<1x1x1x128xf32>
    %122 = vector.shape_cast %121 : vector<1x1x1x128xf32> to vector<1x128xf32>
    %123 = vector.shape_cast %112 : vector<1x128xf32> to vector<1x1x1x128xf32>
    tpu.vector_store %arg11[%c0_89, %c0_90, %c0_91, %c0_92], %123 {strides = array<i32>} : memref<1x1x1x256xf32, #tpu.memory_space<vmem>>, vector<1x1x1x128xf32>,
    %c0_93 = arith.constant 0 : index
    %c0_94 = arith.constant 0 : index
    %c0_95 = arith.constant 0 : index
    %c128 = arith.constant 128 : index
    %124 = vector.load %arg11[%c0_93, %c0_94, %c0_95, %c128] : memref<1x1x1x256xf32, #tpu.memory_space<vmem>>, vector<1x1x1x128xf32>
    %125 = vector.shape_cast %124 : vector<1x1x1x128xf32> to vector<1x128xf32>
    %126 = vector.shape_cast %116 : vector<1x128xf32> to vector<1x1x1x128xf32>
    tpu.vector_store %arg11[%c0_93, %c0_94, %c0_95, %c128], %126 {strides = array<i32>} : memref<1x1x1x256xf32, #tpu.memory_space<vmem>>, vector<1x1x1x128xf32>,
    return
  }
  func.func @transform_0(%arg0: i32, %arg1: i32) -> (i32, i32, i32) {
    %c0_i32 = arith.constant 0 : i32
    %c0_i32_0 = arith.constant 0 : i32
    return %arg0, %arg1, %c0_i32 : i32, i32, i32
  }
  func.func @transform_1(%arg0: i32, %arg1: i32) -> (i32, i32, i32, i32) {
    %c8_i32 = arith.constant 8 : i32
    %0 = arith.muli %arg1, %c8_i32 : i32
    %c1_i32 = arith.constant 1 : i32
    %1 = arith.subi %0, %c1_i32 : i32
    %c0_i32 = arith.constant 0 : i32
    %2 = arith.maxsi %1, %c0_i32 : i32
    %c0_i32_0 = arith.constant 0 : i32
    %c0_i32_1 = arith.constant 0 : i32
    %c0_i32_2 = arith.constant 0 : i32
    return %arg0, %2, %c0_i32_0, %c0_i32_1 : i32, i32, i32, i32
  }
  func.func @transform_2(%arg0: i32, %arg1: i32) -> (i32, i32, i32, i32) {
    %c1_i32 = arith.constant 1 : i32
    %0 = arith.addi %arg1, %c1_i32 : i32
    %c8_i32 = arith.constant 8 : i32
    %1 = arith.muli %0, %c8_i32 : i32
    %c7_i32 = arith.constant 7 : i32
    %2 = arith.minsi %1, %c7_i32 : i32
    %c0_i32 = arith.constant 0 : i32
    %c0_i32_0 = arith.constant 0 : i32
    %c0_i32_1 = arith.constant 0 : i32
    return %arg0, %2, %c0_i32, %c0_i32_0 : i32, i32, i32, i32
  }
  func.func @transform_3(%arg0: i32, %arg1: i32) -> (i32, i32, i32) {
    %c0_i32 = arith.constant 0 : i32
    %c0_i32_0 = arith.constant 0 : i32
    %c0_i32_1 = arith.constant 0 : i32
    return %arg1, %c0_i32, %c0_i32_0 : i32, i32, i32
  }
  func.func @transform_4(%arg0: i32, %arg1: i32) -> (i32, i32) {
    %c0_i32 = arith.constant 0 : i32
    %c0_i32_0 = arith.constant 0 : i32
    %c0_i32_1 = arith.constant 0 : i32
    return %c0_i32, %c0_i32_0 : i32, i32
  }
  func.func @transform_5(%arg0: i32, %arg1: i32) -> (i32, i32) {
    %c0_i32 = arith.constant 0 : i32
    %c0_i32_0 = arith.constant 0 : i32
    %c0_i32_1 = arith.constant 0 : i32
    return %c0_i32, %c0_i32_0 : i32, i32
  }
  func.func @transform_6(%arg0: i32, %arg1: i32) -> (i32, i32, i32) {
    %c0_i32 = arith.constant 0 : i32
    %c0_i32_0 = arith.constant 0 : i32
    %c0_i32_1 = arith.constant 0 : i32
    %c0_i32_2 = arith.constant 0 : i32
    return %c0_i32, %c0_i32_0, %c0_i32_1 : i32, i32, i32
  }
  func.func @transform_7(%arg0: i32, %arg1: i32) -> (i32, i32) {
    %c0_i32 = arith.constant 0 : i32
    %c0_i32_0 = arith.constant 0 : i32
    %c0_i32_1 = arith.constant 0 : i32
    return %c0_i32, %c0_i32_0 : i32, i32
  }
  func.func @transform_8(%arg0: i32, %arg1: i32) -> (i32, i32, i32) {
    %c0_i32 = arith.constant 0 : i32
    %c0_i32_0 = arith.constant 0 : i32
    return %arg0, %arg1, %c0_i32 : i32, i32, i32
  }
  func.func @transform_9(%arg0: i32, %arg1: i32) -> (i32, i32, i32, i32) {
    %c0_i32 = arith.constant 0 : i32
    %c0_i32_0 = arith.constant 0 : i32
    %c0_i32_1 = arith.constant 0 : i32
    return %arg0, %arg1, %c0_i32, %c0_i32_0 : i32, i32, i32, i32
  }
}

module attributes {stable_mosaic.version = 11 : i64} {
  func.func @_conv_bn3x3_kernel(%arg0: i32, %arg1: i32, %arg2: memref<1x80x128xbf16, #tpu.memory_space<vmem>>, %arg3: memref<1x1x10x128xbf16, #tpu.memory_space<vmem>>, %arg4: memref<1x1x10x128xbf16, #tpu.memory_space<vmem>>, %arg5: memref<1x100x1xf32, #tpu.memory_space<vmem>>, %arg6: memref<1x128xf32, #tpu.memory_space<vmem>>, %arg7: memref<1x128xf32, #tpu.memory_space<vmem>>, %arg8: memref<9x128x128xbf16, #tpu.memory_space<vmem>>, %arg9: memref<1x128xf32, #tpu.memory_space<vmem>>, %arg10: memref<1x80x128xbf16, #tpu.memory_space<vmem>>, %arg11: memref<104x128xbf16, #tpu.memory_space<vmem>>) attributes {dimension_semantics = [#tpu.dimension_semantics<parallel>, #tpu.dimension_semantics<parallel>], iteration_bounds = array<i64: 2, 1>, scalar_prefetch = 0 : i64, scratch_operands = 1 : i64, tpu.core_type = #tpu.core_type<tc>, window_params = [{transform_indices = @transform_0, window_bounds = array<i64: 1, 80, 128>}, {transform_indices = @transform_1, window_bounds = array<i64: 1, 1, 10, 128>}, {transform_indices = @transform_2, window_bounds = array<i64: 1, 1, 10, 128>}, {transform_indices = @transform_3, window_bounds = array<i64: 1, 100, 1>}, {pipeline_mode = #tpu.pipeline_mode<synchronous>, transform_indices = @transform_4, window_bounds = array<i64: 1, 128>}, {pipeline_mode = #tpu.pipeline_mode<synchronous>, transform_indices = @transform_5, window_bounds = array<i64: 1, 128>}, {pipeline_mode = #tpu.pipeline_mode<synchronous>, transform_indices = @transform_6, window_bounds = array<i64: 9, 128, 128>}, {pipeline_mode = #tpu.pipeline_mode<synchronous>, transform_indices = @transform_7, window_bounds = array<i64: 1, 128>}, {transform_indices = @transform_8, window_bounds = array<i64: 1, 80, 128>}]} {
    %c0 = arith.constant 0 : index
    %c0_0 = arith.constant 0 : index
    %0 = vector.load %arg6[%c0, %c0_0] : memref<1x128xf32, #tpu.memory_space<vmem>>, vector<1x128xf32>
    %c0_1 = arith.constant 0 : index
    %c0_2 = arith.constant 0 : index
    %1 = vector.load %arg7[%c0_1, %c0_2] : memref<1x128xf32, #tpu.memory_space<vmem>>, vector<1x128xf32>
    %cst = arith.constant 0.000000e+00 : bf16
    %2 = vector.broadcast %cst : bf16 to vector<1x128xbf16>
    %c0_3 = arith.constant 0 : index
    %c0_4 = arith.constant 0 : index
    %3 = vector.load %arg11[%c0_3, %c0_4] : memref<104x128xbf16, #tpu.memory_space<vmem>>, vector<1x128xbf16>
    tpu.vector_store %arg11[%c0_3, %c0_4], %2 {strides = array<i32>} : memref<104x128xbf16, #tpu.memory_space<vmem>>, vector<1x128xbf16>,
    %cst_5 = arith.constant 0.000000e+00 : bf16
    %4 = vector.broadcast %cst_5 : bf16 to vector<3x128xbf16>
    %c101 = arith.constant 101 : index
    %c0_6 = arith.constant 0 : index
    %5 = vector.load %arg11[%c101, %c0_6] : memref<104x128xbf16, #tpu.memory_space<vmem>>, vector<3x128xbf16>
    tpu.vector_store %arg11[%c101, %c0_6], %4 {strides = array<i32>} : memref<104x128xbf16, #tpu.memory_space<vmem>>, vector<3x128xbf16>,
    %c0_7 = arith.constant 0 : index
    %c0_8 = arith.constant 0 : index
    %c0_9 = arith.constant 0 : index
    %c0_10 = arith.constant 0 : index
    %6 = vector.load %arg3[%c0_7, %c0_8, %c0_9, %c0_10] : memref<1x1x10x128xbf16, #tpu.memory_space<vmem>>, vector<1x1x10x128xbf16>
    %7 = vector.shape_cast %6 : vector<1x1x10x128xbf16> to vector<10x128xbf16>
    %c0_11 = arith.constant 0 : index
    %c0_12 = arith.constant 0 : index
    %c0_13 = arith.constant 0 : index
    %8 = vector.load %arg5[%c0_11, %c0_12, %c0_13] : memref<1x100x1xf32, #tpu.memory_space<vmem>>, vector<1x10x1xf32>
    %9 = vector.shape_cast %8 : vector<1x10x1xf32> to vector<10x1xf32>
    %10 = arith.extf %7 : vector<10x128xbf16> to vector<10x128xf32>
    %11 = vector.broadcast %0 : vector<1x128xf32> to vector<10x128xf32>
    %12 = arith.mulf %10, %11 : vector<10x128xf32>
    %13 = vector.broadcast %1 : vector<1x128xf32> to vector<10x128xf32>
    %14 = arith.addf %12, %13 : vector<10x128xf32>
    %15 = vector.broadcast %9 : vector<10x1xf32> to vector<10x128xf32>
    %16 = arith.mulf %14, %15 : vector<10x128xf32>
    %17 = arith.truncf %16 : vector<10x128xf32> to vector<10x128xbf16>
    %c1 = arith.constant 1 : index
    %c0_14 = arith.constant 0 : index
    %18 = vector.load %arg11[%c1, %c0_14] : memref<104x128xbf16, #tpu.memory_space<vmem>>, vector<10x128xbf16>
    tpu.vector_store %arg11[%c1, %c0_14], %17 {strides = array<i32>} : memref<104x128xbf16, #tpu.memory_space<vmem>>, vector<10x128xbf16>,
    %c0_15 = arith.constant 0 : index
    %c0_16 = arith.constant 0 : index
    %c0_17 = arith.constant 0 : index
    %19 = vector.load %arg2[%c0_15, %c0_16, %c0_17] : memref<1x80x128xbf16, #tpu.memory_space<vmem>>, vector<1x80x128xbf16>
    %20 = vector.shape_cast %19 : vector<1x80x128xbf16> to vector<80x128xbf16>
    %c0_18 = arith.constant 0 : index
    %c10 = arith.constant 10 : index
    %c0_19 = arith.constant 0 : index
    %21 = vector.load %arg5[%c0_18, %c10, %c0_19] : memref<1x100x1xf32, #tpu.memory_space<vmem>>, vector<1x80x1xf32>
    %22 = vector.shape_cast %21 : vector<1x80x1xf32> to vector<80x1xf32>
    %23 = arith.extf %20 : vector<80x128xbf16> to vector<80x128xf32>
    %24 = vector.broadcast %0 : vector<1x128xf32> to vector<80x128xf32>
    %25 = arith.mulf %23, %24 : vector<80x128xf32>
    %26 = vector.broadcast %1 : vector<1x128xf32> to vector<80x128xf32>
    %27 = arith.addf %25, %26 : vector<80x128xf32>
    %28 = vector.broadcast %22 : vector<80x1xf32> to vector<80x128xf32>
    %29 = arith.mulf %27, %28 : vector<80x128xf32>
    %30 = arith.truncf %29 : vector<80x128xf32> to vector<80x128xbf16>
    %c11 = arith.constant 11 : index
    %c0_20 = arith.constant 0 : index
    %31 = vector.load %arg11[%c11, %c0_20] : memref<104x128xbf16, #tpu.memory_space<vmem>>, vector<80x128xbf16>
    tpu.vector_store %arg11[%c11, %c0_20], %30 {strides = array<i32>} : memref<104x128xbf16, #tpu.memory_space<vmem>>, vector<80x128xbf16>,
    %c0_21 = arith.constant 0 : index
    %c0_22 = arith.constant 0 : index
    %c0_23 = arith.constant 0 : index
    %c0_24 = arith.constant 0 : index
    %32 = vector.load %arg4[%c0_21, %c0_22, %c0_23, %c0_24] : memref<1x1x10x128xbf16, #tpu.memory_space<vmem>>, vector<1x1x10x128xbf16>
    %33 = vector.shape_cast %32 : vector<1x1x10x128xbf16> to vector<10x128xbf16>
    %c0_25 = arith.constant 0 : index
    %c90 = arith.constant 90 : index
    %c0_26 = arith.constant 0 : index
    %34 = vector.load %arg5[%c0_25, %c90, %c0_26] : memref<1x100x1xf32, #tpu.memory_space<vmem>>, vector<1x10x1xf32>
    %35 = vector.shape_cast %34 : vector<1x10x1xf32> to vector<10x1xf32>
    %36 = arith.extf %33 : vector<10x128xbf16> to vector<10x128xf32>
    %37 = vector.broadcast %0 : vector<1x128xf32> to vector<10x128xf32>
    %38 = arith.mulf %36, %37 : vector<10x128xf32>
    %39 = vector.broadcast %1 : vector<1x128xf32> to vector<10x128xf32>
    %40 = arith.addf %38, %39 : vector<10x128xf32>
    %41 = vector.broadcast %35 : vector<10x1xf32> to vector<10x128xf32>
    %42 = arith.mulf %40, %41 : vector<10x128xf32>
    %43 = arith.truncf %42 : vector<10x128xf32> to vector<10x128xbf16>
    %c91 = arith.constant 91 : index
    %c0_27 = arith.constant 0 : index
    %44 = vector.load %arg11[%c91, %c0_27] : memref<104x128xbf16, #tpu.memory_space<vmem>>, vector<10x128xbf16>
    tpu.vector_store %arg11[%c91, %c0_27], %43 {strides = array<i32>} : memref<104x128xbf16, #tpu.memory_space<vmem>>, vector<10x128xbf16>,
    %c0_28 = arith.constant 0 : index
    %c0_29 = arith.constant 0 : index
    %45 = vector.load %arg9[%c0_28, %c0_29] : memref<1x128xf32, #tpu.memory_space<vmem>>, vector<1x128xf32>
    %cst_30 = arith.constant 0.000000e+00 : f32
    %46 = vector.broadcast %cst_30 : f32 to vector<80x128xf32>
    %c0_31 = arith.constant 0 : index
    %c0_32 = arith.constant 0 : index
    %47 = vector.load %arg11[%c0_31, %c0_32] : memref<104x128xbf16, #tpu.memory_space<vmem>>, vector<80x128xbf16>
    %c0_33 = arith.constant 0 : index
    %c0_34 = arith.constant 0 : index
    %c0_35 = arith.constant 0 : index
    %48 = vector.load %arg8[%c0_33, %c0_34, %c0_35] : memref<9x128x128xbf16, #tpu.memory_space<vmem>>, vector<1x128x128xbf16>
    %49 = vector.shape_cast %48 : vector<1x128x128xbf16> to vector<128x128xbf16>
    %cst_36 = arith.constant dense<0.000000e+00> : vector<80x128xf32>
    %50 = tpu.matmul %47, %49, %cst_36 {dimension_numbers = #tpu.dot_dimension_numbers<[1], [0], [0], [1], [0, 0, 1, 1], [], []>} : vector<80x128xbf16>, vector<128x128xbf16>, vector<80x128xf32> -> vector<80x128xf32>
    %51 = arith.addf %46, %50 : vector<80x128xf32>
    %c1_37 = arith.constant 1 : index
    %c0_38 = arith.constant 0 : index
    %52 = vector.load %arg11[%c1_37, %c0_38] : memref<104x128xbf16, #tpu.memory_space<vmem>>, vector<80x128xbf16>
    %c1_39 = arith.constant 1 : index
    %c0_40 = arith.constant 0 : index
    %c0_41 = arith.constant 0 : index
    %53 = vector.load %arg8[%c1_39, %c0_40, %c0_41] : memref<9x128x128xbf16, #tpu.memory_space<vmem>>, vector<1x128x128xbf16>
    %54 = vector.shape_cast %53 : vector<1x128x128xbf16> to vector<128x128xbf16>
    %cst_42 = arith.constant dense<0.000000e+00> : vector<80x128xf32>
    %55 = tpu.matmul %52, %54, %cst_42 {dimension_numbers = #tpu.dot_dimension_numbers<[1], [0], [0], [1], [0, 0, 1, 1], [], []>} : vector<80x128xbf16>, vector<128x128xbf16>, vector<80x128xf32> -> vector<80x128xf32>
    %56 = arith.addf %51, %55 : vector<80x128xf32>
    %c2 = arith.constant 2 : index
    %c0_43 = arith.constant 0 : index
    %57 = vector.load %arg11[%c2, %c0_43] : memref<104x128xbf16, #tpu.memory_space<vmem>>, vector<80x128xbf16>
    %c2_44 = arith.constant 2 : index
    %c0_45 = arith.constant 0 : index
    %c0_46 = arith.constant 0 : index
    %58 = vector.load %arg8[%c2_44, %c0_45, %c0_46] : memref<9x128x128xbf16, #tpu.memory_space<vmem>>, vector<1x128x128xbf16>
    %59 = vector.shape_cast %58 : vector<1x128x128xbf16> to vector<128x128xbf16>
    %cst_47 = arith.constant dense<0.000000e+00> : vector<80x128xf32>
    %60 = tpu.matmul %57, %59, %cst_47 {dimension_numbers = #tpu.dot_dimension_numbers<[1], [0], [0], [1], [0, 0, 1, 1], [], []>} : vector<80x128xbf16>, vector<128x128xbf16>, vector<80x128xf32> -> vector<80x128xf32>
    %61 = arith.addf %56, %60 : vector<80x128xf32>
    %c10_48 = arith.constant 10 : index
    %c0_49 = arith.constant 0 : index
    %62 = vector.load %arg11[%c10_48, %c0_49] : memref<104x128xbf16, #tpu.memory_space<vmem>>, vector<80x128xbf16>
    %c3 = arith.constant 3 : index
    %c0_50 = arith.constant 0 : index
    %c0_51 = arith.constant 0 : index
    %63 = vector.load %arg8[%c3, %c0_50, %c0_51] : memref<9x128x128xbf16, #tpu.memory_space<vmem>>, vector<1x128x128xbf16>
    %64 = vector.shape_cast %63 : vector<1x128x128xbf16> to vector<128x128xbf16>
    %cst_52 = arith.constant dense<0.000000e+00> : vector<80x128xf32>
    %65 = tpu.matmul %62, %64, %cst_52 {dimension_numbers = #tpu.dot_dimension_numbers<[1], [0], [0], [1], [0, 0, 1, 1], [], []>} : vector<80x128xbf16>, vector<128x128xbf16>, vector<80x128xf32> -> vector<80x128xf32>
    %66 = arith.addf %61, %65 : vector<80x128xf32>
    %c11_53 = arith.constant 11 : index
    %c0_54 = arith.constant 0 : index
    %67 = vector.load %arg11[%c11_53, %c0_54] : memref<104x128xbf16, #tpu.memory_space<vmem>>, vector<80x128xbf16>
    %c4 = arith.constant 4 : index
    %c0_55 = arith.constant 0 : index
    %c0_56 = arith.constant 0 : index
    %68 = vector.load %arg8[%c4, %c0_55, %c0_56] : memref<9x128x128xbf16, #tpu.memory_space<vmem>>, vector<1x128x128xbf16>
    %69 = vector.shape_cast %68 : vector<1x128x128xbf16> to vector<128x128xbf16>
    %cst_57 = arith.constant dense<0.000000e+00> : vector<80x128xf32>
    %70 = tpu.matmul %67, %69, %cst_57 {dimension_numbers = #tpu.dot_dimension_numbers<[1], [0], [0], [1], [0, 0, 1, 1], [], []>} : vector<80x128xbf16>, vector<128x128xbf16>, vector<80x128xf32> -> vector<80x128xf32>
    %71 = arith.addf %66, %70 : vector<80x128xf32>
    %c12 = arith.constant 12 : index
    %c0_58 = arith.constant 0 : index
    %72 = vector.load %arg11[%c12, %c0_58] : memref<104x128xbf16, #tpu.memory_space<vmem>>, vector<80x128xbf16>
    %c5 = arith.constant 5 : index
    %c0_59 = arith.constant 0 : index
    %c0_60 = arith.constant 0 : index
    %73 = vector.load %arg8[%c5, %c0_59, %c0_60] : memref<9x128x128xbf16, #tpu.memory_space<vmem>>, vector<1x128x128xbf16>
    %74 = vector.shape_cast %73 : vector<1x128x128xbf16> to vector<128x128xbf16>
    %cst_61 = arith.constant dense<0.000000e+00> : vector<80x128xf32>
    %75 = tpu.matmul %72, %74, %cst_61 {dimension_numbers = #tpu.dot_dimension_numbers<[1], [0], [0], [1], [0, 0, 1, 1], [], []>} : vector<80x128xbf16>, vector<128x128xbf16>, vector<80x128xf32> -> vector<80x128xf32>
    %76 = arith.addf %71, %75 : vector<80x128xf32>
    %c20 = arith.constant 20 : index
    %c0_62 = arith.constant 0 : index
    %77 = vector.load %arg11[%c20, %c0_62] : memref<104x128xbf16, #tpu.memory_space<vmem>>, vector<80x128xbf16>
    %c6 = arith.constant 6 : index
    %c0_63 = arith.constant 0 : index
    %c0_64 = arith.constant 0 : index
    %78 = vector.load %arg8[%c6, %c0_63, %c0_64] : memref<9x128x128xbf16, #tpu.memory_space<vmem>>, vector<1x128x128xbf16>
    %79 = vector.shape_cast %78 : vector<1x128x128xbf16> to vector<128x128xbf16>
    %cst_65 = arith.constant dense<0.000000e+00> : vector<80x128xf32>
    %80 = tpu.matmul %77, %79, %cst_65 {dimension_numbers = #tpu.dot_dimension_numbers<[1], [0], [0], [1], [0, 0, 1, 1], [], []>} : vector<80x128xbf16>, vector<128x128xbf16>, vector<80x128xf32> -> vector<80x128xf32>
    %81 = arith.addf %76, %80 : vector<80x128xf32>
    %c21 = arith.constant 21 : index
    %c0_66 = arith.constant 0 : index
    %82 = vector.load %arg11[%c21, %c0_66] : memref<104x128xbf16, #tpu.memory_space<vmem>>, vector<80x128xbf16>
    %c7 = arith.constant 7 : index
    %c0_67 = arith.constant 0 : index
    %c0_68 = arith.constant 0 : index
    %83 = vector.load %arg8[%c7, %c0_67, %c0_68] : memref<9x128x128xbf16, #tpu.memory_space<vmem>>, vector<1x128x128xbf16>
    %84 = vector.shape_cast %83 : vector<1x128x128xbf16> to vector<128x128xbf16>
    %cst_69 = arith.constant dense<0.000000e+00> : vector<80x128xf32>
    %85 = tpu.matmul %82, %84, %cst_69 {dimension_numbers = #tpu.dot_dimension_numbers<[1], [0], [0], [1], [0, 0, 1, 1], [], []>} : vector<80x128xbf16>, vector<128x128xbf16>, vector<80x128xf32> -> vector<80x128xf32>
    %86 = arith.addf %81, %85 : vector<80x128xf32>
    %c22 = arith.constant 22 : index
    %c0_70 = arith.constant 0 : index
    %87 = vector.load %arg11[%c22, %c0_70] : memref<104x128xbf16, #tpu.memory_space<vmem>>, vector<80x128xbf16>
    %c8 = arith.constant 8 : index
    %c0_71 = arith.constant 0 : index
    %c0_72 = arith.constant 0 : index
    %88 = vector.load %arg8[%c8, %c0_71, %c0_72] : memref<9x128x128xbf16, #tpu.memory_space<vmem>>, vector<1x128x128xbf16>
    %89 = vector.shape_cast %88 : vector<1x128x128xbf16> to vector<128x128xbf16>
    %cst_73 = arith.constant dense<0.000000e+00> : vector<80x128xf32>
    %90 = tpu.matmul %87, %89, %cst_73 {dimension_numbers = #tpu.dot_dimension_numbers<[1], [0], [0], [1], [0, 0, 1, 1], [], []>} : vector<80x128xbf16>, vector<128x128xbf16>, vector<80x128xf32> -> vector<80x128xf32>
    %91 = arith.addf %86, %90 : vector<80x128xf32>
    %c0_74 = arith.constant 0 : index
    %c10_75 = arith.constant 10 : index
    %c0_76 = arith.constant 0 : index
    %92 = vector.load %arg5[%c0_74, %c10_75, %c0_76] : memref<1x100x1xf32, #tpu.memory_space<vmem>>, vector<1x80x1xf32>
    %93 = vector.shape_cast %92 : vector<1x80x1xf32> to vector<80x1xf32>
    %cst_77 = arith.constant 0.000000e+00 : f32
    %94 = vector.broadcast %cst_77 : f32 to vector<80x1xf32>
    %95 = arith.cmpf ogt, %93, %94 : vector<80x1xf32>
    %96 = vector.broadcast %45 : vector<1x128xf32> to vector<80x128xf32>
    %97 = arith.addf %91, %96 : vector<80x128xf32>
    %cst_78 = arith.constant 0.000000e+00 : f32
    %98 = vector.shape_cast %95 : vector<80x1xi1> to vector<80x1xi1>
    %99 = vector.broadcast %98 : vector<80x1xi1> to vector<80x128xi1>
    %100 = vector.broadcast %cst_78 : f32 to vector<80x128xf32>
    %101 = arith.select %99, %97, %100 : vector<80x128xi1>, vector<80x128xf32>
    %102 = arith.truncf %101 : vector<80x128xf32> to vector<80x128xbf16>
    %c0_79 = arith.constant 0 : index
    %c0_80 = arith.constant 0 : index
    %c0_81 = arith.constant 0 : index
    %103 = vector.load %arg10[%c0_79, %c0_80, %c0_81] : memref<1x80x128xbf16, #tpu.memory_space<vmem>>, vector<1x80x128xbf16>
    %104 = vector.shape_cast %103 : vector<1x80x128xbf16> to vector<80x128xbf16>
    %105 = vector.shape_cast %102 : vector<80x128xbf16> to vector<1x80x128xbf16>
    tpu.vector_store %arg10[%c0_79, %c0_80, %c0_81], %105 {strides = array<i32>} : memref<1x80x128xbf16, #tpu.memory_space<vmem>>, vector<1x80x128xbf16>,
    return
  }
  func.func @transform_0(%arg0: i32, %arg1: i32) -> (i32, i32, i32) {
    %c0_i32 = arith.constant 0 : i32
    %c0_i32_0 = arith.constant 0 : i32
    return %arg0, %arg1, %c0_i32 : i32, i32, i32
  }
  func.func @transform_1(%arg0: i32, %arg1: i32) -> (i32, i32, i32, i32) {
    %c8_i32 = arith.constant 8 : i32
    %0 = arith.muli %arg1, %c8_i32 : i32
    %c1_i32 = arith.constant 1 : i32
    %1 = arith.subi %0, %c1_i32 : i32
    %c0_i32 = arith.constant 0 : i32
    %2 = arith.maxsi %1, %c0_i32 : i32
    %c0_i32_0 = arith.constant 0 : i32
    %c0_i32_1 = arith.constant 0 : i32
    %c0_i32_2 = arith.constant 0 : i32
    return %arg0, %2, %c0_i32_0, %c0_i32_1 : i32, i32, i32, i32
  }
  func.func @transform_2(%arg0: i32, %arg1: i32) -> (i32, i32, i32, i32) {
    %c1_i32 = arith.constant 1 : i32
    %0 = arith.addi %arg1, %c1_i32 : i32
    %c8_i32 = arith.constant 8 : i32
    %1 = arith.muli %0, %c8_i32 : i32
    %c7_i32 = arith.constant 7 : i32
    %2 = arith.minsi %1, %c7_i32 : i32
    %c0_i32 = arith.constant 0 : i32
    %c0_i32_0 = arith.constant 0 : i32
    %c0_i32_1 = arith.constant 0 : i32
    return %arg0, %2, %c0_i32, %c0_i32_0 : i32, i32, i32, i32
  }
  func.func @transform_3(%arg0: i32, %arg1: i32) -> (i32, i32, i32) {
    %c0_i32 = arith.constant 0 : i32
    %c0_i32_0 = arith.constant 0 : i32
    %c0_i32_1 = arith.constant 0 : i32
    return %arg1, %c0_i32, %c0_i32_0 : i32, i32, i32
  }
  func.func @transform_4(%arg0: i32, %arg1: i32) -> (i32, i32) {
    %c0_i32 = arith.constant 0 : i32
    %c0_i32_0 = arith.constant 0 : i32
    %c0_i32_1 = arith.constant 0 : i32
    return %c0_i32, %c0_i32_0 : i32, i32
  }
  func.func @transform_5(%arg0: i32, %arg1: i32) -> (i32, i32) {
    %c0_i32 = arith.constant 0 : i32
    %c0_i32_0 = arith.constant 0 : i32
    %c0_i32_1 = arith.constant 0 : i32
    return %c0_i32, %c0_i32_0 : i32, i32
  }
  func.func @transform_6(%arg0: i32, %arg1: i32) -> (i32, i32, i32) {
    %c0_i32 = arith.constant 0 : i32
    %c0_i32_0 = arith.constant 0 : i32
    %c0_i32_1 = arith.constant 0 : i32
    %c0_i32_2 = arith.constant 0 : i32
    return %c0_i32, %c0_i32_0, %c0_i32_1 : i32, i32, i32
  }
  func.func @transform_7(%arg0: i32, %arg1: i32) -> (i32, i32) {
    %c0_i32 = arith.constant 0 : i32
    %c0_i32_0 = arith.constant 0 : i32
    %c0_i32_1 = arith.constant 0 : i32
    return %c0_i32, %c0_i32_0 : i32, i32
  }
  func.func @transform_8(%arg0: i32, %arg1: i32) -> (i32, i32, i32) {
    %c0_i32 = arith.constant 0 : i32
    %c0_i32_0 = arith.constant 0 : i32
    return %arg0, %arg1, %c0_i32 : i32, i32, i32
  }
}

module attributes {stable_mosaic.version = 11 : i64} {
  func.func @_conv_bn3x3_kernel(%arg0: i32, %arg1: i32, %arg2: memref<1x80x128xbf16, #tpu.memory_space<vmem>>, %arg3: memref<1x1x10x128xbf16, #tpu.memory_space<vmem>>, %arg4: memref<1x1x10x128xbf16, #tpu.memory_space<vmem>>, %arg5: memref<1x100x1xf32, #tpu.memory_space<vmem>>, %arg6: memref<1x128xf32, #tpu.memory_space<vmem>>, %arg7: memref<1x128xf32, #tpu.memory_space<vmem>>, %arg8: memref<9x128x128xbf16, #tpu.memory_space<vmem>>, %arg9: memref<1x128xf32, #tpu.memory_space<vmem>>, %arg10: memref<1x80x128xbf16, #tpu.memory_space<vmem>>, %arg11: memref<1x80x128xbf16, #tpu.memory_space<vmem>>, %arg12: memref<104x128xbf16, #tpu.memory_space<vmem>>) attributes {dimension_semantics = [#tpu.dimension_semantics<parallel>, #tpu.dimension_semantics<parallel>], iteration_bounds = array<i64: 2, 1>, scalar_prefetch = 0 : i64, scratch_operands = 1 : i64, tpu.core_type = #tpu.core_type<tc>, window_params = [{transform_indices = @transform_0, window_bounds = array<i64: 1, 80, 128>}, {transform_indices = @transform_1, window_bounds = array<i64: 1, 1, 10, 128>}, {transform_indices = @transform_2, window_bounds = array<i64: 1, 1, 10, 128>}, {transform_indices = @transform_3, window_bounds = array<i64: 1, 100, 1>}, {pipeline_mode = #tpu.pipeline_mode<synchronous>, transform_indices = @transform_4, window_bounds = array<i64: 1, 128>}, {pipeline_mode = #tpu.pipeline_mode<synchronous>, transform_indices = @transform_5, window_bounds = array<i64: 1, 128>}, {pipeline_mode = #tpu.pipeline_mode<synchronous>, transform_indices = @transform_6, window_bounds = array<i64: 9, 128, 128>}, {pipeline_mode = #tpu.pipeline_mode<synchronous>, transform_indices = @transform_7, window_bounds = array<i64: 1, 128>}, {transform_indices = @transform_8, window_bounds = array<i64: 1, 80, 128>}, {transform_indices = @transform_9, window_bounds = array<i64: 1, 80, 128>}]} {
    %c0 = arith.constant 0 : index
    %c0_0 = arith.constant 0 : index
    %0 = vector.load %arg6[%c0, %c0_0] : memref<1x128xf32, #tpu.memory_space<vmem>>, vector<1x128xf32>
    %c0_1 = arith.constant 0 : index
    %c0_2 = arith.constant 0 : index
    %1 = vector.load %arg7[%c0_1, %c0_2] : memref<1x128xf32, #tpu.memory_space<vmem>>, vector<1x128xf32>
    %cst = arith.constant 0.000000e+00 : bf16
    %2 = vector.broadcast %cst : bf16 to vector<1x128xbf16>
    %c0_3 = arith.constant 0 : index
    %c0_4 = arith.constant 0 : index
    %3 = vector.load %arg12[%c0_3, %c0_4] : memref<104x128xbf16, #tpu.memory_space<vmem>>, vector<1x128xbf16>
    tpu.vector_store %arg12[%c0_3, %c0_4], %2 {strides = array<i32>} : memref<104x128xbf16, #tpu.memory_space<vmem>>, vector<1x128xbf16>,
    %cst_5 = arith.constant 0.000000e+00 : bf16
    %4 = vector.broadcast %cst_5 : bf16 to vector<3x128xbf16>
    %c101 = arith.constant 101 : index
    %c0_6 = arith.constant 0 : index
    %5 = vector.load %arg12[%c101, %c0_6] : memref<104x128xbf16, #tpu.memory_space<vmem>>, vector<3x128xbf16>
    tpu.vector_store %arg12[%c101, %c0_6], %4 {strides = array<i32>} : memref<104x128xbf16, #tpu.memory_space<vmem>>, vector<3x128xbf16>,
    %c0_7 = arith.constant 0 : index
    %c0_8 = arith.constant 0 : index
    %c0_9 = arith.constant 0 : index
    %c0_10 = arith.constant 0 : index
    %6 = vector.load %arg3[%c0_7, %c0_8, %c0_9, %c0_10] : memref<1x1x10x128xbf16, #tpu.memory_space<vmem>>, vector<1x1x10x128xbf16>
    %7 = vector.shape_cast %6 : vector<1x1x10x128xbf16> to vector<10x128xbf16>
    %c0_11 = arith.constant 0 : index
    %c0_12 = arith.constant 0 : index
    %c0_13 = arith.constant 0 : index
    %8 = vector.load %arg5[%c0_11, %c0_12, %c0_13] : memref<1x100x1xf32, #tpu.memory_space<vmem>>, vector<1x10x1xf32>
    %9 = vector.shape_cast %8 : vector<1x10x1xf32> to vector<10x1xf32>
    %10 = arith.extf %7 : vector<10x128xbf16> to vector<10x128xf32>
    %11 = vector.broadcast %0 : vector<1x128xf32> to vector<10x128xf32>
    %12 = arith.mulf %10, %11 : vector<10x128xf32>
    %13 = vector.broadcast %1 : vector<1x128xf32> to vector<10x128xf32>
    %14 = arith.addf %12, %13 : vector<10x128xf32>
    %cst_14 = arith.constant 0.000000e+00 : f32
    %15 = vector.broadcast %cst_14 : f32 to vector<10x128xf32>
    %16 = arith.maximumf %14, %15 : vector<10x128xf32>
    %17 = vector.broadcast %9 : vector<10x1xf32> to vector<10x128xf32>
    %18 = arith.mulf %16, %17 : vector<10x128xf32>
    %19 = arith.truncf %18 : vector<10x128xf32> to vector<10x128xbf16>
    %c1 = arith.constant 1 : index
    %c0_15 = arith.constant 0 : index
    %20 = vector.load %arg12[%c1, %c0_15] : memref<104x128xbf16, #tpu.memory_space<vmem>>, vector<10x128xbf16>
    tpu.vector_store %arg12[%c1, %c0_15], %19 {strides = array<i32>} : memref<104x128xbf16, #tpu.memory_space<vmem>>, vector<10x128xbf16>,
    %c0_16 = arith.constant 0 : index
    %c0_17 = arith.constant 0 : index
    %c0_18 = arith.constant 0 : index
    %21 = vector.load %arg2[%c0_16, %c0_17, %c0_18] : memref<1x80x128xbf16, #tpu.memory_space<vmem>>, vector<1x80x128xbf16>
    %22 = vector.shape_cast %21 : vector<1x80x128xbf16> to vector<80x128xbf16>
    %c0_19 = arith.constant 0 : index
    %c10 = arith.constant 10 : index
    %c0_20 = arith.constant 0 : index
    %23 = vector.load %arg5[%c0_19, %c10, %c0_20] : memref<1x100x1xf32, #tpu.memory_space<vmem>>, vector<1x80x1xf32>
    %24 = vector.shape_cast %23 : vector<1x80x1xf32> to vector<80x1xf32>
    %25 = arith.extf %22 : vector<80x128xbf16> to vector<80x128xf32>
    %26 = vector.broadcast %0 : vector<1x128xf32> to vector<80x128xf32>
    %27 = arith.mulf %25, %26 : vector<80x128xf32>
    %28 = vector.broadcast %1 : vector<1x128xf32> to vector<80x128xf32>
    %29 = arith.addf %27, %28 : vector<80x128xf32>
    %cst_21 = arith.constant 0.000000e+00 : f32
    %30 = vector.broadcast %cst_21 : f32 to vector<80x128xf32>
    %31 = arith.maximumf %29, %30 : vector<80x128xf32>
    %32 = vector.broadcast %24 : vector<80x1xf32> to vector<80x128xf32>
    %33 = arith.mulf %31, %32 : vector<80x128xf32>
    %34 = arith.truncf %33 : vector<80x128xf32> to vector<80x128xbf16>
    %c11 = arith.constant 11 : index
    %c0_22 = arith.constant 0 : index
    %35 = vector.load %arg12[%c11, %c0_22] : memref<104x128xbf16, #tpu.memory_space<vmem>>, vector<80x128xbf16>
    tpu.vector_store %arg12[%c11, %c0_22], %34 {strides = array<i32>} : memref<104x128xbf16, #tpu.memory_space<vmem>>, vector<80x128xbf16>,
    %c0_23 = arith.constant 0 : index
    %c0_24 = arith.constant 0 : index
    %c0_25 = arith.constant 0 : index
    %c0_26 = arith.constant 0 : index
    %36 = vector.load %arg4[%c0_23, %c0_24, %c0_25, %c0_26] : memref<1x1x10x128xbf16, #tpu.memory_space<vmem>>, vector<1x1x10x128xbf16>
    %37 = vector.shape_cast %36 : vector<1x1x10x128xbf16> to vector<10x128xbf16>
    %c0_27 = arith.constant 0 : index
    %c90 = arith.constant 90 : index
    %c0_28 = arith.constant 0 : index
    %38 = vector.load %arg5[%c0_27, %c90, %c0_28] : memref<1x100x1xf32, #tpu.memory_space<vmem>>, vector<1x10x1xf32>
    %39 = vector.shape_cast %38 : vector<1x10x1xf32> to vector<10x1xf32>
    %40 = arith.extf %37 : vector<10x128xbf16> to vector<10x128xf32>
    %41 = vector.broadcast %0 : vector<1x128xf32> to vector<10x128xf32>
    %42 = arith.mulf %40, %41 : vector<10x128xf32>
    %43 = vector.broadcast %1 : vector<1x128xf32> to vector<10x128xf32>
    %44 = arith.addf %42, %43 : vector<10x128xf32>
    %cst_29 = arith.constant 0.000000e+00 : f32
    %45 = vector.broadcast %cst_29 : f32 to vector<10x128xf32>
    %46 = arith.maximumf %44, %45 : vector<10x128xf32>
    %47 = vector.broadcast %39 : vector<10x1xf32> to vector<10x128xf32>
    %48 = arith.mulf %46, %47 : vector<10x128xf32>
    %49 = arith.truncf %48 : vector<10x128xf32> to vector<10x128xbf16>
    %c91 = arith.constant 91 : index
    %c0_30 = arith.constant 0 : index
    %50 = vector.load %arg12[%c91, %c0_30] : memref<104x128xbf16, #tpu.memory_space<vmem>>, vector<10x128xbf16>
    tpu.vector_store %arg12[%c91, %c0_30], %49 {strides = array<i32>} : memref<104x128xbf16, #tpu.memory_space<vmem>>, vector<10x128xbf16>,
    %c0_31 = arith.constant 0 : index
    %c0_32 = arith.constant 0 : index
    %51 = vector.load %arg9[%c0_31, %c0_32] : memref<1x128xf32, #tpu.memory_space<vmem>>, vector<1x128xf32>
    %cst_33 = arith.constant 0.000000e+00 : f32
    %52 = vector.broadcast %cst_33 : f32 to vector<80x128xf32>
    %c0_34 = arith.constant 0 : index
    %c0_35 = arith.constant 0 : index
    %53 = vector.load %arg12[%c0_34, %c0_35] : memref<104x128xbf16, #tpu.memory_space<vmem>>, vector<80x128xbf16>
    %c0_36 = arith.constant 0 : index
    %c0_37 = arith.constant 0 : index
    %c0_38 = arith.constant 0 : index
    %54 = vector.load %arg8[%c0_36, %c0_37, %c0_38] : memref<9x128x128xbf16, #tpu.memory_space<vmem>>, vector<1x128x128xbf16>
    %55 = vector.shape_cast %54 : vector<1x128x128xbf16> to vector<128x128xbf16>
    %cst_39 = arith.constant dense<0.000000e+00> : vector<80x128xf32>
    %56 = tpu.matmul %53, %55, %cst_39 {dimension_numbers = #tpu.dot_dimension_numbers<[1], [0], [0], [1], [0, 0, 1, 1], [], []>} : vector<80x128xbf16>, vector<128x128xbf16>, vector<80x128xf32> -> vector<80x128xf32>
    %57 = arith.addf %52, %56 : vector<80x128xf32>
    %c1_40 = arith.constant 1 : index
    %c0_41 = arith.constant 0 : index
    %58 = vector.load %arg12[%c1_40, %c0_41] : memref<104x128xbf16, #tpu.memory_space<vmem>>, vector<80x128xbf16>
    %c1_42 = arith.constant 1 : index
    %c0_43 = arith.constant 0 : index
    %c0_44 = arith.constant 0 : index
    %59 = vector.load %arg8[%c1_42, %c0_43, %c0_44] : memref<9x128x128xbf16, #tpu.memory_space<vmem>>, vector<1x128x128xbf16>
    %60 = vector.shape_cast %59 : vector<1x128x128xbf16> to vector<128x128xbf16>
    %cst_45 = arith.constant dense<0.000000e+00> : vector<80x128xf32>
    %61 = tpu.matmul %58, %60, %cst_45 {dimension_numbers = #tpu.dot_dimension_numbers<[1], [0], [0], [1], [0, 0, 1, 1], [], []>} : vector<80x128xbf16>, vector<128x128xbf16>, vector<80x128xf32> -> vector<80x128xf32>
    %62 = arith.addf %57, %61 : vector<80x128xf32>
    %c2 = arith.constant 2 : index
    %c0_46 = arith.constant 0 : index
    %63 = vector.load %arg12[%c2, %c0_46] : memref<104x128xbf16, #tpu.memory_space<vmem>>, vector<80x128xbf16>
    %c2_47 = arith.constant 2 : index
    %c0_48 = arith.constant 0 : index
    %c0_49 = arith.constant 0 : index
    %64 = vector.load %arg8[%c2_47, %c0_48, %c0_49] : memref<9x128x128xbf16, #tpu.memory_space<vmem>>, vector<1x128x128xbf16>
    %65 = vector.shape_cast %64 : vector<1x128x128xbf16> to vector<128x128xbf16>
    %cst_50 = arith.constant dense<0.000000e+00> : vector<80x128xf32>
    %66 = tpu.matmul %63, %65, %cst_50 {dimension_numbers = #tpu.dot_dimension_numbers<[1], [0], [0], [1], [0, 0, 1, 1], [], []>} : vector<80x128xbf16>, vector<128x128xbf16>, vector<80x128xf32> -> vector<80x128xf32>
    %67 = arith.addf %62, %66 : vector<80x128xf32>
    %c10_51 = arith.constant 10 : index
    %c0_52 = arith.constant 0 : index
    %68 = vector.load %arg12[%c10_51, %c0_52] : memref<104x128xbf16, #tpu.memory_space<vmem>>, vector<80x128xbf16>
    %c3 = arith.constant 3 : index
    %c0_53 = arith.constant 0 : index
    %c0_54 = arith.constant 0 : index
    %69 = vector.load %arg8[%c3, %c0_53, %c0_54] : memref<9x128x128xbf16, #tpu.memory_space<vmem>>, vector<1x128x128xbf16>
    %70 = vector.shape_cast %69 : vector<1x128x128xbf16> to vector<128x128xbf16>
    %cst_55 = arith.constant dense<0.000000e+00> : vector<80x128xf32>
    %71 = tpu.matmul %68, %70, %cst_55 {dimension_numbers = #tpu.dot_dimension_numbers<[1], [0], [0], [1], [0, 0, 1, 1], [], []>} : vector<80x128xbf16>, vector<128x128xbf16>, vector<80x128xf32> -> vector<80x128xf32>
    %72 = arith.addf %67, %71 : vector<80x128xf32>
    %c11_56 = arith.constant 11 : index
    %c0_57 = arith.constant 0 : index
    %73 = vector.load %arg12[%c11_56, %c0_57] : memref<104x128xbf16, #tpu.memory_space<vmem>>, vector<80x128xbf16>
    %c4 = arith.constant 4 : index
    %c0_58 = arith.constant 0 : index
    %c0_59 = arith.constant 0 : index
    %74 = vector.load %arg8[%c4, %c0_58, %c0_59] : memref<9x128x128xbf16, #tpu.memory_space<vmem>>, vector<1x128x128xbf16>
    %75 = vector.shape_cast %74 : vector<1x128x128xbf16> to vector<128x128xbf16>
    %cst_60 = arith.constant dense<0.000000e+00> : vector<80x128xf32>
    %76 = tpu.matmul %73, %75, %cst_60 {dimension_numbers = #tpu.dot_dimension_numbers<[1], [0], [0], [1], [0, 0, 1, 1], [], []>} : vector<80x128xbf16>, vector<128x128xbf16>, vector<80x128xf32> -> vector<80x128xf32>
    %77 = arith.addf %72, %76 : vector<80x128xf32>
    %c12 = arith.constant 12 : index
    %c0_61 = arith.constant 0 : index
    %78 = vector.load %arg12[%c12, %c0_61] : memref<104x128xbf16, #tpu.memory_space<vmem>>, vector<80x128xbf16>
    %c5 = arith.constant 5 : index
    %c0_62 = arith.constant 0 : index
    %c0_63 = arith.constant 0 : index
    %79 = vector.load %arg8[%c5, %c0_62, %c0_63] : memref<9x128x128xbf16, #tpu.memory_space<vmem>>, vector<1x128x128xbf16>
    %80 = vector.shape_cast %79 : vector<1x128x128xbf16> to vector<128x128xbf16>
    %cst_64 = arith.constant dense<0.000000e+00> : vector<80x128xf32>
    %81 = tpu.matmul %78, %80, %cst_64 {dimension_numbers = #tpu.dot_dimension_numbers<[1], [0], [0], [1], [0, 0, 1, 1], [], []>} : vector<80x128xbf16>, vector<128x128xbf16>, vector<80x128xf32> -> vector<80x128xf32>
    %82 = arith.addf %77, %81 : vector<80x128xf32>
    %c20 = arith.constant 20 : index
    %c0_65 = arith.constant 0 : index
    %83 = vector.load %arg12[%c20, %c0_65] : memref<104x128xbf16, #tpu.memory_space<vmem>>, vector<80x128xbf16>
    %c6 = arith.constant 6 : index
    %c0_66 = arith.constant 0 : index
    %c0_67 = arith.constant 0 : index
    %84 = vector.load %arg8[%c6, %c0_66, %c0_67] : memref<9x128x128xbf16, #tpu.memory_space<vmem>>, vector<1x128x128xbf16>
    %85 = vector.shape_cast %84 : vector<1x128x128xbf16> to vector<128x128xbf16>
    %cst_68 = arith.constant dense<0.000000e+00> : vector<80x128xf32>
    %86 = tpu.matmul %83, %85, %cst_68 {dimension_numbers = #tpu.dot_dimension_numbers<[1], [0], [0], [1], [0, 0, 1, 1], [], []>} : vector<80x128xbf16>, vector<128x128xbf16>, vector<80x128xf32> -> vector<80x128xf32>
    %87 = arith.addf %82, %86 : vector<80x128xf32>
    %c21 = arith.constant 21 : index
    %c0_69 = arith.constant 0 : index
    %88 = vector.load %arg12[%c21, %c0_69] : memref<104x128xbf16, #tpu.memory_space<vmem>>, vector<80x128xbf16>
    %c7 = arith.constant 7 : index
    %c0_70 = arith.constant 0 : index
    %c0_71 = arith.constant 0 : index
    %89 = vector.load %arg8[%c7, %c0_70, %c0_71] : memref<9x128x128xbf16, #tpu.memory_space<vmem>>, vector<1x128x128xbf16>
    %90 = vector.shape_cast %89 : vector<1x128x128xbf16> to vector<128x128xbf16>
    %cst_72 = arith.constant dense<0.000000e+00> : vector<80x128xf32>
    %91 = tpu.matmul %88, %90, %cst_72 {dimension_numbers = #tpu.dot_dimension_numbers<[1], [0], [0], [1], [0, 0, 1, 1], [], []>} : vector<80x128xbf16>, vector<128x128xbf16>, vector<80x128xf32> -> vector<80x128xf32>
    %92 = arith.addf %87, %91 : vector<80x128xf32>
    %c22 = arith.constant 22 : index
    %c0_73 = arith.constant 0 : index
    %93 = vector.load %arg12[%c22, %c0_73] : memref<104x128xbf16, #tpu.memory_space<vmem>>, vector<80x128xbf16>
    %c8 = arith.constant 8 : index
    %c0_74 = arith.constant 0 : index
    %c0_75 = arith.constant 0 : index
    %94 = vector.load %arg8[%c8, %c0_74, %c0_75] : memref<9x128x128xbf16, #tpu.memory_space<vmem>>, vector<1x128x128xbf16>
    %95 = vector.shape_cast %94 : vector<1x128x128xbf16> to vector<128x128xbf16>
    %cst_76 = arith.constant dense<0.000000e+00> : vector<80x128xf32>
    %96 = tpu.matmul %93, %95, %cst_76 {dimension_numbers = #tpu.dot_dimension_numbers<[1], [0], [0], [1], [0, 0, 1, 1], [], []>} : vector<80x128xbf16>, vector<128x128xbf16>, vector<80x128xf32> -> vector<80x128xf32>
    %97 = arith.addf %92, %96 : vector<80x128xf32>
    %c0_77 = arith.constant 0 : index
    %c10_78 = arith.constant 10 : index
    %c0_79 = arith.constant 0 : index
    %98 = vector.load %arg5[%c0_77, %c10_78, %c0_79] : memref<1x100x1xf32, #tpu.memory_space<vmem>>, vector<1x80x1xf32>
    %99 = vector.shape_cast %98 : vector<1x80x1xf32> to vector<80x1xf32>
    %cst_80 = arith.constant 0.000000e+00 : f32
    %100 = vector.broadcast %cst_80 : f32 to vector<80x1xf32>
    %101 = arith.cmpf ogt, %99, %100 : vector<80x1xf32>
    %102 = vector.broadcast %51 : vector<1x128xf32> to vector<80x128xf32>
    %103 = arith.addf %97, %102 : vector<80x128xf32>
    %cst_81 = arith.constant 0.000000e+00 : f32
    %104 = vector.shape_cast %101 : vector<80x1xi1> to vector<80x1xi1>
    %105 = vector.broadcast %104 : vector<80x1xi1> to vector<80x128xi1>
    %106 = vector.broadcast %cst_81 : f32 to vector<80x128xf32>
    %107 = arith.select %105, %103, %106 : vector<80x128xi1>, vector<80x128xf32>
    %c0_82 = arith.constant 0 : index
    %c0_83 = arith.constant 0 : index
    %c0_84 = arith.constant 0 : index
    %108 = vector.load %arg10[%c0_82, %c0_83, %c0_84] : memref<1x80x128xbf16, #tpu.memory_space<vmem>>, vector<1x80x128xbf16>
    %109 = vector.shape_cast %108 : vector<1x80x128xbf16> to vector<80x128xbf16>
    %110 = arith.extf %109 : vector<80x128xbf16> to vector<80x128xf32>
    %111 = arith.addf %107, %110 : vector<80x128xf32>
    %112 = arith.truncf %111 : vector<80x128xf32> to vector<80x128xbf16>
    %c0_85 = arith.constant 0 : index
    %c0_86 = arith.constant 0 : index
    %c0_87 = arith.constant 0 : index
    %113 = vector.load %arg11[%c0_85, %c0_86, %c0_87] : memref<1x80x128xbf16, #tpu.memory_space<vmem>>, vector<1x80x128xbf16>
    %114 = vector.shape_cast %113 : vector<1x80x128xbf16> to vector<80x128xbf16>
    %115 = vector.shape_cast %112 : vector<80x128xbf16> to vector<1x80x128xbf16>
    tpu.vector_store %arg11[%c0_85, %c0_86, %c0_87], %115 {strides = array<i32>} : memref<1x80x128xbf16, #tpu.memory_space<vmem>>, vector<1x80x128xbf16>,
    return
  }
  func.func @transform_0(%arg0: i32, %arg1: i32) -> (i32, i32, i32) {
    %c0_i32 = arith.constant 0 : i32
    %c0_i32_0 = arith.constant 0 : i32
    return %arg0, %arg1, %c0_i32 : i32, i32, i32
  }
  func.func @transform_1(%arg0: i32, %arg1: i32) -> (i32, i32, i32, i32) {
    %c8_i32 = arith.constant 8 : i32
    %0 = arith.muli %arg1, %c8_i32 : i32
    %c1_i32 = arith.constant 1 : i32
    %1 = arith.subi %0, %c1_i32 : i32
    %c0_i32 = arith.constant 0 : i32
    %2 = arith.maxsi %1, %c0_i32 : i32
    %c0_i32_0 = arith.constant 0 : i32
    %c0_i32_1 = arith.constant 0 : i32
    %c0_i32_2 = arith.constant 0 : i32
    return %arg0, %2, %c0_i32_0, %c0_i32_1 : i32, i32, i32, i32
  }
  func.func @transform_2(%arg0: i32, %arg1: i32) -> (i32, i32, i32, i32) {
    %c1_i32 = arith.constant 1 : i32
    %0 = arith.addi %arg1, %c1_i32 : i32
    %c8_i32 = arith.constant 8 : i32
    %1 = arith.muli %0, %c8_i32 : i32
    %c7_i32 = arith.constant 7 : i32
    %2 = arith.minsi %1, %c7_i32 : i32
    %c0_i32 = arith.constant 0 : i32
    %c0_i32_0 = arith.constant 0 : i32
    %c0_i32_1 = arith.constant 0 : i32
    return %arg0, %2, %c0_i32, %c0_i32_0 : i32, i32, i32, i32
  }
  func.func @transform_3(%arg0: i32, %arg1: i32) -> (i32, i32, i32) {
    %c0_i32 = arith.constant 0 : i32
    %c0_i32_0 = arith.constant 0 : i32
    %c0_i32_1 = arith.constant 0 : i32
    return %arg1, %c0_i32, %c0_i32_0 : i32, i32, i32
  }
  func.func @transform_4(%arg0: i32, %arg1: i32) -> (i32, i32) {
    %c0_i32 = arith.constant 0 : i32
    %c0_i32_0 = arith.constant 0 : i32
    %c0_i32_1 = arith.constant 0 : i32
    return %c0_i32, %c0_i32_0 : i32, i32
  }
  func.func @transform_5(%arg0: i32, %arg1: i32) -> (i32, i32) {
    %c0_i32 = arith.constant 0 : i32
    %c0_i32_0 = arith.constant 0 : i32
    %c0_i32_1 = arith.constant 0 : i32
    return %c0_i32, %c0_i32_0 : i32, i32
  }
  func.func @transform_6(%arg0: i32, %arg1: i32) -> (i32, i32, i32) {
    %c0_i32 = arith.constant 0 : i32
    %c0_i32_0 = arith.constant 0 : i32
    %c0_i32_1 = arith.constant 0 : i32
    %c0_i32_2 = arith.constant 0 : i32
    return %c0_i32, %c0_i32_0, %c0_i32_1 : i32, i32, i32
  }
  func.func @transform_7(%arg0: i32, %arg1: i32) -> (i32, i32) {
    %c0_i32 = arith.constant 0 : i32
    %c0_i32_0 = arith.constant 0 : i32
    %c0_i32_1 = arith.constant 0 : i32
    return %c0_i32, %c0_i32_0 : i32, i32
  }
  func.func @transform_8(%arg0: i32, %arg1: i32) -> (i32, i32, i32) {
    %c0_i32 = arith.constant 0 : i32
    %c0_i32_0 = arith.constant 0 : i32
    return %arg0, %arg1, %c0_i32 : i32, i32, i32
  }
  func.func @transform_9(%arg0: i32, %arg1: i32) -> (i32, i32, i32) {
    %c0_i32 = arith.constant 0 : i32
    %c0_i32_0 = arith.constant 0 : i32
    return %arg0, %arg1, %c0_i32 : i32, i32, i32
  }
}

</mosaic_0001>

<bundles_post_ra>
// kernel: down_forward.4
= control target key start
LH: loop header
LB: loop body
LE: loop exit
PB: predicated region body
PF: predicated region fallthrough
CT: control target
= control target key end

     0   :  { %s757_s9 = smov 0   ;;  %s759_s10 = smov 0   ;;  %s1028_s0 = inlined_call_operand.vmem [shape: f32[2,16,8,256], index: 0, kind: input, shape index: {}]   ;;  %s1029_s1 = inlined_call_operand.vmem [shape: bf16[2,8,10,128], index: 1, kind: output, shape index: {0}]   ;;  %s1030_s2 = inlined_call_operand.vmem [shape: f32[2,1,1,256], index: 2, kind: output, shape index: {1}]  }
   0x1   :  { %s761_s11 = smov 0  }
   0x2 LB: > { %s25_s12 = sadd.s32 1, %s736_s10  ;;  %p668_p0 = scmp.ge.s32.totalorder %s740_s11, 1  ;;  %s740_s11 = sphi %s761_s11, %s13_s11   ;;  %s736_s10 = sphi %s759_s10, %s1038_s10   ;;  %s732_s9 = sphi %s757_s9, %s1037_s9  }
   0x3   : > { %p27_p1 = scmp.ge.s32.totalorder %s25_s12, 2  ;;  %p139_p2 = scmp.lt.s32.totalorder %s740_s11, 3 }
   0x5   : > { %s1040_s12 = smov (%p27_p1, %s25_s12), 0  ;;  %p140_p3 = pnand %p668_p0, %p139_p2 }
   0x6   : > { %p180_p4 = scmp.lt.s32.totalorder (!%p140_p3), %s732_s9, 1 }
   0x7   : > { %143 = sbr.rel (%p140_p3) target bundleno = 67 (0x43), region = 24 }
   0xc   : > { %s1042_s9 = smov (!%p180_p4, %s732_s9), 1  ;;  %vm378_vm0 = vcmask 1043456   ;;  %vm379_vm1 = vsmask.f32 7938  ;;  %vm384_vm2 = vcmask 1040384  }
   0xd   : > { %s684_s13 = sshll.u32 %s1042_s9, 8  ;;  %s685_s17 = sshll.u32 %s1042_s9, 6  ;;  %vm385_vm3 = vsmask.f32 256  ;;  %vm810_vm4 = vmand %vm378_vm0, %vm379_vm1 }
   0xe   : > { %s781_s16 = scalar_lea.vmem %s1028_s0, %s684_s13  ;;  %s803_s20 = scalar_lea.vmem %s1029_s1, %s685_s17  ;;  %vm819_vm5 = vmand %vm384_vm2, %vm385_vm3 }
   0xf   : > { %v210_v0 = vld [vmem:[%s781_s16] sm:$0xff]  ;;  %v211_v1 = vld [vmem:[%s781_s16 + $0x8] sm:$0xff]  ;;  %v212_v2 = vld [vmem:[%s781_s16 + $0x10] sm:$0xff]  ;;  %s673_s21 = sshll.u32 %s1042_s9, 1 }
  0x10   : > { %v213_v3 = vld [vmem:[%s781_s16 + $0x18] sm:$0xff]  ;;  %v242_v4 = vmax.f32 %v210_v0, %v211_v1  ;;  %v214_v6 = vld [vmem:[%s781_s16 + $0x20] sm:$0xff]  ;;  %v215_v7 = vld [vmem:[%s781_s16 + $0x28] sm:$0xff]  ;;  %s208_s24 = scalar_lea.vmem %s1030_s2, %s673_s21 }
  0x11   : > { %v243_v5 = vmax.f32 %v212_v2, %v213_v3  ;;  %v216_v8 = vld [vmem:[%s781_s16 + $0x30] sm:$0xff]  ;;  %v217_v9 = vld [vmem:[%s781_s16 + $0x38] sm:$0xff]  ;;  %v244_v10 = vmax.f32 %v214_v6, %v215_v7  ;;  %v218_v13 = vld [vmem:[%s781_s16 + $0x40] sm:$0xff] }
  0x12   : > { %v245_v12 = vmax.f32 %v216_v8, %v217_v9  ;;  %v219_v14 = vld [vmem:[%s781_s16 + $0x48] sm:$0xff]  ;;  %v220_v15 = vld [vmem:[%s781_s16 + $0x50] sm:$0xff]  ;;  %v221_v16 = vld [vmem:[%s781_s16 + $0x58] sm:$0xff] }
  0x13   : > { %v258_v11 = vmax.f32 %v242_v4, %v243_v5  ;;  %v246_v17 = vmax.f32 %v218_v13, %v219_v14  ;;  %v247_v20 = vmax.f32 %v220_v15, %v221_v16  ;;  %v222_v21 = vld [vmem:[%s781_s16 + $0x60] sm:$0xff]  ;;  %v223_v22 = vld [vmem:[%s781_s16 + $0x68] sm:$0xff]  ;;  %v224_v23 = vld [vmem:[%s781_s16 + $0x70] sm:$0xff] }
  0x14   : > { %v259_v19 = vmax.f32 %v244_v10, %v245_v12  ;;  %v225_v25 = vld [vmem:[%s781_s16 + $0x78] sm:$0xff]  ;;  %v248_v29 = vmax.f32 %v222_v21, %v223_v22  ;;  %v226_v30 = vld [vmem:[%s781_s16 + $0x80] sm:$0xff]  ;;  %v227_v31 = vld [vmem:[%s781_s16 + $0x88] sm:$0xff] }
  0x15   : > { %v686_v18 = vpack.c.bf16 %v258_v11, %v258_v11  ;;  %v494_v24 = vmul.f32 %v258_v11, %v258_v11  ;;  %v228_v32 = vld [vmem:[%s781_s16 + $0x90] sm:$0xff]  ;;  %v814_v35 = vmax.f32 %v246_v17, %v247_v20  ;;  %v249_v36 = vmax.f32 %v224_v23, %v225_v25  ;;  %v229_v37 = vld [vmem:[%s781_s16 + $0x98] sm:$0xff]  ;;  %v230_v44 = vld [vmem:[%s781_s16 + $0xa0] sm:$0xff] }
  0x16   : > { %v687_v28 = vpack.c.bf16 %v259_v19, %v259_v19  ;;  %v495_v34 = vmul.f32 %v259_v19, %v259_v19  ;;  %v250_v38 = vmax.f32 %v226_v30, %v227_v31  ;;  %v251_v43 = vmax.f32 %v228_v32, %v229_v37  ;;  %v231_v45 = vld [vmem:[%s781_s16 + $0xa8] sm:$0xff]  ;;  %v381_v46 = vld [vmem:[%s803_s20] sm:$0xf]  ;;  %v387_v47 = vld [vmem:[%s803_s20 + $0x4] sm:$0x1] }
  0x17   : > { %v299_v26 = vshrl.u32 %v686_v18, 16  ;;  %v302_v27 = vshll.u32 %v686_v18, 16  ;;  %v390_v48 = vld [vmem:[%s803_s20 + $0x8] sm:$0xf]  ;;  %v481_v49 = vadd.f32 %v259_v19, %v258_v11  ;;  %v688_v51 = vpack.c.bf16 %v814_v35, %v814_v35  ;;  %v393_v55 = vld [vmem:[%s803_s20 + $0xc] sm:$0x1]  ;;  %vm890_vm6 = vmand %vm384_vm2, %vm379_vm1 }
  0x18   : > { %v307_v41 = vshrl.u32 %v687_v28, 16  ;;  %v310_v42 = vshll.u32 %v687_v28, 16  ;;  %v828_v50 = vadd.f32 %v495_v34, %v494_v24  ;;  %v833_v56 = vmax.f32 %v248_v29, %v249_v36  ;;  %v232_v57 = vld [vmem:[%s781_s16 + $0xb0] sm:$0xff]  ;;  %v233_v61 = vld [vmem:[%s781_s16 + $0xb8] sm:$0xff]  ;;  %v234_v63 = vld [vmem:[%s781_s16 + $0xc0] sm:$0xff] }
  0x19   : > { %v301_v39 = vrot.slane %v299_v26, 7  ;;  %v315_v58 = vshrl.u32 %v688_v51, 16  ;;  %v318_v59 = vshll.u32 %v688_v51, 16  ;;  %v836_v60 = vmax.f32 %v250_v38, %v251_v43  ;;  %v235_v0 = vld [vmem:[%s781_s16 + $0xc8] sm:$0xff]  ;;  %v396_v6 = vld [vmem:[%s803_s20 + $0x10] sm:$0xf] }
  0x1a   : > { %v309_v54 = vrot.slane %v307_v41, 7  ;;  %v252_v62 = vmax.f32 %v230_v44, %v231_v45  ;;  %v482_v7 = vadd.f32 %v481_v49, %v814_v35  ;;  %v689_v8 = vpack.c.bf16 %v833_v56, %v833_v56  ;;  %v236_v10 = vld [vmem:[%s781_s16 + $0xd0] sm:$0xff]  ;;  %v237_v11 = vld [vmem:[%s781_s16 + $0xd8] sm:$0xff]  ;;  %v238_v17 = vld [vmem:[%s781_s16 + $0xe0] sm:$0xff] }
  0x1b   : > { %v304_v52 = vor.u32 %v302_v27, %v301_v39  ;;  %v305_v53 = vrot.slane %v301_v39, 4  ;;  %v317_v5 = vrot.slane %v315_v58, 7  ;;  %v690_v9 = vpack.c.bf16 %v836_v60, %v836_v60  ;;  %v399_v14 = vld [vmem:[%s803_s20 + $0x14] sm:$0x1]  ;;  %v239_v18 = vld [vmem:[%s781_s16 + $0xe8] sm:$0xff]  ;;  %v241_v24 = vld [vmem:[%s781_s16 + $0xf8] sm:$0xff] }
  0x1c   : > { %v312_v3 = vor.u32 %v310_v42, %v309_v54  ;;  %v313_v4 = vrot.slane %v309_v54, 4  ;;  %v253_v15 = vmax.f32 %v232_v57, %v233_v61  ;;  %v254_v16 = vmax.f32 %v234_v63, %v235_v0  ;;  %v240_v23 = vld [vmem:[%s781_s16 + $0xf0] sm:$0xff]  ;;  %v402_v34 = vld [vmem:[%s803_s20 + $0x18] sm:$0xf]  ;;  %v405_v36 = vld [vmem:[%s803_s20 + $0x1c] sm:$0x1] }
  0x1d   : > { %v382_v1 = vsel %vm810_vm4, %v304_v52, %v381_v46  ;;  %v388_v2 = vsel %vm819_vm5, %v305_v53, %v387_v47  ;;  %v320_v19 = vor.u32 %v318_v59, %v317_v5  ;;  %v321_v20 = vrot.slane %v317_v5, 4  ;;  %v408_v45 = vld [vmem:[%s803_s20 + $0x20] sm:$0xf]  ;;  %v411_v46 = vld [vmem:[%s803_s20 + $0x24] sm:$0x1] }
  0x1e   : > { %383 = vst [vmem:[%s803_s20] sm:$0xf] %v382_v1  ;;  %389 = vst [vmem:[%s803_s20 + $0x4] sm:$0x1] %v388_v2  ;;  %v391_v12 = vsel %vm810_vm4, %v312_v3, %v390_v48  ;;  %v394_v13 = vsel %vm819_vm5, %v313_v4, %v393_v55  ;;  %v323_v21 = vshrl.u32 %v689_v8, 16  ;;  %v326_v22 = vshll.u32 %v689_v8, 16 }
  0x1f   : > { %392 = vst [vmem:[%s803_s20 + $0x8] sm:$0xf] %v391_v12  ;;  %395 = vst [vmem:[%s803_s20 + $0xc] sm:$0x1] %v394_v13  ;;  %v331_v25 = vshrl.u32 %v690_v9, 16  ;;  %v334_v26 = vshll.u32 %v690_v9, 16  ;;  %v866_v27 = vmax.f32 %v252_v62, %v253_v15  ;;  %v255_v28 = vmax.f32 %v236_v10, %v237_v11 }
  0x20   : > { %v397_v29 = vsel %vm810_vm4, %v320_v19, %v396_v6  ;;  %v400_v30 = vsel %vm819_vm5, %v321_v20, %v399_v14  ;;  %v325_v31 = vrot.slane %v323_v21, 7  ;;  %v256_v32 = vmax.f32 %v238_v17, %v239_v18  ;;  %v414_v57 = vld [vmem:[%s803_s20 + $0x28] sm:$0xf]  ;;  %v417_v4 = vld [vmem:[%s803_s20 + $0x2c] sm:$0x1] }
  0x21   : > { %398 = vst [vmem:[%s803_s20 + $0x10] sm:$0xf] %v397_v29  ;;  %401 = vst [vmem:[%s803_s20 + $0x14] sm:$0x1] %v400_v30  ;;  %v333_v37 = vrot.slane %v331_v25, 7  ;;  %v691_v38 = vpack.c.bf16 %v866_v27, %v866_v27  ;;  %v878_v39 = vmax.f32 %v254_v16, %v255_v28  ;;  %v257_v41 = vmax.f32 %v240_v23, %v241_v24 }
  0x22   : > { %v882_v42 = vmul.f32 %v814_v35, %v814_v35  ;;  %v328_v43 = vor.u32 %v326_v22, %v325_v31  ;;  %v329_v44 = vrot.slane %v325_v31, 4  ;;  %v483_v47 = vadd.f32 %v482_v7, %v833_v56  ;;  %v420_v11 = vld [vmem:[%s803_s20 + $0x30] sm:$0xf]  ;;  %v423_v22 = vld [vmem:[%s803_s20 + $0x34] sm:$0x1] }
  0x23   : > { %v336_v48 = vor.u32 %v334_v26, %v333_v37  ;;  %v337_v49 = vrot.slane %v333_v37, 4  ;;  %v339_v51 = vshrl.u32 %v691_v38, 16  ;;  %v342_v52 = vshll.u32 %v691_v38, 16  ;;  %v426_v29 = vld [vmem:[%s803_s20 + $0x38] sm:$0xf] }
  0x24   : > { %v403_v54 = vsel %vm810_vm4, %v328_v43, %v402_v34  ;;  %v406_v55 = vsel %vm819_vm5, %v329_v44, %v405_v36  ;;  %v692_v58 = vpack.c.bf16 %v878_v39, %v878_v39  ;;  %v901_v59 = vmax.f32 %v256_v32, %v257_v41  ;;  %v429_v30 = vld [vmem:[%s803_s20 + $0x3c] sm:$0x1] }
  0x25   : > { %v432_v53 = vld [vmem:[%s803_s20] sm:$0x1]  ;;  %v457_v61 = vld [vmem:[%s803_s20 + $0x4] sm:$0x1]  ;;  %404 = vst [vmem:[%s803_s20 + $0x18] sm:$0xf] %v403_v54  ;;  %v409_v62 = vsel %vm810_vm4, %v336_v48, %v408_v45  ;;  %v412_v63 = vsel %vm819_vm5, %v337_v49, %v411_v46  ;;  %v484_v18 = vadd.f32 %v483_v47, %v836_v60  ;;  %v497_v19 = vmul.f32 %v833_v56, %v833_v56 }
  0x26   : > { %407 = vst [vmem:[%s803_s20 + $0x1c] sm:$0x1] %v406_v55  ;;  %v341_v0 = vrot.slane %v339_v51, 7  ;;  %v433_v1 = vsel %vm819_vm5, 0, %v432_v53  ;;  %v435_v2 = vld [vmem:[%s803_s20 + $0x8] sm:$0x1]  ;;  %v693_v7 = vpack.c.bf16 %v901_v59, %v901_v59  ;;  %v498_v32 = vmul.f32 %v836_v60, %v836_v60 }
  0x27   : > { %v460_v3 = vld [vmem:[%s803_s20 + $0xc] sm:$0x1]  ;;  %410 = vst [vmem:[%s803_s20 + $0x20] sm:$0xf] %v409_v62  ;;  %413 = vst [vmem:[%s803_s20 + $0x24] sm:$0x1] %v412_v63  ;;  %v485_v31 = vadd.f32 %v484_v18, %v866_v27  ;;  %v499_v34 = vmul.f32 %v866_v27, %v866_v27  ;;  %v503_v36 = vadd.f32 %v828_v50, %v882_v42 }
  0x28   : > { %v347_v5 = vshrl.u32 %v692_v58, 16  ;;  %v350_v6 = vshll.u32 %v692_v58, 16  ;;  %434 = vst [vmem:[%s803_s20] sm:$0x1] %v433_v1  ;;  %v436_v8 = vsel %vm819_vm5, 0, %v435_v2  ;;  %v344_v9 = vor.u32 %v342_v52, %v341_v0  ;;  %v438_v17 = vld [vmem:[%s803_s20 + $0x10] sm:$0x1] }
  0x29   : > { %v345_v10 = vrot.slane %v341_v0, 4  ;;  %437 = vst [vmem:[%s803_s20 + $0x8] sm:$0x1] %v436_v8  ;;  %v458_v12 = vsel %vm890_vm6, 0, %v457_v61  ;;  %v461_v13 = vsel %vm890_vm6, 0, %v460_v3  ;;  %v355_v15 = vshrl.u32 %v693_v7, 16 }
  0x2a   : > { %v349_v14 = vrot.slane %v347_v5, 7  ;;  %v358_v16 = vshll.u32 %v693_v7, 16  ;;  %459 = vst [vmem:[%s803_s20 + $0x4] sm:$0x1] %v458_v12  ;;  %462 = vst [vmem:[%s803_s20 + $0xc] sm:$0x1] %v461_v13  ;;  %v415_v20 = vsel %vm810_vm4, %v344_v9, %v414_v57  ;;  %v486_v46 = vadd.f32 %v485_v31, %v878_v39 }
  0x2b   : > { %v418_v21 = vsel %vm819_vm5, %v345_v10, %v417_v4  ;;  %v439_v23 = vsel %vm819_vm5, 0, %v438_v17  ;;  %v463_v24 = vld [vmem:[%s803_s20 + $0x14] sm:$0x1]  ;;  %416 = vst [vmem:[%s803_s20 + $0x28] sm:$0xf] %v415_v20  ;;  %v357_v28 = vrot.slane %v355_v15, 7  ;;  %v504_v47 = vadd.f32 %v503_v36, %v497_v19 }
  0x2c   : > { %419 = vst [vmem:[%s803_s20 + $0x2c] sm:$0x1] %v418_v21  ;;  %v352_v25 = vor.u32 %v350_v6, %v349_v14  ;;  %v353_v26 = vrot.slane %v349_v14, 4  ;;  %440 = vst [vmem:[%s803_s20 + $0x10] sm:$0x1] %v439_v23  ;;  %v464_v56 = vsel %vm890_vm6, 0, %v463_v24  ;;  %v487_v33 = vadd.f32 %v486_v46, %v901_v59 }
  0x2d   : > { %465 = vst [vmem:[%s803_s20 + $0x14] sm:$0x1] %v464_v56  ;;  %v360_v41 = vor.u32 %v358_v16, %v357_v28  ;;  %v361_v43 = vrot.slane %v357_v28, 4  ;;  %v441_v44 = vld [vmem:[%s803_s20 + $0x18] sm:$0x1]  ;;  %v500_v53 = vmul.f32 %v878_v39, %v878_v39  ;;  %v505_v54 = vadd.f32 %v504_v47, %v498_v32 }
  0x2e   : > { %v421_v37 = vsel %vm810_vm4, %v352_v25, %v420_v11  ;;  %v424_v38 = vsel %vm819_vm5, %v353_v26, %v423_v22  ;;  %v466_v45 = vld [vmem:[%s803_s20 + $0x1c] sm:$0x1]  ;;  %v442_v50 = vsel %vm819_vm5, 0, %v441_v44  ;;  %v444_v60 = vld [vmem:[%s803_s20 + $0x20] sm:$0x1]  ;;  %v488_v58 = vrot.slane %v487_v33, 4 }
  0x2f   : > { %422 = vst [vmem:[%s803_s20 + $0x30] sm:$0xf] %v421_v37  ;;  %425 = vst [vmem:[%s803_s20 + $0x34] sm:$0x1] %v424_v38  ;;  %v467_v27 = vsel %vm890_vm6, 0, %v466_v45  ;;  %v427_v48 = vsel %vm810_vm4, %v360_v41, %v426_v29  ;;  %v430_v49 = vsel %vm819_vm5, %v361_v43, %v429_v30  ;;  %v445_v51 = vsel %vm819_vm5, 0, %v444_v60 }
  0x30   : > { %v469_v42 = vld [vmem:[%s803_s20 + $0x24] sm:$0x1]  ;;  %443 = vst [vmem:[%s803_s20 + $0x18] sm:$0x1] %v442_v50  ;;  %468 = vst [vmem:[%s803_s20 + $0x1c] sm:$0x1] %v467_v27  ;;  %v501_v61 = vmul.f32 %v901_v59, %v901_v59  ;;  %v506_v62 = vadd.f32 %v505_v54, %v499_v34  ;;  %v489_v39 = vadd.f32 %v488_v58, %v487_v33  ;;  %v515_v9 = vlaneseq }
  0x31   : > { %v470_v52 = vsel %vm890_vm6, 0, %v469_v42  ;;  %428 = vst [vmem:[%s803_s20 + $0x38] sm:$0xf] %v427_v48  ;;  %431 = vst [vmem:[%s803_s20 + $0x3c] sm:$0x1] %v430_v49 }
  0x32   : > { %446 = vst [vmem:[%s803_s20 + $0x20] sm:$0x1] %v445_v51  ;;  %471 = vst [vmem:[%s803_s20 + $0x24] sm:$0x1] %v470_v52  ;;  %v447_v55 = vld [vmem:[%s803_s20 + $0x28] sm:$0x1]  ;;  %v507_v1 = vadd.f32 %v506_v62, %v500_v53 }
  0x33   : > { %v472_v57 = vld [vmem:[%s803_s20 + $0x2c] sm:$0x1]  ;;  %v448_v63 = vsel %vm819_vm5, 0, %v447_v55  ;;  %v490_v5 = vrot.slane %v489_v39, 2  ;;  %vm517_vm7 = vcmp.lt.s32.totalorder %v515_v9, 128 }
  0x34   : > { %v473_v0 = vsel %vm890_vm6, 0, %v472_v57  ;;  %449 = vst [vmem:[%s803_s20 + $0x28] sm:$0x1] %v448_v63  ;;  %v508_v6 = vadd.f32 %v507_v1, %v501_v61 }
  0x35   : > { %474 = vst [vmem:[%s803_s20 + $0x2c] sm:$0x1] %v473_v0  ;;  %v491_v12 = vadd.f32 %v490_v5, %v489_v39 }
  0x36   : > { %v450_v2 = vld [vmem:[%s803_s20 + $0x30] sm:$0x1]  ;;  %v475_v3 = vld [vmem:[%s803_s20 + $0x34] sm:$0x1]  ;;  %v509_v13 = vrot.slane %v508_v6, 4 }
  0x37   : > { %v451_v59 = vsel %vm819_vm5, 0, %v450_v2  ;;  %v476_v4 = vsel %vm890_vm6, 0, %v475_v3  ;;  %v492_v14 = vrot.slane %v491_v12, 1 }
  0x38   : > { %452 = vst [vmem:[%s803_s20 + $0x30] sm:$0x1] %v451_v59  ;;  %v453_v7 = vld [vmem:[%s803_s20 + $0x38] sm:$0x1]  ;;  %477 = vst [vmem:[%s803_s20 + $0x34] sm:$0x1] %v476_v4  ;;  %v510_v15 = vadd.f32 %v509_v13, %v508_v6 }
  0x39   : > { %v478_v8 = vld [vmem:[%s803_s20 + $0x3c] sm:$0x1]  ;;  %v454_v10 = vsel %vm819_vm5, 0, %v453_v7  ;;  %v493_v16 = vadd.f32 %v492_v14, %v491_v12 }
  0x3a   : > { %v479_v11 = vsel %vm890_vm6, 0, %v478_v8  ;;  %455 = vst [vmem:[%s803_s20 + $0x38] sm:$0x1] %v454_v10  ;;  %v511_v17 = vrot.slane %v510_v15, 2 }
  0x3b   : > { %480 = vst [vmem:[%s803_s20 + $0x3c] sm:$0x1] %v479_v11  ;;  %519 = vst.msk [vmem:[%s208_s24] sm:$0x1] %vm517_vm7, %v493_v16 }
  0x3c   : > { %v512_v40 = vadd.f32 %v511_v17, %v510_v15 }
  0x3e   : > { %v513_v18 = vrot.slane %v512_v40, 1 }
  0x40   : > { %v514_v19 = vadd.f32 %v513_v18, %v512_v40 }
  0x42   : > { %520 = vst.msk [vmem:[%s208_s24 + $0x1] sm:$0x1] %vm517_vm7, %v514_v19 }
  0x43 PF: > { %s13_s11 = sadd.s32 1, %s740_s11   ;;  %s1037_s9 = smov %s736_s10 }
  0x44   : > { %p10_p5 = scmp.ge.s32.totalorder %s13_s11, 4   ;;  %s1038_s10 = smov %s1040_s12 }
  0x46   :  { %12 = sbr.rel (!%p10_p5) target bundleno = 2 (0x2), region = 66 }

// kernel: down_forward.5
= control target key start
LH: loop header
LB: loop body
LE: loop exit
PB: predicated region body
PF: predicated region fallthrough
CT: control target
= control target key end

     0   :  { %s3897_s27 = smov 0   ;;  %s3899_s28 = smov 0   ;;  %s4798_s0 = inlined_call_operand.vmem [shape: bf16[2,80,128], index: 0, kind: input, shape index: {}]   ;;  %s4799_s1 = inlined_call_operand.vmem [shape: bf16[2,8,10,128], index: 1, kind: input, shape index: {}, may-alias: {1,2}]   ;;  %s4800_s2 = inlined_call_operand.vmem [shape: bf16[2,8,10,128], index: 2, kind: input, shape index: {}, may-alias: {1,2}]   ;;  %s4801_s3 = inlined_call_operand.vmem [shape: f32[1,100,1], index: 3, kind: input, shape index: {}]   ;;  %s4802_s4 = inlined_call_operand.vmem [shape: f32[1,128], index: 4, kind: input, shape index: {}]   ;;  %s4803_s5 = inlined_call_operand.vmem [shape: f32[1,128], index: 5, kind: input, shape index: {}]   ;;  %s4804_s6 = inlined_call_operand.vmem [shape: bf16[9,128,128], index: 6, kind: input, shape index: {}]   ;;  %s4805_s7 = inlined_call_operand.vmem [shape: f32[1,128], index: 7, kind: input, shape index: {}]   ;;  %s4806_s8 = inlined_call_operand.vmem [shape: bf16[2,80,128], index: 8, kind: output, shape index: {}]  }
   0x1   :  { %s3901_s29 = smov 0  }
   0x2 LB: > { %s30_s30 = sadd.s32 1, %s3843_s28  ;;  %p2903_p0 = scmp.ge.s32.totalorder %s3847_s29, 1  ;;  %s3847_s29 = sphi %s3901_s29, %s18_s29   ;;  %s3843_s28 = sphi %s3899_s28, %s4820_s28   ;;  %s3839_s27 = sphi %s3897_s27, %s4819_s27  }
   0x3   : > { %p32_p1 = scmp.ge.s32.totalorder %s30_s30, 2  ;;  %p357_p2 = scmp.lt.s32.totalorder %s3847_s29, 3 }
   0x5   : > { %s4822_s30 = smov (%p32_p1, %s30_s30), 0  ;;  %p358_p3 = pnand %p2903_p0, %p357_p2 }
   0x6   : > { %p431_p4 = scmp.lt.s32.totalorder (!%p358_p3), %s3839_s27, 1 }
   0x7   : > { %361 = sbr.rel (%p358_p3) target bundleno = 564 (0x234), region = 52 }
   0xc   : > { %v3920_v0 = vld [vmem:[%s4801_s3 + $0xa] sm:$0xff]  ;;  %v506_v1 = vld [vmem:[%s4801_s3] sm:$0xff]  ;;  %v3849_v2 = vmov 0   ;;  %v587_v3 = vld [vmem:[%s4801_s3 + $0x12] sm:$0xff]  ;;  %vm492_vm0 = vcmask 1040384   ;;  %v3850_v12 = vmov 0.0  }
   0xd   : > { %3729 = vset.pattern.permute.xlu1 %v3849_v2  ;;  %3728 = vset.pattern.permute.xlu0 %v3849_v2  ;;  %v507_v4 = vld [vmem:[%s4801_s3 + $0x8] sm:$0x3]  ;;  %v3942_v6 = vld [vmem:[%s4801_s3 + $0x1a] sm:$0xff]  ;;  %vm493_vm1 = vsmask.f32 256  ;;  %v3953_v9 = vld [vmem:[%s4801_s3 + $0x32] sm:$0xff] }
   0xe   : > { %628 = vperm.xlu1 %3729, %v3920_v0   ;;  %528 = vperm.xlu0 %3728, %v506_v1   ;;  %v3937_v5 = vld [vmem:[%s4801_s3 + $0x22] sm:$0xff]  ;;  %v495_v7 = vld [vmem:[#allocation2] sm:$0x1]  ;;  %v3730_v8 = vld [vmem:[%s4804_s6 + $0x38] sm:$0xff]   ;;  %vm2619_vm3 = vcmp.gt.f32.partialorder %v587_v3, 0.0  ;;  %vm2618_vm4 = vcmp.gt.f32.partialorder %v3920_v0, 0.0 }
   0xf   : > { %vm494_vm2 = vmand %vm492_vm0, %vm493_vm1  ;;  %v3958_v10 = vld [vmem:[%s4801_s3 + $0x2a] sm:$0xff]  ;;  %3396 = vmatprep.subr.bf16.mxu1 %v3850_v12  ;;  %3360 = vmatprep.subr.bf16.mxu0 %v3850_v12  ;;  %v3968_v14 = vld [vmem:[%s4801_s3 + $0x42] sm:$0xff]  ;;  %v2645_v27 = vsel %vm2619_vm3, 1, %v3849_v2  ;;  %v2644_v28 = vsel %vm2618_vm4, 1, %v3849_v2  ;;  %vm2621_vm5 = vcmp.gt.f32.partialorder %v3937_v5, 0.0  ;;  %vm2620_vm6 = vcmp.gt.f32.partialorder %v3942_v6, 0.0 }
  0x10   : > { %v496_v11 = vsel %vm494_vm2, 0, %v495_v7  ;;  %3397 = vmatpush3.bf16.msra.mxu1 %v3730_v8  ;;  %v3731_v13 = vld [vmem:[%s4804_s6 + $0x30] sm:$0xff]   ;;  %v3732_v15 = vld [vmem:[%s4804_s6 + $0x78] sm:$0xff]   ;;  %v3733_v17 = vld [vmem:[%s4804_s6 + $0x28] sm:$0xff]   ;;  %vm498_vm7 = vcmask 1043458   ;;  %v2647_v31 = vsel %vm2621_vm5, 1, %v3849_v2 }
  0x11   : > { %497 = vst [vmem:[#allocation2] sm:$0x1] %v496_v11  ;;  %3398 = vmatprep.subr.bf16.mxu1 %v3850_v12  ;;  %v3979_v16 = vld [vmem:[%s4801_s3 + $0x3a] sm:$0xff]  ;;  %3361 = vmatpush3.bf16.msra.mxu0 %v3732_v15  ;;  %v3734_v18 = vld [vmem:[%s4804_s6 + $0x70] sm:$0xff]   ;;  %v3736_v22 = vld [vmem:[%s4804_s6 + $0x68] sm:$0xff]   ;;  %v2646_v33 = vsel %vm2620_vm6, 1, %v3849_v2 }
  0x12   : > { %633 = vperm.xlu1 %3729, %v587_v3   ;;  %533 = vperm.xlu0 %3728, %v507_v4   ;;  %v3994_v19 = vld [vmem:[%s4801_s3 + $0x52] sm:$0xff]  ;;  %v3999_v20 = vld [vmem:[%s4801_s3 + $0x4a] sm:$0xff]  ;;  %v3735_v21 = vld [vmem:[%s4804_s6 + $0x20] sm:$0xff]   ;;  %vm499_vm8 = vsmask.f32 7946  ;;  %vm2623_vm10 = vcmp.gt.f32.partialorder %v3953_v9, 0.0 }
  0x13   : > { %3362 = vmatprep.subr.bf16.mxu0 %v3850_v12  ;;  %v849_v23 = vld [vmem:[%s4801_s3 + $0x62] sm:$0x3]  ;;  %v848_v24 = vld [vmem:[%s4801_s3 + $0x5a] sm:$0xff]  ;;  %v3739_v29 = vld [vmem:[%s4804_s6 + $0x10] sm:$0xff]   ;;  %vm2622_vm11 = vcmp.gt.f32.partialorder %v3958_v10, 0.0  ;;  %v2649_v37 = vsel %vm2623_vm10, 1, %v3849_v2 }
  0x14   : > { %3399 = vmatpush3.bf16.msra.mxu1 %v3731_v13  ;;  %v3737_v25 = vld [vmem:[%s4804_s6 + $0x18] sm:$0xff]   ;;  %v3738_v26 = vld [vmem:[%s4804_s6 + $0x60] sm:$0xff]   ;;  %vm500_vm9 = vmand %vm498_vm7, %vm499_vm8  ;;  %v2648_v38 = vsel %vm2622_vm11, 1, %v3849_v2  ;;  %vm2625_vm12 = vcmp.gt.f32.partialorder %v3968_v14, 0.0  ;;  %vm2624_vm13 = vcmp.gt.f32.partialorder %v3979_v16, 0.0  ;;  %vm2627_vm14 = vcmp.gt.f32.partialorder %v3994_v19, 0.0 }
  0x15   : > { %3400 = vmatprep.subr.bf16.mxu1 %v3850_v12  ;;  %3363 = vmatpush3.bf16.msra.mxu0 %v3734_v18  ;;  %v3740_v30 = vld [vmem:[%s4804_s6 + $0x58] sm:$0xff]   ;;  %v501_v32 = vld [vmem:[#allocation2 + $0x30] sm:$0xc]  ;;  %v3741_v35 = vld [vmem:[%s4804_s6 + $0x8] sm:$0xff]   ;;  %v2651_v41 = vsel %vm2625_vm12, 1, %v3849_v2  ;;  %v2650_v42 = vsel %vm2624_vm13, 1, %v3849_v2 }
  0x16   : > { %643 = vperm.xlu1 %3729, %v3937_v5   ;;  %638 = vperm.xlu0 %3728, %v3942_v6   ;;  %v502_v34 = vsel %vm500_vm9, 0, %v501_v32  ;;  %v3742_v36 = vld [vmem:[%s4804_s6 + $0x50] sm:$0xff]   ;;  %v3743_v39 = vld [vmem:[%s4804_s6] sm:$0xff]   ;;  %v3744_v40 = vld [vmem:[%s4804_s6 + $0x48] sm:$0xff]   ;;  %vm3851_vm15 = vmmov 0   ;;  %vm2626_vm0 = vcmp.gt.f32.partialorder %v3999_v20, 0.0 }
  0x17   : > { %3364 = vmatprep.subr.bf16.mxu0 %v3850_v12  ;;  %503 = vst [vmem:[#allocation2 + $0x30] sm:$0xc] %v502_v34  ;;  %3412 = vmatprep.mubr.msk.bf16.mxu1 %vm3851_vm15, %v3850_v12  ;;  %v3747_v43 = vld [vmem:[%s4804_s6 + $0x40] sm:$0xff]   ;;  %v2653_v44 = vsel %vm2627_vm14, 1, %v3849_v2  ;;  %v2652_v45 = vsel %vm2626_vm0, 1, %v3849_v2  ;;  %s4824_s27 = smov (!%p431_p4, %s3839_s27), 1 }
  0x18   : > { %3401 = vmatpush3.bf16.msra.mxu1 %v3733_v17  ;;  %3376 = vmatprep.mubr.msk.bf16.mxu0 %vm3851_vm15, %v3850_v12  ;;  %s3700_s15 = smul.u32 40, %s4824_s27  ;;  %s3162_s16 = sshll.u32 %s4824_s27, 6  ;;  %v4097_v50 = vld [vmem:[%s4802_s4] ss:$0 sm:$0xff]  ;;  %vm564_vm2 = vcmask 1043456   ;;  %vm570_vm7 = vcmask 1041408  }
  0x19   : > { %3402 = vmatprep.subr.bf16.mxu1 %v3850_v12  ;;  %3365 = vmatpush3.bf16.msra.mxu0 %v3736_v22  ;;  %s452_s22 = scalar_lea.vmem %s4799_s1, %s3162_s16  ;;  %v4104_v57 = vld [vmem:[%s4803_s5] ss:$0 sm:$0xff]  ;;  %s3164_s9 = sadd.s32 56, %s3162_s16  ;;  %vm565_vm3 = vsmask.f32 7938  ;;  %vm828_vm12 = vcmask 1043457  }
  0x1a   : > { %653 = vperm.xlu1 %3729, %v3953_v9   ;;  %648 = vperm.xlu0 %3728, %v3958_v10   ;;  %s438_s19 = scalar_lea.vmem %s4798_s0, %s3700_s15  ;;  %v504_v47 = vld [vmem:[%s452_s22] sm:$0xf]  ;;  %v505_v51 = vld [vmem:[%s452_s22 + $0x4] sm:$0x1]  ;;  %s469_s12 = scalar_lea.vmem %s4800_s2, %s3164_s9  ;;  %vm716_vm4 = vsmask.f32 5392  ;;  %vm4135_vm8 = vmand %vm564_vm2, %vm565_vm3 }
  0x1b   : > { %3366 = vmatprep.subr.bf16.mxu0 %v3850_v12  ;;  %v3190_v46 = vld [vmem:[%s438_s19] sm:$0xff]   ;;  %v508_v49 = vunpack.c.l.bf16 %v504_v47  ;;  %v3235_v52 = vld [vmem:[%s438_s19 + $0x8] sm:$0xff]   ;;  %v3236_v53 = vld [vmem:[%s438_s19 + $0x10] sm:$0xff]   ;;  %v509_v59 = vunpack.c.l.bf16 %v505_v51  ;;  %vm544_vm5 = vsmask.f32 4368  ;;  %vm897_vm0 = vcmask 1042432   ;;  %s4755_s10 = scalar_lea.vmem %s4806_s8, %s3700_s15 }
  0x1c   : > { %3403 = vmatpush3.bf16.msra.mxu1 %v3735_v21  ;;  %v3191_v48 = vunpack.c.l.bf16 %v3190_v46  ;;  %v3237_v56 = vld [vmem:[%s438_s19 + $0x18] sm:$0xff]   ;;  %v3192_v58 = vunpack.c.h.bf16 %v3190_v46  ;;  %v3196_v60 = vunpack.c.h.bf16 %v3235_v52  ;;  %v3195_v61 = vunpack.c.l.bf16 %v3235_v52  ;;  %v3238_v3 = vld [vmem:[%s438_s19 + $0x20] sm:$0xff]   ;;  %vm4162_vm10 = vmor %vm493_vm1, %vm544_vm5 }
  0x1d   : > { %3404 = vmatprep.subr.bf16.mxu1 %v3850_v12  ;;  %3367 = vmatpush3.bf16.msra.mxu0 %v3738_v26  ;;  %v516_v55 = vmul.f32 %v4097_v50, %v508_v49  ;;  %v3200_v62 = vunpack.c.h.bf16 %v3236_v53  ;;  %v3199_v63 = vunpack.c.l.bf16 %v3236_v53  ;;  %v3204_v0 = vunpack.c.h.bf16 %v3237_v56 }
  0x1e   : > { %663 = vperm.xlu1 %3729, %v3968_v14   ;;  %658 = vperm.xlu0 %3728, %v3979_v16   ;;  %v606_v54 = vmul.f32 %v3191_v48, %v4097_v50  ;;  %v607_v4 = vmul.f32 %v3192_v58, %v4097_v50  ;;  %v517_v5 = vmul.f32 %v4097_v50, %v509_v59  ;;  %v3203_v7 = vunpack.c.l.bf16 %v3237_v56  ;;  %v567_v48 = vld [vmem:[#allocation2] sm:$0xf] }
  0x1f   : > { %3368 = vmatprep.subr.bf16.mxu0 %v3850_v12  ;;  %v524_v2 = vadd.f32 %v4104_v57, %v516_v55  ;;  %v609_v6 = vmul.f32 %v3196_v60, %v4097_v50  ;;  %v608_v8 = vmul.f32 %v3195_v61, %v4097_v50  ;;  %v611_v9 = vmul.f32 %v3200_v62, %v4097_v50 }
  0x20   : > { %3405 = vmatpush3.bf16.msra.mxu1 %v3737_v25  ;;  %v616_v1 = vadd.f32 %v4104_v57, %v606_v54  ;;  %v610_v13 = vmul.f32 %v3199_v63, %v4097_v50  ;;  %v613_v14 = vmul.f32 %v3204_v0, %v4097_v50  ;;  %v3208_v15 = vunpack.c.h.bf16 %v3238_v3 }
  0x21   : > { %3406 = vmatprep.subr.bf16.mxu1 %v3850_v12  ;;  %3369 = vmatpush3.bf16.msra.mxu0 %v3740_v30  ;;  %v3207_v16 = vunpack.c.l.bf16 %v3238_v3  ;;  %v619_v21 = vadd.f32 %v4104_v57, %v609_v6  ;;  %v612_v22 = vmul.f32 %v3203_v7, %v4097_v50  ;;  %vm571_vm6 = vsmask.f32 1280 }
  0x22   : > { %673 = vperm.xlu1 %3729, %v3994_v19   ;;  %668 = vperm.xlu0 %3728, %v3999_v20   ;;  %v617_v19 = vadd.f32 %v4104_v57, %v607_v4  ;;  %v525_v20 = vadd.f32 %v4104_v57, %v517_v5  ;;  %v618_v26 = vadd.f32 %v4104_v57, %v608_v8  ;;  %vm4156_vm9 = vmor %vm571_vm6, %vm716_vm4  ;;  %vm829_vm1 = vsmask.f32 7942 }
  0x23   : > { %3370 = vmatprep.subr.bf16.mxu0 %v3850_v12  ;;  %v4126_v32 = vadd.f32 %v4104_v57, %v613_v14  ;;  %v614_v34 = vmul.f32 %v3207_v16, %v4097_v50  ;;  %vm4168_vm11 = vmand %vm570_vm7, %vm571_vm6  ;;  %vm898_vm14 = vsmask.f32 2304  ;;  %vm976_vm3 = vsmask.f32 7424 }
  0x24   : > { %3407 = vmatpush3.bf16.msra.mxu1 %v3739_v29  ;;  %vm4191_vm13 = vmand %vm828_vm12, %vm829_vm1  ;;  %vm1294_vm4 = vcmask 1046528   ;;  %vm1877_vm5 = vcmask 1045504   ;;  %vm1666_vm6 = vsmask.f32 6400  ;;  %vm2249_vm7 = vsmask.f32 5376 }
  0x25   : > { %3408 = vmatprep.subr.bf16.mxu1 %v3850_v12  ;;  %3371 = vmatpush3.bf16.msra.mxu0 %v3742_v36  ;;  %v4143_v55 = vadd.f32 %v4104_v57, %v614_v34  ;;  %vm4222_vm2 = vmand %vm897_vm0, %vm898_vm14 }
  0x26   : > { %863 = vperm.xlu1 %3729, %v849_v23   ;;  %858 = vperm.xlu0 %3728, %v848_v24   ;;  %v847_v23 = vld [vmem:[%s469_s12 + $0x4] sm:$0x1] }
  0x27   : > { %3372 = vmatprep.subr.bf16.mxu0 %v3850_v12 }
  0x28   : > { %3409 = vmatpush3.bf16.msra.mxu1 %v3741_v35 }
  0x29   : > { %3410 = vmatprep.subr.bf16.mxu1 %v3850_v12  ;;  %3373 = vmatpush3.bf16.msra.mxu0 %v3744_v40 }
  0x2a   : > { %2658 = vperm.xlu1 %3729, %v2645_v27   ;;  %2655 = vperm.xlu0 %3728, %v2644_v28   ;;  %v621_v27 = vadd.f32 %v4104_v57, %v611_v9  ;;  %v846_v28 = vld [vmem:[%s469_s12] sm:$0xf] }
  0x2b   : > { %3374 = vmatprep.subr.bf16.mxu0 %v3850_v12 }
  0x2c   : > { %3411 = vmatpush3.bf16.msra.mxu1 %v3743_v39 }
  0x2d   : > { %3468 = vmatprep.subr.bf16.mxu1 %v3850_v12  ;;  %3375 = vmatpush3.bf16.msra.mxu0 %v3747_v43 }
  0x2e   : > { %2664 = vperm.xlu1 %3729, %v2647_v31   ;;  %2661 = vperm.xlu0 %3728, %v2646_v33   ;;  %v620_v31 = vadd.f32 %v4104_v57, %v610_v13  ;;  %v615_v33 = vmul.f32 %v3208_v15, %v4097_v50 }
  0x2f   : > { %3432 = vmatprep.subr.bf16.mxu0 %v3850_v12 }
  0x30   : > { %v4140_v54 = vadd.f32 %v4104_v57, %v615_v33 }
  0x32   : > { %2670 = vperm.xlu1 %3729, %v2649_v37   ;;  %2667 = vperm.xlu0 %3728, %v2648_v38   ;;  %v851_v38 = vunpack.c.l.bf16 %v847_v23 }
  0x34   : > { %v853_v60 = vmul.f32 %v4097_v50, %v851_v38 }
  0x36   : > { %2676 = vperm.xlu1 %3729, %v2651_v41   ;;  %2673 = vperm.xlu0 %3728, %v2650_v42   ;;  %v4131_v41 = vadd.f32 %v4104_v57, %v612_v22  ;;  %v850_v42 = vunpack.c.l.bf16 %v846_v28 }
  0x38   : > { %v4149_v0 = vmul.f32 %v4097_v50, %v850_v42 }
  0x3a   : > { %2682 = vperm.xlu1 %3729, %v2653_v44   ;;  %2679 = vperm.xlu0 %3728, %v2652_v45  }
  0x89   : > { %v629_v10 = vpop.permute.xlu1 %628  ;;  %v529_v11 = vpop.permute.xlu0 %528 }
  0x8a   : > { %v676_v17 = vmul.f32 %v629_v10, %v616_v1  ;;  %v536_v18 = vmul.f32 %v529_v11, %v524_v2 }
  0x8c   : > { %v3167_v24 = vpack.c.bf16 %v676_v17, %v676_v17  ;;  %v3165_v25 = vpack.c.bf16 %v536_v18, %v536_v18 }
  0x8d   : > { %v634_v29 = vpop.permute.xlu1 %633  ;;  %v534_v30 = vpop.permute.xlu0 %533 }
  0x8e   : > { %v719_v35 = vshrl.u32 %v3167_v24, 16  ;;  %v722_v36 = vshll.u32 %v3167_v24, 16  ;;  %v547_v37 = vshrl.u32 %v3165_v25, 16  ;;  %v677_v39 = vmul.f32 %v634_v29, %v617_v19 }
  0x8f   : > { %v537_v40 = vmul.f32 %v534_v30, %v525_v20  ;;  %v550_v46 = vshll.u32 %v3165_v25, 16  ;;  %v573_v20 = vld [vmem:[#allocation2 + $0x4] sm:$0x3] }
  0x90   : > { %v721_v43 = vrot.slane %v719_v35, 6  ;;  %v724_v44 = vrot.slane %v722_v36, 7  ;;  %v549_v45 = vrot.slane %v547_v37, 7  ;;  %v3168_v49 = vpack.c.bf16 %v677_v39, %v677_v39 }
  0x91   : > { %v3166_v51 = vpack.c.bf16 %v537_v40, %v537_v40  ;;  %v644_v52 = vpop.permute.xlu1 %643  ;;  %v639_v53 = vpop.permute.xlu0 %638 }
  0x92   : > { %v4145_v56 = vor.u32 %v724_v44, %v721_v43  ;;  %v552_v58 = vor.u32 %v550_v46, %v549_v45  ;;  %v679_v59 = vmul.f32 %v644_v52, %v619_v21  ;;  %v728_v61 = vshrl.u32 %v3168_v49, 16 }
  0x93   : > { %v731_v62 = vshll.u32 %v3168_v49, 16  ;;  %v555_v63 = vshrl.u32 %v3166_v51, 16  ;;  %v558_v2 = vshll.u32 %v3166_v51, 16  ;;  %v678_v4 = vmul.f32 %v639_v53, %v618_v26 }
  0x94   : > { %v568_v1 = vsel %vm4135_vm8, %v552_v58, %v567_v48  ;;  %v3170_v3 = vpack.c.bf16 %v679_v59, %v679_v59  ;;  %v726_v5 = vrot.slane %v4145_v56, 4  ;;  %v730_v7 = vrot.slane %v728_v61, 6 }
  0x95   : > { %569 = vst [vmem:[#allocation2] sm:$0xf] %v568_v1  ;;  %v733_v8 = vrot.slane %v731_v62, 7  ;;  %v557_v9 = vrot.slane %v555_v63, 7  ;;  %v654_v50 = vpop.permute.xlu1 %653  ;;  %v649_v10 = vpop.permute.xlu0 %648  ;;  %v3169_v15 = vpack.c.bf16 %v678_v4, %v678_v4  ;;  %v553_v17 = vrot.slane %v549_v45, 4 }
  0x96   : > { %v748_v13 = vshrl.u32 %v3170_v3, 16  ;;  %v751_v14 = vshll.u32 %v3170_v3, 16  ;;  %v681_v16 = vmul.f32 %v654_v50, %v621_v27  ;;  %v680_v22 = vmul.f32 %v649_v10, %v620_v31 }
  0x97   : > { %v734_v18 = vor.u32 %v733_v8, %v730_v7  ;;  %v560_v21 = vor.u32 %v558_v2, %v557_v9  ;;  %v738_v25 = vshrl.u32 %v3169_v15, 16  ;;  %v741_v26 = vshll.u32 %v3169_v15, 16 }
  0x98   : > { %v750_v23 = vrot.slane %v748_v13, 6  ;;  %v753_v24 = vrot.slane %v751_v14, 7  ;;  %v3172_v30 = vpack.c.bf16 %v681_v16, %v681_v16  ;;  %v3171_v40 = vpack.c.bf16 %v680_v22, %v680_v22 }
  0x99   : > { %v735_v27 = vsel %vm4156_vm9, %v726_v5, %v734_v18  ;;  %v736_v28 = vrot.slane %v734_v18, 4  ;;  %v561_v29 = vsel %vm4162_vm10, %v553_v17, %v560_v21  ;;  %v664_v33 = vpop.permute.xlu1 %663  ;;  %v659_v34 = vpop.permute.xlu0 %658  ;;  %v740_v36 = vrot.slane %v738_v25, 6 }
  0x9a   : > { %834 = vst [vmem:[#allocation2 + $0x8] sm:$0xf] %v735_v27  ;;  %v574_v31 = vsel %vm4168_vm11, %v561_v29, %v573_v20  ;;  %v754_v35 = vor.u32 %v753_v24, %v750_v23  ;;  %v743_v37 = vrot.slane %v741_v26, 7  ;;  %v768_v38 = vshrl.u32 %v3172_v30, 16 }
  0x9b   : > { %575 = vst [vmem:[#allocation2 + $0x4] sm:$0x3] %v574_v31  ;;  %v771_v39 = vshll.u32 %v3172_v30, 16  ;;  %v683_v42 = vmul.f32 %v664_v33, %v4126_v32  ;;  %v682_v45 = vmul.f32 %v659_v34, %v4131_v41  ;;  %v855_v46 = vadd.f32 %v4104_v57, %v853_v60 }
  0x9c   : > { %v756_v43 = vrot.slane %v754_v35, 4  ;;  %v744_v44 = vor.u32 %v743_v37, %v740_v36  ;;  %v770_v47 = vrot.slane %v768_v38, 6  ;;  %v758_v49 = vshrl.u32 %v3171_v40, 16  ;;  %v843_v36 = vld [vmem:[#allocation2 + $0x2c] sm:$0x3] }
  0x9d   : > { %v773_v48 = vrot.slane %v771_v39, 7  ;;  %v761_v51 = vshll.u32 %v3171_v40, 16  ;;  %v674_v52 = vpop.permute.xlu1 %673  ;;  %v3174_v59 = vpack.c.bf16 %v683_v42, %v683_v42  ;;  %v3173_v61 = vpack.c.bf16 %v682_v45, %v682_v45  ;;  %v669_v62 = vpop.permute.xlu0 %668 }
  0x9e   : > { %v745_v53 = vsel %vm4156_vm9, %v736_v28, %v744_v44  ;;  %v746_v58 = vrot.slane %v744_v44, 4  ;;  %v760_v63 = vrot.slane %v758_v49, 6  ;;  %v685_v41 = vmul.f32 %v674_v52, %v4140_v54  ;;  %v3750_v49 = vld [vmem:[%s4804_s6 + $0xf8] sm:$0xff]   ;;  %v3751_v54 = vld [vmem:[%s4804_s6 + $0xb0] sm:$0xff]  }
  0x9f   : > { %835 = vst [vmem:[#allocation2 + $0xc] sm:$0xf] %v745_v53  ;;  %v774_v32 = vor.u32 %v773_v48, %v770_v47  ;;  %v763_v1 = vrot.slane %v761_v51, 7  ;;  %v788_v2 = vshrl.u32 %v3174_v59, 16  ;;  %v791_v3 = vshll.u32 %v3174_v59, 16 }
  0xa0   : > { %v755_v60 = vsel %vm4156_vm9, %v746_v58, %v754_v35  ;;  %v778_v4 = vshrl.u32 %v3173_v61, 16  ;;  %v781_v7 = vshll.u32 %v3173_v61, 16  ;;  %v3176_v8 = vpack.c.bf16 %v685_v41, %v685_v41  ;;  %v904_v58 = vld [vmem:[#allocation2] sm:$0xf] }
  0xa1   : > { %836 = vst [vmem:[#allocation2 + $0x10] sm:$0xf] %v755_v60  ;;  %v764_v5 = vor.u32 %v763_v1, %v760_v63  ;;  %v864_v9 = vpop.permute.xlu1 %863  ;;  %v854_v50 = vadd.f32 %v4104_v57, %v4149_v0  ;;  %v790_v10 = vrot.slane %v788_v2, 6  ;;  %v793_v11 = vrot.slane %v791_v3, 7  ;;  %v859_v23 = vpop.permute.xlu0 %858 }
  0xa2   : > { %v780_v13 = vrot.slane %v778_v4, 6  ;;  %v684_v14 = vmul.f32 %v669_v62, %v4143_v55  ;;  %v831_v15 = vld [vmem:[#allocation2 + $0x4] sm:$0xe]  ;;  %v783_v18 = vrot.slane %v781_v7, 7  ;;  %v808_v20 = vshrl.u32 %v3176_v8, 16 }
  0xa3   : > { %v765_v16 = vsel %vm4156_vm9, %v756_v43, %v764_v5  ;;  %v766_v17 = vrot.slane %v764_v5, 4  ;;  %v776_v21 = vrot.slane %v774_v32, 4  ;;  %v811_v57 = vshll.u32 %v3176_v8, 16  ;;  %v900_v8 = vld [vmem:[#allocation2 + $0x30] sm:$0x7] }
  0xa4   : > { %837 = vst [vmem:[#allocation2 + $0x14] sm:$0xf] %v765_v16  ;;  %v3175_v0 = vpack.c.bf16 %v684_v14, %v684_v14  ;;  %v867_v22 = vmul.f32 %v864_v9, %v855_v46  ;;  %v784_v24 = vor.u32 %v783_v18, %v780_v13  ;;  %v810_v25 = vrot.slane %v808_v20, 6  ;;  %v3752_v9 = vld [vmem:[%s4804_s6 + $0xf0] sm:$0xff]   ;;  %v3749_v18 = vld [vmem:[%s4804_s6 + $0xb8] sm:$0xff]  }
  0xa5   : > { %v775_v55 = vsel %vm4156_vm9, %v766_v17, %v774_v32  ;;  %v832_v26 = vsel %vm4191_vm13, %v4145_v56, %v831_v15  ;;  %v794_v27 = vor.u32 %v793_v11, %v790_v10  ;;  %v813_v28 = vrot.slane %v811_v57, 7  ;;  %v3755_v57 = vld [vmem:[%s4804_s6 + $0xe8] sm:$0xff]  }
  0xa6   : > { %838 = vst [vmem:[#allocation2 + $0x18] sm:$0xf] %v775_v55  ;;  %v798_v29 = vshrl.u32 %v3175_v0, 16  ;;  %v801_v30 = vshll.u32 %v3175_v0, 16  ;;  %833 = vst [vmem:[#allocation2 + $0x4] sm:$0xe] %v832_v26  ;;  %v785_v33 = vsel %vm4156_vm9, %v776_v21, %v784_v24  ;;  %v3178_v31 = vpack.c.bf16 %v867_v22, %v867_v22 }
  0xa7   : > { %v786_v34 = vrot.slane %v784_v24, 4  ;;  %v866_v35 = vmul.f32 %v859_v23, %v854_v50  ;;  %839 = vst [vmem:[#allocation2 + $0x1c] sm:$0xf] %v785_v33  ;;  %v814_v37 = vor.u32 %v813_v28, %v810_v25  ;;  %v796_v44 = vrot.slane %v794_v27, 4  ;;  %v4213_v59 = vld [vmem:[#allocation2 + $0x8] sm:$0xff]   ;;  %v3756_v22 = vld [vmem:[%s4804_s6 + $0xe0] sm:$0xff]  }
  0xa8   : > { %v800_v38 = vrot.slane %v798_v29, 6  ;;  %v803_v39 = vrot.slane %v801_v30, 7  ;;  %v884_v40 = vshrl.u32 %v3178_v31, 16  ;;  %v887_v42 = vshll.u32 %v3178_v31, 16  ;;  %v3754_v25 = vld [vmem:[%s4804_s6 + $0xa8] sm:$0xff]   ;;  %v3759_v28 = vld [vmem:[%s4804_s6 + $0xd8] sm:$0xff]  }
  0xa9   : > { %v795_v56 = vsel %vm4156_vm9, %v786_v34, %v794_v27  ;;  %v3177_v43 = vpack.c.bf16 %v866_v35, %v866_v35  ;;  %v816_v45 = vrot.slane %v814_v37, 4  ;;  %v985_v4 = vshll.u32 %v4213_v59, 16  ;;  %v3757_v29 = vld [vmem:[%s4804_s6 + $0xa0] sm:$0xff]   ;;  %v3761_v34 = vld [vmem:[%s4804_s6 + $0xd0] sm:$0xff]  }
  0xaa   : > { %840 = vst [vmem:[#allocation2 + $0x20] sm:$0xf] %v795_v56  ;;  %v804_v46 = vor.u32 %v803_v39, %v800_v38  ;;  %v886_v61 = vrot.slane %v884_v40, 6  ;;  %v889_v62 = vrot.slane %v887_v42, 7  ;;  %v989_v0 = vshrl.u32 %v4213_v59, 16  ;;  %v3764_v39 = vld [vmem:[%s4804_s6 + $0xc8] sm:$0xff]  }
  0xab   : > { %v875_v47 = vshrl.u32 %v3177_v43, 16  ;;  %v878_v48 = vshll.u32 %v3177_v43, 16  ;;  %v844_v51 = vsel %vm4168_vm11, %v816_v45, %v843_v36  ;;  %v4233_v11 = vld [vmem:[#allocation2 + $0x10] sm:$0xff]   ;;  %v987_v17 = vrot.slane %v985_v4, 1  ;;  %v3760_v36 = vld [vmem:[%s4804_s6 + $0x98] sm:$0xff]   ;;  %v3766_v43 = vld [vmem:[%s4804_s6 + $0xc0] sm:$0xff]  }
  0xac   : > { %v805_v52 = vsel %vm4156_vm9, %v796_v44, %v804_v46  ;;  %v806_v53 = vrot.slane %v804_v46, 4  ;;  %845 = vst [vmem:[#allocation2 + $0x2c] sm:$0x3] %v844_v51  ;;  %v890_v5 = vor.u32 %v889_v62, %v886_v61  ;;  %v993_v21 = vshll.u32 %v4233_v11, 16  ;;  %v3763_v56 = vld [vmem:[%s4804_s6 + $0x90] sm:$0xff]   ;;  %v3765_v46 = vld [vmem:[%s4804_s6 + $0x88] sm:$0xff]  }
  0xad   : > { %841 = vst [vmem:[#allocation2 + $0x24] sm:$0xf] %v805_v52  ;;  %v877_v32 = vrot.slane %v875_v47, 6  ;;  %v880_v63 = vrot.slane %v878_v48, 7  ;;  %v4215_v1 = vld [vmem:[#allocation2 + $0x4] sm:$0xf]  ;;  %v991_v24 = vor.u32 %v989_v0, %v987_v17 }
  0xae   : > { %v815_v41 = vsel %vm4156_vm9, %v806_v53, %v814_v37  ;;  %v2942_v19 = vcombine.low %v904_v58, %v4215_v1  ;;  %v995_v23 = vrot.slane %v993_v21, 1  ;;  %v4263_v55 = vld [vmem:[#allocation2 + $0x18] sm:$0xff]   ;;  %v997_v30 = vshrl.u32 %v4233_v11, 16  ;;  %v1442_v47 = vld [vmem:[#allocation2 + $0x4] sm:$0xe]  ;;  %v4339_v61 = vld [vmem:[#allocation2 + $0xc] sm:$0xff]  }
  0xaf   : > { %842 = vst [vmem:[#allocation2 + $0x28] sm:$0xf] %v815_v41  ;;  %v881_v60 = vor.u32 %v880_v63, %v877_v32  ;;  %v1001_v27 = vshll.u32 %v4263_v55, 16  ;;  %v1005_v40 = vshrl.u32 %v4263_v55, 16  ;;  %v4324_v51 = vld [vmem:[#allocation2 + $0x8] sm:$0xf] }
  0xb0   : > { %v980_v3 = vshll.u32 %v2942_v19, 16  ;;  %3413 = vmatmul.mubr.bf16.vlgmr.msra.gmra.mxu1 %v2942_v19  ;;  %v978_v50 = vshrl.u32 %v2942_v19, 16  ;;  %v996_v26 = vsel %vm976_vm3, %v991_v24, %v995_v23  ;;  %v999_v35 = vor.u32 %v997_v30, %v995_v23  ;;  %v3770_v58 = vld [vmem:[%s4804_s6 + $0x80] sm:$0xff]   ;;  %v3783_v24 = vld [vmem:[%s4804_s6 + $0x118] sm:$0xff]  }
  0xb1   : > { %v882_v7 = vrot.slane %v881_v60, 4  ;;  %3416 = vmatprep.mubr.msk.bf16.mxu1 %vm3851_vm15, %v3850_v12  ;;  %3469 = vmatpush3.bf16.msra.mxu1 %v3750_v49  ;;  %v1003_v33 = vrot.slane %v1001_v27, 1  ;;  %v4327_v52 = vcombine.low %v1442_v47, %v4324_v51  ;;  %v1273_v41 = vld [vmem:[#allocation2] sm:$0xe]  ;;  %v1499_v19 = vrot.slane %v4339_v61, 1 }
  0xb2   : > { %v982_v10 = vrot.slane %v980_v3, 1  ;;  %3470 = vmatprep.subr.bf16.mxu1 %v3850_v12  ;;  %v2980_v2 = vcombine.low %v1273_v41, %v4215_v1  ;;  %v3775_v1 = vld [vmem:[%s4804_s6 + $0x170] sm:$0xff]   ;;  %v1300_v0 = vrot.slane %v4263_v55, 1  ;;  %v3789_v30 = vld [vmem:[%s4804_s6 + $0x140] sm:$0xff]   ;;  %vm2460_vm8 = vcmask 1044480  }
  0xb3   : > { %v891_v13 = vsel %vm4156_vm9, %v882_v7, %v890_v5  ;;  %v894_v14 = vld [vmem:[#allocation2 + $0x2c] sm:$0xe]  ;;  %v1004_v37 = vsel %vm976_vm3, %v999_v35, %v1003_v33  ;;  %v1007_v45 = vor.u32 %v1005_v40, %v1003_v33  ;;  %v1498_v63 = vrot.slane %v4327_v52, 1  ;;  %v4351_v5 = vld [vmem:[#allocation2 + $0x14] sm:$0xff]   ;;  %v1856_v35 = vld [vmem:[#allocation2 + $0x4] sm:$0xc] }
  0xb4   : > { %v901_v15 = vsel %vm4222_vm2, %v891_v13, %v900_v8  ;;  %v983_v16 = vor.u32 %v982_v10, %v978_v50  ;;  %v895_v20 = vsel %vm4191_vm13, %v881_v60, %v894_v14  ;;  %v4289_v31 = vld [vmem:[#allocation2 + $0x20] sm:$0xff]   ;;  %v3773_v60 = vld [vmem:[%s4804_s6 + $0x178] sm:$0xff]   ;;  %v1295_v7 = vrot.slane %v2980_v2, 1  ;;  %v3778_v13 = vld [vmem:[%s4804_s6 + $0x168] sm:$0xff]  }
  0xb5   : > { %902 = vst [vmem:[#allocation2 + $0x30] sm:$0x7] %v901_v15  ;;  %3471 = vmatpush3.bf16.msra.mxu1 %v3752_v9  ;;  %896 = vst [vmem:[#allocation2 + $0x2c] sm:$0xe] %v895_v20  ;;  %v1009_v38 = vshll.u32 %v4289_v31, 16  ;;  %v1013_v53 = vshrl.u32 %v4289_v31, 16  ;;  %v1500_v4 = vsel %vm1294_vm4, %v1498_v63, %v1499_v19 }
  0xb6   : > { %v988_v6 = vsel %vm976_vm3, %v983_v16, %v987_v17  ;;  %3472 = vmatprep.subr.bf16.mxu1 %v3850_v12  ;;  %v4315_v44 = vld [vmem:[#allocation2 + $0x28] ss:$0 sps:$4 sm:$0x11]   ;;  %v1501_v8 = vrot.slane %v4351_v5, 1  ;;  %v1296_v9 = vrot.slane %v4213_v59, 1  ;;  %v3771_v50 = vld [vmem:[%s4804_s6 + $0x138] sm:$0xff]  }
  0xb7   : > { %3377 = vmatmul.mubr.bf16.vlgmr.msra.gmra.mxu0 %v988_v6  ;;  %v1011_v42 = vrot.slane %v1009_v38, 1  ;;  %v1017_v49 = vshll.u32 %v4315_v44, 16  ;;  %v4372_v15 = vld [vmem:[#allocation2 + $0x1c] sm:$0xff]   ;;  %v1298_v16 = vrot.slane %v4233_v11, 1  ;;  %v3777_v20 = vld [vmem:[%s4804_s6 + $0x128] sm:$0xff]   ;;  %v1671_v40 = vshll.u32 %v4327_v52, 16 }
  0xb8   : > { %3433 = vmatpush3.bf16.msra.mxu0 %v3749_v18  ;;  %3417 = vmatmul.mubr.bf16.gmra.mxu1 %v4213_v59  ;;  %v1297_v10 = vsel %vm1294_vm4, %v1295_v7, %v1296_v9  ;;  %v1502_v14 = vsel %vm1294_vm4, %v1499_v19, %v1501_v8  ;;  %v3774_v59 = vld [vmem:[%s4804_s6 + $0x130] sm:$0xff]   ;;  %v3779_v17 = vld [vmem:[%s4804_s6 + $0x160] sm:$0xff]   ;;  %v1503_v18 = vrot.slane %v4372_v15, 1  ;;  %v3782_v6 = vld [vmem:[%s4804_s6 + $0x158] sm:$0xff]   ;;  %v1881_v63 = vrot.slane %v4351_v5, 2 }
  0xb9   : > { %3434 = vmatprep.subr.bf16.mxu0 %v3850_v12  ;;  %3380 = vmatprep.mubr.msk.bf16.mxu0 %vm3851_vm15, %v3850_v12  ;;  %v1012_v48 = vsel %vm976_vm3, %v1007_v45, %v1011_v42  ;;  %v1015_v62 = vor.u32 %v1013_v53, %v1011_v42  ;;  %v1019_v32 = vrot.slane %v1017_v49, 1  ;;  %v3785_v27 = vld [vmem:[#allocation2 + $0x2c] ss:$0 sps:$4 sm:$0x11]   ;;  %v3791_v38 = vld [vmem:[%s4804_s6 + $0x100] sm:$0xff]   ;;  %v1679_v45 = vshll.u32 %v4339_v61, 16 }
  0xba   : > { %3420 = vmatprep.mubr.msk.bf16.mxu1 %vm3851_vm15, %v3850_v12  ;;  %3473 = vmatpush3.bf16.msra.mxu1 %v3755_v57  ;;  %v1504_v21 = vsel %vm1294_vm4, %v1501_v8, %v1503_v18  ;;  %v4397_v57 = vld [vmem:[#allocation2 + $0x24] sm:$0xff]   ;;  %v1507_v33 = vrot.slane %v3785_v27, 1  ;;  %v1673_v49 = vrot.slane %v1671_v40, 2  ;;  %v3792_v19 = vld [vmem:[%s4804_s6 + $0x1b8] sm:$0xff]  }
  0xbb   : > { %3474 = vmatprep.subr.bf16.mxu1 %v3850_v12  ;;  %v1020_v3 = vsel %vm976_vm3, %v1015_v62, %v1019_v32  ;;  %v1505_v23 = vrot.slane %v4397_v57, 1  ;;  %v1681_v53 = vrot.slane %v1679_v45, 2  ;;  %v1685_v62 = vshrl.u32 %v4351_v5, 16  ;;  %v3798_v8 = vld [vmem:[%s4804_s6 + $0x1e0] sm:$0xff]  }
  0xbc   : > { %3435 = vmatpush3.bf16.msra.mxu0 %v3751_v54  ;;  %v3780_v54 = vld [vmem:[%s4804_s6 + $0x120] sm:$0xff]   ;;  %v1688_v32 = vshll.u32 %v4351_v5, 16  ;;  %v3794_v5 = vld [vmem:[%s4804_s6 + $0x1b0] sm:$0xff]  }
  0xbd   : > { %3436 = vmatprep.subr.bf16.mxu0 %v3850_v12  ;;  %v1687_v2 = vrot.slane %v1685_v62, 1 }
  0xbe   : > { %3475 = vmatpush3.bf16.msra.mxu1 %v3756_v22  ;;  %v3784_v22 = vld [vmem:[%s4804_s6 + $0x150] sm:$0xff]  }
  0xbf   : > { %3381 = vmatmul.mubr.bf16.gmra.mxu0 %v996_v26  ;;  %3476 = vmatprep.subr.bf16.mxu1 %v3850_v12  ;;  %v1506_v26 = vsel %vm1294_vm4, %v1503_v18, %v1505_v23  ;;  %v3799_v18 = vld [vmem:[%s4804_s6 + $0x1a0] sm:$0xff]  }
  0xc0   : > { %3421 = vmatmul.mubr.bf16.gmra.mxu1 %v4233_v11  ;;  %3437 = vmatpush3.bf16.msra.mxu0 %v3754_v25  ;;  %v1299_v11 = vsel %vm1294_vm4, %v1296_v9, %v1298_v16  ;;  %v3787_v25 = vld [vmem:[%s4804_s6 + $0x148] sm:$0xff]   ;;  %v1694_v9 = vshrl.u32 %v4372_v15, 16 }
  0xc1   : > { %3438 = vmatprep.subr.bf16.mxu0 %v3850_v12  ;;  %3384 = vmatprep.mubr.msk.bf16.mxu0 %vm3851_vm15, %v3850_v12 }
  0xc2   : > { %3424 = vmatprep.mubr.msk.bf16.mxu1 %vm3851_vm15, %v3850_v12  ;;  %3477 = vmatpush3.bf16.msra.mxu1 %v3759_v28  ;;  %v3786_v28 = vld [vmem:[%s4804_s6 + $0x110] sm:$0xff]  }
  0xc3   : > { %3478 = vmatprep.subr.bf16.mxu1 %v3850_v12 }
  0xc4   : > { %3439 = vmatpush3.bf16.msra.mxu0 %v3757_v29  ;;  %v1302_v29 = vrot.slane %v4289_v31, 1 }
  0xc5   : > { %3440 = vmatprep.subr.bf16.mxu0 %v3850_v12 }
  0xc6   : > { %3479 = vmatpush3.bf16.msra.mxu1 %v3761_v34  ;;  %v3788_v34 = vld [vmem:[%s4804_s6 + $0x108] sm:$0xff]  }
  0xc7   : > { %3385 = vmatmul.mubr.bf16.gmra.mxu0 %v1004_v37  ;;  %3480 = vmatprep.subr.bf16.mxu1 %v3850_v12  ;;  %v3060_v37 = vcombine.low %v1856_v35, %v4324_v51 }
  0xc8   : > { %3425 = vmatmul.mubr.bf16.gmra.mxu1 %v4263_v55  ;;  %3441 = vmatpush3.bf16.msra.mxu0 %v3760_v36  ;;  %v1301_v55 = vsel %vm1294_vm4, %v1298_v16, %v1300_v0  ;;  %v1508_v36 = vsel %vm1294_vm4, %v1505_v23, %v1507_v33  ;;  %v4529_v23 = vld [vmem:[#allocation2 + $0xc] sm:$0xf] }
  0xc9   : > { %3388 = vmatprep.mubr.msk.bf16.mxu0 %vm3851_vm15, %v3850_v12  ;;  %3428 = vmatprep.mubr.msk.bf16.mxu1 %vm3851_vm15, %v3850_v12  ;;  %v1878_v42 = vrot.slane %v3060_v37, 2 }
  0xca   : > { %3442 = vmatprep.subr.bf16.mxu0 %v3850_v12  ;;  %3481 = vmatpush3.bf16.msra.mxu1 %v3764_v39  ;;  %v1304_v39 = vrot.slane %v4315_v44, 1  ;;  %v3793_v44 = vld [vmem:[%s4804_s6 + $0x1f8] sm:$0xff]  }
  0xcb   : > { %3482 = vmatprep.subr.bf16.mxu1 %v3850_v12 }
  0xcc   : > { %3443 = vmatpush3.bf16.msra.mxu0 %v3763_v56  ;;  %v1668_v56 = vshrl.u32 %v4327_v52, 16  ;;  %v1305_v47 = vsel %vm1294_vm4, %v1302_v29, %v1304_v39  ;;  %v3806_v39 = vld [vmem:[%s4804_s6 + $0x188] sm:$0xff]  }
  0xcd   : > { %3444 = vmatprep.subr.bf16.mxu0 %v3850_v12 }
  0xce   : > { %3483 = vmatpush3.bf16.msra.mxu1 %v3766_v43  ;;  %v1676_v43 = vshrl.u32 %v4339_v61, 16 }
  0xcf   : > { %3389 = vmatmul.mubr.bf16.gmra.mxu0 %v1012_v48  ;;  %3540 = vmatprep.subr.bf16.mxu1 %v3850_v12  ;;  %v1670_v48 = vrot.slane %v1668_v56, 1 }
  0xd0   : > { %3429 = vmatmul.mubr.bf16.gmra.mxu1 %v4289_v31  ;;  %3445 = vmatpush3.bf16.msra.mxu0 %v3765_v46  ;;  %v1303_v31 = vsel %vm1294_vm4, %v1300_v0, %v1302_v29  ;;  %v1879_v46 = vrot.slane %v4339_v61, 2  ;;  %v1678_v52 = vrot.slane %v1676_v43, 1  ;;  %v3801_v0 = vld [vmem:[%s4804_s6 + $0x198] sm:$0xff]   ;;  %v3804_v29 = vld [vmem:[%s4804_s6 + $0x190] sm:$0xff]  }
  0xd1   : > { %3392 = vmatprep.mubr.msk.bf16.mxu0 %vm3851_vm15, %v3850_v12  ;;  %3484 = vmatprep.mubr.msk.bf16.mxu1 %vm3851_vm15, %v3850_v12  ;;  %v1674_v61 = vor.u32 %v1673_v49, %v1670_v48  ;;  %v4564_v48 = vld [vmem:[#allocation2 + $0x18] sm:$0xff]   ;;  %v3810_v49 = vld [vmem:[%s4804_s6 + $0x180] sm:$0xff]  }
  0xd2   : > { %3446 = vmatprep.subr.bf16.mxu0 %v3850_v12  ;;  %v1880_v51 = vsel %vm1877_vm5, %v1878_v42, %v1879_v46  ;;  %v1682_v41 = vor.u32 %v1681_v53, %v1678_v52  ;;  %v2271_v62 = vshll.u32 %v4564_v48, 16 }
  0xd4   : > { %3447 = vmatpush3.bf16.msra.mxu0 %v3770_v58  ;;  %v3795_v58 = vld [vmem:[%s4804_s6 + $0x1f0] sm:$0xff]  }
  0xd5   : > { %3504 = vmatprep.subr.bf16.mxu0 %v3850_v12 }
  0xd7   : > { %3393 = vmatmul.mubr.bf16.gmra.mxu0 %v1020_v3  ;;  %v1690_v3 = vrot.slane %v1688_v32, 2 }
  0xd8   : > { %3485 = vmatmul.mubr.bf16.vlgmr.msra.gmra.mxu1 %v1500_v4  ;;  %3448 = vmatprep.mubr.msk.bf16.mxu0 %vm3851_vm15, %v3850_v12  ;;  %v3797_v4 = vld [vmem:[%s4804_s6 + $0x1e8] sm:$0xff]  }
  0xd9   : > { %3488 = vmatprep.mubr.msk.bf16.mxu1 %vm3851_vm15, %v3850_v12  ;;  %3541 = vmatpush3.bf16.msra.mxu1 %v3773_v60  ;;  %v1683_v60 = vsel %vm1666_vm6, %v1674_v61, %v1682_v41  ;;  %v1691_v7 = vor.u32 %v1690_v3, %v1687_v2  ;;  %v2268_v61 = vshrl.u32 %v4564_v48, 16  ;;  %v2273_v2 = vrot.slane %v2271_v62, 3  ;;  %v4583_v3 = vld [vmem:[#allocation2 + $0x20] sm:$0xff]  }
  0xda   : > { %3542 = vmatprep.subr.bf16.mxu1 %v3850_v12 }
  0xdd   : > { %3543 = vmatpush3.bf16.msra.mxu1 %v3775_v1  ;;  %v1882_v1 = vsel %vm1877_vm5, %v1879_v46, %v1881_v63 }
  0xde   : > { %3544 = vmatprep.subr.bf16.mxu1 %v3850_v12 }
  0xdf   : > { %3449 = vmatmul.mubr.bf16.vlgmr.msra.gmra.mxu0 %v1297_v10  ;;  %v1883_v10 = vrot.slane %v4372_v15, 2 }
  0xe0   : > { %3505 = vmatpush3.bf16.msra.mxu0 %v3771_v50  ;;  %3489 = vmatmul.mubr.bf16.gmra.mxu1 %v1502_v14  ;;  %v1697_v50 = vshll.u32 %v4372_v15, 16  ;;  %v1692_v14 = vsel %vm1666_vm6, %v1682_v41, %v1691_v7 }
  0xe1   : > { %3506 = vmatprep.subr.bf16.mxu0 %v3850_v12  ;;  %3452 = vmatprep.mubr.msk.bf16.mxu0 %vm3851_vm15, %v3850_v12  ;;  %v1884_v15 = vsel %vm1877_vm5, %v1881_v63, %v1883_v10  ;;  %v3811_v63 = vld [vmem:[%s4804_s6 + $0x238] sm:$0xff]  }
  0xe2   : > { %3492 = vmatprep.mubr.msk.bf16.mxu1 %vm3851_vm15, %v3850_v12  ;;  %3545 = vmatpush3.bf16.msra.mxu1 %v3778_v13  ;;  %v3796_v13 = vld [vmem:[%s4804_s6 + $0x1a8] sm:$0xff]   ;;  %v1699_v16 = vrot.slane %v1697_v50, 2 }
  0xe3   : > { %3546 = vmatprep.subr.bf16.mxu1 %v3850_v12 }
  0xe4   : > { %3507 = vmatpush3.bf16.msra.mxu0 %v3774_v59  ;;  %v1696_v59 = vrot.slane %v1694_v9, 1 }
  0xe5   : > { %3508 = vmatprep.subr.bf16.mxu0 %v3850_v12 }
  0xe6   : > { %3547 = vmatpush3.bf16.msra.mxu1 %v3779_v17  ;;  %v3800_v17 = vld [vmem:[%s4804_s6 + $0x1d8] sm:$0xff]  }
  0xe7   : > { %3453 = vmatmul.mubr.bf16.gmra.mxu0 %v1299_v11  ;;  %3548 = vmatprep.subr.bf16.mxu1 %v3850_v12  ;;  %v3802_v11 = vld [vmem:[%s4804_s6 + $0x1d0] sm:$0xff]  }
  0xe8   : > { %3493 = vmatmul.mubr.bf16.gmra.mxu1 %v1504_v21  ;;  %3509 = vmatpush3.bf16.msra.mxu0 %v3777_v20  ;;  %v1700_v20 = vor.u32 %v1699_v16, %v1696_v59  ;;  %v1706_v21 = vshll.u32 %v4397_v57, 16  ;;  %v4603_v16 = vld [vmem:[#allocation2 + $0x28] sm:$0xff]  }
  0xe9   : > { %3510 = vmatprep.subr.bf16.mxu0 %v3850_v12  ;;  %3456 = vmatprep.mubr.msk.bf16.mxu0 %vm3851_vm15, %v3850_v12 }
  0xea   : > { %3496 = vmatprep.mubr.msk.bf16.mxu1 %vm3851_vm15, %v3850_v12  ;;  %3549 = vmatpush3.bf16.msra.mxu1 %v3782_v6  ;;  %v1703_v6 = vshrl.u32 %v4397_v57, 16 }
  0xeb   : > { %3550 = vmatprep.subr.bf16.mxu1 %v3850_v12 }
  0xec   : > { %3511 = vmatpush3.bf16.msra.mxu0 %v3780_v54  ;;  %v1885_v54 = vrot.slane %v4397_v57, 2  ;;  %v3805_v57 = vld [vmem:[%s4804_s6 + $0x1c8] sm:$0xff]  }
  0xed   : > { %3512 = vmatprep.subr.bf16.mxu0 %v3850_v12 }
  0xee   : > { %3551 = vmatpush3.bf16.msra.mxu1 %v3784_v22  ;;  %v2025_v22 = vld [vmem:[#allocation2 + $0x8] sm:$0xc]  ;;  %v1886_v27 = vsel %vm1877_vm5, %v1883_v10, %v1885_v54 }
  0xef   : > { %3457 = vmatmul.mubr.bf16.gmra.mxu0 %v1301_v55  ;;  %3552 = vmatprep.subr.bf16.mxu1 %v3850_v12  ;;  %v1705_v55 = vrot.slane %v1703_v6, 1  ;;  %v3815_v10 = vld [vmem:[%s4804_s6 + $0x228] sm:$0xff]  }
  0xf0   : > { %3497 = vmatmul.mubr.bf16.gmra.mxu1 %v1506_v26  ;;  %3513 = vmatpush3.bf16.msra.mxu0 %v3783_v24  ;;  %v1701_v24 = vsel %vm1666_vm6, %v1691_v7, %v1700_v20  ;;  %v3803_v26 = vld [vmem:[#allocation2 + $0x2c] ss:$0 sps:$4 sm:$0x33]   ;;  %v2277_v7 = vshrl.u32 %v4583_v3, 16 }
  0xf1   : > { %3460 = vmatprep.mubr.msk.bf16.mxu0 %vm3851_vm15, %v3850_v12  ;;  %3500 = vmatprep.mubr.msk.bf16.mxu1 %vm3851_vm15, %v3850_v12  ;;  %v1712_v35 = vshrl.u32 %v3803_v26, 16 }
  0xf2   : > { %3514 = vmatprep.subr.bf16.mxu0 %v3850_v12  ;;  %3553 = vmatpush3.bf16.msra.mxu1 %v3787_v25  ;;  %v1708_v25 = vrot.slane %v1706_v21, 2  ;;  %v3818_v21 = vld [vmem:[%s4804_s6 + $0x218] sm:$0xff]  }
  0xf3   : > { %3554 = vmatprep.subr.bf16.mxu1 %v3850_v12  ;;  %v1714_v43 = vrot.slane %v1712_v35, 1 }
  0xf4   : > { %3515 = vmatpush3.bf16.msra.mxu0 %v3786_v28  ;;  %v4537_v28 = vld [vmem:[#allocation2 + $0x10] sm:$0xff]   ;;  %v1709_v33 = vor.u32 %v1708_v25, %v1705_v55  ;;  %v2086_v55 = vrot.slane %v4583_v3, 2 }
  0xf5   : > { %3516 = vmatprep.subr.bf16.mxu0 %v3850_v12  ;;  %v2259_v37 = vshrl.u32 %v4537_v28, 16  ;;  %v3819_v25 = vld [vmem:[%s4804_s6 + $0x210] sm:$0xff]  }
  0xf6   : > { %3555 = vmatpush3.bf16.msra.mxu1 %v3789_v30  ;;  %v4547_v30 = vcombine.low %v2025_v22, %v4529_v23  ;;  %v1710_v42 = vsel %vm1666_vm6, %v1700_v20, %v1709_v33  ;;  %v2286_v20 = vshrl.u32 %v4603_v16, 16 }
  0xf7   : > { %3461 = vmatmul.mubr.bf16.gmra.mxu0 %v1303_v31  ;;  %3612 = vmatprep.subr.bf16.mxu1 %v3850_v12  ;;  %v1715_v31 = vshll.u32 %v3803_v26, 16 }
  0xf8   : > { %3501 = vmatmul.mubr.bf16.gmra.mxu1 %v1508_v36  ;;  %3517 = vmatpush3.bf16.msra.mxu0 %v3788_v34  ;;  %v3807_v34 = vld [vmem:[%s4804_s6 + $0x1c0] sm:$0xff]   ;;  %v1887_v36 = vrot.slane %v3803_v26, 2  ;;  %v2251_v56 = vshrl.u32 %v4547_v30, 16  ;;  %v2254_v40 = vshll.u32 %v4547_v30, 16  ;;  %v2081_v9 = vrot.slane %v4547_v30, 2  ;;  %v3821_v30 = vld [vmem:[%s4804_s6 + $0x208] sm:$0xff]  }
  0xf9   : > { %3464 = vmatprep.mubr.msk.bf16.mxu0 %vm3851_vm15, %v3850_v12  ;;  %3556 = vmatprep.mubr.msk.bf16.mxu1 %vm3851_vm15, %v3850_v12  ;;  %v1717_v45 = vrot.slane %v1715_v31, 2  ;;  %v2088_v31 = vrot.slane %v4603_v16, 2 }
  0xfa   : > { %3518 = vmatprep.subr.bf16.mxu0 %v3850_v12  ;;  %v1888_v46 = vsel %vm1877_vm5, %v1885_v54, %v1887_v36  ;;  %v2256_v52 = vrot.slane %v2254_v40, 3  ;;  %v3822_v36 = vld [vmem:[%s4804_s6 + $0x200] sm:$0xff]   ;;  %v2468_v40 = vrot.slane %v4603_v16, 3 }
  0xfb   : > { %v1718_v53 = vor.u32 %v1717_v45, %v1714_v43  ;;  %v2466_v43 = vrot.slane %v4583_v3, 3  ;;  %v2439_v45 = vld [vmem:[#allocation2 + $0x8] sm:$0x8] }
  0xfc   : > { %3519 = vmatpush3.bf16.msra.mxu0 %v3791_v38  ;;  %v2262_v38 = vshll.u32 %v4537_v28, 16 }
  0xfd   : > { %3576 = vmatprep.subr.bf16.mxu0 %v3850_v12  ;;  %v1719_v41 = vsel %vm1666_vm6, %v1709_v33, %v1718_v53 }
  0xff   : > { %3465 = vmatmul.mubr.bf16.gmra.mxu0 %v1305_v47  ;;  %v2264_v47 = vrot.slane %v2262_v38, 3  ;;  %v2089_v38 = vsel %vm1877_vm5, %v2086_v55, %v2088_v31 }
 0x100   : > { %3557 = vmatmul.mubr.bf16.vlgmr.msra.gmra.mxu1 %v1880_v51  ;;  %3520 = vmatprep.mubr.msk.bf16.mxu0 %vm3851_vm15, %v3850_v12  ;;  %v2253_v51 = vrot.slane %v2251_v56, 2  ;;  %v3823_v56 = vld [vmem:[#allocation2 + $0x30] ss:$0 sps:$4 sm:$0x33]  }
 0x101   : > { %3560 = vmatprep.mubr.msk.bf16.mxu1 %vm3851_vm15, %v3850_v12  ;;  %3613 = vmatpush3.bf16.msra.mxu1 %v3793_v44  ;;  %v2261_v44 = vrot.slane %v2259_v37, 2 }
 0x102   : > { %3614 = vmatprep.subr.bf16.mxu1 %v3850_v12  ;;  %v2257_v32 = vor.u32 %v2256_v52, %v2253_v51 }
 0x105   : > { %3615 = vmatpush3.bf16.msra.mxu1 %v3795_v58  ;;  %v2265_v58 = vor.u32 %v2264_v47, %v2261_v44  ;;  %v2469_v44 = vsel %vm2460_vm8, %v2466_v43, %v2468_v40  ;;  %v3140_v47 = vcombine.low %v2439_v45, %v4529_v23 }
 0x106   : > { %3616 = vmatprep.subr.bf16.mxu1 %v3850_v12 }
 0x107   : > { %3521 = vmatmul.mubr.bf16.vlgmr.msra.gmra.mxu0 %v1683_v60  ;;  %v2270_v60 = vrot.slane %v2268_v61, 2  ;;  %v2461_v51 = vrot.slane %v3140_v47, 3  ;;  %v2464_v61 = vrot.slane %v4564_v48, 3 }
 0x108   : > { %3577 = vmatpush3.bf16.msra.mxu0 %v3792_v19  ;;  %3561 = vmatmul.mubr.bf16.gmra.mxu1 %v1882_v1  ;;  %v2266_v19 = vsel %vm2249_vm7, %v2257_v32, %v2265_v58  ;;  %v2082_v1 = vrot.slane %v4537_v28, 2 }
 0x109   : > { %3578 = vmatprep.subr.bf16.mxu0 %v3850_v12  ;;  %3524 = vmatprep.mubr.msk.bf16.mxu0 %vm3851_vm15, %v3850_v12 }
 0x10a   : > { %3564 = vmatprep.mubr.msk.bf16.mxu1 %vm3851_vm15, %v3850_v12  ;;  %3617 = vmatpush3.bf16.msra.mxu1 %v3797_v4  ;;  %v3813_v4 = vld [vmem:[%s4804_s6 + $0x230] sm:$0xff]   ;;  %v2083_v50 = vsel %vm1877_vm5, %v2081_v9, %v2082_v1 }
 0x10b   : > { %3618 = vmatprep.subr.bf16.mxu1 %v3850_v12 }
 0x10c   : > { %3579 = vmatpush3.bf16.msra.mxu0 %v3794_v5  ;;  %v2274_v5 = vor.u32 %v2273_v2, %v2270_v60 }
 0x10d   : > { %3580 = vmatprep.subr.bf16.mxu0 %v3850_v12 }
 0x10e   : > { %3619 = vmatpush3.bf16.msra.mxu1 %v3798_v8  ;;  %v2280_v8 = vshll.u32 %v4583_v3, 16 }
 0x10f   : > { %3525 = vmatmul.mubr.bf16.gmra.mxu0 %v1692_v14  ;;  %3620 = vmatprep.subr.bf16.mxu1 %v3850_v12  ;;  %v2279_v14 = vrot.slane %v2277_v7, 2 }
 0x110   : > { %3565 = vmatmul.mubr.bf16.gmra.mxu1 %v1884_v15  ;;  %3581 = vmatpush3.bf16.msra.mxu0 %v3796_v13  ;;  %v2275_v13 = vsel %vm2249_vm7, %v2265_v58, %v2274_v5  ;;  %v2282_v59 = vrot.slane %v2280_v8, 3  ;;  %v3816_v15 = vld [vmem:[%s4804_s6 + $0x220] sm:$0xff]  }
 0x111   : > { %3582 = vmatprep.subr.bf16.mxu0 %v3850_v12  ;;  %3528 = vmatprep.mubr.msk.bf16.mxu0 %vm3851_vm15, %v3850_v12 }
 0x112   : > { %3568 = vmatprep.mubr.msk.bf16.mxu1 %vm3851_vm15, %v3850_v12  ;;  %3621 = vmatpush3.bf16.msra.mxu1 %v3800_v17  ;;  %v2084_v17 = vrot.slane %v4564_v48, 2 }
 0x113   : > { %3622 = vmatprep.subr.bf16.mxu1 %v3850_v12 }
 0x114   : > { %3583 = vmatpush3.bf16.msra.mxu0 %v3799_v18  ;;  %v2283_v18 = vor.u32 %v2282_v59, %v2279_v14  ;;  %v2085_v6 = vsel %vm1877_vm5, %v2082_v1, %v2084_v17 }
 0x115   : > { %3584 = vmatprep.subr.bf16.mxu0 %v3850_v12 }
 0x116   : > { %3623 = vmatpush3.bf16.msra.mxu1 %v3802_v11  ;;  %v2289_v11 = vshll.u32 %v4603_v16, 16  ;;  %v2284_v54 = vsel %vm2249_vm7, %v2274_v5, %v2283_v18 }
 0x117   : > { %3529 = vmatmul.mubr.bf16.gmra.mxu0 %v1701_v24  ;;  %3624 = vmatprep.subr.bf16.mxu1 %v3850_v12  ;;  %v3820_v24 = vld [vmem:[#allocation2 + $0x30] ss:$0 sps:$4 sm:$0x77]  }
 0x118   : > { %3569 = vmatmul.mubr.bf16.gmra.mxu1 %v1886_v27  ;;  %3585 = vmatpush3.bf16.msra.mxu0 %v3801_v0  ;;  %v2288_v0 = vrot.slane %v2286_v20, 2  ;;  %v2291_v22 = vrot.slane %v2289_v11, 3  ;;  %v2298_v27 = vshll.u32 %v3820_v24, 16  ;;  %v2470_v52 = vrot.slane %v3820_v24, 3 }
 0x119   : > { %3532 = vmatprep.mubr.msk.bf16.mxu0 %vm3851_vm15, %v3850_v12  ;;  %3572 = vmatprep.mubr.msk.bf16.mxu1 %vm3851_vm15, %v3850_v12 }
 0x11a   : > { %3586 = vmatprep.subr.bf16.mxu0 %v3850_v12  ;;  %3625 = vmatpush3.bf16.msra.mxu1 %v3805_v57  ;;  %v2292_v26 = vor.u32 %v2291_v22, %v2288_v0  ;;  %v2295_v57 = vshrl.u32 %v3820_v24, 16  ;;  %v2300_v35 = vrot.slane %v2298_v27, 3  ;;  %v2471_v58 = vsel %vm2460_vm8, %v2468_v40, %v2470_v52 }
 0x11b   : > { %3626 = vmatprep.subr.bf16.mxu1 %v3850_v12 }
 0x11c   : > { %3587 = vmatpush3.bf16.msra.mxu0 %v3804_v29  ;;  %v2087_v29 = vsel %vm1877_vm5, %v2084_v17, %v2086_v55  ;;  %v2293_v33 = vsel %vm2249_vm7, %v2283_v18, %v2292_v26 }
 0x11d   : > { %3588 = vmatprep.subr.bf16.mxu0 %v3850_v12 }
 0x11e   : > { %3627 = vmatpush3.bf16.msra.mxu1 %v3807_v34  ;;  %v2297_v34 = vrot.slane %v2295_v57, 2 }
 0x11f   : > { %3533 = vmatmul.mubr.bf16.gmra.mxu0 %v1710_v42  ;;  %3684 = vmatprep.subr.bf16.mxu1 %v3850_v12  ;;  %v2090_v42 = vrot.slane %v3823_v56, 2 }
 0x120   : > { %3573 = vmatmul.mubr.bf16.gmra.mxu1 %v1888_v46  ;;  %3589 = vmatpush3.bf16.msra.mxu0 %v3806_v39  ;;  %v2301_v37 = vor.u32 %v2300_v35, %v2297_v34 }
 0x121   : > { %3536 = vmatprep.mubr.msk.bf16.mxu0 %vm3851_vm15, %v3850_v12  ;;  %3628 = vmatprep.mubr.msk.bf16.mxu1 %vm3851_vm15, %v3850_v12  ;;  %v2091_v46 = vsel %vm1877_vm5, %v2088_v31, %v2090_v42 }
 0x122   : > { %3590 = vmatprep.subr.bf16.mxu0 %v3850_v12  ;;  %v2302_v39 = vsel %vm2249_vm7, %v2292_v26, %v2301_v37 }
 0x124   : > { %3591 = vmatpush3.bf16.msra.mxu0 %v3810_v49  ;;  %v2462_v49 = vrot.slane %v4537_v28, 3  ;;  %v2467_v28 = vsel %vm2460_vm8, %v2464_v61, %v2466_v43 }
 0x125   : > { %3648 = vmatprep.subr.bf16.mxu0 %v3850_v12 }
 0x126   : > { %v2463_v53 = vsel %vm2460_vm8, %v2461_v51, %v2462_v49  ;;  %v2465_v23 = vsel %vm2460_vm8, %v2462_v49, %v2464_v61 }
 0x127   : > { %3537 = vmatmul.mubr.bf16.gmra.mxu0 %v1719_v41 }
 0x128   : > { %3629 = vmatmul.mubr.bf16.vlgmr.msra.gmra.mxu1 %v2266_v19  ;;  %3592 = vmatprep.mubr.msk.bf16.mxu0 %vm3851_vm15, %v3850_v12 }
 0x129   : > { %3632 = vmatprep.mubr.msk.bf16.mxu1 %vm3851_vm15, %v3850_v12  ;;  %3692 = vmatpush3.bf16.msra.mxu1 %v3811_v63 }
 0x12a   : > { %3685 = vmatprep.subr.bf16.mxu1 %v3850_v12 }
 0x12d   : > { %3693 = vmatpush3.bf16.msra.mxu1 %v3813_v4 }
 0x12e   : > { %3686 = vmatprep.subr.bf16.mxu1 %v3850_v12 }
 0x12f   : > { %3593 = vmatmul.mubr.bf16.vlgmr.msra.gmra.mxu0 %v2083_v50 }
 0x130   : > { %3649 = vmatpush3.bf16.msra.mxu0 %v3811_v63  ;;  %3633 = vmatmul.mubr.bf16.gmra.mxu1 %v2275_v13 }
 0x131   : > { %3650 = vmatprep.subr.bf16.mxu0 %v3850_v12  ;;  %3596 = vmatprep.mubr.msk.bf16.mxu0 %vm3851_vm15, %v3850_v12 }
 0x132   : > { %3636 = vmatprep.mubr.msk.bf16.mxu1 %vm3851_vm15, %v3850_v12  ;;  %3694 = vmatpush3.bf16.msra.mxu1 %v3815_v10 }
 0x133   : > { %3687 = vmatprep.subr.bf16.mxu1 %v3850_v12 }
 0x134   : > { %3651 = vmatpush3.bf16.msra.mxu0 %v3813_v4 }
 0x135   : > { %3652 = vmatprep.subr.bf16.mxu0 %v3850_v12 }
 0x136   : > { %3695 = vmatpush3.bf16.msra.mxu1 %v3816_v15 }
 0x137   : > { %3597 = vmatmul.mubr.bf16.gmra.mxu0 %v2085_v6  ;;  %3688 = vmatprep.subr.bf16.mxu1 %v3850_v12 }
 0x138   : > { %3637 = vmatmul.mubr.bf16.gmra.mxu1 %v2284_v54  ;;  %3653 = vmatpush3.bf16.msra.mxu0 %v3815_v10 }
 0x139   : > { %3654 = vmatprep.subr.bf16.mxu0 %v3850_v12  ;;  %3600 = vmatprep.mubr.msk.bf16.mxu0 %vm3851_vm15, %v3850_v12 }
 0x13a   : > { %3640 = vmatprep.mubr.msk.bf16.mxu1 %vm3851_vm15, %v3850_v12  ;;  %3696 = vmatpush3.bf16.msra.mxu1 %v3818_v21 }
 0x13b   : > { %3689 = vmatprep.subr.bf16.mxu1 %v3850_v12 }
 0x13c   : > { %3655 = vmatpush3.bf16.msra.mxu0 %v3816_v15 }
 0x13d   : > { %3656 = vmatprep.subr.bf16.mxu0 %v3850_v12 }
 0x13e   : > { %3697 = vmatpush3.bf16.msra.mxu1 %v3819_v25 }
 0x13f   : > { %3601 = vmatmul.mubr.bf16.gmra.mxu0 %v2087_v29  ;;  %3690 = vmatprep.subr.bf16.mxu1 %v3850_v12 }
 0x140   : > { %3641 = vmatmul.mubr.bf16.gmra.mxu1 %v2293_v33  ;;  %3657 = vmatpush3.bf16.msra.mxu0 %v3818_v21 }
 0x141   : > { %3604 = vmatprep.mubr.msk.bf16.mxu0 %vm3851_vm15, %v3850_v12  ;;  %3644 = vmatprep.mubr.msk.bf16.mxu1 %vm3851_vm15, %v3850_v12 }
 0x142   : > { %3658 = vmatprep.subr.bf16.mxu0 %v3850_v12  ;;  %3698 = vmatpush3.bf16.msra.mxu1 %v3821_v30 }
 0x143   : > { %3691 = vmatprep.subr.bf16.mxu1 %v3850_v12 }
 0x144   : > { %3659 = vmatpush3.bf16.msra.mxu0 %v3819_v25 }
 0x145   : > { %3660 = vmatprep.subr.bf16.mxu0 %v3850_v12 }
 0x146   : > { %3699 = vmatpush3.bf16.msra.mxu1 %v3822_v36 }
 0x147   : > { %3605 = vmatmul.mubr.bf16.gmra.mxu0 %v2089_v38 }
 0x148   : > { %3645 = vmatmul.mubr.bf16.gmra.mxu1 %v2302_v39  ;;  %3661 = vmatpush3.bf16.msra.mxu0 %v3821_v30 }
 0x149   : > { %3608 = vmatprep.mubr.msk.bf16.mxu0 %vm3851_vm15, %v3850_v12  ;;  %3676 = vmatprep.mubr.msk.bf16.mxu1 %vm3851_vm15, %v3850_v12 }
 0x14a   : > { %3662 = vmatprep.subr.bf16.mxu0 %v3850_v12 }
 0x14c   : > { %3663 = vmatpush3.bf16.msra.mxu0 %v3822_v36 }
 0x14f   : > { %3609 = vmatmul.mubr.bf16.gmra.mxu0 %v2091_v46 }
 0x150   : > { %3677 = vmatmul.mubr.bf16.vlgmr.msra.gmra.mxu1 %v2469_v44  ;;  %3664 = vmatprep.mubr.msk.bf16.mxu0 %vm3851_vm15, %v3850_v12 }
 0x151   : > { %3680 = vmatprep.mubr.msk.bf16.mxu1 %vm3851_vm15, %v3850_v12 }
 0x157   : > { %3665 = vmatmul.mubr.bf16.vlgmr.msra.gmra.mxu0 %v2463_v53 }
 0x158   : > { %3681 = vmatmul.mubr.bf16.gmra.mxu1 %v2471_v58  ;;  %3668 = vmatprep.mubr.msk.bf16.mxu0 %vm3851_vm15, %v3850_v12 }
 0x15f   : > { %3669 = vmatmul.mubr.bf16.gmra.mxu0 %v2465_v23 }
 0x160   : > { %3672 = vmatprep.mubr.msk.bf16.mxu0 %vm3851_vm15, %v3850_v12 }
 0x167   : > { %3673 = vmatmul.mubr.bf16.gmra.mxu0 %v2467_v28 }
 0x170   : > { %v1234_v62 = vpop.f32.mrf.mxu1 }
 0x172   : > { %v3414_v32 = vpop.f32.mrf.mxu1 }
 0x174   : > { %v1237_v63 = vpop.f32.mrf.mxu1 }
 0x176   : > { %v3415_v41 = vpop.f32.mrf.mxu1 }
 0x177   : > { %v1108_v19 = vpop.f32.mrf.mxu0 }
 0x178   : > { %v1235_v60 = vadd.f32 %v1234_v62, %v1108_v19  ;;  %v1242_v2 = vpop.f32.mrf.mxu1 }
 0x179   : > { %v3378_v3 = vpop.f32.mrf.mxu0 }
 0x17a   : > { %v3418_v4 = vpop.f32.mrf.mxu1 }
 0x17b   : > { %v1111_v1 = vpop.f32.mrf.mxu0 }
 0x17c   : > { %v1238_v48 = vadd.f32 %v1237_v63, %v1111_v1  ;;  %v1245_v5 = vpop.f32.mrf.mxu1 }
 0x17d   : > { %v3379_v7 = vpop.f32.mrf.mxu0 }
 0x17e   : > { %v3419_v8 = vpop.f32.mrf.mxu1 }
 0x17f   : > { %v1116_v9 = vpop.f32.mrf.mxu0 }
 0x180   : > { %v1243_v50 = vadd.f32 %v1242_v2, %v1116_v9  ;;  %v1250_v12 = vpop.f32.mrf.mxu1 }
 0x181   : > { %v3382_v10 = vpop.f32.mrf.mxu0 }
 0x182   : > { %v3422_v13 = vpop.f32.mrf.mxu1 }
 0x183   : > { %v1119_v14 = vpop.f32.mrf.mxu0 }
 0x184   : > { %v1246_v59 = vadd.f32 %v1245_v5, %v1119_v14  ;;  %v1253_v16 = vpop.f32.mrf.mxu1 }
 0x185   : > { %v3383_v17 = vpop.f32.mrf.mxu0 }
 0x186   : > { %v3423_v15 = vpop.f32.mrf.mxu1 }
 0x187   : > { %v1124_v18 = vpop.f32.mrf.mxu0 }
 0x188   : > { %v1251_v20 = vadd.f32 %v1250_v12, %v1124_v18  ;;  %v1258_v11 = vpop.f32.mrf.mxu1 }
 0x189   : > { %v3386_v6 = vpop.f32.mrf.mxu0 }
 0x18a   : > { %v3426_v21 = vpop.f32.mrf.mxu1 }
 0x18b   : > { %v1127_v54 = vpop.f32.mrf.mxu0 }
 0x18c   : > { %v1254_v0 = vadd.f32 %v1253_v16, %v1127_v54  ;;  %v1261_v22 = vpop.f32.mrf.mxu1 }
 0x18d   : > { %v3387_v24 = vpop.f32.mrf.mxu0 }
 0x18e   : > { %v3427_v55 = vpop.f32.mrf.mxu1 }
 0x18f   : > { %v1132_v25 = vpop.f32.mrf.mxu0 }
 0x190   : > { %v1259_v26 = vadd.f32 %v1258_v11, %v1132_v25  ;;  %v1266_v57 = vpop.f32.mrf.mxu1 }
 0x191   : > { %v3390_v27 = vpop.f32.mrf.mxu0 }
 0x192   : > { %v3430_v29 = vpop.f32.mrf.mxu1 }
 0x193   : > { %v1135_v30 = vpop.f32.mrf.mxu0 }
 0x194   : > { %v1262_v33 = vadd.f32 %v1261_v22, %v1135_v30  ;;  %v1269_v34 = vpop.f32.mrf.mxu1 }
 0x195   : > { %v3391_v35 = vpop.f32.mrf.mxu0 }
 0x196   : > { %v3431_v31 = vpop.f32.mrf.mxu1 }
 0x197   : > { %v1140_v36 = vpop.f32.mrf.mxu0 }
 0x198   : > { %v1267_v37 = vadd.f32 %v1266_v57, %v1140_v36  ;;  %v1596_v38 = vpop.f32.mrf.mxu1 }
 0x199   : > { %v3394_v39 = vpop.f32.mrf.mxu0 }
 0x19a   : > { %v3486_v56 = vpop.f32.mrf.mxu1 }
 0x19b   : > { %v1143_v40 = vpop.f32.mrf.mxu0 }
 0x19c   : > { %v1270_v42 = vadd.f32 %v1269_v34, %v1143_v40  ;;  %v1599_v43 = vpop.f32.mrf.mxu1 }
 0x19d   : > { %v3395_v45 = vpop.f32.mrf.mxu0 }
 0x19e   : > { %v3487_v46 = vpop.f32.mrf.mxu1 }
 0x19f   : > { %v1393_v44 = vpop.f32.mrf.mxu0 }
 0x1a0   : > { %v1432_v47 = vadd.f32 %v1393_v44, %v1235_v60  ;;  %v1604_v49 = vpop.f32.mrf.mxu1 }
 0x1a1   : > { %v3450_v51 = vpop.f32.mrf.mxu0 }
 0x1a2   : > { %v3490_v52 = vpop.f32.mrf.mxu1  ;;  %v1635_v53 = vadd.f32 %v1596_v38, %v1432_v47 }
 0x1a3   : > { %v1396_v58 = vpop.f32.mrf.mxu0 }
 0x1a4   : > { %v1433_v61 = vadd.f32 %v1396_v58, %v1238_v48  ;;  %v1607_v23 = vpop.f32.mrf.mxu1 }
 0x1a5   : > { %v3451_v28 = vpop.f32.mrf.mxu0 }
 0x1a6   : > { %v3491_v62 = vpop.f32.mrf.mxu1  ;;  %v1636_v32 = vadd.f32 %v1599_v43, %v1433_v61 }
 0x1a7   : > { %v1401_v63 = vpop.f32.mrf.mxu0 }
 0x1a8   : > { %v1434_v41 = vadd.f32 %v1401_v63, %v1243_v50  ;;  %v1612_v19 = vpop.f32.mrf.mxu1 }
 0x1a9   : > { %v3454_v2 = vpop.f32.mrf.mxu0 }
 0x1aa   : > { %v3494_v3 = vpop.f32.mrf.mxu1  ;;  %v1637_v4 = vadd.f32 %v1604_v49, %v1434_v41 }
 0x1ab   : > { %v1404_v1 = vpop.f32.mrf.mxu0 }
 0x1ac   : > { %v1435_v5 = vadd.f32 %v1404_v1, %v1246_v59  ;;  %v1615_v7 = vpop.f32.mrf.mxu1 }
 0x1ad   : > { %v3455_v60 = vpop.f32.mrf.mxu0 }
 0x1ae   : > { %v3495_v8 = vpop.f32.mrf.mxu1  ;;  %v1638_v9 = vadd.f32 %v1607_v23, %v1435_v5 }
 0x1af   : > { %v1409_v12 = vpop.f32.mrf.mxu0 }
 0x1b0   : > { %v1436_v10 = vadd.f32 %v1409_v12, %v1251_v20  ;;  %v1620_v13 = vpop.f32.mrf.mxu1 }
 0x1b1   : > { %v3458_v48 = vpop.f32.mrf.mxu0 }
 0x1b2   : > { %v3498_v14 = vpop.f32.mrf.mxu1  ;;  %v1639_v16 = vadd.f32 %v1612_v19, %v1436_v10 }
 0x1b3   : > { %v1412_v17 = vpop.f32.mrf.mxu0 }
 0x1b4   : > { %v1437_v15 = vadd.f32 %v1412_v17, %v1254_v0  ;;  %v1623_v18 = vpop.f32.mrf.mxu1 }
 0x1b5   : > { %v3459_v50 = vpop.f32.mrf.mxu0 }
 0x1b6   : > { %v3499_v11 = vpop.f32.mrf.mxu1  ;;  %v1640_v6 = vadd.f32 %v1615_v7, %v1437_v15 }
 0x1b7   : > { %v1417_v21 = vpop.f32.mrf.mxu0 }
 0x1b8   : > { %v1438_v54 = vadd.f32 %v1417_v21, %v1259_v26  ;;  %v1628_v22 = vpop.f32.mrf.mxu1 }
 0x1b9   : > { %v3462_v59 = vpop.f32.mrf.mxu0 }
 0x1ba   : > { %v3502_v24 = vpop.f32.mrf.mxu1  ;;  %v4678_v55 = vadd.f32 %v1620_v13, %v1438_v54 }
 0x1bb   : > { %v1420_v25 = vpop.f32.mrf.mxu0 }
 0x1bc   : > { %v1439_v57 = vadd.f32 %v1420_v25, %v1262_v33  ;;  %v1631_v20 = vpop.f32.mrf.mxu1 }
 0x1bd   : > { %v3463_v27 = vpop.f32.mrf.mxu0 }
 0x1be   : > { %v3503_v29 = vpop.f32.mrf.mxu1  ;;  %v4680_v30 = vadd.f32 %v1623_v18, %v1439_v57 }
 0x1bf   : > { %v1425_v34 = vpop.f32.mrf.mxu0 }
 0x1c0   : > { %v1440_v0 = vadd.f32 %v1425_v34, %v1267_v37  ;;  %v1976_v35 = vpop.f32.mrf.mxu1 }
 0x1c1   : > { %v3466_v31 = vpop.f32.mrf.mxu0 }
 0x1c2   : > { %v3558_v36 = vpop.f32.mrf.mxu1  ;;  %v4682_v38 = vadd.f32 %v1628_v22, %v1440_v0 }
 0x1c3   : > { %v1428_v26 = vpop.f32.mrf.mxu0 }
 0x1c4   : > { %v1441_v39 = vadd.f32 %v1428_v26, %v1270_v42  ;;  %v1979_v56 = vpop.f32.mrf.mxu1 }
 0x1c5   : > { %v3467_v40 = vpop.f32.mrf.mxu0 }
 0x1c6   : > { %v3559_v43 = vpop.f32.mrf.mxu1  ;;  %v4684_v45 = vadd.f32 %v1631_v20, %v1441_v39 }
 0x1c7   : > { %v1807_v33 = vpop.f32.mrf.mxu0 }
 0x1c8   : > { %v1846_v46 = vadd.f32 %v1807_v33, %v1635_v53  ;;  %v1984_v44 = vpop.f32.mrf.mxu1 }
 0x1c9   : > { %v3522_v47 = vpop.f32.mrf.mxu0 }
 0x1ca   : > { %v3562_v49 = vpop.f32.mrf.mxu1  ;;  %v4686_v51 = vadd.f32 %v1976_v35, %v1846_v46 }
 0x1cb   : > { %v1810_v37 = vpop.f32.mrf.mxu0 }
 0x1cc   : > { %v1847_v52 = vadd.f32 %v1810_v37, %v1636_v32  ;;  %v1987_v58 = vpop.f32.mrf.mxu1 }
 0x1cd   : > { %v3523_v61 = vpop.f32.mrf.mxu0 }
 0x1ce   : > { %v3563_v23 = vpop.f32.mrf.mxu1  ;;  %v4688_v28 = vadd.f32 %v1979_v56, %v1847_v52 }
 0x1cf   : > { %v1815_v42 = vpop.f32.mrf.mxu0 }
 0x1d0   : > { %v1848_v62 = vadd.f32 %v1815_v42, %v1637_v4  ;;  %v1992_v63 = vpop.f32.mrf.mxu1 }
 0x1d1   : > { %v3526_v41 = vpop.f32.mrf.mxu0 }
 0x1d2   : > { %v3566_v19 = vpop.f32.mrf.mxu1  ;;  %v4690_v2 = vadd.f32 %v1984_v44, %v1848_v62  ;;  %v4720_v62 = vpop.permute.xlu1 %2658 }
 0x1d3   : > { %v1818_v53 = vpop.f32.mrf.mxu0  ;;  %v4722_v41 = vpop.permute.xlu0 %2655  ;;  %vm2685_vm10 = vcmp.eq.s32.totalorder %v4720_v62, 1 }
 0x1d4   : > { %v1849_v3 = vadd.f32 %v1818_v53, %v1638_v9  ;;  %v1995_v1 = vpop.f32.mrf.mxu1  ;;  %vm2684_vm11 = vcmp.eq.s32.totalorder %v4722_v41, 1 }
 0x1d5   : > { %v3527_v5 = vpop.f32.mrf.mxu0 }
 0x1d6   : > { %v3567_v7 = vpop.f32.mrf.mxu1  ;;  %v4692_v60 = vadd.f32 %v1987_v58, %v1849_v3 }
 0x1d7   : > { %v1823_v32 = vpop.f32.mrf.mxu0 }
 0x1d8   : > { %v1850_v8 = vadd.f32 %v1823_v32, %v1639_v16  ;;  %v2000_v12 = vpop.f32.mrf.mxu1  ;;  %v4727_v32 = vpop.permute.xlu1 %2664 }
 0x1d9   : > { %v3530_v10 = vpop.f32.mrf.mxu0  ;;  %vm2687_vm13 = vcmp.eq.s32.totalorder %v4727_v32, 1 }
 0x1da   : > { %v3570_v13 = vpop.f32.mrf.mxu1  ;;  %v4694_v48 = vadd.f32 %v1992_v63, %v1850_v8  ;;  %v4729_v10 = vpop.permute.xlu0 %2661 }
 0x1db   : > { %v1826_v4 = vpop.f32.mrf.mxu0  ;;  %vm2686_vm14 = vcmp.eq.s32.totalorder %v4729_v10, 1 }
 0x1dc   : > { %v1851_v14 = vadd.f32 %v1826_v4, %v1640_v6  ;;  %v2003_v17 = vpop.f32.mrf.mxu1 }
 0x1dd   : > { %v3531_v15 = vpop.f32.mrf.mxu0 }
 0x1de   : > { %v3571_v18 = vpop.f32.mrf.mxu1  ;;  %v4696_v50 = vadd.f32 %v1995_v1, %v1851_v14 }
 0x1df   : > { %v1831_v9 = vpop.f32.mrf.mxu0 }
 0x1e0   : > { %v4698_v11 = vpop.f32.mrf.mxu1  ;;  %v1852_v3 = vadd.f32 %v1831_v9, %v4678_v55  ;;  %v4733_v9 = vpop.permute.xlu1 %2670 }
 0x1e1   : > { %v3534_v21 = vpop.f32.mrf.mxu0  ;;  %vm2689_vm0 = vcmp.eq.s32.totalorder %v4733_v9, 1 }
 0x1e2   : > { %v3574_v54 = vpop.f32.mrf.mxu1  ;;  %v2021_v4 = vadd.f32 %v2000_v12, %v1852_v3 }
 0x1e3   : > { %v1834_v22 = vpop.f32.mrf.mxu0 }
 0x1e4   : > { %v4700_v59 = vpop.f32.mrf.mxu1  ;;  %v1853_v13 = vadd.f32 %v1834_v22, %v4680_v30 }
 0x1e5   : > { %v3535_v16 = vpop.f32.mrf.mxu0 }
 0x1e6   : > { %v3575_v24 = vpop.f32.mrf.mxu1 }
 0x1e7   : > { %v1839_v25 = vpop.f32.mrf.mxu0  ;;  %v2022_v24 = vadd.f32 %v2003_v17, %v1853_v13 }
 0x1e8   : > { %v4702_v57 = vpop.f32.mrf.mxu1  ;;  %v1854_v16 = vadd.f32 %v1839_v25, %v4682_v38  ;;  %v4743_v38 = vld [vmem:[%s4805_s7] ss:$0 sm:$0xff] }
 0x1e9   : > { %v3538_v20 = vpop.f32.mrf.mxu0 }
 0x1ea   : > { %v3630_v6 = vpop.f32.mrf.mxu1  ;;  %v2023_v12 = vadd.f32 %v4698_v11, %v1854_v16 }
 0x1eb   : > { %v1842_v27 = vpop.f32.mrf.mxu0  ;;  %v4735_v6 = vpop.permute.xlu0 %2667 }
 0x1ec   : > { %v4704_v29 = vpop.f32.mrf.mxu1  ;;  %v1855_v30 = vadd.f32 %v1842_v27, %v4684_v45  ;;  %vm2688_vm2 = vcmp.eq.s32.totalorder %v4735_v6, 1 }
 0x1ed   : > { %v3539_v34 = vpop.f32.mrf.mxu0 }
 0x1ee   : > { %v3631_v0 = vpop.f32.mrf.mxu1  ;;  %v2024_v11 = vadd.f32 %v4700_v59, %v1855_v30 }
 0x1ef   : > { %v2179_v35 = vpop.f32.mrf.mxu0 }
 0x1f0   : > { %v4706_v31 = vpop.f32.mrf.mxu1 }
 0x1f1   : > { %v3594_v36 = vpop.f32.mrf.mxu0 }
 0x1f2   : > { %v3634_v26 = vpop.f32.mrf.mxu1 }
 0x1f3   : > { %v2182_v39 = vpop.f32.mrf.mxu0 }
 0x1f4   : > { %v4708_v56 = vpop.f32.mrf.mxu1 }
 0x1f5   : > { %v3595_v40 = vpop.f32.mrf.mxu0 }
 0x1f6   : > { %v3635_v43 = vpop.f32.mrf.mxu1 }
 0x1f7   : > { %v4710_v33 = vpop.f32.mrf.mxu0  ;;  %v2218_v43 = vadd.f32 %v2179_v35, %v4686_v51  ;;  %v2219_v51 = vadd.f32 %v2182_v39, %v4688_v28 }
 0x1f8   : > { %v4712_v46 = vpop.f32.mrf.mxu1  ;;  %v2220_v39 = vadd.f32 %v4710_v33, %v4690_v2 }
 0x1f9   : > { %v3598_v44 = vpop.f32.mrf.mxu0 }
 0x1fa   : > { %v3638_v47 = vpop.f32.mrf.mxu1 }
 0x1fb   : > { %v4714_v49 = vpop.f32.mrf.mxu0 }
 0x1fc   : > { %v4716_v37 = vpop.f32.mrf.mxu1  ;;  %v2221_v2 = vadd.f32 %v4714_v49, %v4692_v60 }
 0x1fd   : > { %v3599_v52 = vpop.f32.mrf.mxu0 }
 0x1fe   : > { %v3639_v58 = vpop.f32.mrf.mxu1  ;;  %v2677_v52 = vpop.permute.xlu1 %2676 }
 0x1ff   : > { %v4718_v61 = vpop.f32.mrf.mxu0  ;;  %vm2691_vm15 = vcmp.eq.s32.totalorder %v2677_v52, 1 }
 0x200   : > { %v2414_v23 = vpop.f32.mrf.mxu1 }
 0x201   : > { %v3602_v42 = vpop.f32.mrf.mxu0 }
 0x202   : > { %v3642_v63 = vpop.f32.mrf.mxu1  ;;  %v2683_v16 = vpop.permute.xlu1 %2682 }
 0x203   : > { %v4724_v19 = vpop.f32.mrf.mxu0  ;;  %v2429_v63 = vadd.f32 %v4702_v57, %v2218_v43  ;;  %vm2693_vm12 = vcmp.eq.s32.totalorder %v2683_v16, 1 }
 0x204   : > { %v2417_v53 = vpop.f32.mrf.mxu1 }
 0x205   : > { %v3603_v1 = vpop.f32.mrf.mxu0 }
 0x206   : > { %v3643_v5 = vpop.f32.mrf.mxu1 }
 0x207   : > { %v2203_v7 = vpop.f32.mrf.mxu0 }
 0x208   : > { %v2422_v8 = vpop.f32.mrf.mxu1  ;;  %v2224_v18 = vadd.f32 %v2203_v7, %v2021_v4 }
 0x209   : > { %v3606_v14 = vpop.f32.mrf.mxu0 }
 0x20a   : > { %v3646_v15 = vpop.f32.mrf.mxu1  ;;  %v2435_v36 = vadd.f32 %v2414_v23, %v2224_v18  ;;  %v2674_v23 = vpop.permute.xlu0 %2673 }
 0x20b   : > { %v2206_v21 = vpop.f32.mrf.mxu0  ;;  %vm2690_vm9 = vcmp.eq.s32.totalorder %v2674_v23, 1  ;;  %v2430_v15 = vadd.f32 %v4704_v29, %v2219_v51  ;;  %v2431_v29 = vadd.f32 %v4706_v31, %v2220_v39  ;;  %v2222_v31 = vadd.f32 %v4718_v61, %v4694_v48 }
 0x20c   : > { %v2425_v54 = vpop.f32.mrf.mxu1  ;;  %v2225_v34 = vadd.f32 %v2206_v21, %v2022_v24  ;;  %v2223_v23 = vadd.f32 %v4724_v19, %v4696_v50 }
 0x20d   : > { %v3607_v55 = vpop.f32.mrf.mxu0 }
 0x20e   : > { %v3647_v20 = vpop.f32.mrf.mxu1  ;;  %v2436_v47 = vadd.f32 %v2417_v53, %v2225_v34  ;;  %v2680_v34 = vpop.permute.xlu0 %2679 }
 0x20f   : > { %v2211_v0 = vpop.f32.mrf.mxu0  ;;  %vm2692_vm1 = vcmp.eq.s32.totalorder %v2680_v34, 1 }
 0x210   : > { %v2583_v26 = vpop.f32.mrf.mxu1  ;;  %v2226_v25 = vadd.f32 %v2211_v0, %v2023_v12 }
 0x211   : > { %v2604_v22 = vadd.f32 %v2583_v26, %v2435_v36  ;;  %v3610_v40 = vpop.f32.mrf.mxu0 }
 0x212   : > { %v3678_v17 = vpop.f32.mrf.mxu1  ;;  %v2437_v53 = vadd.f32 %v2422_v8, %v2226_v25 }
 0x213   : > { %v2214_v44 = vpop.f32.mrf.mxu0  ;;  %v2640_v45 = vadd.f32 %v4743_v38, %v2604_v22 }
 0x214   : > { %v2586_v58 = vpop.f32.mrf.mxu1  ;;  %v2227_v3 = vadd.f32 %v2214_v44, %v2024_v11  ;;  %v2432_v44 = vadd.f32 %v4708_v56, %v2221_v2  ;;  %v2433_v11 = vadd.f32 %v4712_v46, %v2222_v31 }
 0x215   : > { %v2605_v27 = vadd.f32 %v2586_v58, %v2436_v47  ;;  %v3611_v42 = vpop.f32.mrf.mxu0  ;;  %v2700_v4 = vsel %vm2690_vm9, %v2640_v45, 0.0 }
 0x216   : > { %v3679_v35 = vpop.f32.mrf.mxu1  ;;  %v2438_v21 = vadd.f32 %v2425_v54, %v2227_v3 }
 0x217   : > { %v2641_v1 = vadd.f32 %v4743_v38, %v2605_v27  ;;  %v2559_v5 = vpop.f32.mrf.mxu0  ;;  %v2434_v35 = vadd.f32 %v4716_v37, %v2223_v23 }
 0x218   : > { %v2598_v7 = vadd.f32 %v2559_v5, %v2429_v63  ;;  %v2591_v13 = vpop.f32.mrf.mxu1 }
 0x219   : > { %v2701_v28 = vsel %vm2691_vm15, %v2641_v1, 0.0  ;;  %v2606_v59 = vadd.f32 %v2591_v13, %v2437_v53  ;;  %v3666_v57 = vpop.f32.mrf.mxu0 }
 0x21a   : > { %v3227_v14 = vpack.c.bf16 %v2701_v28, %v2700_v4  ;;  %v3682_v8 = vpop.f32.mrf.mxu1  ;;  %v2634_v24 = vadd.f32 %v4743_v38, %v2598_v7 }
 0x21b   : > { %v2562_v18 = vpop.f32.mrf.mxu0  ;;  %v2642_v0 = vadd.f32 %v4743_v38, %v2606_v59 }
 0x21c   : > { %3241 = vst [vmem:[%s4755_s10 + $0x18] sm:$0xff] %v3227_v14   ;;  %v2599_v55 = vadd.f32 %v2562_v18, %v2430_v15  ;;  %v2594_v20 = vpop.f32.mrf.mxu1  ;;  %v2694_v22 = vsel %vm2684_vm11, %v2634_v24, 0.0 }
 0x21d   : > { %v2607_v36 = vadd.f32 %v2594_v20, %v2438_v21  ;;  %v3667_v26 = vpop.f32.mrf.mxu0  ;;  %v2702_v60 = vsel %vm2692_vm1, %v2642_v0, 0.0 }
 0x21e   : > { %v2635_v33 = vadd.f32 %v4743_v38, %v2599_v55  ;;  %v3683_v30 = vpop.f32.mrf.mxu1 }
 0x21f   : > { %v2643_v54 = vadd.f32 %v4743_v38, %v2607_v36  ;;  %v2567_v12 = vpop.f32.mrf.mxu0 }
 0x220   : > { %v2695_v40 = vsel %vm2685_vm10, %v2635_v33, 0.0  ;;  %v2600_v43 = vadd.f32 %v2567_v12, %v2431_v29 }
 0x221   : > { %v3212_v49 = vpack.c.bf16 %v2695_v40, %v2694_v22  ;;  %v2703_v17 = vsel %vm2693_vm12, %v2643_v54, 0.0  ;;  %v3670_v25 = vpop.f32.mrf.mxu0 }
 0x222   : > { %v3232_v62 = vpack.c.bf16 %v2703_v17, %v2702_v60  ;;  %v2636_v47 = vadd.f32 %v4743_v38, %v2600_v43 }
 0x223   : > { %3213 = vst [vmem:[%s4755_s10] sm:$0xff] %v3212_v49   ;;  %v2570_v41 = vpop.f32.mrf.mxu0 }
 0x224   : > { %3242 = vst [vmem:[%s4755_s10 + $0x20] sm:$0xff] %v3232_v62   ;;  %v2601_v52 = vadd.f32 %v2570_v41, %v2432_v44  ;;  %v2696_v56 = vsel %vm2686_vm14, %v2636_v47, 0.0 }
 0x225   : > { %v3671_v58 = vpop.f32.mrf.mxu0 }
 0x226   : > { %v2637_v45 = vadd.f32 %v4743_v38, %v2601_v52 }
 0x227   : > { %v2575_v48 = vpop.f32.mrf.mxu0 }
 0x228   : > { %v2697_v61 = vsel %vm2687_vm13, %v2637_v45, 0.0  ;;  %v2602_v27 = vadd.f32 %v2575_v48, %v2433_v11 }
 0x229   : > { %v3217_v42 = vpack.c.bf16 %v2697_v61, %v2696_v56  ;;  %v3674_v51 = vpop.f32.mrf.mxu0 }
 0x22a   : > { %v2638_v50 = vadd.f32 %v4743_v38, %v2602_v27 }
 0x22b   : > { %3239 = vst [vmem:[%s4755_s10 + $0x8] sm:$0xff] %v3217_v42   ;;  %v2578_v63 = vpop.f32.mrf.mxu0 }
 0x22c   : > { %v2603_v19 = vadd.f32 %v2578_v63, %v2434_v35  ;;  %v2698_v32 = vsel %vm2688_vm2, %v2638_v50, 0.0 }
 0x22d   : > { %v3675_v3 = vpop.f32.mrf.mxu0 }
 0x22e   : > { %v2639_v46 = vadd.f32 %v4743_v38, %v2603_v19 }
 0x230   : > { %v2699_v10 = vsel %vm2689_vm0, %v2639_v46, 0.0 }
 0x231   : > { %v3222_v1 = vpack.c.bf16 %v2699_v10, %v2698_v32 }
 0x233   : > { %3240 = vst [vmem:[%s4755_s10 + $0x10] sm:$0xff] %v3222_v1  }
 0x234 PF: > { %s18_s29 = sadd.s32 1, %s3847_s29   ;;  %s4819_s27 = smov %s3843_s28 }
 0x235   : > { %p15_p5 = scmp.ge.s32.totalorder %s18_s29, 4   ;;  %s4820_s28 = smov %s4822_s30 }
 0x237   :  { %17 = sbr.rel (!%p15_p5) target bundleno = 2 (0x2), region = 99 }

// kernel: down_forward.6
= control target key start
LH: loop header
LB: loop body
LE: loop exit
PB: predicated region body
PF: predicated region fallthrough
CT: control target
= control target key end

     0   :  { %s4060_s30 = smov 0   ;;  %s4062_s10 = smov 0   ;;  %s4995_s0 = inlined_call_operand.vmem [shape: bf16[2,80,128], index: 0, kind: input, shape index: {}]   ;;  %s4996_s1 = inlined_call_operand.vmem [shape: bf16[2,8,10,128], index: 1, kind: input, shape index: {}, may-alias: {1,2}]   ;;  %s4997_s2 = inlined_call_operand.vmem [shape: bf16[2,8,10,128], index: 2, kind: input, shape index: {}, may-alias: {1,2}]   ;;  %s4998_s3 = inlined_call_operand.vmem [shape: f32[1,100,1], index: 3, kind: input, shape index: {}]   ;;  %s4999_s4 = inlined_call_operand.vmem [shape: f32[1,128], index: 4, kind: input, shape index: {}]   ;;  %s5000_s5 = inlined_call_operand.vmem [shape: f32[1,128], index: 5, kind: input, shape index: {}]   ;;  %s5001_s6 = inlined_call_operand.vmem [shape: bf16[9,128,128], index: 6, kind: input, shape index: {}]   ;;  %s5002_s7 = inlined_call_operand.vmem [shape: f32[1,128], index: 7, kind: input, shape index: {}]   ;;  %s5003_s8 = inlined_call_operand.vmem [shape: bf16[2,80,128], index: 8, kind: output, shape index: {0}]   ;;  %s5004_s9 = inlined_call_operand.vmem [shape: f32[2,1,1,256], index: 9, kind: output, shape index: {1}]  }
   0x1   :  { %s4064_s11 = smov 0  }
   0x2 LB: > { %s32_s12 = sadd.s32 1, %s4001_s10  ;;  %p3060_p0 = scmp.ge.s32.totalorder %s4005_s11, 1  ;;  %s4005_s11 = sphi %s4064_s11, %s20_s11   ;;  %s4001_s10 = sphi %s4062_s10, %s5018_s10   ;;  %s3997_s30 = sphi %s4060_s30, %s5017_s30  }
   0x3   : > { %p34_p1 = scmp.ge.s32.totalorder %s32_s12, 2  ;;  %p387_p2 = scmp.lt.s32.totalorder %s4005_s11, 3 }
   0x5   : > { %s5020_s12 = smov (%p34_p1, %s32_s12), 0  ;;  %p388_p3 = pnand %p3060_p0, %p387_p2 }
   0x6   : > { %p471_p4 = scmp.lt.s32.totalorder (!%p388_p3), %s3997_s30, 1 }
   0x7   : > { %391 = sbr.rel (%p388_p3) target bundleno = 586 (0x24a), region = 52 }
   0xc   : > { %v4083_v0 = vld [vmem:[%s4998_s3 + $0xa] sm:$0xff]  ;;  %v554_v1 = vld [vmem:[%s4998_s3] sm:$0xff]  ;;  %v4007_v2 = vmov 0   ;;  %v637_v3 = vld [vmem:[%s4998_s3 + $0x12] sm:$0xff]  ;;  %vm540_vm0 = vcmask 1040384   ;;  %v4008_v9 = vmov 0.0  }
   0xd   : > { %3887 = vset.pattern.permute.xlu1 %v4007_v2  ;;  %3886 = vset.pattern.permute.xlu0 %v4007_v2  ;;  %v555_v4 = vld [vmem:[%s4998_s3 + $0x8] sm:$0x3]  ;;  %v4105_v6 = vld [vmem:[%s4998_s3 + $0x1a] sm:$0xff]  ;;  %vm541_vm1 = vsmask.f32 256  ;;  %v4118_v10 = vld [vmem:[%s4998_s3 + $0x32] sm:$0xff] }
   0xe   : > { %688 = vperm.xlu1 %3887, %v4083_v0   ;;  %578 = vperm.xlu0 %3886, %v554_v1   ;;  %v4100_v5 = vld [vmem:[%s4998_s3 + $0x22] sm:$0xff]  ;;  %v3888_v7 = vld [vmem:[%s5001_s6 + $0x38] sm:$0xff]   ;;  %v543_v8 = vld [vmem:[#allocation2] sm:$0x1]  ;;  %vm2681_vm3 = vcmp.gt.f32.partialorder %v637_v3, 0.0  ;;  %vm2680_vm4 = vcmp.gt.f32.partialorder %v4083_v0, 0.0 }
   0xf   : > { %3554 = vmatprep.subr.bf16.mxu1 %v4008_v9  ;;  %3518 = vmatprep.subr.bf16.mxu0 %v4008_v9  ;;  %vm542_vm2 = vmand %vm540_vm0, %vm541_vm1  ;;  %v4123_v11 = vld [vmem:[%s4998_s3 + $0x2a] sm:$0xff]  ;;  %v4129_v13 = vld [vmem:[%s4998_s3 + $0x42] sm:$0xff]  ;;  %v2707_v27 = vsel %vm2681_vm3, 1, %v4007_v2  ;;  %v2706_v28 = vsel %vm2680_vm4, 1, %v4007_v2  ;;  %vm2683_vm5 = vcmp.gt.f32.partialorder %v4100_v5, 0.0  ;;  %vm2682_vm6 = vcmp.gt.f32.partialorder %v4105_v6, 0.0 }
  0x10   : > { %v544_v12 = vsel %vm542_vm2, 0, %v543_v8  ;;  %3555 = vmatpush3.bf16.msra.mxu1 %v3888_v7  ;;  %v3889_v14 = vld [vmem:[%s5001_s6 + $0x30] sm:$0xff]   ;;  %v4139_v15 = vld [vmem:[%s4998_s3 + $0x3a] sm:$0xff]  ;;  %v3891_v17 = vld [vmem:[%s5001_s6 + $0x28] sm:$0xff]   ;;  %vm546_vm7 = vcmask 1043458   ;;  %v2709_v32 = vsel %vm2683_vm5, 1, %v4007_v2 }
  0x11   : > { %545 = vst [vmem:[#allocation2] sm:$0x1] %v544_v12  ;;  %3556 = vmatprep.subr.bf16.mxu1 %v4008_v9  ;;  %v3890_v16 = vld [vmem:[%s5001_s6 + $0x78] sm:$0xff]   ;;  %v3892_v18 = vld [vmem:[%s5001_s6 + $0x70] sm:$0xff]   ;;  %v3893_v21 = vld [vmem:[%s5001_s6 + $0x20] sm:$0xff]   ;;  %vm2685_vm9 = vcmp.gt.f32.partialorder %v4118_v10, 0.0 }
  0x12   : > { %693 = vperm.xlu1 %3887, %v637_v3   ;;  %583 = vperm.xlu0 %3886, %v555_v4   ;;  %v4156_v19 = vld [vmem:[%s4998_s3 + $0x52] sm:$0xff]  ;;  %v4161_v20 = vld [vmem:[%s4998_s3 + $0x4a] sm:$0xff]  ;;  %v909_v23 = vld [vmem:[%s4998_s3 + $0x62] sm:$0x3]  ;;  %vm547_vm8 = vsmask.f32 7946 }
  0x13   : > { %3519 = vmatpush3.bf16.msra.mxu0 %v3890_v16  ;;  %v3894_v22 = vld [vmem:[%s5001_s6 + $0x68] sm:$0xff]   ;;  %v908_v24 = vld [vmem:[%s4998_s3 + $0x5a] sm:$0xff]  ;;  %v3897_v29 = vld [vmem:[%s5001_s6 + $0x10] sm:$0xff]   ;;  %v2708_v33 = vsel %vm2682_vm6, 1, %v4007_v2  ;;  %vm2684_vm11 = vcmp.gt.f32.partialorder %v4123_v11, 0.0  ;;  %v2711_v37 = vsel %vm2685_vm9, 1, %v4007_v2 }
  0x14   : > { %3557 = vmatpush3.bf16.msra.mxu1 %v3889_v14  ;;  %3520 = vmatprep.subr.bf16.mxu0 %v4008_v9  ;;  %v3895_v25 = vld [vmem:[%s5001_s6 + $0x18] sm:$0xff]   ;;  %v3896_v26 = vld [vmem:[%s5001_s6 + $0x60] sm:$0xff]   ;;  %v549_v30 = vld [vmem:[#allocation2 + $0x30] sm:$0xc]  ;;  %v2710_v38 = vsel %vm2684_vm11, 1, %v4007_v2  ;;  %vm2687_vm12 = vcmp.gt.f32.partialorder %v4129_v13, 0.0 }
  0x15   : > { %3558 = vmatprep.subr.bf16.mxu1 %v4008_v9  ;;  %v3898_v31 = vld [vmem:[%s5001_s6 + $0x58] sm:$0xff]   ;;  %vm548_vm10 = vmand %vm546_vm7, %vm547_vm8  ;;  %v3899_v35 = vld [vmem:[%s5001_s6 + $0x8] sm:$0xff]   ;;  %vm2686_vm13 = vcmp.gt.f32.partialorder %v4139_v15, 0.0  ;;  %vm2689_vm14 = vcmp.gt.f32.partialorder %v4156_v19, 0.0  ;;  %v2713_v41 = vsel %vm2687_vm12, 1, %v4007_v2  ;;  %vm4009_vm15 = vmmov 0  }
  0x16   : > { %703 = vperm.xlu1 %3887, %v4100_v5   ;;  %698 = vperm.xlu0 %3886, %v4105_v6   ;;  %v550_v34 = vsel %vm548_vm10, 0, %v549_v30  ;;  %v3900_v36 = vld [vmem:[%s5001_s6 + $0x50] sm:$0xff]   ;;  %v3901_v39 = vld [vmem:[%s5001_s6] sm:$0xff]   ;;  %v3902_v40 = vld [vmem:[%s5001_s6 + $0x48] sm:$0xff]   ;;  %v2712_v42 = vsel %vm2686_vm13, 1, %v4007_v2  ;;  %vm2688_vm0 = vcmp.gt.f32.partialorder %v4161_v20, 0.0 }
  0x17   : > { %3521 = vmatpush3.bf16.msra.mxu0 %v3892_v18  ;;  %551 = vst [vmem:[#allocation2 + $0x30] sm:$0xc] %v550_v34  ;;  %3570 = vmatprep.mubr.msk.bf16.mxu1 %vm4009_vm15, %v4008_v9  ;;  %v3905_v43 = vld [vmem:[%s5001_s6 + $0x40] sm:$0xff]   ;;  %v2715_v44 = vsel %vm2689_vm14, 1, %v4007_v2  ;;  %v2714_v45 = vsel %vm2688_vm0, 1, %v4007_v2  ;;  %s5022_s30 = smov (!%p471_p4, %s3997_s30), 1 }
  0x18   : > { %3559 = vmatpush3.bf16.msra.mxu1 %v3891_v17  ;;  %3522 = vmatprep.subr.bf16.mxu0 %v4008_v9  ;;  %s3858_s22 = smul.u32 40, %s5022_s30  ;;  %s3320_s23 = sshll.u32 %s5022_s30, 6  ;;  %v4258_v50 = vld [vmem:[%s4999_s4] ss:$0 sm:$0xff]  ;;  %vm614_vm2 = vcmask 1043456   ;;  %vm620_vm7 = vcmask 1041408  }
  0x19   : > { %3560 = vmatprep.subr.bf16.mxu1 %v4008_v9  ;;  %3534 = vmatprep.mubr.msk.bf16.mxu0 %vm4009_vm15, %v4008_v9  ;;  %s492_s29 = scalar_lea.vmem %s4996_s1, %s3320_s23  ;;  %v4265_v58 = vld [vmem:[%s5000_s5] ss:$0 sm:$0xff]  ;;  %s3322_s17 = sadd.s32 56, %s3320_s23  ;;  %vm615_vm3 = vsmask.f32 7938  ;;  %vm888_vm12 = vcmask 1043457  }
  0x1a   : > { %713 = vperm.xlu1 %3887, %v4118_v10   ;;  %708 = vperm.xlu0 %3886, %v4123_v11   ;;  %s478_s26 = scalar_lea.vmem %s4995_s0, %s3858_s22  ;;  %v552_v47 = vld [vmem:[%s492_s29] sm:$0xf]  ;;  %v553_v51 = vld [vmem:[%s492_s29 + $0x4] sm:$0x1]  ;;  %s509_s20 = scalar_lea.vmem %s4997_s2, %s3322_s17  ;;  %vm776_vm4 = vsmask.f32 5392  ;;  %vm4315_vm8 = vmand %vm614_vm2, %vm615_vm3 }
  0x1b   : > { %3523 = vmatpush3.bf16.msra.mxu0 %v3894_v22  ;;  %v3348_v46 = vld [vmem:[%s478_s26] sm:$0xff]   ;;  %v556_v49 = vunpack.c.l.bf16 %v552_v47  ;;  %v3393_v52 = vld [vmem:[%s478_s26 + $0x8] sm:$0xff]   ;;  %v3394_v53 = vld [vmem:[%s478_s26 + $0x10] sm:$0xff]   ;;  %v557_v59 = vunpack.c.l.bf16 %v553_v51  ;;  %vm594_vm5 = vsmask.f32 4368  ;;  %vm959_vm0 = vcmask 1042432  }
  0x1c   : > { %3561 = vmatpush3.bf16.msra.mxu1 %v3893_v21  ;;  %3524 = vmatprep.subr.bf16.mxu0 %v4008_v9  ;;  %v3349_v48 = vunpack.c.l.bf16 %v3348_v46  ;;  %v3350_v56 = vunpack.c.h.bf16 %v3348_v46  ;;  %v3395_v57 = vld [vmem:[%s478_s26 + $0x18] sm:$0xff]   ;;  %v3354_v60 = vunpack.c.h.bf16 %v3393_v52  ;;  %v3353_v61 = vunpack.c.l.bf16 %v3393_v52  ;;  %v3396_v4 = vld [vmem:[%s478_s26 + $0x20] sm:$0xff]   ;;  %vm4340_vm10 = vmor %vm541_vm1, %vm594_vm5  ;;  %s4938_s26 = scalar_lea.vmem %s5003_s8, %s3858_s22  ;;  %s3067_s22 = sshll.u32 %s5022_s30, 1 }
  0x1d   : > { %3562 = vmatprep.subr.bf16.mxu1 %v4008_v9  ;;  %v564_v55 = vmul.f32 %v4258_v50, %v556_v49  ;;  %v3358_v62 = vunpack.c.h.bf16 %v3394_v53  ;;  %v3357_v63 = vunpack.c.l.bf16 %v3394_v53  ;;  %v3362_v0 = vunpack.c.h.bf16 %v3395_v57  ;;  %v907_v21 = vld [vmem:[%s509_s20 + $0x4] sm:$0x1]  ;;  %s536_s29 = scalar_lea.vmem %s5004_s9, %s3067_s22 }
  0x1e   : > { %723 = vperm.xlu1 %3887, %v4129_v13   ;;  %718 = vperm.xlu0 %3886, %v4139_v15   ;;  %v656_v54 = vmul.f32 %v3349_v48, %v4258_v50  ;;  %v657_v3 = vmul.f32 %v3350_v56, %v4258_v50  ;;  %v565_v5 = vmul.f32 %v4258_v50, %v557_v59  ;;  %v3361_v7 = vunpack.c.l.bf16 %v3395_v57 }
  0x1f   : > { %3525 = vmatpush3.bf16.msra.mxu0 %v3896_v26  ;;  %v572_v2 = vadd.f32 %v4265_v58, %v564_v55  ;;  %v659_v6 = vmul.f32 %v3354_v60, %v4258_v50  ;;  %v658_v8 = vmul.f32 %v3353_v61, %v4258_v50  ;;  %v661_v10 = vmul.f32 %v3358_v62, %v4258_v50 }
  0x20   : > { %3563 = vmatpush3.bf16.msra.mxu1 %v3895_v25  ;;  %3526 = vmatprep.subr.bf16.mxu0 %v4008_v9  ;;  %v666_v1 = vadd.f32 %v4265_v58, %v656_v54  ;;  %v660_v11 = vmul.f32 %v3357_v63, %v4258_v50  ;;  %v663_v12 = vmul.f32 %v3362_v0, %v4258_v50  ;;  %v3366_v13 = vunpack.c.h.bf16 %v3396_v4  ;;  %v617_v0 = vld [vmem:[#allocation2] sm:$0xf] }
  0x21   : > { %3564 = vmatprep.subr.bf16.mxu1 %v4008_v9  ;;  %v3365_v14 = vunpack.c.l.bf16 %v3396_v4  ;;  %v574_v16 = vmax.f32 %v572_v2, 0.0  ;;  %v667_v17 = vadd.f32 %v4265_v58, %v657_v3  ;;  %v573_v18 = vadd.f32 %v4265_v58, %v565_v5 }
  0x22   : > { %733 = vperm.xlu1 %3887, %v4156_v19   ;;  %728 = vperm.xlu0 %3886, %v4161_v20   ;;  %v676_v15 = vmax.f32 %v666_v1, 0.0  ;;  %v669_v19 = vadd.f32 %v4265_v58, %v659_v6  ;;  %v662_v20 = vmul.f32 %v3361_v7, %v4258_v50  ;;  %v4284_v22 = vadd.f32 %v4265_v58, %v658_v8 }
  0x23   : > { %3527 = vmatpush3.bf16.msra.mxu0 %v3898_v31  ;;  %v664_v30 = vmul.f32 %v3365_v14, %v4258_v50  ;;  %v911_v34 = vunpack.c.l.bf16 %v907_v21  ;;  %vm621_vm6 = vsmask.f32 1280  ;;  %vm889_vm1 = vsmask.f32 7942 }
  0x24   : > { %3565 = vmatpush3.bf16.msra.mxu1 %v3897_v29  ;;  %3528 = vmatprep.subr.bf16.mxu0 %v4008_v9  ;;  %v665_v29 = vmul.f32 %v3366_v13, %v4258_v50  ;;  %vm4334_vm9 = vmor %vm621_vm6, %vm776_vm4  ;;  %vm960_vm14 = vsmask.f32 2304  ;;  %vm1038_vm3 = vsmask.f32 7424  ;;  %vm1356_vm4 = vcmask 1046528  }
  0x25   : > { %3566 = vmatprep.subr.bf16.mxu1 %v4008_v9  ;;  %v4308_v48 = vadd.f32 %v4265_v58, %v664_v30  ;;  %v913_v53 = vmul.f32 %v4258_v50, %v911_v34  ;;  %vm4346_vm11 = vmand %vm620_vm7, %vm621_vm6  ;;  %v623_v34 = vld [vmem:[#allocation2 + $0x4] sm:$0x3]  ;;  %vm1939_vm5 = vcmask 1045504   ;;  %vm1728_vm6 = vsmask.f32 6400 }
  0x26   : > { %925 = vperm.xlu1 %3887, %v909_v23   ;;  %920 = vperm.xlu0 %3886, %v908_v24   ;;  %v4287_v23 = vadd.f32 %v4265_v58, %v661_v10  ;;  %v906_v24 = vld [vmem:[%s509_s20] sm:$0xf]  ;;  %v4305_v47 = vadd.f32 %v4265_v58, %v665_v29  ;;  %vm4372_vm13 = vmand %vm888_vm12, %vm889_vm1  ;;  %vm2311_vm7 = vsmask.f32 5376 }
  0x27   : > { %3529 = vmatpush3.bf16.msra.mxu0 %v3900_v36  ;;  %v679_v36 = vmax.f32 %v669_v19, 0.0  ;;  %v684_v6 = vmax.f32 %v4308_v48, 0.0  ;;  %v4324_v10 = vadd.f32 %v4265_v58, %v913_v53  ;;  %vm4403_vm2 = vmand %vm959_vm0, %vm960_vm14 }
  0x28   : > { %3567 = vmatpush3.bf16.msra.mxu1 %v3899_v35  ;;  %3530 = vmatprep.subr.bf16.mxu0 %v4008_v9  ;;  %v575_v35 = vmax.f32 %v573_v18, 0.0  ;;  %v685_v5 = vmax.f32 %v4305_v47, 0.0 }
  0x29   : > { %3568 = vmatprep.subr.bf16.mxu1 %v4008_v9 }
  0x2a   : > { %2720 = vperm.xlu1 %3887, %v2707_v27   ;;  %2717 = vperm.xlu0 %3886, %v2706_v28   ;;  %v4290_v27 = vadd.f32 %v4265_v58, %v660_v11  ;;  %v4293_v28 = vadd.f32 %v4265_v58, %v663_v12 }
  0x2b   : > { %3531 = vmatpush3.bf16.msra.mxu0 %v3902_v40 }
  0x2c   : > { %3569 = vmatpush3.bf16.msra.mxu1 %v3901_v39  ;;  %3532 = vmatprep.subr.bf16.mxu0 %v4008_v9  ;;  %v683_v46 = vmax.f32 %v4293_v28, 0.0 }
  0x2d   : > { %3626 = vmatprep.subr.bf16.mxu1 %v4008_v9 }
  0x2e   : > { %2726 = vperm.xlu1 %3887, %v2709_v32   ;;  %2723 = vperm.xlu0 %3886, %v2708_v33   ;;  %v677_v33 = vmax.f32 %v667_v17, 0.0 }
  0x2f   : > { %3533 = vmatpush3.bf16.msra.mxu0 %v3905_v43 }
  0x30   : > { %3590 = vmatprep.subr.bf16.mxu0 %v4008_v9 }
  0x32   : > { %2732 = vperm.xlu1 %3887, %v2711_v37   ;;  %2729 = vperm.xlu0 %3886, %v2710_v38   ;;  %v4298_v37 = vadd.f32 %v4265_v58, %v662_v20  ;;  %v910_v38 = vunpack.c.l.bf16 %v906_v24 }
  0x34   : > { %v682_v56 = vmax.f32 %v4298_v37, 0.0  ;;  %v912_v57 = vmul.f32 %v4258_v50, %v910_v38 }
  0x36   : > { %2738 = vperm.xlu1 %3887, %v2713_v41   ;;  %2735 = vperm.xlu0 %3886, %v2712_v42   ;;  %v678_v41 = vmax.f32 %v4284_v22, 0.0  ;;  %v681_v42 = vmax.f32 %v4287_v23, 0.0  ;;  %v4327_v14 = vadd.f32 %v4265_v58, %v912_v57 }
  0x3a   : > { %2744 = vperm.xlu1 %3887, %v2715_v44   ;;  %2741 = vperm.xlu0 %3886, %v2714_v45   ;;  %v680_v45 = vmax.f32 %v4290_v27, 0.0 }
  0x89   : > { %v689_v25 = vpop.permute.xlu1 %688  ;;  %v579_v26 = vpop.permute.xlu0 %578 }
  0x8a   : > { %v736_v31 = vmul.f32 %v689_v25, %v676_v15  ;;  %v586_v32 = vmul.f32 %v579_v26, %v574_v16 }
  0x8c   : > { %v3325_v39 = vpack.c.bf16 %v736_v31, %v736_v31  ;;  %v3323_v40 = vpack.c.bf16 %v586_v32, %v586_v32 }
  0x8d   : > { %v694_v43 = vpop.permute.xlu1 %693  ;;  %v584_v44 = vpop.permute.xlu0 %583 }
  0x8e   : > { %v779_v49 = vshrl.u32 %v3325_v39, 16  ;;  %v782_v51 = vshll.u32 %v3325_v39, 16  ;;  %v597_v52 = vshrl.u32 %v3323_v40, 16  ;;  %v737_v54 = vmul.f32 %v694_v43, %v677_v33 }
  0x8f   : > { %v587_v55 = vmul.f32 %v584_v44, %v575_v35  ;;  %v600_v62 = vshll.u32 %v3323_v40, 16 }
  0x90   : > { %v781_v59 = vrot.slane %v779_v49, 6  ;;  %v784_v60 = vrot.slane %v782_v51, 7  ;;  %v599_v61 = vrot.slane %v597_v52, 7  ;;  %v3326_v1 = vpack.c.bf16 %v737_v54, %v737_v54 }
  0x91   : > { %v3324_v2 = vpack.c.bf16 %v587_v55, %v587_v55  ;;  %v704_v3 = vpop.permute.xlu1 %703  ;;  %v699_v4 = vpop.permute.xlu0 %698 }
  0x92   : > { %v4321_v50 = vor.u32 %v784_v60, %v781_v59  ;;  %v602_v7 = vor.u32 %v600_v62, %v599_v61  ;;  %v739_v8 = vmul.f32 %v704_v3, %v679_v36  ;;  %v788_v11 = vshrl.u32 %v3326_v1, 16 }
  0x93   : > { %v791_v12 = vshll.u32 %v3326_v1, 16  ;;  %v605_v13 = vshrl.u32 %v3324_v2, 16  ;;  %v608_v16 = vshll.u32 %v3324_v2, 16  ;;  %v738_v18 = vmul.f32 %v699_v4, %v678_v41 }
  0x94   : > { %v618_v15 = vsel %vm4315_vm8, %v602_v7, %v617_v0  ;;  %v3328_v17 = vpack.c.bf16 %v739_v8, %v739_v8  ;;  %v786_v19 = vrot.slane %v4321_v50, 4  ;;  %v790_v21 = vrot.slane %v788_v11, 6 }
  0x95   : > { %619 = vst [vmem:[#allocation2] sm:$0xf] %v618_v15  ;;  %v793_v22 = vrot.slane %v791_v12, 7  ;;  %v607_v23 = vrot.slane %v605_v13, 7  ;;  %v714_v58 = vpop.permute.xlu1 %713  ;;  %v709_v24 = vpop.permute.xlu0 %708  ;;  %v3327_v29 = vpack.c.bf16 %v738_v18, %v738_v18  ;;  %v603_v31 = vrot.slane %v599_v61, 4 }
  0x96   : > { %v808_v26 = vshrl.u32 %v3328_v17, 16  ;;  %v811_v27 = vshll.u32 %v3328_v17, 16  ;;  %v741_v30 = vmul.f32 %v714_v58, %v681_v42  ;;  %v740_v36 = vmul.f32 %v709_v24, %v680_v45 }
  0x97   : > { %v794_v32 = vor.u32 %v793_v22, %v790_v21  ;;  %v610_v35 = vor.u32 %v608_v16, %v607_v23  ;;  %v798_v40 = vshrl.u32 %v3327_v29, 16  ;;  %v801_v41 = vshll.u32 %v3327_v29, 16 }
  0x98   : > { %v810_v38 = vrot.slane %v808_v26, 6  ;;  %v813_v39 = vrot.slane %v811_v27, 7  ;;  %v3330_v49 = vpack.c.bf16 %v741_v30, %v741_v30  ;;  %v3329_v60 = vpack.c.bf16 %v740_v36, %v740_v36 }
  0x99   : > { %v795_v42 = vsel %vm4334_vm9, %v786_v19, %v794_v32  ;;  %v796_v43 = vrot.slane %v794_v32, 4  ;;  %v611_v44 = vsel %vm4340_vm10, %v603_v31, %v610_v35  ;;  %v724_v51 = vpop.permute.xlu1 %723  ;;  %v719_v52 = vpop.permute.xlu0 %718  ;;  %v800_v54 = vrot.slane %v798_v40, 6 }
  0x9a   : > { %894 = vst [vmem:[#allocation2 + $0x8] sm:$0xf] %v795_v42  ;;  %v624_v45 = vsel %vm4346_vm11, %v611_v44, %v623_v34  ;;  %v814_v53 = vor.u32 %v813_v39, %v810_v38  ;;  %v803_v55 = vrot.slane %v801_v41, 7  ;;  %v828_v57 = vshrl.u32 %v3330_v49, 16 }
  0x9b   : > { %625 = vst [vmem:[#allocation2 + $0x4] sm:$0x3] %v624_v45  ;;  %v831_v59 = vshll.u32 %v3330_v49, 16  ;;  %v743_v61 = vmul.f32 %v724_v51, %v683_v46  ;;  %v742_v0 = vmul.f32 %v719_v52, %v682_v56  ;;  %v917_v1 = vmax.f32 %v4324_v10, 0.0 }
  0x9c   : > { %v816_v62 = vrot.slane %v814_v53, 4  ;;  %v804_v63 = vor.u32 %v803_v55, %v800_v54  ;;  %v830_v2 = vrot.slane %v828_v57, 6  ;;  %v818_v4 = vshrl.u32 %v3329_v60, 16  ;;  %v903_v54 = vld [vmem:[#allocation2 + $0x2c] sm:$0x3] }
  0x9d   : > { %v833_v3 = vrot.slane %v831_v59, 7  ;;  %v821_v7 = vshll.u32 %v3329_v60, 16  ;;  %v734_v8 = vpop.permute.xlu1 %733  ;;  %v3332_v13 = vpack.c.bf16 %v743_v61, %v743_v61  ;;  %v3331_v15 = vpack.c.bf16 %v742_v0, %v742_v0  ;;  %v729_v28 = vpop.permute.xlu0 %728 }
  0x9e   : > { %v805_v11 = vsel %vm4334_vm9, %v796_v43, %v804_v63  ;;  %v806_v12 = vrot.slane %v804_v63, 4  ;;  %v820_v16 = vrot.slane %v818_v4, 6  ;;  %v745_v37 = vmul.f32 %v734_v8, %v685_v5  ;;  %v3908_v4 = vld [vmem:[%s5001_s6 + $0xf8] sm:$0xff]   ;;  %v3909_v5 = vld [vmem:[%s5001_s6 + $0xb0] sm:$0xff]  }
  0x9f   : > { %895 = vst [vmem:[#allocation2 + $0xc] sm:$0xf] %v805_v11  ;;  %v834_v46 = vor.u32 %v833_v3, %v830_v2  ;;  %v823_v17 = vrot.slane %v821_v7, 7  ;;  %v848_v10 = vshrl.u32 %v3332_v13, 16  ;;  %v851_v18 = vshll.u32 %v3332_v13, 16 }
  0xa0   : > { %v815_v56 = vsel %vm4334_vm9, %v806_v12, %v814_v53  ;;  %v838_v19 = vshrl.u32 %v3331_v15, 16  ;;  %v841_v22 = vshll.u32 %v3331_v15, 16  ;;  %v3334_v23 = vpack.c.bf16 %v745_v37, %v745_v37  ;;  %v966_v12 = vld [vmem:[#allocation2] sm:$0xf] }
  0xa1   : > { %896 = vst [vmem:[#allocation2 + $0x10] sm:$0xf] %v815_v56  ;;  %v824_v21 = vor.u32 %v823_v17, %v820_v16  ;;  %v926_v58 = vpop.permute.xlu1 %925  ;;  %v916_v24 = vmax.f32 %v4327_v14, 0.0  ;;  %v850_v25 = vrot.slane %v848_v10, 6  ;;  %v853_v26 = vrot.slane %v851_v18, 7  ;;  %v921_v48 = vpop.permute.xlu0 %920 }
  0xa2   : > { %v840_v27 = vrot.slane %v838_v19, 6  ;;  %v744_v47 = vmul.f32 %v729_v28, %v684_v6  ;;  %v891_v29 = vld [vmem:[#allocation2 + $0x4] sm:$0xe]  ;;  %v843_v32 = vrot.slane %v841_v22, 7  ;;  %v868_v34 = vshrl.u32 %v3334_v23, 16 }
  0xa3   : > { %v825_v30 = vsel %vm4334_vm9, %v816_v62, %v824_v21  ;;  %v826_v31 = vrot.slane %v824_v21, 4  ;;  %v836_v14 = vrot.slane %v834_v46, 4  ;;  %v871_v35 = vshll.u32 %v3334_v23, 16  ;;  %v962_v23 = vld [vmem:[#allocation2 + $0x30] sm:$0x7] }
  0xa4   : > { %897 = vst [vmem:[#allocation2 + $0x14] sm:$0xf] %v825_v30  ;;  %v3333_v36 = vpack.c.bf16 %v744_v47, %v744_v47  ;;  %v929_v38 = vmul.f32 %v926_v58, %v917_v1  ;;  %v844_v39 = vor.u32 %v843_v32, %v840_v27  ;;  %v870_v40 = vrot.slane %v868_v34, 6  ;;  %v3910_v58 = vld [vmem:[%s5001_s6 + $0xf0] sm:$0xff]   ;;  %v3907_v32 = vld [vmem:[%s5001_s6 + $0xb8] sm:$0xff]  }
  0xa5   : > { %v835_v6 = vsel %vm4334_vm9, %v826_v31, %v834_v46  ;;  %v892_v41 = vsel %vm4372_vm13, %v4321_v50, %v891_v29  ;;  %v854_v42 = vor.u32 %v853_v26, %v850_v25  ;;  %v873_v43 = vrot.slane %v871_v35, 7  ;;  %v3913_v35 = vld [vmem:[%s5001_s6 + $0xe8] sm:$0xff]  }
  0xa6   : > { %898 = vst [vmem:[#allocation2 + $0x18] sm:$0xf] %v835_v6  ;;  %v858_v44 = vshrl.u32 %v3333_v36, 16  ;;  %v861_v49 = vshll.u32 %v3333_v36, 16  ;;  %893 = vst [vmem:[#allocation2 + $0x4] sm:$0xe] %v892_v41  ;;  %v845_v51 = vsel %vm4334_vm9, %v836_v14, %v844_v39  ;;  %v3336_v45 = vpack.c.bf16 %v929_v38, %v929_v38 }
  0xa7   : > { %v846_v52 = vrot.slane %v844_v39, 4  ;;  %v928_v53 = vmul.f32 %v921_v48, %v916_v24  ;;  %899 = vst [vmem:[#allocation2 + $0x1c] sm:$0xf] %v845_v51  ;;  %v874_v55 = vor.u32 %v873_v43, %v870_v40  ;;  %v856_v63 = vrot.slane %v854_v42, 4  ;;  %v4394_v13 = vld [vmem:[#allocation2 + $0x8] sm:$0xff]   ;;  %v3914_v38 = vld [vmem:[%s5001_s6 + $0xe0] sm:$0xff]  }
  0xa8   : > { %v860_v57 = vrot.slane %v858_v44, 6  ;;  %v863_v59 = vrot.slane %v861_v49, 7  ;;  %v946_v60 = vshrl.u32 %v3336_v45, 16  ;;  %v949_v61 = vshll.u32 %v3336_v45, 16  ;;  %v3912_v40 = vld [vmem:[%s5001_s6 + $0xa8] sm:$0xff]   ;;  %v3917_v43 = vld [vmem:[%s5001_s6 + $0xd8] sm:$0xff]  }
  0xa9   : > { %v855_v50 = vsel %vm4334_vm9, %v846_v52, %v854_v42  ;;  %v3335_v62 = vpack.c.bf16 %v928_v53, %v928_v53  ;;  %v876_v0 = vrot.slane %v874_v55, 4  ;;  %v1047_v19 = vshll.u32 %v4394_v13, 16  ;;  %v3915_v44 = vld [vmem:[%s5001_s6 + $0xa0] sm:$0xff]   ;;  %v3919_v52 = vld [vmem:[%s5001_s6 + $0xd0] sm:$0xff]  }
  0xaa   : > { %900 = vst [vmem:[#allocation2 + $0x20] sm:$0xf] %v855_v50  ;;  %v864_v1 = vor.u32 %v863_v59, %v860_v57  ;;  %v948_v15 = vrot.slane %v946_v60, 6  ;;  %v951_v28 = vrot.slane %v949_v61, 7  ;;  %v1051_v36 = vshrl.u32 %v4394_v13, 16  ;;  %v3922_v59 = vld [vmem:[%s5001_s6 + $0xc8] sm:$0xff]  }
  0xab   : > { %v937_v2 = vshrl.u32 %v3335_v62, 16  ;;  %v940_v3 = vshll.u32 %v3335_v62, 16  ;;  %v904_v7 = vsel %vm4346_vm11, %v876_v0, %v903_v54  ;;  %v4414_v26 = vld [vmem:[#allocation2 + $0x10] sm:$0xff]   ;;  %v1049_v31 = vrot.slane %v1047_v19, 1  ;;  %v3918_v54 = vld [vmem:[%s5001_s6 + $0x98] sm:$0xff]   ;;  %v3924_v62 = vld [vmem:[%s5001_s6 + $0xc0] sm:$0xff]  }
  0xac   : > { %v865_v8 = vsel %vm4334_vm9, %v856_v63, %v864_v1  ;;  %v866_v11 = vrot.slane %v864_v1, 4  ;;  %905 = vst [vmem:[#allocation2 + $0x2c] sm:$0x3] %v904_v7  ;;  %v952_v21 = vor.u32 %v951_v28, %v948_v15  ;;  %v1055_v14 = vshll.u32 %v4414_v26, 16  ;;  %v3921_v50 = vld [vmem:[%s5001_s6 + $0x90] sm:$0xff]   ;;  %v3923_v1 = vld [vmem:[%s5001_s6 + $0x88] sm:$0xff]  }
  0xad   : > { %901 = vst [vmem:[#allocation2 + $0x24] sm:$0xf] %v865_v8  ;;  %v939_v46 = vrot.slane %v937_v2, 6  ;;  %v942_v16 = vrot.slane %v940_v3, 7  ;;  %v4396_v17 = vld [vmem:[#allocation2 + $0x4] sm:$0xf]  ;;  %v1053_v39 = vor.u32 %v1051_v36, %v1049_v31 }
  0xae   : > { %v875_v37 = vsel %vm4334_vm9, %v866_v11, %v874_v55  ;;  %v3100_v33 = vcombine.low %v966_v12, %v4396_v17  ;;  %v1057_v48 = vrot.slane %v1055_v14, 1  ;;  %v4444_v6 = vld [vmem:[#allocation2 + $0x18] sm:$0xff]   ;;  %v1059_v49 = vshrl.u32 %v4414_v26, 16  ;;  %v1504_v2 = vld [vmem:[#allocation2 + $0x4] sm:$0xe]  ;;  %v4520_v15 = vld [vmem:[#allocation2 + $0xc] sm:$0xff]  }
  0xaf   : > { %902 = vst [vmem:[#allocation2 + $0x28] sm:$0xf] %v875_v37  ;;  %v943_v56 = vor.u32 %v942_v16, %v939_v46  ;;  %v1063_v42 = vshll.u32 %v4444_v6, 16  ;;  %v1067_v60 = vshrl.u32 %v4444_v6, 16  ;;  %v4505_v7 = vld [vmem:[#allocation2 + $0x8] sm:$0xf] }
  0xb0   : > { %v1042_v18 = vshll.u32 %v3100_v33, 16  ;;  %3571 = vmatmul.mubr.bf16.vlgmr.msra.gmra.mxu1 %v3100_v33  ;;  %v1040_v24 = vshrl.u32 %v3100_v33, 16  ;;  %v1058_v41 = vsel %vm1038_vm3, %v1053_v39, %v1057_v48  ;;  %v1061_v53 = vor.u32 %v1059_v49, %v1057_v48  ;;  %v3928_v12 = vld [vmem:[%s5001_s6 + $0x80] sm:$0xff]   ;;  %v3941_v39 = vld [vmem:[%s5001_s6 + $0x118] sm:$0xff]  }
  0xb1   : > { %v944_v22 = vrot.slane %v943_v56, 4  ;;  %3574 = vmatprep.mubr.msk.bf16.mxu1 %vm4009_vm15, %v4008_v9  ;;  %3627 = vmatpush3.bf16.msra.mxu1 %v3908_v4  ;;  %v1065_v51 = vrot.slane %v1063_v42, 1  ;;  %v4508_v8 = vcombine.low %v1504_v2, %v4505_v7  ;;  %v1335_v37 = vld [vmem:[#allocation2] sm:$0xe]  ;;  %v1561_v33 = vrot.slane %v4520_v15, 1 }
  0xb2   : > { %v1044_v25 = vrot.slane %v1042_v18, 1  ;;  %3628 = vmatprep.subr.bf16.mxu1 %v4008_v9  ;;  %v3138_v10 = vcombine.low %v1335_v37, %v4396_v17  ;;  %v3933_v17 = vld [vmem:[%s5001_s6 + $0x170] sm:$0xff]   ;;  %v1362_v36 = vrot.slane %v4444_v6, 1  ;;  %v3947_v49 = vld [vmem:[%s5001_s6 + $0x140] sm:$0xff]   ;;  %vm2522_vm8 = vcmask 1044480  }
  0xb3   : > { %v953_v27 = vsel %vm4334_vm9, %v944_v22, %v952_v21  ;;  %v956_v47 = vld [vmem:[#allocation2 + $0x2c] sm:$0xe]  ;;  %v1066_v55 = vsel %vm1038_vm3, %v1061_v53, %v1065_v51  ;;  %v1069_v0 = vor.u32 %v1067_v60, %v1065_v51  ;;  %v1560_v16 = vrot.slane %v4508_v8, 1  ;;  %v4532_v21 = vld [vmem:[#allocation2 + $0x14] sm:$0xff]   ;;  %v1918_v53 = vld [vmem:[#allocation2 + $0x4] sm:$0xc] }
  0xb4   : > { %v963_v29 = vsel %vm4403_vm2, %v953_v27, %v962_v23  ;;  %v1045_v30 = vor.u32 %v1044_v25, %v1040_v24  ;;  %v957_v34 = vsel %vm4372_vm13, %v943_v56, %v956_v47  ;;  %v4470_v45 = vld [vmem:[#allocation2 + $0x20] sm:$0xff]   ;;  %v3931_v56 = vld [vmem:[%s5001_s6 + $0x178] sm:$0xff]   ;;  %v1357_v22 = vrot.slane %v3138_v10, 1  ;;  %v3936_v27 = vld [vmem:[%s5001_s6 + $0x168] sm:$0xff]  }
  0xb5   : > { %964 = vst [vmem:[#allocation2 + $0x30] sm:$0x7] %v963_v29  ;;  %3629 = vmatpush3.bf16.msra.mxu1 %v3910_v58  ;;  %958 = vst [vmem:[#allocation2 + $0x2c] sm:$0xe] %v957_v34  ;;  %v1071_v57 = vshll.u32 %v4470_v45, 16  ;;  %v1075_v11 = vshrl.u32 %v4470_v45, 16  ;;  %v1562_v19 = vsel %vm1356_vm4, %v1560_v16, %v1561_v33 }
  0xb6   : > { %v1050_v20 = vsel %vm1038_vm3, %v1045_v30, %v1049_v31  ;;  %3630 = vmatprep.subr.bf16.mxu1 %v4008_v9  ;;  %v4496_v63 = vld [vmem:[#allocation2 + $0x28] ss:$0 sps:$4 sm:$0x11]   ;;  %v1563_v23 = vrot.slane %v4532_v21, 1  ;;  %v1358_v58 = vrot.slane %v4394_v13, 1  ;;  %v3929_v24 = vld [vmem:[%s5001_s6 + $0x138] sm:$0xff]  }
  0xb7   : > { %3535 = vmatmul.mubr.bf16.vlgmr.msra.gmra.mxu0 %v1050_v20  ;;  %v1073_v61 = vrot.slane %v1071_v57, 1  ;;  %v1079_v4 = vshll.u32 %v4496_v63, 16  ;;  %v4553_v29 = vld [vmem:[#allocation2 + $0x1c] sm:$0xff]   ;;  %v1360_v30 = vrot.slane %v4414_v26, 1  ;;  %v3935_v34 = vld [vmem:[%s5001_s6 + $0x128] sm:$0xff]   ;;  %v1733_v60 = vshll.u32 %v4508_v8, 16 }
  0xb8   : > { %3591 = vmatpush3.bf16.msra.mxu0 %v3907_v32  ;;  %3575 = vmatmul.mubr.bf16.gmra.mxu1 %v4394_v13  ;;  %v1359_v25 = vsel %vm1356_vm4, %v1357_v22, %v1358_v58  ;;  %v1564_v47 = vsel %vm1356_vm4, %v1561_v33, %v1563_v23  ;;  %v3932_v13 = vld [vmem:[%s5001_s6 + $0x130] sm:$0xff]   ;;  %v3937_v31 = vld [vmem:[%s5001_s6 + $0x160] sm:$0xff]   ;;  %v1565_v32 = vrot.slane %v4553_v29, 1  ;;  %v3940_v20 = vld [vmem:[%s5001_s6 + $0x158] sm:$0xff]   ;;  %v1943_v16 = vrot.slane %v4532_v21, 2 }
  0xb9   : > { %3592 = vmatprep.subr.bf16.mxu0 %v4008_v9  ;;  %3538 = vmatprep.mubr.msk.bf16.mxu0 %vm4009_vm15, %v4008_v9  ;;  %v1074_v3 = vsel %vm1038_vm3, %v1069_v0, %v1073_v61  ;;  %v1077_v28 = vor.u32 %v1075_v11, %v1073_v61  ;;  %v1081_v46 = vrot.slane %v1079_v4, 1  ;;  %v3943_v42 = vld [vmem:[#allocation2 + $0x2c] ss:$0 sps:$4 sm:$0x11]   ;;  %v3949_v57 = vld [vmem:[%s5001_s6 + $0x100] sm:$0xff]   ;;  %v1741_v0 = vshll.u32 %v4520_v15, 16 }
  0xba   : > { %3578 = vmatprep.mubr.msk.bf16.mxu1 %vm4009_vm15, %v4008_v9  ;;  %3631 = vmatpush3.bf16.msra.mxu1 %v3913_v35  ;;  %v1566_v14 = vsel %vm1356_vm4, %v1563_v23, %v1565_v32  ;;  %v4578_v35 = vld [vmem:[#allocation2 + $0x24] sm:$0xff]   ;;  %v1569_v51 = vrot.slane %v3943_v42, 1  ;;  %v1735_v4 = vrot.slane %v1733_v60, 2  ;;  %v3950_v33 = vld [vmem:[%s5001_s6 + $0x1b8] sm:$0xff]  }
  0xbb   : > { %3632 = vmatprep.subr.bf16.mxu1 %v4008_v9  ;;  %v1082_v18 = vsel %vm1038_vm3, %v1077_v28, %v1081_v46  ;;  %v1567_v48 = vrot.slane %v4578_v35, 1  ;;  %v1743_v11 = vrot.slane %v1741_v0, 2  ;;  %v1747_v28 = vshrl.u32 %v4532_v21, 16  ;;  %v3956_v23 = vld [vmem:[%s5001_s6 + $0x1e0] sm:$0xff]  }
  0xbc   : > { %3593 = vmatpush3.bf16.msra.mxu0 %v3909_v5  ;;  %v3938_v5 = vld [vmem:[%s5001_s6 + $0x120] sm:$0xff]   ;;  %v1750_v46 = vshll.u32 %v4532_v21, 16  ;;  %v3952_v21 = vld [vmem:[%s5001_s6 + $0x1b0] sm:$0xff]  }
  0xbd   : > { %3594 = vmatprep.subr.bf16.mxu0 %v4008_v9  ;;  %v1749_v10 = vrot.slane %v1747_v28, 1 }
  0xbe   : > { %3633 = vmatpush3.bf16.msra.mxu1 %v3914_v38  ;;  %v3942_v38 = vld [vmem:[%s5001_s6 + $0x150] sm:$0xff]  }
  0xbf   : > { %3539 = vmatmul.mubr.bf16.gmra.mxu0 %v1058_v41  ;;  %3634 = vmatprep.subr.bf16.mxu1 %v4008_v9  ;;  %v1568_v41 = vsel %vm1356_vm4, %v1565_v32, %v1567_v48  ;;  %v3957_v32 = vld [vmem:[%s5001_s6 + $0x1a0] sm:$0xff]  }
  0xc0   : > { %3579 = vmatmul.mubr.bf16.gmra.mxu1 %v4414_v26  ;;  %3595 = vmatpush3.bf16.msra.mxu0 %v3912_v40  ;;  %v1361_v26 = vsel %vm1356_vm4, %v1358_v58, %v1360_v30  ;;  %v3945_v40 = vld [vmem:[%s5001_s6 + $0x148] sm:$0xff]   ;;  %v1756_v58 = vshrl.u32 %v4553_v29, 16 }
  0xc1   : > { %3596 = vmatprep.subr.bf16.mxu0 %v4008_v9  ;;  %3542 = vmatprep.mubr.msk.bf16.mxu0 %vm4009_vm15, %v4008_v9 }
  0xc2   : > { %3582 = vmatprep.mubr.msk.bf16.mxu1 %vm4009_vm15, %v4008_v9  ;;  %3635 = vmatpush3.bf16.msra.mxu1 %v3917_v43  ;;  %v3944_v43 = vld [vmem:[%s5001_s6 + $0x110] sm:$0xff]  }
  0xc3   : > { %3636 = vmatprep.subr.bf16.mxu1 %v4008_v9 }
  0xc4   : > { %3597 = vmatpush3.bf16.msra.mxu0 %v3915_v44  ;;  %v1364_v44 = vrot.slane %v4470_v45, 1 }
  0xc5   : > { %3598 = vmatprep.subr.bf16.mxu0 %v4008_v9 }
  0xc6   : > { %3637 = vmatpush3.bf16.msra.mxu1 %v3919_v52  ;;  %v3946_v52 = vld [vmem:[%s5001_s6 + $0x108] sm:$0xff]  }
  0xc7   : > { %3543 = vmatmul.mubr.bf16.gmra.mxu0 %v1066_v55  ;;  %3638 = vmatprep.subr.bf16.mxu1 %v4008_v9  ;;  %v3218_v55 = vcombine.low %v1918_v53, %v4505_v7 }
  0xc8   : > { %3583 = vmatmul.mubr.bf16.gmra.mxu1 %v4444_v6  ;;  %3599 = vmatpush3.bf16.msra.mxu0 %v3918_v54  ;;  %v1363_v6 = vsel %vm1356_vm4, %v1360_v30, %v1362_v36  ;;  %v1570_v54 = vsel %vm1356_vm4, %v1567_v48, %v1569_v51  ;;  %v4710_v48 = vld [vmem:[#allocation2 + $0xc] sm:$0xf] }
  0xc9   : > { %3546 = vmatprep.mubr.msk.bf16.mxu0 %vm4009_vm15, %v4008_v9  ;;  %3586 = vmatprep.mubr.msk.bf16.mxu1 %vm4009_vm15, %v4008_v9  ;;  %v1940_v61 = vrot.slane %v3218_v55, 2 }
  0xca   : > { %3600 = vmatprep.subr.bf16.mxu0 %v4008_v9  ;;  %3639 = vmatpush3.bf16.msra.mxu1 %v3922_v59  ;;  %v1366_v59 = vrot.slane %v4496_v63, 1  ;;  %v3951_v63 = vld [vmem:[%s5001_s6 + $0x1f8] sm:$0xff]  }
  0xcb   : > { %3640 = vmatprep.subr.bf16.mxu1 %v4008_v9 }
  0xcc   : > { %3601 = vmatpush3.bf16.msra.mxu0 %v3921_v50  ;;  %v1730_v50 = vshrl.u32 %v4508_v8, 16  ;;  %v1367_v2 = vsel %vm1356_vm4, %v1364_v44, %v1366_v59  ;;  %v3964_v59 = vld [vmem:[%s5001_s6 + $0x188] sm:$0xff]  }
  0xcd   : > { %3602 = vmatprep.subr.bf16.mxu0 %v4008_v9 }
  0xce   : > { %3641 = vmatpush3.bf16.msra.mxu1 %v3924_v62  ;;  %v1738_v62 = vshrl.u32 %v4520_v15, 16 }
  0xcf   : > { %3547 = vmatmul.mubr.bf16.gmra.mxu0 %v1074_v3  ;;  %3698 = vmatprep.subr.bf16.mxu1 %v4008_v9  ;;  %v1732_v3 = vrot.slane %v1730_v50, 1 }
  0xd0   : > { %3587 = vmatmul.mubr.bf16.gmra.mxu1 %v4470_v45  ;;  %3603 = vmatpush3.bf16.msra.mxu0 %v3923_v1  ;;  %v1365_v45 = vsel %vm1356_vm4, %v1362_v36, %v1364_v44  ;;  %v1941_v1 = vrot.slane %v4520_v15, 2  ;;  %v1740_v8 = vrot.slane %v1738_v62, 1  ;;  %v3959_v36 = vld [vmem:[%s5001_s6 + $0x198] sm:$0xff]   ;;  %v3962_v44 = vld [vmem:[%s5001_s6 + $0x190] sm:$0xff]  }
  0xd1   : > { %3550 = vmatprep.mubr.msk.bf16.mxu0 %vm4009_vm15, %v4008_v9  ;;  %3642 = vmatprep.mubr.msk.bf16.mxu1 %vm4009_vm15, %v4008_v9  ;;  %v1736_v15 = vor.u32 %v1735_v4, %v1732_v3  ;;  %v4745_v3 = vld [vmem:[#allocation2 + $0x18] sm:$0xff]   ;;  %v3968_v4 = vld [vmem:[%s5001_s6 + $0x180] sm:$0xff]  }
  0xd2   : > { %3604 = vmatprep.subr.bf16.mxu0 %v4008_v9  ;;  %v1942_v7 = vsel %vm1939_vm5, %v1940_v61, %v1941_v1  ;;  %v1744_v37 = vor.u32 %v1743_v11, %v1740_v8  ;;  %v2333_v28 = vshll.u32 %v4745_v3, 16 }
  0xd4   : > { %3605 = vmatpush3.bf16.msra.mxu0 %v3928_v12  ;;  %v3953_v12 = vld [vmem:[%s5001_s6 + $0x1f0] sm:$0xff]  }
  0xd5   : > { %3662 = vmatprep.subr.bf16.mxu0 %v4008_v9 }
  0xd7   : > { %3551 = vmatmul.mubr.bf16.gmra.mxu0 %v1082_v18  ;;  %v1752_v18 = vrot.slane %v1750_v46, 2 }
  0xd8   : > { %3643 = vmatmul.mubr.bf16.vlgmr.msra.gmra.mxu1 %v1562_v19  ;;  %3606 = vmatprep.mubr.msk.bf16.mxu0 %vm4009_vm15, %v4008_v9  ;;  %v3955_v19 = vld [vmem:[%s5001_s6 + $0x1e8] sm:$0xff]  }
  0xd9   : > { %3646 = vmatprep.mubr.msk.bf16.mxu1 %vm4009_vm15, %v4008_v9  ;;  %3699 = vmatpush3.bf16.msra.mxu1 %v3931_v56  ;;  %v1745_v56 = vsel %vm1728_vm6, %v1736_v15, %v1744_v37  ;;  %v1753_v22 = vor.u32 %v1752_v18, %v1749_v10  ;;  %v2330_v15 = vshrl.u32 %v4745_v3, 16  ;;  %v2335_v10 = vrot.slane %v2333_v28, 3  ;;  %v4764_v18 = vld [vmem:[#allocation2 + $0x20] sm:$0xff]  }
  0xda   : > { %3700 = vmatprep.subr.bf16.mxu1 %v4008_v9 }
  0xdd   : > { %3701 = vmatpush3.bf16.msra.mxu1 %v3933_v17  ;;  %v1944_v17 = vsel %vm1939_vm5, %v1941_v1, %v1943_v16 }
  0xde   : > { %3702 = vmatprep.subr.bf16.mxu1 %v4008_v9 }
  0xdf   : > { %3607 = vmatmul.mubr.bf16.vlgmr.msra.gmra.mxu0 %v1359_v25  ;;  %v1945_v25 = vrot.slane %v4553_v29, 2 }
  0xe0   : > { %3663 = vmatpush3.bf16.msra.mxu0 %v3929_v24  ;;  %3647 = vmatmul.mubr.bf16.gmra.mxu1 %v1564_v47  ;;  %v1759_v24 = vshll.u32 %v4553_v29, 16  ;;  %v1754_v47 = vsel %vm1728_vm6, %v1744_v37, %v1753_v22 }
  0xe1   : > { %3664 = vmatprep.subr.bf16.mxu0 %v4008_v9  ;;  %3610 = vmatprep.mubr.msk.bf16.mxu0 %vm4009_vm15, %v4008_v9  ;;  %v1946_v29 = vsel %vm1939_vm5, %v1943_v16, %v1945_v25  ;;  %v3969_v16 = vld [vmem:[%s5001_s6 + $0x238] sm:$0xff]  }
  0xe2   : > { %3650 = vmatprep.mubr.msk.bf16.mxu1 %vm4009_vm15, %v4008_v9  ;;  %3703 = vmatpush3.bf16.msra.mxu1 %v3936_v27  ;;  %v3954_v27 = vld [vmem:[%s5001_s6 + $0x1a8] sm:$0xff]   ;;  %v1761_v30 = vrot.slane %v1759_v24, 2 }
  0xe3   : > { %3704 = vmatprep.subr.bf16.mxu1 %v4008_v9 }
  0xe4   : > { %3665 = vmatpush3.bf16.msra.mxu0 %v3932_v13  ;;  %v1758_v13 = vrot.slane %v1756_v58, 1 }
  0xe5   : > { %3666 = vmatprep.subr.bf16.mxu0 %v4008_v9 }
  0xe6   : > { %3705 = vmatpush3.bf16.msra.mxu1 %v3937_v31  ;;  %v3958_v31 = vld [vmem:[%s5001_s6 + $0x1d8] sm:$0xff]  }
  0xe7   : > { %3611 = vmatmul.mubr.bf16.gmra.mxu0 %v1361_v26  ;;  %3706 = vmatprep.subr.bf16.mxu1 %v4008_v9  ;;  %v3960_v26 = vld [vmem:[%s5001_s6 + $0x1d0] sm:$0xff]  }
  0xe8   : > { %3651 = vmatmul.mubr.bf16.gmra.mxu1 %v1566_v14  ;;  %3667 = vmatpush3.bf16.msra.mxu0 %v3935_v34  ;;  %v1762_v34 = vor.u32 %v1761_v30, %v1758_v13  ;;  %v1768_v14 = vshll.u32 %v4578_v35, 16  ;;  %v4784_v30 = vld [vmem:[#allocation2 + $0x28] sm:$0xff]  }
  0xe9   : > { %3668 = vmatprep.subr.bf16.mxu0 %v4008_v9  ;;  %3614 = vmatprep.mubr.msk.bf16.mxu0 %vm4009_vm15, %v4008_v9 }
  0xea   : > { %3654 = vmatprep.mubr.msk.bf16.mxu1 %vm4009_vm15, %v4008_v9  ;;  %3707 = vmatpush3.bf16.msra.mxu1 %v3940_v20  ;;  %v1765_v20 = vshrl.u32 %v4578_v35, 16 }
  0xeb   : > { %3708 = vmatprep.subr.bf16.mxu1 %v4008_v9 }
  0xec   : > { %3669 = vmatpush3.bf16.msra.mxu0 %v3938_v5  ;;  %v1947_v5 = vrot.slane %v4578_v35, 2  ;;  %v3963_v35 = vld [vmem:[%s5001_s6 + $0x1c8] sm:$0xff]  }
  0xed   : > { %3670 = vmatprep.subr.bf16.mxu0 %v4008_v9 }
  0xee   : > { %3709 = vmatpush3.bf16.msra.mxu1 %v3942_v38  ;;  %v2087_v38 = vld [vmem:[#allocation2 + $0x8] sm:$0xc]  ;;  %v1948_v42 = vsel %vm1939_vm5, %v1945_v25, %v1947_v5 }
  0xef   : > { %3615 = vmatmul.mubr.bf16.gmra.mxu0 %v1363_v6  ;;  %3710 = vmatprep.subr.bf16.mxu1 %v4008_v9  ;;  %v1767_v6 = vrot.slane %v1765_v20, 1  ;;  %v3973_v25 = vld [vmem:[%s5001_s6 + $0x228] sm:$0xff]  }
  0xf0   : > { %3655 = vmatmul.mubr.bf16.gmra.mxu1 %v1568_v41  ;;  %3671 = vmatpush3.bf16.msra.mxu0 %v3941_v39  ;;  %v1763_v39 = vsel %vm1728_vm6, %v1753_v22, %v1762_v34  ;;  %v3961_v41 = vld [vmem:[#allocation2 + $0x2c] ss:$0 sps:$4 sm:$0x33]   ;;  %v2339_v22 = vshrl.u32 %v4764_v18, 16 }
  0xf1   : > { %3618 = vmatprep.mubr.msk.bf16.mxu0 %vm4009_vm15, %v4008_v9  ;;  %3658 = vmatprep.mubr.msk.bf16.mxu1 %vm4009_vm15, %v4008_v9  ;;  %v1774_v53 = vshrl.u32 %v3961_v41, 16 }
  0xf2   : > { %3672 = vmatprep.subr.bf16.mxu0 %v4008_v9  ;;  %3711 = vmatpush3.bf16.msra.mxu1 %v3945_v40  ;;  %v1770_v40 = vrot.slane %v1768_v14, 2  ;;  %v3976_v14 = vld [vmem:[%s5001_s6 + $0x218] sm:$0xff]  }
  0xf3   : > { %3712 = vmatprep.subr.bf16.mxu1 %v4008_v9  ;;  %v1776_v62 = vrot.slane %v1774_v53, 1 }
  0xf4   : > { %3673 = vmatpush3.bf16.msra.mxu0 %v3944_v43  ;;  %v4718_v43 = vld [vmem:[#allocation2 + $0x10] sm:$0xff]   ;;  %v1771_v51 = vor.u32 %v1770_v40, %v1767_v6  ;;  %v2148_v6 = vrot.slane %v4764_v18, 2 }
  0xf5   : > { %3674 = vmatprep.subr.bf16.mxu0 %v4008_v9  ;;  %v2321_v55 = vshrl.u32 %v4718_v43, 16  ;;  %v3977_v40 = vld [vmem:[%s5001_s6 + $0x210] sm:$0xff]  }
  0xf6   : > { %3713 = vmatpush3.bf16.msra.mxu1 %v3947_v49  ;;  %v4728_v49 = vcombine.low %v2087_v38, %v4710_v48  ;;  %v1772_v61 = vsel %vm1728_vm6, %v1762_v34, %v1771_v51  ;;  %v2348_v34 = vshrl.u32 %v4784_v30, 16 }
  0xf7   : > { %3619 = vmatmul.mubr.bf16.gmra.mxu0 %v1365_v45  ;;  %3770 = vmatprep.subr.bf16.mxu1 %v4008_v9  ;;  %v1777_v45 = vshll.u32 %v3961_v41, 16 }
  0xf8   : > { %3659 = vmatmul.mubr.bf16.gmra.mxu1 %v1570_v54  ;;  %3675 = vmatpush3.bf16.msra.mxu0 %v3946_v52  ;;  %v3965_v52 = vld [vmem:[%s5001_s6 + $0x1c0] sm:$0xff]   ;;  %v1949_v54 = vrot.slane %v3961_v41, 2  ;;  %v2313_v50 = vshrl.u32 %v4728_v49, 16  ;;  %v2316_v60 = vshll.u32 %v4728_v49, 16  ;;  %v2143_v58 = vrot.slane %v4728_v49, 2  ;;  %v3979_v49 = vld [vmem:[%s5001_s6 + $0x208] sm:$0xff]  }
  0xf9   : > { %3622 = vmatprep.mubr.msk.bf16.mxu0 %vm4009_vm15, %v4008_v9  ;;  %3714 = vmatprep.mubr.msk.bf16.mxu1 %vm4009_vm15, %v4008_v9  ;;  %v1779_v0 = vrot.slane %v1777_v45, 2  ;;  %v2150_v45 = vrot.slane %v4784_v30, 2 }
  0xfa   : > { %3676 = vmatprep.subr.bf16.mxu0 %v4008_v9  ;;  %v1950_v1 = vsel %vm1939_vm5, %v1947_v5, %v1949_v54  ;;  %v2318_v8 = vrot.slane %v2316_v60, 3  ;;  %v3980_v54 = vld [vmem:[%s5001_s6 + $0x200] sm:$0xff]   ;;  %v2530_v60 = vrot.slane %v4784_v30, 3 }
  0xfb   : > { %v1780_v11 = vor.u32 %v1779_v0, %v1776_v62  ;;  %v2528_v62 = vrot.slane %v4764_v18, 3  ;;  %v2501_v0 = vld [vmem:[#allocation2 + $0x8] sm:$0x8] }
  0xfc   : > { %3677 = vmatpush3.bf16.msra.mxu0 %v3949_v57  ;;  %v2324_v57 = vshll.u32 %v4718_v43, 16 }
  0xfd   : > { %3734 = vmatprep.subr.bf16.mxu0 %v4008_v9  ;;  %v1781_v37 = vsel %vm1728_vm6, %v1771_v51, %v1780_v11 }
  0xff   : > { %3623 = vmatmul.mubr.bf16.gmra.mxu0 %v1367_v2  ;;  %v2326_v2 = vrot.slane %v2324_v57, 3  ;;  %v2151_v57 = vsel %vm1939_vm5, %v2148_v6, %v2150_v45 }
 0x100   : > { %3715 = vmatmul.mubr.bf16.vlgmr.msra.gmra.mxu1 %v1942_v7  ;;  %3678 = vmatprep.mubr.msk.bf16.mxu0 %vm4009_vm15, %v4008_v9  ;;  %v2315_v7 = vrot.slane %v2313_v50, 2  ;;  %v3981_v50 = vld [vmem:[#allocation2 + $0x30] ss:$0 sps:$4 sm:$0x33]  }
 0x101   : > { %3718 = vmatprep.mubr.msk.bf16.mxu1 %vm4009_vm15, %v4008_v9  ;;  %3771 = vmatpush3.bf16.msra.mxu1 %v3951_v63  ;;  %v2323_v63 = vrot.slane %v2321_v55, 2 }
 0x102   : > { %3772 = vmatprep.subr.bf16.mxu1 %v4008_v9  ;;  %v2319_v46 = vor.u32 %v2318_v8, %v2315_v7 }
 0x105   : > { %3773 = vmatpush3.bf16.msra.mxu1 %v3953_v12  ;;  %v2327_v12 = vor.u32 %v2326_v2, %v2323_v63  ;;  %v2531_v63 = vsel %vm2522_vm8, %v2528_v62, %v2530_v60  ;;  %v3298_v2 = vcombine.low %v2501_v0, %v4710_v48 }
 0x106   : > { %3774 = vmatprep.subr.bf16.mxu1 %v4008_v9 }
 0x107   : > { %3679 = vmatmul.mubr.bf16.vlgmr.msra.gmra.mxu0 %v1745_v56  ;;  %v2332_v56 = vrot.slane %v2330_v15, 2  ;;  %v2523_v7 = vrot.slane %v3298_v2, 3  ;;  %v2526_v15 = vrot.slane %v4745_v3, 3 }
 0x108   : > { %3735 = vmatpush3.bf16.msra.mxu0 %v3950_v33  ;;  %3719 = vmatmul.mubr.bf16.gmra.mxu1 %v1944_v17  ;;  %v2328_v33 = vsel %vm2311_vm7, %v2319_v46, %v2327_v12  ;;  %v2144_v17 = vrot.slane %v4718_v43, 2 }
 0x109   : > { %3736 = vmatprep.subr.bf16.mxu0 %v4008_v9  ;;  %3682 = vmatprep.mubr.msk.bf16.mxu0 %vm4009_vm15, %v4008_v9 }
 0x10a   : > { %3722 = vmatprep.mubr.msk.bf16.mxu1 %vm4009_vm15, %v4008_v9  ;;  %3775 = vmatpush3.bf16.msra.mxu1 %v3955_v19  ;;  %v3971_v19 = vld [vmem:[%s5001_s6 + $0x230] sm:$0xff]   ;;  %v2145_v24 = vsel %vm1939_vm5, %v2143_v58, %v2144_v17 }
 0x10b   : > { %3776 = vmatprep.subr.bf16.mxu1 %v4008_v9 }
 0x10c   : > { %3737 = vmatpush3.bf16.msra.mxu0 %v3952_v21  ;;  %v2336_v21 = vor.u32 %v2335_v10, %v2332_v56 }
 0x10d   : > { %3738 = vmatprep.subr.bf16.mxu0 %v4008_v9 }
 0x10e   : > { %3777 = vmatpush3.bf16.msra.mxu1 %v3956_v23  ;;  %v2342_v23 = vshll.u32 %v4764_v18, 16 }
 0x10f   : > { %3683 = vmatmul.mubr.bf16.gmra.mxu0 %v1754_v47  ;;  %3778 = vmatprep.subr.bf16.mxu1 %v4008_v9  ;;  %v2341_v47 = vrot.slane %v2339_v22, 2 }
 0x110   : > { %3723 = vmatmul.mubr.bf16.gmra.mxu1 %v1946_v29  ;;  %3739 = vmatpush3.bf16.msra.mxu0 %v3954_v27  ;;  %v2337_v27 = vsel %vm2311_vm7, %v2327_v12, %v2336_v21  ;;  %v2344_v13 = vrot.slane %v2342_v23, 3  ;;  %v3974_v29 = vld [vmem:[%s5001_s6 + $0x220] sm:$0xff]  }
 0x111   : > { %3740 = vmatprep.subr.bf16.mxu0 %v4008_v9  ;;  %3686 = vmatprep.mubr.msk.bf16.mxu0 %vm4009_vm15, %v4008_v9 }
 0x112   : > { %3726 = vmatprep.mubr.msk.bf16.mxu1 %vm4009_vm15, %v4008_v9  ;;  %3779 = vmatpush3.bf16.msra.mxu1 %v3958_v31  ;;  %v2146_v31 = vrot.slane %v4745_v3, 2 }
 0x113   : > { %3780 = vmatprep.subr.bf16.mxu1 %v4008_v9 }
 0x114   : > { %3741 = vmatpush3.bf16.msra.mxu0 %v3957_v32  ;;  %v2345_v32 = vor.u32 %v2344_v13, %v2341_v47  ;;  %v2147_v20 = vsel %vm1939_vm5, %v2144_v17, %v2146_v31 }
 0x115   : > { %3742 = vmatprep.subr.bf16.mxu0 %v4008_v9 }
 0x116   : > { %3781 = vmatpush3.bf16.msra.mxu1 %v3960_v26  ;;  %v2351_v26 = vshll.u32 %v4784_v30, 16  ;;  %v2346_v5 = vsel %vm2311_vm7, %v2336_v21, %v2345_v32 }
 0x117   : > { %3687 = vmatmul.mubr.bf16.gmra.mxu0 %v1763_v39  ;;  %3782 = vmatprep.subr.bf16.mxu1 %v4008_v9  ;;  %v3978_v39 = vld [vmem:[#allocation2 + $0x30] ss:$0 sps:$4 sm:$0x77]  }
 0x118   : > { %3727 = vmatmul.mubr.bf16.gmra.mxu1 %v1948_v42  ;;  %3743 = vmatpush3.bf16.msra.mxu0 %v3959_v36  ;;  %v2350_v36 = vrot.slane %v2348_v34, 2  ;;  %v2353_v38 = vrot.slane %v2351_v26, 3  ;;  %v2360_v42 = vshll.u32 %v3978_v39, 16  ;;  %v2532_v8 = vrot.slane %v3978_v39, 3 }
 0x119   : > { %3690 = vmatprep.mubr.msk.bf16.mxu0 %vm4009_vm15, %v4008_v9  ;;  %3730 = vmatprep.mubr.msk.bf16.mxu1 %vm4009_vm15, %v4008_v9 }
 0x11a   : > { %3744 = vmatprep.subr.bf16.mxu0 %v4008_v9  ;;  %3783 = vmatpush3.bf16.msra.mxu1 %v3963_v35  ;;  %v2354_v41 = vor.u32 %v2353_v38, %v2350_v36  ;;  %v2357_v35 = vshrl.u32 %v3978_v39, 16  ;;  %v2362_v53 = vrot.slane %v2360_v42, 3  ;;  %v2533_v12 = vsel %vm2522_vm8, %v2530_v60, %v2532_v8 }
 0x11b   : > { %3784 = vmatprep.subr.bf16.mxu1 %v4008_v9 }
 0x11c   : > { %3745 = vmatpush3.bf16.msra.mxu0 %v3962_v44  ;;  %v2149_v44 = vsel %vm1939_vm5, %v2146_v31, %v2148_v6  ;;  %v2355_v51 = vsel %vm2311_vm7, %v2345_v32, %v2354_v41 }
 0x11d   : > { %3746 = vmatprep.subr.bf16.mxu0 %v4008_v9 }
 0x11e   : > { %3785 = vmatpush3.bf16.msra.mxu1 %v3965_v52  ;;  %v2359_v52 = vrot.slane %v2357_v35, 2 }
 0x11f   : > { %3691 = vmatmul.mubr.bf16.gmra.mxu0 %v1772_v61  ;;  %3842 = vmatprep.subr.bf16.mxu1 %v4008_v9  ;;  %v2152_v61 = vrot.slane %v3981_v50, 2 }
 0x120   : > { %3731 = vmatmul.mubr.bf16.gmra.mxu1 %v1950_v1  ;;  %3747 = vmatpush3.bf16.msra.mxu0 %v3964_v59  ;;  %v2363_v55 = vor.u32 %v2362_v53, %v2359_v52 }
 0x121   : > { %3694 = vmatprep.mubr.msk.bf16.mxu0 %vm4009_vm15, %v4008_v9  ;;  %3786 = vmatprep.mubr.msk.bf16.mxu1 %vm4009_vm15, %v4008_v9  ;;  %v2153_v1 = vsel %vm1939_vm5, %v2150_v45, %v2152_v61 }
 0x122   : > { %3748 = vmatprep.subr.bf16.mxu0 %v4008_v9  ;;  %v2364_v59 = vsel %vm2311_vm7, %v2354_v41, %v2363_v55 }
 0x124   : > { %3749 = vmatpush3.bf16.msra.mxu0 %v3968_v4  ;;  %v2524_v4 = vrot.slane %v4718_v43, 3  ;;  %v2529_v43 = vsel %vm2522_vm8, %v2526_v15, %v2528_v62 }
 0x125   : > { %3806 = vmatprep.subr.bf16.mxu0 %v4008_v9 }
 0x126   : > { %v2525_v11 = vsel %vm2522_vm8, %v2523_v7, %v2524_v4  ;;  %v2527_v48 = vsel %vm2522_vm8, %v2524_v4, %v2526_v15 }
 0x127   : > { %3695 = vmatmul.mubr.bf16.gmra.mxu0 %v1781_v37 }
 0x128   : > { %3787 = vmatmul.mubr.bf16.vlgmr.msra.gmra.mxu1 %v2328_v33  ;;  %3750 = vmatprep.mubr.msk.bf16.mxu0 %vm4009_vm15, %v4008_v9 }
 0x129   : > { %3790 = vmatprep.mubr.msk.bf16.mxu1 %vm4009_vm15, %v4008_v9  ;;  %3850 = vmatpush3.bf16.msra.mxu1 %v3969_v16 }
 0x12a   : > { %3843 = vmatprep.subr.bf16.mxu1 %v4008_v9 }
 0x12d   : > { %3851 = vmatpush3.bf16.msra.mxu1 %v3971_v19 }
 0x12e   : > { %3844 = vmatprep.subr.bf16.mxu1 %v4008_v9 }
 0x12f   : > { %3751 = vmatmul.mubr.bf16.vlgmr.msra.gmra.mxu0 %v2145_v24 }
 0x130   : > { %3807 = vmatpush3.bf16.msra.mxu0 %v3969_v16  ;;  %3791 = vmatmul.mubr.bf16.gmra.mxu1 %v2337_v27 }
 0x131   : > { %3808 = vmatprep.subr.bf16.mxu0 %v4008_v9  ;;  %3754 = vmatprep.mubr.msk.bf16.mxu0 %vm4009_vm15, %v4008_v9 }
 0x132   : > { %3794 = vmatprep.mubr.msk.bf16.mxu1 %vm4009_vm15, %v4008_v9  ;;  %3852 = vmatpush3.bf16.msra.mxu1 %v3973_v25 }
 0x133   : > { %3845 = vmatprep.subr.bf16.mxu1 %v4008_v9 }
 0x134   : > { %3809 = vmatpush3.bf16.msra.mxu0 %v3971_v19 }
 0x135   : > { %3810 = vmatprep.subr.bf16.mxu0 %v4008_v9 }
 0x136   : > { %3853 = vmatpush3.bf16.msra.mxu1 %v3974_v29 }
 0x137   : > { %3755 = vmatmul.mubr.bf16.gmra.mxu0 %v2147_v20  ;;  %3846 = vmatprep.subr.bf16.mxu1 %v4008_v9 }
 0x138   : > { %3795 = vmatmul.mubr.bf16.gmra.mxu1 %v2346_v5  ;;  %3811 = vmatpush3.bf16.msra.mxu0 %v3973_v25 }
 0x139   : > { %3812 = vmatprep.subr.bf16.mxu0 %v4008_v9  ;;  %3758 = vmatprep.mubr.msk.bf16.mxu0 %vm4009_vm15, %v4008_v9 }
 0x13a   : > { %3798 = vmatprep.mubr.msk.bf16.mxu1 %vm4009_vm15, %v4008_v9  ;;  %3854 = vmatpush3.bf16.msra.mxu1 %v3976_v14 }
 0x13b   : > { %3847 = vmatprep.subr.bf16.mxu1 %v4008_v9 }
 0x13c   : > { %3813 = vmatpush3.bf16.msra.mxu0 %v3974_v29 }
 0x13d   : > { %3814 = vmatprep.subr.bf16.mxu0 %v4008_v9 }
 0x13e   : > { %3855 = vmatpush3.bf16.msra.mxu1 %v3977_v40 }
 0x13f   : > { %3759 = vmatmul.mubr.bf16.gmra.mxu0 %v2149_v44  ;;  %3848 = vmatprep.subr.bf16.mxu1 %v4008_v9 }
 0x140   : > { %3799 = vmatmul.mubr.bf16.gmra.mxu1 %v2355_v51  ;;  %3815 = vmatpush3.bf16.msra.mxu0 %v3976_v14 }
 0x141   : > { %3762 = vmatprep.mubr.msk.bf16.mxu0 %vm4009_vm15, %v4008_v9  ;;  %3802 = vmatprep.mubr.msk.bf16.mxu1 %vm4009_vm15, %v4008_v9 }
 0x142   : > { %3816 = vmatprep.subr.bf16.mxu0 %v4008_v9  ;;  %3856 = vmatpush3.bf16.msra.mxu1 %v3979_v49 }
 0x143   : > { %3849 = vmatprep.subr.bf16.mxu1 %v4008_v9 }
 0x144   : > { %3817 = vmatpush3.bf16.msra.mxu0 %v3977_v40 }
 0x145   : > { %3818 = vmatprep.subr.bf16.mxu0 %v4008_v9 }
 0x146   : > { %3857 = vmatpush3.bf16.msra.mxu1 %v3980_v54 }
 0x147   : > { %3763 = vmatmul.mubr.bf16.gmra.mxu0 %v2151_v57 }
 0x148   : > { %3803 = vmatmul.mubr.bf16.gmra.mxu1 %v2364_v59  ;;  %3819 = vmatpush3.bf16.msra.mxu0 %v3979_v49 }
 0x149   : > { %3766 = vmatprep.mubr.msk.bf16.mxu0 %vm4009_vm15, %v4008_v9  ;;  %3834 = vmatprep.mubr.msk.bf16.mxu1 %vm4009_vm15, %v4008_v9 }
 0x14a   : > { %3820 = vmatprep.subr.bf16.mxu0 %v4008_v9 }
 0x14c   : > { %3821 = vmatpush3.bf16.msra.mxu0 %v3980_v54 }
 0x14f   : > { %3767 = vmatmul.mubr.bf16.gmra.mxu0 %v2153_v1 }
 0x150   : > { %3835 = vmatmul.mubr.bf16.vlgmr.msra.gmra.mxu1 %v2531_v63  ;;  %3822 = vmatprep.mubr.msk.bf16.mxu0 %vm4009_vm15, %v4008_v9 }
 0x151   : > { %3838 = vmatprep.mubr.msk.bf16.mxu1 %vm4009_vm15, %v4008_v9 }
 0x157   : > { %3823 = vmatmul.mubr.bf16.vlgmr.msra.gmra.mxu0 %v2525_v11 }
 0x158   : > { %3839 = vmatmul.mubr.bf16.gmra.mxu1 %v2533_v12  ;;  %3826 = vmatprep.mubr.msk.bf16.mxu0 %vm4009_vm15, %v4008_v9 }
 0x15f   : > { %3827 = vmatmul.mubr.bf16.gmra.mxu0 %v2527_v48 }
 0x160   : > { %3830 = vmatprep.mubr.msk.bf16.mxu0 %vm4009_vm15, %v4008_v9 }
 0x167   : > { %3831 = vmatmul.mubr.bf16.gmra.mxu0 %v2529_v43 }
 0x170   : > { %v1296_v28 = vpop.f32.mrf.mxu1 }
 0x172   : > { %v3572_v46 = vpop.f32.mrf.mxu1 }
 0x174   : > { %v1299_v16 = vpop.f32.mrf.mxu1 }
 0x176   : > { %v3573_v37 = vpop.f32.mrf.mxu1 }
 0x177   : > { %v1170_v33 = vpop.f32.mrf.mxu0 }
 0x178   : > { %v1297_v56 = vadd.f32 %v1296_v28, %v1170_v33  ;;  %v1304_v10 = vpop.f32.mrf.mxu1 }
 0x179   : > { %v3536_v18 = vpop.f32.mrf.mxu0 }
 0x17a   : > { %v3576_v19 = vpop.f32.mrf.mxu1 }
 0x17b   : > { %v1173_v17 = vpop.f32.mrf.mxu0 }
 0x17c   : > { %v1300_v3 = vadd.f32 %v1299_v16, %v1173_v17  ;;  %v1307_v21 = vpop.f32.mrf.mxu1 }
 0x17d   : > { %v3537_v22 = vpop.f32.mrf.mxu0 }
 0x17e   : > { %v3577_v23 = vpop.f32.mrf.mxu1 }
 0x17f   : > { %v1178_v58 = vpop.f32.mrf.mxu0 }
 0x180   : > { %v1305_v24 = vadd.f32 %v1304_v10, %v1178_v58  ;;  %v1312_v9 = vpop.f32.mrf.mxu1 }
 0x181   : > { %v3540_v25 = vpop.f32.mrf.mxu0 }
 0x182   : > { %v3580_v27 = vpop.f32.mrf.mxu1 }
 0x183   : > { %v1181_v47 = vpop.f32.mrf.mxu0 }
 0x184   : > { %v1308_v13 = vadd.f32 %v1307_v21, %v1181_v47  ;;  %v1315_v30 = vpop.f32.mrf.mxu1 }
 0x185   : > { %v3541_v31 = vpop.f32.mrf.mxu0 }
 0x186   : > { %v3581_v29 = vpop.f32.mrf.mxu1 }
 0x187   : > { %v1186_v32 = vpop.f32.mrf.mxu0 }
 0x188   : > { %v1313_v34 = vadd.f32 %v1312_v9, %v1186_v32  ;;  %v1320_v26 = vpop.f32.mrf.mxu1 }
 0x189   : > { %v3544_v20 = vpop.f32.mrf.mxu0 }
 0x18a   : > { %v3584_v14 = vpop.f32.mrf.mxu1 }
 0x18b   : > { %v1189_v5 = vpop.f32.mrf.mxu0 }
 0x18c   : > { %v1316_v36 = vadd.f32 %v1315_v30, %v1189_v5  ;;  %v1323_v38 = vpop.f32.mrf.mxu1 }
 0x18d   : > { %v3545_v39 = vpop.f32.mrf.mxu0 }
 0x18e   : > { %v3585_v6 = vpop.f32.mrf.mxu1 }
 0x18f   : > { %v1194_v40 = vpop.f32.mrf.mxu0 }
 0x190   : > { %v1321_v41 = vadd.f32 %v1320_v26, %v1194_v40  ;;  %v1328_v35 = vpop.f32.mrf.mxu1 }
 0x191   : > { %v3548_v42 = vpop.f32.mrf.mxu0 }
 0x192   : > { %v3588_v44 = vpop.f32.mrf.mxu1 }
 0x193   : > { %v1197_v49 = vpop.f32.mrf.mxu0 }
 0x194   : > { %v1324_v51 = vadd.f32 %v1323_v38, %v1197_v49  ;;  %v1331_v52 = vpop.f32.mrf.mxu1 }
 0x195   : > { %v3549_v53 = vpop.f32.mrf.mxu0 }
 0x196   : > { %v3589_v45 = vpop.f32.mrf.mxu1 }
 0x197   : > { %v1202_v54 = vpop.f32.mrf.mxu0 }
 0x198   : > { %v1329_v55 = vadd.f32 %v1328_v35, %v1202_v54  ;;  %v1658_v57 = vpop.f32.mrf.mxu1 }
 0x199   : > { %v3552_v59 = vpop.f32.mrf.mxu0 }
 0x19a   : > { %v3644_v50 = vpop.f32.mrf.mxu1 }
 0x19b   : > { %v1205_v60 = vpop.f32.mrf.mxu0 }
 0x19c   : > { %v1332_v61 = vadd.f32 %v1331_v52, %v1205_v60  ;;  %v1661_v62 = vpop.f32.mrf.mxu1 }
 0x19d   : > { %v3553_v0 = vpop.f32.mrf.mxu0 }
 0x19e   : > { %v3645_v1 = vpop.f32.mrf.mxu1 }
 0x19f   : > { %v1455_v63 = vpop.f32.mrf.mxu0 }
 0x1a0   : > { %v1494_v2 = vadd.f32 %v1455_v63, %v1297_v56  ;;  %v1666_v4 = vpop.f32.mrf.mxu1 }
 0x1a1   : > { %v3608_v7 = vpop.f32.mrf.mxu0 }
 0x1a2   : > { %v3648_v8 = vpop.f32.mrf.mxu1  ;;  %v1697_v11 = vadd.f32 %v1658_v57, %v1494_v2 }
 0x1a3   : > { %v1458_v12 = vpop.f32.mrf.mxu0 }
 0x1a4   : > { %v1495_v15 = vadd.f32 %v1458_v12, %v1300_v3  ;;  %v1669_v48 = vpop.f32.mrf.mxu1 }
 0x1a5   : > { %v3609_v43 = vpop.f32.mrf.mxu0 }
 0x1a6   : > { %v3649_v28 = vpop.f32.mrf.mxu1  ;;  %v1698_v46 = vadd.f32 %v1661_v62, %v1495_v15 }
 0x1a7   : > { %v1463_v16 = vpop.f32.mrf.mxu0 }
 0x1a8   : > { %v1496_v37 = vadd.f32 %v1463_v16, %v1305_v24  ;;  %v1674_v33 = vpop.f32.mrf.mxu1 }
 0x1a9   : > { %v3612_v10 = vpop.f32.mrf.mxu0 }
 0x1aa   : > { %v3652_v18 = vpop.f32.mrf.mxu1  ;;  %v1699_v19 = vadd.f32 %v1666_v4, %v1496_v37 }
 0x1ab   : > { %v1466_v17 = vpop.f32.mrf.mxu0 }
 0x1ac   : > { %v1497_v21 = vadd.f32 %v1466_v17, %v1308_v13  ;;  %v1677_v22 = vpop.f32.mrf.mxu1 }
 0x1ad   : > { %v3613_v56 = vpop.f32.mrf.mxu0 }
 0x1ae   : > { %v3653_v23 = vpop.f32.mrf.mxu1  ;;  %v1700_v58 = vadd.f32 %v1669_v48, %v1497_v21 }
 0x1af   : > { %v1471_v9 = vpop.f32.mrf.mxu0 }
 0x1b0   : > { %v1498_v25 = vadd.f32 %v1471_v9, %v1313_v34  ;;  %v1682_v27 = vpop.f32.mrf.mxu1 }
 0x1b1   : > { %v3616_v3 = vpop.f32.mrf.mxu0 }
 0x1b2   : > { %v3656_v47 = vpop.f32.mrf.mxu1  ;;  %v1701_v30 = vadd.f32 %v1674_v33, %v1498_v25 }
 0x1b3   : > { %v1474_v31 = vpop.f32.mrf.mxu0 }
 0x1b4   : > { %v1499_v29 = vadd.f32 %v1474_v31, %v1316_v36  ;;  %v1685_v32 = vpop.f32.mrf.mxu1 }
 0x1b5   : > { %v3617_v24 = vpop.f32.mrf.mxu0 }
 0x1b6   : > { %v3657_v26 = vpop.f32.mrf.mxu1  ;;  %v1702_v20 = vadd.f32 %v1677_v22, %v1499_v29 }
 0x1b7   : > { %v1479_v14 = vpop.f32.mrf.mxu0 }
 0x1b8   : > { %v1500_v5 = vadd.f32 %v1479_v14, %v1321_v41  ;;  %v1690_v38 = vpop.f32.mrf.mxu1 }
 0x1b9   : > { %v3620_v13 = vpop.f32.mrf.mxu0 }
 0x1ba   : > { %v3660_v39 = vpop.f32.mrf.mxu1  ;;  %v4859_v6 = vadd.f32 %v1682_v27, %v1500_v5 }
 0x1bb   : > { %v1482_v40 = vpop.f32.mrf.mxu0 }
 0x1bc   : > { %v1501_v35 = vadd.f32 %v1482_v40, %v1324_v51  ;;  %v1693_v34 = vpop.f32.mrf.mxu1 }
 0x1bd   : > { %v3621_v42 = vpop.f32.mrf.mxu0 }
 0x1be   : > { %v3661_v44 = vpop.f32.mrf.mxu1  ;;  %v4861_v49 = vadd.f32 %v1685_v32, %v1501_v35 }
 0x1bf   : > { %v1487_v52 = vpop.f32.mrf.mxu0 }
 0x1c0   : > { %v1502_v36 = vadd.f32 %v1487_v52, %v1329_v55  ;;  %v2038_v53 = vpop.f32.mrf.mxu1 }
 0x1c1   : > { %v3624_v45 = vpop.f32.mrf.mxu0 }
 0x1c2   : > { %v3716_v54 = vpop.f32.mrf.mxu1  ;;  %v4863_v57 = vadd.f32 %v1690_v38, %v1502_v36 }
 0x1c3   : > { %v1490_v41 = vpop.f32.mrf.mxu0 }
 0x1c4   : > { %v1503_v59 = vadd.f32 %v1490_v41, %v1332_v61  ;;  %v2041_v50 = vpop.f32.mrf.mxu1 }
 0x1c5   : > { %v3625_v60 = vpop.f32.mrf.mxu0 }
 0x1c6   : > { %v3717_v62 = vpop.f32.mrf.mxu1  ;;  %v4865_v0 = vadd.f32 %v1693_v34, %v1503_v59 }
 0x1c7   : > { %v1869_v51 = vpop.f32.mrf.mxu0 }
 0x1c8   : > { %v1908_v1 = vadd.f32 %v1869_v51, %v1697_v11  ;;  %v2046_v63 = vpop.f32.mrf.mxu1 }
 0x1c9   : > { %v3680_v2 = vpop.f32.mrf.mxu0 }
 0x1ca   : > { %v3720_v4 = vpop.f32.mrf.mxu1  ;;  %v4867_v7 = vadd.f32 %v2038_v53, %v1908_v1 }
 0x1cb   : > { %v1872_v55 = vpop.f32.mrf.mxu0 }
 0x1cc   : > { %v1909_v8 = vadd.f32 %v1872_v55, %v1698_v46  ;;  %v2049_v12 = vpop.f32.mrf.mxu1 }
 0x1cd   : > { %v3681_v15 = vpop.f32.mrf.mxu0 }
 0x1ce   : > { %v3721_v48 = vpop.f32.mrf.mxu1  ;;  %v4869_v43 = vadd.f32 %v2041_v50, %v1909_v8 }
 0x1cf   : > { %v1877_v61 = vpop.f32.mrf.mxu0 }
 0x1d0   : > { %v1910_v28 = vadd.f32 %v1877_v61, %v1699_v19  ;;  %v2054_v16 = vpop.f32.mrf.mxu1 }
 0x1d1   : > { %v3684_v37 = vpop.f32.mrf.mxu0 }
 0x1d2   : > { %v3724_v33 = vpop.f32.mrf.mxu1  ;;  %v4871_v10 = vadd.f32 %v2046_v63, %v1910_v28  ;;  %v4901_v28 = vpop.permute.xlu1 %2720 }
 0x1d3   : > { %v1880_v11 = vpop.f32.mrf.mxu0  ;;  %v4903_v37 = vpop.permute.xlu0 %2717  ;;  %vm2747_vm11 = vcmp.eq.s32.totalorder %v4901_v28, 1 }
 0x1d4   : > { %v1911_v18 = vadd.f32 %v1880_v11, %v1700_v58  ;;  %v2057_v17 = vpop.f32.mrf.mxu1  ;;  %vm2746_vm10 = vcmp.eq.s32.totalorder %v4903_v37, 1 }
 0x1d5   : > { %v3685_v21 = vpop.f32.mrf.mxu0 }
 0x1d6   : > { %v3725_v22 = vpop.f32.mrf.mxu1  ;;  %v4873_v56 = vadd.f32 %v2049_v12, %v1911_v18 }
 0x1d7   : > { %v1885_v46 = vpop.f32.mrf.mxu0 }
 0x1d8   : > { %v1912_v23 = vadd.f32 %v1885_v46, %v1701_v30  ;;  %v2062_v9 = vpop.f32.mrf.mxu1  ;;  %v4908_v46 = vpop.permute.xlu1 %2726 }
 0x1d9   : > { %v3688_v25 = vpop.f32.mrf.mxu0  ;;  %vm2749_vm14 = vcmp.eq.s32.totalorder %v4908_v46, 1 }
 0x1da   : > { %v3728_v27 = vpop.f32.mrf.mxu1  ;;  %v4875_v3 = vadd.f32 %v2054_v16, %v1912_v23  ;;  %v4910_v25 = vpop.permute.xlu0 %2723 }
 0x1db   : > { %v1888_v19 = vpop.f32.mrf.mxu0  ;;  %vm2748_vm13 = vcmp.eq.s32.totalorder %v4910_v25, 1 }
 0x1dc   : > { %v1913_v47 = vadd.f32 %v1888_v19, %v1702_v20  ;;  %v2065_v31 = vpop.f32.mrf.mxu1 }
 0x1dd   : > { %v3689_v29 = vpop.f32.mrf.mxu0 }
 0x1de   : > { %v3729_v32 = vpop.f32.mrf.mxu1  ;;  %v4877_v24 = vadd.f32 %v2057_v17, %v1913_v47 }
 0x1df   : > { %v1893_v58 = vpop.f32.mrf.mxu0 }
 0x1e0   : > { %v4879_v26 = vpop.f32.mrf.mxu1  ;;  %v1914_v18 = vadd.f32 %v1893_v58, %v4859_v6  ;;  %v4914_v58 = vpop.permute.xlu1 %2732 }
 0x1e1   : > { %v3692_v14 = vpop.f32.mrf.mxu0  ;;  %vm2751_vm2 = vcmp.eq.s32.totalorder %v4914_v58, 1 }
 0x1e2   : > { %v3732_v5 = vpop.f32.mrf.mxu1  ;;  %v2083_v19 = vadd.f32 %v2062_v9, %v1914_v18 }
 0x1e3   : > { %v1896_v38 = vpop.f32.mrf.mxu0 }
 0x1e4   : > { %v4881_v13 = vpop.f32.mrf.mxu1  ;;  %v1915_v27 = vadd.f32 %v1896_v38, %v4861_v49 }
 0x1e5   : > { %v3693_v30 = vpop.f32.mrf.mxu0 }
 0x1e6   : > { %v3733_v39 = vpop.f32.mrf.mxu1 }
 0x1e7   : > { %v1901_v40 = vpop.f32.mrf.mxu0  ;;  %v2084_v39 = vadd.f32 %v2065_v31, %v1915_v27 }
 0x1e8   : > { %v4883_v35 = vpop.f32.mrf.mxu1  ;;  %v1916_v30 = vadd.f32 %v1901_v40, %v4863_v57  ;;  %v4924_v57 = vld [vmem:[%s5002_s7] ss:$0 sm:$0xff] }
 0x1e9   : > { %v3696_v34 = vpop.f32.mrf.mxu0 }
 0x1ea   : > { %v3788_v20 = vpop.f32.mrf.mxu1  ;;  %v2085_v9 = vadd.f32 %v4879_v26, %v1916_v30 }
 0x1eb   : > { %v1904_v42 = vpop.f32.mrf.mxu0  ;;  %v4916_v20 = vpop.permute.xlu0 %2729 }
 0x1ec   : > { %v4885_v44 = vpop.f32.mrf.mxu1  ;;  %v1917_v49 = vadd.f32 %v1904_v42, %v4865_v0  ;;  %vm2750_vm0 = vcmp.eq.s32.totalorder %v4916_v20, 1 }
 0x1ed   : > { %v3697_v52 = vpop.f32.mrf.mxu0 }
 0x1ee   : > { %v3789_v36 = vpop.f32.mrf.mxu1  ;;  %v2086_v26 = vadd.f32 %v4881_v13, %v1917_v49 }
 0x1ef   : > { %v2241_v53 = vpop.f32.mrf.mxu0 }
 0x1f0   : > { %v4887_v45 = vpop.f32.mrf.mxu1 }
 0x1f1   : > { %v3752_v54 = vpop.f32.mrf.mxu0 }
 0x1f2   : > { %v3792_v41 = vpop.f32.mrf.mxu1 }
 0x1f3   : > { %v2244_v59 = vpop.f32.mrf.mxu0 }
 0x1f4   : > { %v4889_v50 = vpop.f32.mrf.mxu1 }
 0x1f5   : > { %v3753_v60 = vpop.f32.mrf.mxu0 }
 0x1f6   : > { %v3793_v62 = vpop.f32.mrf.mxu1 }
 0x1f7   : > { %v4891_v51 = vpop.f32.mrf.mxu0  ;;  %v2280_v62 = vadd.f32 %v2241_v53, %v4867_v7  ;;  %v2281_v7 = vadd.f32 %v2244_v59, %v4869_v43 }
 0x1f8   : > { %v4893_v1 = vpop.f32.mrf.mxu1  ;;  %v2282_v59 = vadd.f32 %v4891_v51, %v4871_v10 }
 0x1f9   : > { %v3756_v63 = vpop.f32.mrf.mxu0 }
 0x1fa   : > { %v3796_v2 = vpop.f32.mrf.mxu1 }
 0x1fb   : > { %v4895_v4 = vpop.f32.mrf.mxu0 }
 0x1fc   : > { %v4897_v55 = vpop.f32.mrf.mxu1 }
 0x1fd   : > { %v3757_v8 = vpop.f32.mrf.mxu0 }
 0x1fe   : > { %v3797_v12 = vpop.f32.mrf.mxu1  ;;  %v2739_v8 = vpop.permute.xlu1 %2738 }
 0x1ff   : > { %v4899_v15 = vpop.f32.mrf.mxu0  ;;  %vm2753_vm15 = vcmp.eq.s32.totalorder %v2739_v8, 1 }
 0x200   : > { %v2476_v48 = vpop.f32.mrf.mxu1 }
 0x201   : > { %v3760_v61 = vpop.f32.mrf.mxu0 }
 0x202   : > { %v3800_v16 = vpop.f32.mrf.mxu1 }
 0x203   : > { %v4905_v33 = vpop.f32.mrf.mxu0  ;;  %v2491_v16 = vadd.f32 %v4883_v35, %v2280_v62 }
 0x204   : > { %v2479_v11 = vpop.f32.mrf.mxu1 }
 0x205   : > { %v3761_v17 = vpop.f32.mrf.mxu0 }
 0x206   : > { %v3801_v21 = vpop.f32.mrf.mxu1 }
 0x207   : > { %v2265_v22 = vpop.f32.mrf.mxu0 }
 0x208   : > { %v2484_v23 = vpop.f32.mrf.mxu1  ;;  %v2286_v32 = vadd.f32 %v2265_v22, %v2083_v19 }
 0x209   : > { %v3764_v47 = vpop.f32.mrf.mxu0 }
 0x20a   : > { %v3804_v29 = vpop.f32.mrf.mxu1  ;;  %v2497_v54 = vadd.f32 %v2476_v48, %v2286_v32  ;;  %v2736_v48 = vpop.permute.xlu0 %2735  ;;  %v2492_v32 = vadd.f32 %v4885_v44, %v2281_v7 }
 0x20b   : > { %v2268_v14 = vpop.f32.mrf.mxu0  ;;  %vm2752_vm9 = vcmp.eq.s32.totalorder %v2736_v48, 1 }
 0x20c   : > { %v2487_v5 = vpop.f32.mrf.mxu1  ;;  %v2287_v52 = vadd.f32 %v2268_v14, %v2084_v39  ;;  %v2745_v14 = vpop.permute.xlu1 %2744 }
 0x20d   : > { %v3765_v6 = vpop.f32.mrf.mxu0  ;;  %vm2755_vm12 = vcmp.eq.s32.totalorder %v2745_v14, 1 }
 0x20e   : > { %v3805_v34 = vpop.f32.mrf.mxu1  ;;  %v2498_v2 = vadd.f32 %v2479_v11, %v2287_v52  ;;  %v2742_v6 = vpop.permute.xlu0 %2741 }
 0x20f   : > { %v2273_v36 = vpop.f32.mrf.mxu0  ;;  %vm2754_vm1 = vcmp.eq.s32.totalorder %v2742_v6, 1 }
 0x210   : > { %v2645_v41 = vpop.f32.mrf.mxu1  ;;  %v2288_v40 = vadd.f32 %v2273_v36, %v2085_v9  ;;  %v2493_v9 = vadd.f32 %v4887_v45, %v2282_v59  ;;  %v2284_v45 = vadd.f32 %v4899_v15, %v4875_v3 }
 0x211   : > { %v2666_v38 = vadd.f32 %v2645_v41, %v2497_v54  ;;  %v3768_v60 = vpop.f32.mrf.mxu0  ;;  %v2283_v41 = vadd.f32 %v4895_v4, %v4873_v56 }
 0x212   : > { %v3836_v31 = vpop.f32.mrf.mxu1  ;;  %v2499_v11 = vadd.f32 %v2484_v23, %v2288_v40  ;;  %v2495_v15 = vadd.f32 %v4893_v1, %v2284_v45 }
 0x213   : > { %v2276_v63 = vpop.f32.mrf.mxu0  ;;  %v2702_v0 = vadd.f32 %v4924_v57, %v2666_v38 }
 0x214   : > { %v2648_v12 = vpop.f32.mrf.mxu1  ;;  %v2289_v18 = vadd.f32 %v2276_v63, %v2086_v26 }
 0x215   : > { %v2667_v42 = vadd.f32 %v2648_v12, %v2498_v2  ;;  %v3769_v61 = vpop.f32.mrf.mxu0  ;;  %v4931_v19 = vsel %vm2752_vm9, %v2702_v0, 0.0  ;;  %v2494_v12 = vadd.f32 %v4889_v50, %v2283_v41 }
 0x216   : > { %v3837_v53 = vpop.f32.mrf.mxu1  ;;  %v2500_v39 = vadd.f32 %v2487_v5, %v2289_v18  ;;  %v2788_v20 = vmul.f32 %v4931_v19, %v4931_v19 }
 0x217   : > { %v2703_v17 = vadd.f32 %v4924_v57, %v2667_v42  ;;  %v2621_v21 = vpop.f32.mrf.mxu0 }
 0x218   : > { %v2660_v22 = vadd.f32 %v2621_v21, %v2491_v16  ;;  %v2653_v27 = vpop.f32.mrf.mxu1  ;;  %v2285_v16 = vadd.f32 %v4905_v33, %v4877_v24 }
 0x219   : > { %v4940_v43 = vsel %vm2753_vm15, %v2703_v17, 0.0  ;;  %v2668_v13 = vadd.f32 %v2653_v27, %v2499_v11  ;;  %v3824_v35 = vpop.f32.mrf.mxu0 }
 0x21a   : > { %v3385_v23 = vpack.c.bf16 %v4940_v43, %v4931_v19  ;;  %v2696_v47 = vadd.f32 %v4924_v57, %v2660_v22  ;;  %v3840_v29 = vpop.f32.mrf.mxu1  ;;  %v2496_v35 = vadd.f32 %v4897_v55, %v2285_v16 }
 0x21b   : > { %v2624_v30 = vpop.f32.mrf.mxu0  ;;  %v2704_v34 = vadd.f32 %v4924_v57, %v2668_v13 }
 0x21c   : > { %3399 = vst [vmem:[%s4938_s26 + $0x18] sm:$0xff] %v3385_v23   ;;  %v2661_v52 = vadd.f32 %v2624_v30, %v2492_v32  ;;  %v2656_v36 = vpop.f32.mrf.mxu1  ;;  %v2756_v10 = vsel %vm2746_vm10, %v2696_v47, 0.0 }
 0x21d   : > { %v2669_v51 = vadd.f32 %v2656_v36, %v2500_v39  ;;  %v3825_v54 = vpop.f32.mrf.mxu0  ;;  %v2782_v38 = vmul.f32 %v2756_v10, %v2756_v10  ;;  %v2764_v60 = vsel %vm2754_vm1, %v2704_v34, 0.0 }
 0x21e   : > { %v2697_v49 = vadd.f32 %v4924_v57, %v2661_v52  ;;  %v3841_v44 = vpop.f32.mrf.mxu1  ;;  %v2789_v52 = vmul.f32 %v4940_v43, %v4940_v43  ;;  %v2790_v58 = vmul.f32 %v2764_v60, %v2764_v60 }
 0x21f   : > { %v2705_v37 = vadd.f32 %v4924_v57, %v2669_v51  ;;  %v2629_v5 = vpop.f32.mrf.mxu0 }
 0x220   : > { %v2757_v62 = vsel %vm2747_vm11, %v2697_v49, 0.0  ;;  %v2662_v31 = vadd.f32 %v2629_v5, %v2493_v9 }
 0x221   : > { %v2766_v40 = vadd.f32 %v2757_v62, %v2756_v10  ;;  %v2783_v56 = vmul.f32 %v2757_v62, %v2757_v62  ;;  %v3370_v4 = vpack.c.bf16 %v2757_v62, %v2756_v10  ;;  %v2765_v63 = vsel %vm2755_vm12, %v2705_v37, 0.0  ;;  %v3828_v2 = vpop.f32.mrf.mxu0 }
 0x222   : > { %v3390_v28 = vpack.c.bf16 %v2765_v63, %v2764_v60  ;;  %v2698_v8 = vadd.f32 %v4924_v57, %v2662_v31  ;;  %v2791_v54 = vmul.f32 %v2765_v63, %v2765_v63  ;;  %v2858_v62 = vlaneseq }
 0x223   : > { %v2792_v48 = vadd.f32 %v2783_v56, %v2782_v38  ;;  %3371 = vst [vmem:[%s4938_s26] sm:$0xff] %v3370_v4   ;;  %v2632_v0 = vpop.f32.mrf.mxu0 }
 0x224   : > { %3400 = vst [vmem:[%s4938_s26 + $0x20] sm:$0xff] %v3390_v28   ;;  %v2758_v26 = vsel %vm2748_vm13, %v2698_v8, 0.0  ;;  %v2663_v42 = vadd.f32 %v2632_v0, %v2494_v12  ;;  %vm2860_vm3 = vcmp.lt.s32.totalorder %v2858_v62, 128 }
 0x225   : > { %v2767_v61 = vadd.f32 %v2766_v40, %v2758_v26  ;;  %v2784_v7 = vmul.f32 %v2758_v26, %v2758_v26  ;;  %v3829_v53 = vpop.f32.mrf.mxu0 }
 0x226   : > { %v2699_v3 = vadd.f32 %v4924_v57, %v2663_v42 }
 0x227   : > { %v2793_v50 = vadd.f32 %v2792_v48, %v2784_v7  ;;  %v2637_v25 = vpop.f32.mrf.mxu0 }
 0x228   : > { %v2759_v18 = vsel %vm2749_vm14, %v2699_v3, 0.0  ;;  %v2664_v17 = vadd.f32 %v2637_v25, %v2495_v15 }
 0x229   : > { %v2768_v21 = vadd.f32 %v2767_v61, %v2759_v18  ;;  %v2785_v11 = vmul.f32 %v2759_v18, %v2759_v18  ;;  %v3375_v22 = vpack.c.bf16 %v2759_v18, %v2758_v26  ;;  %v3832_v27 = vpop.f32.mrf.mxu0 }
 0x22a   : > { %v2700_v13 = vadd.f32 %v4924_v57, %v2664_v17 }
 0x22b   : > { %v2794_v24 = vadd.f32 %v2793_v50, %v2785_v11  ;;  %3397 = vst [vmem:[%s4938_s26 + $0x8] sm:$0xff] %v3375_v22   ;;  %v2640_v33 = vpop.f32.mrf.mxu0 }
 0x22c   : > { %v2760_v1 = vsel %vm2750_vm0, %v2700_v13, 0.0  ;;  %v2665_v46 = vadd.f32 %v2640_v33, %v2496_v35 }
 0x22d   : > { %v2769_v59 = vadd.f32 %v2768_v21, %v2760_v1  ;;  %v2786_v23 = vmul.f32 %v2760_v1, %v2760_v1  ;;  %v3833_v47 = vpop.f32.mrf.mxu0 }
 0x22e   : > { %v2701_v29 = vadd.f32 %v4924_v57, %v2665_v46 }
 0x22f   : > { %v2795_v32 = vadd.f32 %v2794_v24, %v2786_v23 }
 0x230   : > { %v2761_v14 = vsel %vm2751_vm2, %v2701_v29, 0.0 }
 0x231   : > { %v2770_v30 = vadd.f32 %v2769_v59, %v2761_v14  ;;  %v2787_v39 = vmul.f32 %v2761_v14, %v2761_v14  ;;  %v3380_v55 = vpack.c.bf16 %v2761_v14, %v2760_v1 }
 0x233   : > { %v2771_v6 = vadd.f32 %v2770_v30, %v4931_v19  ;;  %v2796_v34 = vadd.f32 %v2795_v32, %v2787_v39  ;;  %3398 = vst [vmem:[%s4938_s26 + $0x10] sm:$0xff] %v3380_v55  }
 0x235   : > { %v2772_v57 = vadd.f32 %v2771_v6, %v4940_v43  ;;  %v2797_v36 = vadd.f32 %v2796_v34, %v2788_v20 }
 0x237   : > { %v2773_v10 = vadd.f32 %v2772_v57, %v2764_v60  ;;  %v2798_v51 = vadd.f32 %v2797_v36, %v2789_v52 }
 0x239   : > { %v2774_v41 = vadd.f32 %v2773_v10, %v2765_v63  ;;  %v2799_v49 = vadd.f32 %v2798_v51, %v2790_v58 }
 0x23b   : > { %v2775_v44 = vrot.slane %v2774_v41, 4  ;;  %v2800_v9 = vadd.f32 %v2799_v49, %v2791_v54 }
 0x23d   : > { %v2776_v37 = vadd.f32 %v2775_v44, %v2774_v41  ;;  %v2801_v5 = vrot.slane %v2800_v9, 4 }
 0x23f   : > { %v2777_v19 = vrot.slane %v2776_v37, 2  ;;  %v2802_v38 = vadd.f32 %v2801_v5, %v2800_v9 }
 0x241   : > { %v2778_v31 = vadd.f32 %v2777_v19, %v2776_v37  ;;  %v2803_v40 = vrot.slane %v2802_v38, 2 }
 0x243   : > { %v2779_v56 = vrot.slane %v2778_v31, 1  ;;  %v2804_v4 = vadd.f32 %v2803_v40, %v2802_v38 }
 0x245   : > { %v2780_v43 = vadd.f32 %v2779_v56, %v2778_v31  ;;  %v2805_v60 = vrot.slane %v2804_v4, 1 }
 0x247   : > { %v2806_v63 = vadd.f32 %v2805_v60, %v2804_v4  ;;  %2862 = vst.msk [vmem:[%s536_s29] sm:$0x1] %vm2860_vm3, %v2780_v43 }
 0x249   : > { %2863 = vst.msk [vmem:[%s536_s29 + $0x1] sm:$0x1] %vm2860_vm3, %v2806_v63 }
 0x24a PF: > { %s20_s11 = sadd.s32 1, %s4005_s11   ;;  %s5017_s30 = smov %s4001_s10 }
 0x24b   : > { %p17_p5 = scmp.ge.s32.totalorder %s20_s11, 4   ;;  %s5018_s10 = smov %s5020_s12 }
 0x24d   :  { %19 = sbr.rel (!%p17_p5) target bundleno = 2 (0x2), region = 111 }

// kernel: down_forward.7
= control target key start
LH: loop header
LB: loop body
LE: loop exit
PB: predicated region body
PF: predicated region fallthrough
CT: control target
= control target key end

     0   :  { %s4052_s30 = smov 0   ;;  %s4054_s10 = smov 0   ;;  %s4981_s0 = inlined_call_operand.vmem [shape: bf16[2,80,128], index: 0, kind: input, shape index: {}]   ;;  %s4982_s1 = inlined_call_operand.vmem [shape: bf16[2,8,10,128], index: 1, kind: input, shape index: {}, may-alias: {1,2}]   ;;  %s4983_s2 = inlined_call_operand.vmem [shape: bf16[2,8,10,128], index: 2, kind: input, shape index: {}, may-alias: {1,2}]   ;;  %s4984_s3 = inlined_call_operand.vmem [shape: f32[1,100,1], index: 3, kind: input, shape index: {}]   ;;  %s4985_s4 = inlined_call_operand.vmem [shape: f32[1,128], index: 4, kind: input, shape index: {}]   ;;  %s4986_s5 = inlined_call_operand.vmem [shape: f32[1,128], index: 5, kind: input, shape index: {}]   ;;  %s4987_s6 = inlined_call_operand.vmem [shape: bf16[9,128,128], index: 6, kind: input, shape index: {}]   ;;  %s4988_s7 = inlined_call_operand.vmem [shape: f32[1,128], index: 7, kind: input, shape index: {}]   ;;  %s4989_s8 = inlined_call_operand.vmem [shape: bf16[2,80,128], index: 8, kind: input, shape index: {}]   ;;  %s4990_s9 = inlined_call_operand.vmem [shape: bf16[2,80,128], index: 9, kind: output, shape index: {}]  }
   0x1   :  { %s4056_s11 = smov 0  }
   0x2 LB: > { %s31_s12 = sadd.s32 1, %s3993_s10  ;;  %p3028_p0 = scmp.ge.s32.totalorder %s3997_s11, 1  ;;  %s3997_s11 = sphi %s4056_s11, %s19_s11   ;;  %s3993_s10 = sphi %s4054_s10, %s5004_s10   ;;  %s3989_s30 = sphi %s4052_s30, %s5003_s30  }
   0x3   : > { %p33_p1 = scmp.ge.s32.totalorder %s31_s12, 2  ;;  %p399_p2 = scmp.lt.s32.totalorder %s3997_s11, 3 }
   0x5   : > { %s5006_s12 = smov (%p33_p1, %s31_s12), 0  ;;  %p400_p3 = pnand %p3028_p0, %p399_p2 }
   0x6   : > { %p484_p4 = scmp.lt.s32.totalorder (!%p400_p3), %s3989_s30, 1 }
   0x7   : > { %403 = sbr.rel (%p400_p3) target bundleno = 566 (0x236), region = 56 }
   0xc   : > { %v4075_v0 = vld [vmem:[%s4984_s3 + $0xa] sm:$0xff]  ;;  %v569_v1 = vld [vmem:[%s4984_s3] sm:$0xff]  ;;  %v3999_v2 = vmov 0   ;;  %v652_v3 = vld [vmem:[%s4984_s3 + $0x12] sm:$0xff]  ;;  %vm555_vm0 = vcmask 1040384   ;;  %v4000_v12 = vmov 0.0  }
   0xd   : > { %3879 = vset.pattern.permute.xlu1 %v3999_v2  ;;  %3878 = vset.pattern.permute.xlu0 %v3999_v2  ;;  %v570_v4 = vld [vmem:[%s4984_s3 + $0x8] sm:$0x3]  ;;  %v4097_v6 = vld [vmem:[%s4984_s3 + $0x1a] sm:$0xff]  ;;  %vm556_vm1 = vsmask.f32 256  ;;  %v4108_v9 = vld [vmem:[%s4984_s3 + $0x32] sm:$0xff] }
   0xe   : > { %703 = vperm.xlu1 %3879, %v4075_v0   ;;  %593 = vperm.xlu0 %3878, %v569_v1   ;;  %v4092_v5 = vld [vmem:[%s4984_s3 + $0x22] sm:$0xff]  ;;  %v558_v7 = vld [vmem:[#allocation2] sm:$0x1]  ;;  %v3880_v8 = vld [vmem:[%s4987_s6 + $0x38] sm:$0xff]   ;;  %vm2696_vm3 = vcmp.gt.f32.partialorder %v652_v3, 0.0  ;;  %vm2695_vm4 = vcmp.gt.f32.partialorder %v4075_v0, 0.0 }
   0xf   : > { %vm557_vm2 = vmand %vm555_vm0, %vm556_vm1  ;;  %v4113_v10 = vld [vmem:[%s4984_s3 + $0x2a] sm:$0xff]  ;;  %3546 = vmatprep.subr.bf16.mxu1 %v4000_v12  ;;  %3510 = vmatprep.subr.bf16.mxu0 %v4000_v12  ;;  %v4123_v14 = vld [vmem:[%s4984_s3 + $0x42] sm:$0xff]  ;;  %v2722_v27 = vsel %vm2696_vm3, 1, %v3999_v2  ;;  %v2721_v28 = vsel %vm2695_vm4, 1, %v3999_v2  ;;  %vm2698_vm5 = vcmp.gt.f32.partialorder %v4092_v5, 0.0  ;;  %vm2697_vm6 = vcmp.gt.f32.partialorder %v4097_v6, 0.0 }
  0x10   : > { %v559_v11 = vsel %vm557_vm2, 0, %v558_v7  ;;  %3547 = vmatpush3.bf16.msra.mxu1 %v3880_v8  ;;  %v3881_v13 = vld [vmem:[%s4987_s6 + $0x30] sm:$0xff]   ;;  %v3882_v15 = vld [vmem:[%s4987_s6 + $0x78] sm:$0xff]   ;;  %v3883_v17 = vld [vmem:[%s4987_s6 + $0x28] sm:$0xff]   ;;  %vm561_vm7 = vcmask 1043458   ;;  %v2724_v31 = vsel %vm2698_vm5, 1, %v3999_v2 }
  0x11   : > { %560 = vst [vmem:[#allocation2] sm:$0x1] %v559_v11  ;;  %3548 = vmatprep.subr.bf16.mxu1 %v4000_v12  ;;  %v4134_v16 = vld [vmem:[%s4984_s3 + $0x3a] sm:$0xff]  ;;  %3511 = vmatpush3.bf16.msra.mxu0 %v3882_v15  ;;  %v3884_v18 = vld [vmem:[%s4987_s6 + $0x70] sm:$0xff]   ;;  %v3886_v22 = vld [vmem:[%s4987_s6 + $0x68] sm:$0xff]   ;;  %v2723_v33 = vsel %vm2697_vm6, 1, %v3999_v2 }
  0x12   : > { %708 = vperm.xlu1 %3879, %v652_v3   ;;  %598 = vperm.xlu0 %3878, %v570_v4   ;;  %v4149_v19 = vld [vmem:[%s4984_s3 + $0x52] sm:$0xff]  ;;  %v4154_v20 = vld [vmem:[%s4984_s3 + $0x4a] sm:$0xff]  ;;  %v3885_v21 = vld [vmem:[%s4987_s6 + $0x20] sm:$0xff]   ;;  %vm562_vm8 = vsmask.f32 7946  ;;  %vm2700_vm10 = vcmp.gt.f32.partialorder %v4108_v9, 0.0 }
  0x13   : > { %3512 = vmatprep.subr.bf16.mxu0 %v4000_v12  ;;  %v924_v23 = vld [vmem:[%s4984_s3 + $0x62] sm:$0x3]  ;;  %v923_v24 = vld [vmem:[%s4984_s3 + $0x5a] sm:$0xff]  ;;  %v3889_v29 = vld [vmem:[%s4987_s6 + $0x10] sm:$0xff]   ;;  %vm2699_vm11 = vcmp.gt.f32.partialorder %v4113_v10, 0.0  ;;  %v2726_v37 = vsel %vm2700_vm10, 1, %v3999_v2 }
  0x14   : > { %3549 = vmatpush3.bf16.msra.mxu1 %v3881_v13  ;;  %v3887_v25 = vld [vmem:[%s4987_s6 + $0x18] sm:$0xff]   ;;  %v3888_v26 = vld [vmem:[%s4987_s6 + $0x60] sm:$0xff]   ;;  %vm563_vm9 = vmand %vm561_vm7, %vm562_vm8  ;;  %v2725_v38 = vsel %vm2699_vm11, 1, %v3999_v2  ;;  %vm2702_vm12 = vcmp.gt.f32.partialorder %v4123_v14, 0.0  ;;  %vm2701_vm13 = vcmp.gt.f32.partialorder %v4134_v16, 0.0  ;;  %vm2704_vm14 = vcmp.gt.f32.partialorder %v4149_v19, 0.0 }
  0x15   : > { %3550 = vmatprep.subr.bf16.mxu1 %v4000_v12  ;;  %3513 = vmatpush3.bf16.msra.mxu0 %v3884_v18  ;;  %v3890_v30 = vld [vmem:[%s4987_s6 + $0x58] sm:$0xff]   ;;  %v564_v32 = vld [vmem:[#allocation2 + $0x30] sm:$0xc]  ;;  %v3891_v35 = vld [vmem:[%s4987_s6 + $0x8] sm:$0xff]   ;;  %v2728_v41 = vsel %vm2702_vm12, 1, %v3999_v2  ;;  %v2727_v42 = vsel %vm2701_vm13, 1, %v3999_v2 }
  0x16   : > { %718 = vperm.xlu1 %3879, %v4092_v5   ;;  %713 = vperm.xlu0 %3878, %v4097_v6   ;;  %v565_v34 = vsel %vm563_vm9, 0, %v564_v32  ;;  %v3892_v36 = vld [vmem:[%s4987_s6 + $0x50] sm:$0xff]   ;;  %v3893_v39 = vld [vmem:[%s4987_s6] sm:$0xff]   ;;  %v3894_v40 = vld [vmem:[%s4987_s6 + $0x48] sm:$0xff]   ;;  %vm4001_vm15 = vmmov 0   ;;  %vm2703_vm0 = vcmp.gt.f32.partialorder %v4154_v20, 0.0 }
  0x17   : > { %3514 = vmatprep.subr.bf16.mxu0 %v4000_v12  ;;  %566 = vst [vmem:[#allocation2 + $0x30] sm:$0xc] %v565_v34  ;;  %3562 = vmatprep.mubr.msk.bf16.mxu1 %vm4001_vm15, %v4000_v12  ;;  %v3897_v43 = vld [vmem:[%s4987_s6 + $0x40] sm:$0xff]   ;;  %v2730_v44 = vsel %vm2704_vm14, 1, %v3999_v2  ;;  %v2729_v45 = vsel %vm2703_vm0, 1, %v3999_v2  ;;  %s5008_s30 = smov (!%p484_p4, %s3989_s30), 1 }
  0x18   : > { %3551 = vmatpush3.bf16.msra.mxu1 %v3883_v17  ;;  %3526 = vmatprep.mubr.msk.bf16.mxu0 %vm4001_vm15, %v4000_v12  ;;  %s4235_s22 = smul.u32 40, %s5008_s30  ;;  %s3288_s23 = sshll.u32 %s5008_s30, 6  ;;  %v4247_v50 = vld [vmem:[%s4985_s4] ss:$0 sm:$0xff]  ;;  %vm629_vm2 = vcmask 1043456   ;;  %vm635_vm7 = vcmask 1041408  }
  0x19   : > { %3552 = vmatprep.subr.bf16.mxu1 %v4000_v12  ;;  %3515 = vmatpush3.bf16.msra.mxu0 %v3886_v22  ;;  %s505_s29 = scalar_lea.vmem %s4982_s1, %s3288_s23  ;;  %v4254_v58 = vld [vmem:[%s4986_s5] ss:$0 sm:$0xff]  ;;  %s3290_s16 = sadd.s32 56, %s3288_s23  ;;  %vm630_vm3 = vsmask.f32 7938  ;;  %vm903_vm12 = vcmask 1043457  }
  0x1a   : > { %728 = vperm.xlu1 %3879, %v4108_v9   ;;  %723 = vperm.xlu0 %3878, %v4113_v10   ;;  %s491_s26 = scalar_lea.vmem %s4981_s0, %s4235_s22  ;;  %v567_v47 = vld [vmem:[%s505_s29] sm:$0xf]  ;;  %v568_v51 = vld [vmem:[%s505_s29 + $0x4] sm:$0x1]  ;;  %s522_s19 = scalar_lea.vmem %s4983_s2, %s3290_s16  ;;  %vm791_vm4 = vsmask.f32 5392  ;;  %vm4304_vm8 = vmand %vm629_vm2, %vm630_vm3 }
  0x1b   : > { %3516 = vmatprep.subr.bf16.mxu0 %v4000_v12  ;;  %v3316_v46 = vld [vmem:[%s491_s26] sm:$0xff]   ;;  %v571_v49 = vunpack.c.l.bf16 %v567_v47  ;;  %v3381_v52 = vld [vmem:[%s491_s26 + $0x8] sm:$0xff]   ;;  %v3382_v53 = vld [vmem:[%s491_s26 + $0x10] sm:$0xff]   ;;  %v572_v59 = vunpack.c.l.bf16 %v568_v51  ;;  %vm609_vm5 = vsmask.f32 4368  ;;  %vm974_vm0 = vcmask 1042432   ;;  %s4911_s15 = scalar_lea.vmem %s4989_s8, %s4235_s22  ;;  %s4938_s20 = scalar_lea.vmem %s4990_s9, %s4235_s22 }
  0x1c   : > { %3553 = vmatpush3.bf16.msra.mxu1 %v3885_v21  ;;  %v3317_v48 = vunpack.c.l.bf16 %v3316_v46  ;;  %v3318_v56 = vunpack.c.h.bf16 %v3316_v46  ;;  %v3383_v57 = vld [vmem:[%s491_s26 + $0x18] sm:$0xff]   ;;  %v3322_v60 = vunpack.c.h.bf16 %v3381_v52  ;;  %v3321_v61 = vunpack.c.l.bf16 %v3381_v52  ;;  %v3384_v4 = vld [vmem:[%s491_s26 + $0x20] sm:$0xff]   ;;  %vm4329_vm10 = vmor %vm556_vm1, %vm609_vm5 }
  0x1d   : > { %3554 = vmatprep.subr.bf16.mxu1 %v4000_v12  ;;  %3517 = vmatpush3.bf16.msra.mxu0 %v3888_v26  ;;  %v579_v55 = vmul.f32 %v4247_v50, %v571_v49  ;;  %v3326_v62 = vunpack.c.h.bf16 %v3382_v53  ;;  %v3325_v63 = vunpack.c.l.bf16 %v3382_v53  ;;  %v3330_v0 = vunpack.c.h.bf16 %v3383_v57  ;;  %v922_v21 = vld [vmem:[%s522_s19 + $0x4] sm:$0x1] }
  0x1e   : > { %738 = vperm.xlu1 %3879, %v4123_v14   ;;  %733 = vperm.xlu0 %3878, %v4134_v16   ;;  %v671_v54 = vmul.f32 %v3317_v48, %v4247_v50  ;;  %v672_v3 = vmul.f32 %v3318_v56, %v4247_v50  ;;  %v580_v5 = vmul.f32 %v4247_v50, %v572_v59  ;;  %v3329_v7 = vunpack.c.l.bf16 %v3383_v57 }
  0x1f   : > { %3518 = vmatprep.subr.bf16.mxu0 %v4000_v12  ;;  %v587_v2 = vadd.f32 %v4254_v58, %v579_v55  ;;  %v674_v6 = vmul.f32 %v3322_v60, %v4247_v50  ;;  %v673_v8 = vmul.f32 %v3321_v61, %v4247_v50  ;;  %v676_v9 = vmul.f32 %v3326_v62, %v4247_v50 }
  0x20   : > { %3555 = vmatpush3.bf16.msra.mxu1 %v3887_v25  ;;  %v681_v1 = vadd.f32 %v4254_v58, %v671_v54  ;;  %v675_v10 = vmul.f32 %v3325_v63, %v4247_v50  ;;  %v678_v11 = vmul.f32 %v3330_v0, %v4247_v50  ;;  %v3334_v13 = vunpack.c.h.bf16 %v3384_v4  ;;  %v632_v0 = vld [vmem:[#allocation2] sm:$0xf] }
  0x21   : > { %3556 = vmatprep.subr.bf16.mxu1 %v4000_v12  ;;  %3519 = vmatpush3.bf16.msra.mxu0 %v3890_v30  ;;  %v3333_v14 = vunpack.c.l.bf16 %v3384_v4  ;;  %v589_v16 = vmax.f32 %v587_v2, 0.0  ;;  %v682_v17 = vadd.f32 %v4254_v58, %v672_v3  ;;  %v588_v18 = vadd.f32 %v4254_v58, %v580_v5 }
  0x22   : > { %748 = vperm.xlu1 %3879, %v4149_v19   ;;  %743 = vperm.xlu0 %3878, %v4154_v20   ;;  %v691_v15 = vmax.f32 %v681_v1, 0.0  ;;  %v684_v19 = vadd.f32 %v4254_v58, %v674_v6  ;;  %v677_v20 = vmul.f32 %v3329_v7, %v4247_v50  ;;  %v4273_v22 = vadd.f32 %v4254_v58, %v673_v8 }
  0x23   : > { %3520 = vmatprep.subr.bf16.mxu0 %v4000_v12  ;;  %v679_v30 = vmul.f32 %v3333_v14, %v4247_v50  ;;  %v926_v34 = vunpack.c.l.bf16 %v922_v21  ;;  %vm636_vm6 = vsmask.f32 1280  ;;  %vm904_vm1 = vsmask.f32 7942 }
  0x24   : > { %3557 = vmatpush3.bf16.msra.mxu1 %v3889_v29  ;;  %v680_v29 = vmul.f32 %v3334_v13, %v4247_v50  ;;  %vm4323_vm9 = vmor %vm636_vm6, %vm791_vm4  ;;  %vm975_vm14 = vsmask.f32 2304  ;;  %vm1053_vm3 = vsmask.f32 7424  ;;  %vm1371_vm4 = vcmask 1046528  }
  0x25   : > { %3558 = vmatprep.subr.bf16.mxu1 %v4000_v12  ;;  %3521 = vmatpush3.bf16.msra.mxu0 %v3892_v36  ;;  %v694_v36 = vmax.f32 %v684_v19, 0.0  ;;  %v4297_v48 = vadd.f32 %v4254_v58, %v679_v30  ;;  %v928_v53 = vmul.f32 %v4247_v50, %v926_v34  ;;  %vm4335_vm11 = vmand %vm635_vm7, %vm636_vm6  ;;  %v638_v34 = vld [vmem:[#allocation2 + $0x4] sm:$0x3]  ;;  %vm1954_vm5 = vcmask 1045504  }
  0x26   : > { %940 = vperm.xlu1 %3879, %v924_v23   ;;  %935 = vperm.xlu0 %3878, %v923_v24   ;;  %v4276_v23 = vadd.f32 %v4254_v58, %v676_v9  ;;  %v921_v24 = vld [vmem:[%s522_s19] sm:$0xf]  ;;  %v4294_v47 = vadd.f32 %v4254_v58, %v680_v29  ;;  %vm4361_vm13 = vmand %vm903_vm12, %vm904_vm1  ;;  %vm1743_vm6 = vsmask.f32 6400  ;;  %vm2326_vm7 = vsmask.f32 5376 }
  0x27   : > { %3522 = vmatprep.subr.bf16.mxu0 %v4000_v12  ;;  %v699_v6 = vmax.f32 %v4297_v48, 0.0  ;;  %v4313_v9 = vadd.f32 %v4254_v58, %v928_v53  ;;  %vm4392_vm2 = vmand %vm974_vm0, %vm975_vm14 }
  0x28   : > { %3559 = vmatpush3.bf16.msra.mxu1 %v3891_v35  ;;  %v590_v35 = vmax.f32 %v588_v18, 0.0  ;;  %v700_v5 = vmax.f32 %v4294_v47, 0.0 }
  0x29   : > { %3560 = vmatprep.subr.bf16.mxu1 %v4000_v12  ;;  %3523 = vmatpush3.bf16.msra.mxu0 %v3894_v40 }
  0x2a   : > { %2735 = vperm.xlu1 %3879, %v2722_v27   ;;  %2732 = vperm.xlu0 %3878, %v2721_v28   ;;  %v4279_v27 = vadd.f32 %v4254_v58, %v675_v10  ;;  %v4282_v28 = vadd.f32 %v4254_v58, %v678_v11 }
  0x2b   : > { %3524 = vmatprep.subr.bf16.mxu0 %v4000_v12 }
  0x2c   : > { %3561 = vmatpush3.bf16.msra.mxu1 %v3893_v39  ;;  %v698_v46 = vmax.f32 %v4282_v28, 0.0 }
  0x2d   : > { %3618 = vmatprep.subr.bf16.mxu1 %v4000_v12  ;;  %3525 = vmatpush3.bf16.msra.mxu0 %v3897_v43 }
  0x2e   : > { %2741 = vperm.xlu1 %3879, %v2724_v31   ;;  %2738 = vperm.xlu0 %3878, %v2723_v33   ;;  %v692_v33 = vmax.f32 %v682_v17, 0.0 }
  0x2f   : > { %3582 = vmatprep.subr.bf16.mxu0 %v4000_v12 }
  0x32   : > { %2747 = vperm.xlu1 %3879, %v2726_v37   ;;  %2744 = vperm.xlu0 %3878, %v2725_v38   ;;  %v4287_v37 = vadd.f32 %v4254_v58, %v677_v20  ;;  %v925_v38 = vunpack.c.l.bf16 %v921_v24 }
  0x34   : > { %v697_v56 = vmax.f32 %v4287_v37, 0.0  ;;  %v927_v57 = vmul.f32 %v4247_v50, %v925_v38 }
  0x36   : > { %2753 = vperm.xlu1 %3879, %v2728_v41   ;;  %2750 = vperm.xlu0 %3878, %v2727_v42   ;;  %v693_v41 = vmax.f32 %v4273_v22, 0.0  ;;  %v696_v42 = vmax.f32 %v4276_v23, 0.0  ;;  %v4316_v14 = vadd.f32 %v4254_v58, %v927_v57 }
  0x3a   : > { %2759 = vperm.xlu1 %3879, %v2730_v44   ;;  %2756 = vperm.xlu0 %3878, %v2729_v45   ;;  %v695_v45 = vmax.f32 %v4279_v27, 0.0 }
  0x89   : > { %v704_v25 = vpop.permute.xlu1 %703  ;;  %v594_v26 = vpop.permute.xlu0 %593 }
  0x8a   : > { %v751_v31 = vmul.f32 %v704_v25, %v691_v15  ;;  %v601_v32 = vmul.f32 %v594_v26, %v589_v16 }
  0x8c   : > { %v3293_v39 = vpack.c.bf16 %v751_v31, %v751_v31  ;;  %v3291_v40 = vpack.c.bf16 %v601_v32, %v601_v32 }
  0x8d   : > { %v709_v43 = vpop.permute.xlu1 %708  ;;  %v599_v44 = vpop.permute.xlu0 %598 }
  0x8e   : > { %v794_v49 = vshrl.u32 %v3293_v39, 16  ;;  %v797_v51 = vshll.u32 %v3293_v39, 16  ;;  %v612_v52 = vshrl.u32 %v3291_v40, 16  ;;  %v752_v54 = vmul.f32 %v709_v43, %v692_v33 }
  0x8f   : > { %v602_v55 = vmul.f32 %v599_v44, %v590_v35  ;;  %v615_v62 = vshll.u32 %v3291_v40, 16 }
  0x90   : > { %v796_v59 = vrot.slane %v794_v49, 6  ;;  %v799_v60 = vrot.slane %v797_v51, 7  ;;  %v614_v61 = vrot.slane %v612_v52, 7  ;;  %v3294_v1 = vpack.c.bf16 %v752_v54, %v752_v54 }
  0x91   : > { %v3292_v2 = vpack.c.bf16 %v602_v55, %v602_v55  ;;  %v719_v3 = vpop.permute.xlu1 %718  ;;  %v714_v4 = vpop.permute.xlu0 %713 }
  0x92   : > { %v4310_v50 = vor.u32 %v799_v60, %v796_v59  ;;  %v617_v7 = vor.u32 %v615_v62, %v614_v61  ;;  %v754_v8 = vmul.f32 %v719_v3, %v694_v36  ;;  %v803_v10 = vshrl.u32 %v3294_v1, 16 }
  0x93   : > { %v806_v11 = vshll.u32 %v3294_v1, 16  ;;  %v620_v13 = vshrl.u32 %v3292_v2, 16  ;;  %v623_v16 = vshll.u32 %v3292_v2, 16  ;;  %v753_v18 = vmul.f32 %v714_v4, %v693_v41 }
  0x94   : > { %v633_v15 = vsel %vm4304_vm8, %v617_v7, %v632_v0  ;;  %v3296_v17 = vpack.c.bf16 %v754_v8, %v754_v8  ;;  %v801_v19 = vrot.slane %v4310_v50, 4  ;;  %v805_v21 = vrot.slane %v803_v10, 6 }
  0x95   : > { %634 = vst [vmem:[#allocation2] sm:$0xf] %v633_v15  ;;  %v808_v22 = vrot.slane %v806_v11, 7  ;;  %v622_v23 = vrot.slane %v620_v13, 7  ;;  %v729_v58 = vpop.permute.xlu1 %728  ;;  %v724_v24 = vpop.permute.xlu0 %723  ;;  %v3295_v29 = vpack.c.bf16 %v753_v18, %v753_v18  ;;  %v618_v31 = vrot.slane %v614_v61, 4 }
  0x96   : > { %v823_v26 = vshrl.u32 %v3296_v17, 16  ;;  %v826_v27 = vshll.u32 %v3296_v17, 16  ;;  %v756_v30 = vmul.f32 %v729_v58, %v696_v42  ;;  %v755_v36 = vmul.f32 %v724_v24, %v695_v45 }
  0x97   : > { %v809_v32 = vor.u32 %v808_v22, %v805_v21  ;;  %v625_v35 = vor.u32 %v623_v16, %v622_v23  ;;  %v813_v40 = vshrl.u32 %v3295_v29, 16  ;;  %v816_v41 = vshll.u32 %v3295_v29, 16 }
  0x98   : > { %v825_v38 = vrot.slane %v823_v26, 6  ;;  %v828_v39 = vrot.slane %v826_v27, 7  ;;  %v3298_v49 = vpack.c.bf16 %v756_v30, %v756_v30  ;;  %v3297_v60 = vpack.c.bf16 %v755_v36, %v755_v36 }
  0x99   : > { %v810_v42 = vsel %vm4323_vm9, %v801_v19, %v809_v32  ;;  %v811_v43 = vrot.slane %v809_v32, 4  ;;  %v626_v44 = vsel %vm4329_vm10, %v618_v31, %v625_v35  ;;  %v739_v51 = vpop.permute.xlu1 %738  ;;  %v734_v52 = vpop.permute.xlu0 %733  ;;  %v815_v54 = vrot.slane %v813_v40, 6 }
  0x9a   : > { %909 = vst [vmem:[#allocation2 + $0x8] sm:$0xf] %v810_v42  ;;  %v639_v45 = vsel %vm4335_vm11, %v626_v44, %v638_v34  ;;  %v829_v53 = vor.u32 %v828_v39, %v825_v38  ;;  %v818_v55 = vrot.slane %v816_v41, 7  ;;  %v843_v57 = vshrl.u32 %v3298_v49, 16 }
  0x9b   : > { %640 = vst [vmem:[#allocation2 + $0x4] sm:$0x3] %v639_v45  ;;  %v846_v59 = vshll.u32 %v3298_v49, 16  ;;  %v758_v61 = vmul.f32 %v739_v51, %v698_v46  ;;  %v757_v0 = vmul.f32 %v734_v52, %v697_v56  ;;  %v932_v1 = vmax.f32 %v4313_v9, 0.0 }
  0x9c   : > { %v831_v62 = vrot.slane %v829_v53, 4  ;;  %v819_v63 = vor.u32 %v818_v55, %v815_v54  ;;  %v845_v2 = vrot.slane %v843_v57, 6  ;;  %v833_v4 = vshrl.u32 %v3297_v60, 16  ;;  %v918_v54 = vld [vmem:[#allocation2 + $0x2c] sm:$0x3] }
  0x9d   : > { %v848_v3 = vrot.slane %v846_v59, 7  ;;  %v836_v7 = vshll.u32 %v3297_v60, 16  ;;  %v749_v8 = vpop.permute.xlu1 %748  ;;  %v3300_v13 = vpack.c.bf16 %v758_v61, %v758_v61  ;;  %v3299_v15 = vpack.c.bf16 %v757_v0, %v757_v0  ;;  %v744_v28 = vpop.permute.xlu0 %743 }
  0x9e   : > { %v820_v10 = vsel %vm4323_vm9, %v811_v43, %v819_v63  ;;  %v821_v11 = vrot.slane %v819_v63, 4  ;;  %v835_v16 = vrot.slane %v833_v4, 6  ;;  %v760_v37 = vmul.f32 %v749_v8, %v700_v5  ;;  %v3900_v4 = vld [vmem:[%s4987_s6 + $0xf8] sm:$0xff]   ;;  %v3901_v5 = vld [vmem:[%s4987_s6 + $0xb0] sm:$0xff]  }
  0x9f   : > { %910 = vst [vmem:[#allocation2 + $0xc] sm:$0xf] %v820_v10  ;;  %v849_v46 = vor.u32 %v848_v3, %v845_v2  ;;  %v838_v17 = vrot.slane %v836_v7, 7  ;;  %v863_v9 = vshrl.u32 %v3300_v13, 16  ;;  %v866_v18 = vshll.u32 %v3300_v13, 16 }
  0xa0   : > { %v830_v56 = vsel %vm4323_vm9, %v821_v11, %v829_v53  ;;  %v853_v19 = vshrl.u32 %v3299_v15, 16  ;;  %v856_v22 = vshll.u32 %v3299_v15, 16  ;;  %v3302_v23 = vpack.c.bf16 %v760_v37, %v760_v37  ;;  %v981_v11 = vld [vmem:[#allocation2] sm:$0xf] }
  0xa1   : > { %911 = vst [vmem:[#allocation2 + $0x10] sm:$0xf] %v830_v56  ;;  %v839_v21 = vor.u32 %v838_v17, %v835_v16  ;;  %v941_v58 = vpop.permute.xlu1 %940  ;;  %v931_v24 = vmax.f32 %v4316_v14, 0.0  ;;  %v865_v25 = vrot.slane %v863_v9, 6  ;;  %v868_v26 = vrot.slane %v866_v18, 7  ;;  %v936_v48 = vpop.permute.xlu0 %935 }
  0xa2   : > { %v855_v27 = vrot.slane %v853_v19, 6  ;;  %v759_v47 = vmul.f32 %v744_v28, %v699_v6  ;;  %v906_v29 = vld [vmem:[#allocation2 + $0x4] sm:$0xe]  ;;  %v858_v32 = vrot.slane %v856_v22, 7  ;;  %v883_v34 = vshrl.u32 %v3302_v23, 16 }
  0xa3   : > { %v840_v30 = vsel %vm4323_vm9, %v831_v62, %v839_v21  ;;  %v841_v31 = vrot.slane %v839_v21, 4  ;;  %v851_v14 = vrot.slane %v849_v46, 4  ;;  %v886_v35 = vshll.u32 %v3302_v23, 16  ;;  %v977_v23 = vld [vmem:[#allocation2 + $0x30] sm:$0x7] }
  0xa4   : > { %912 = vst [vmem:[#allocation2 + $0x14] sm:$0xf] %v840_v30  ;;  %v3301_v36 = vpack.c.bf16 %v759_v47, %v759_v47  ;;  %v944_v38 = vmul.f32 %v941_v58, %v932_v1  ;;  %v859_v39 = vor.u32 %v858_v32, %v855_v27  ;;  %v885_v40 = vrot.slane %v883_v34, 6  ;;  %v3902_v58 = vld [vmem:[%s4987_s6 + $0xf0] sm:$0xff]   ;;  %v3899_v32 = vld [vmem:[%s4987_s6 + $0xb8] sm:$0xff]  }
  0xa5   : > { %v850_v6 = vsel %vm4323_vm9, %v841_v31, %v849_v46  ;;  %v907_v41 = vsel %vm4361_vm13, %v4310_v50, %v906_v29  ;;  %v869_v42 = vor.u32 %v868_v26, %v865_v25  ;;  %v888_v43 = vrot.slane %v886_v35, 7  ;;  %v3905_v35 = vld [vmem:[%s4987_s6 + $0xe8] sm:$0xff]  }
  0xa6   : > { %913 = vst [vmem:[#allocation2 + $0x18] sm:$0xf] %v850_v6  ;;  %v873_v44 = vshrl.u32 %v3301_v36, 16  ;;  %v876_v49 = vshll.u32 %v3301_v36, 16  ;;  %908 = vst [vmem:[#allocation2 + $0x4] sm:$0xe] %v907_v41  ;;  %v860_v51 = vsel %vm4323_vm9, %v851_v14, %v859_v39  ;;  %v3304_v45 = vpack.c.bf16 %v944_v38, %v944_v38 }
  0xa7   : > { %v861_v52 = vrot.slane %v859_v39, 4  ;;  %v943_v53 = vmul.f32 %v936_v48, %v931_v24  ;;  %914 = vst [vmem:[#allocation2 + $0x1c] sm:$0xf] %v860_v51  ;;  %v889_v55 = vor.u32 %v888_v43, %v885_v40  ;;  %v871_v63 = vrot.slane %v869_v42, 4  ;;  %v4383_v13 = vld [vmem:[#allocation2 + $0x8] sm:$0xff]   ;;  %v3906_v38 = vld [vmem:[%s4987_s6 + $0xe0] sm:$0xff]  }
  0xa8   : > { %v875_v57 = vrot.slane %v873_v44, 6  ;;  %v878_v59 = vrot.slane %v876_v49, 7  ;;  %v961_v60 = vshrl.u32 %v3304_v45, 16  ;;  %v964_v61 = vshll.u32 %v3304_v45, 16  ;;  %v3904_v40 = vld [vmem:[%s4987_s6 + $0xa8] sm:$0xff]   ;;  %v3909_v43 = vld [vmem:[%s4987_s6 + $0xd8] sm:$0xff]  }
  0xa9   : > { %v870_v50 = vsel %vm4323_vm9, %v861_v52, %v869_v42  ;;  %v3303_v62 = vpack.c.bf16 %v943_v53, %v943_v53  ;;  %v891_v0 = vrot.slane %v889_v55, 4  ;;  %v1062_v19 = vshll.u32 %v4383_v13, 16  ;;  %v3907_v44 = vld [vmem:[%s4987_s6 + $0xa0] sm:$0xff]   ;;  %v3911_v52 = vld [vmem:[%s4987_s6 + $0xd0] sm:$0xff]  }
  0xaa   : > { %915 = vst [vmem:[#allocation2 + $0x20] sm:$0xf] %v870_v50  ;;  %v879_v1 = vor.u32 %v878_v59, %v875_v57  ;;  %v963_v15 = vrot.slane %v961_v60, 6  ;;  %v966_v28 = vrot.slane %v964_v61, 7  ;;  %v1066_v36 = vshrl.u32 %v4383_v13, 16  ;;  %v3914_v59 = vld [vmem:[%s4987_s6 + $0xc8] sm:$0xff]  }
  0xab   : > { %v952_v2 = vshrl.u32 %v3303_v62, 16  ;;  %v955_v3 = vshll.u32 %v3303_v62, 16  ;;  %v919_v7 = vsel %vm4335_vm11, %v891_v0, %v918_v54  ;;  %v4403_v26 = vld [vmem:[#allocation2 + $0x10] sm:$0xff]   ;;  %v1064_v31 = vrot.slane %v1062_v19, 1  ;;  %v3910_v54 = vld [vmem:[%s4987_s6 + $0x98] sm:$0xff]   ;;  %v3916_v62 = vld [vmem:[%s4987_s6 + $0xc0] sm:$0xff]  }
  0xac   : > { %v880_v8 = vsel %vm4323_vm9, %v871_v63, %v879_v1  ;;  %v881_v10 = vrot.slane %v879_v1, 4  ;;  %920 = vst [vmem:[#allocation2 + $0x2c] sm:$0x3] %v919_v7  ;;  %v967_v21 = vor.u32 %v966_v28, %v963_v15  ;;  %v1070_v14 = vshll.u32 %v4403_v26, 16  ;;  %v3913_v50 = vld [vmem:[%s4987_s6 + $0x90] sm:$0xff]   ;;  %v3915_v1 = vld [vmem:[%s4987_s6 + $0x88] sm:$0xff]  }
  0xad   : > { %916 = vst [vmem:[#allocation2 + $0x24] sm:$0xf] %v880_v8  ;;  %v954_v46 = vrot.slane %v952_v2, 6  ;;  %v957_v16 = vrot.slane %v955_v3, 7  ;;  %v4385_v17 = vld [vmem:[#allocation2 + $0x4] sm:$0xf]  ;;  %v1068_v39 = vor.u32 %v1066_v36, %v1064_v31 }
  0xae   : > { %v890_v37 = vsel %vm4323_vm9, %v881_v10, %v889_v55  ;;  %v3068_v33 = vcombine.low %v981_v11, %v4385_v17  ;;  %v1072_v48 = vrot.slane %v1070_v14, 1  ;;  %v4433_v6 = vld [vmem:[#allocation2 + $0x18] sm:$0xff]   ;;  %v1074_v49 = vshrl.u32 %v4403_v26, 16  ;;  %v1519_v2 = vld [vmem:[#allocation2 + $0x4] sm:$0xe]  ;;  %v4509_v15 = vld [vmem:[#allocation2 + $0xc] sm:$0xff]  }
  0xaf   : > { %917 = vst [vmem:[#allocation2 + $0x28] sm:$0xf] %v890_v37  ;;  %v958_v56 = vor.u32 %v957_v16, %v954_v46  ;;  %v1078_v42 = vshll.u32 %v4433_v6, 16  ;;  %v1082_v60 = vshrl.u32 %v4433_v6, 16  ;;  %v4494_v7 = vld [vmem:[#allocation2 + $0x8] sm:$0xf] }
  0xb0   : > { %v1057_v18 = vshll.u32 %v3068_v33, 16  ;;  %3563 = vmatmul.mubr.bf16.vlgmr.msra.gmra.mxu1 %v3068_v33  ;;  %v1055_v24 = vshrl.u32 %v3068_v33, 16  ;;  %v1073_v41 = vsel %vm1053_vm3, %v1068_v39, %v1072_v48  ;;  %v1076_v53 = vor.u32 %v1074_v49, %v1072_v48  ;;  %v3920_v11 = vld [vmem:[%s4987_s6 + $0x80] sm:$0xff]   ;;  %v3933_v39 = vld [vmem:[%s4987_s6 + $0x118] sm:$0xff]  }
  0xb1   : > { %v959_v22 = vrot.slane %v958_v56, 4  ;;  %3566 = vmatprep.mubr.msk.bf16.mxu1 %vm4001_vm15, %v4000_v12  ;;  %3619 = vmatpush3.bf16.msra.mxu1 %v3900_v4  ;;  %v1080_v51 = vrot.slane %v1078_v42, 1  ;;  %v4497_v8 = vcombine.low %v1519_v2, %v4494_v7  ;;  %v1350_v37 = vld [vmem:[#allocation2] sm:$0xe]  ;;  %v1576_v33 = vrot.slane %v4509_v15, 1 }
  0xb2   : > { %v1059_v25 = vrot.slane %v1057_v18, 1  ;;  %3620 = vmatprep.subr.bf16.mxu1 %v4000_v12  ;;  %v3106_v9 = vcombine.low %v1350_v37, %v4385_v17  ;;  %v3925_v17 = vld [vmem:[%s4987_s6 + $0x170] sm:$0xff]   ;;  %v1377_v36 = vrot.slane %v4433_v6, 1  ;;  %v3939_v49 = vld [vmem:[%s4987_s6 + $0x140] sm:$0xff]   ;;  %vm2537_vm8 = vcmask 1044480  }
  0xb3   : > { %v968_v27 = vsel %vm4323_vm9, %v959_v22, %v967_v21  ;;  %v971_v47 = vld [vmem:[#allocation2 + $0x2c] sm:$0xe]  ;;  %v1081_v55 = vsel %vm1053_vm3, %v1076_v53, %v1080_v51  ;;  %v1084_v0 = vor.u32 %v1082_v60, %v1080_v51  ;;  %v1575_v16 = vrot.slane %v4497_v8, 1  ;;  %v4521_v21 = vld [vmem:[#allocation2 + $0x14] sm:$0xff]   ;;  %v1933_v53 = vld [vmem:[#allocation2 + $0x4] sm:$0xc] }
  0xb4   : > { %v978_v29 = vsel %vm4392_vm2, %v968_v27, %v977_v23  ;;  %v1060_v30 = vor.u32 %v1059_v25, %v1055_v24  ;;  %v972_v34 = vsel %vm4361_vm13, %v958_v56, %v971_v47  ;;  %v4459_v45 = vld [vmem:[#allocation2 + $0x20] sm:$0xff]   ;;  %v3923_v56 = vld [vmem:[%s4987_s6 + $0x178] sm:$0xff]   ;;  %v1372_v22 = vrot.slane %v3106_v9, 1  ;;  %v3928_v27 = vld [vmem:[%s4987_s6 + $0x168] sm:$0xff]  }
  0xb5   : > { %979 = vst [vmem:[#allocation2 + $0x30] sm:$0x7] %v978_v29  ;;  %3621 = vmatpush3.bf16.msra.mxu1 %v3902_v58  ;;  %973 = vst [vmem:[#allocation2 + $0x2c] sm:$0xe] %v972_v34  ;;  %v1086_v57 = vshll.u32 %v4459_v45, 16  ;;  %v1090_v10 = vshrl.u32 %v4459_v45, 16  ;;  %v1577_v19 = vsel %vm1371_vm4, %v1575_v16, %v1576_v33 }
  0xb6   : > { %v1065_v20 = vsel %vm1053_vm3, %v1060_v30, %v1064_v31  ;;  %3622 = vmatprep.subr.bf16.mxu1 %v4000_v12  ;;  %v4485_v63 = vld [vmem:[#allocation2 + $0x28] ss:$0 sps:$4 sm:$0x11]   ;;  %v1578_v23 = vrot.slane %v4521_v21, 1  ;;  %v1373_v58 = vrot.slane %v4383_v13, 1  ;;  %v3921_v24 = vld [vmem:[%s4987_s6 + $0x138] sm:$0xff]  }
  0xb7   : > { %3527 = vmatmul.mubr.bf16.vlgmr.msra.gmra.mxu0 %v1065_v20  ;;  %v1088_v61 = vrot.slane %v1086_v57, 1  ;;  %v1094_v4 = vshll.u32 %v4485_v63, 16  ;;  %v4542_v29 = vld [vmem:[#allocation2 + $0x1c] sm:$0xff]   ;;  %v1375_v30 = vrot.slane %v4403_v26, 1  ;;  %v3927_v34 = vld [vmem:[%s4987_s6 + $0x128] sm:$0xff]   ;;  %v1748_v60 = vshll.u32 %v4497_v8, 16 }
  0xb8   : > { %3583 = vmatpush3.bf16.msra.mxu0 %v3899_v32  ;;  %3567 = vmatmul.mubr.bf16.gmra.mxu1 %v4383_v13  ;;  %v1374_v25 = vsel %vm1371_vm4, %v1372_v22, %v1373_v58  ;;  %v1579_v47 = vsel %vm1371_vm4, %v1576_v33, %v1578_v23  ;;  %v3924_v13 = vld [vmem:[%s4987_s6 + $0x130] sm:$0xff]   ;;  %v3929_v31 = vld [vmem:[%s4987_s6 + $0x160] sm:$0xff]   ;;  %v1580_v32 = vrot.slane %v4542_v29, 1  ;;  %v3932_v20 = vld [vmem:[%s4987_s6 + $0x158] sm:$0xff]   ;;  %v1958_v16 = vrot.slane %v4521_v21, 2 }
  0xb9   : > { %3584 = vmatprep.subr.bf16.mxu0 %v4000_v12  ;;  %3530 = vmatprep.mubr.msk.bf16.mxu0 %vm4001_vm15, %v4000_v12  ;;  %v1089_v3 = vsel %vm1053_vm3, %v1084_v0, %v1088_v61  ;;  %v1092_v28 = vor.u32 %v1090_v10, %v1088_v61  ;;  %v1096_v46 = vrot.slane %v1094_v4, 1  ;;  %v3935_v42 = vld [vmem:[#allocation2 + $0x2c] ss:$0 sps:$4 sm:$0x11]   ;;  %v3941_v57 = vld [vmem:[%s4987_s6 + $0x100] sm:$0xff]   ;;  %v1756_v0 = vshll.u32 %v4509_v15, 16 }
  0xba   : > { %3570 = vmatprep.mubr.msk.bf16.mxu1 %vm4001_vm15, %v4000_v12  ;;  %3623 = vmatpush3.bf16.msra.mxu1 %v3905_v35  ;;  %v1581_v14 = vsel %vm1371_vm4, %v1578_v23, %v1580_v32  ;;  %v4567_v35 = vld [vmem:[#allocation2 + $0x24] sm:$0xff]   ;;  %v1584_v51 = vrot.slane %v3935_v42, 1  ;;  %v1750_v4 = vrot.slane %v1748_v60, 2  ;;  %v3942_v33 = vld [vmem:[%s4987_s6 + $0x1b8] sm:$0xff]  }
  0xbb   : > { %3624 = vmatprep.subr.bf16.mxu1 %v4000_v12  ;;  %v1097_v18 = vsel %vm1053_vm3, %v1092_v28, %v1096_v46  ;;  %v1582_v48 = vrot.slane %v4567_v35, 1  ;;  %v1758_v10 = vrot.slane %v1756_v0, 2  ;;  %v1762_v28 = vshrl.u32 %v4521_v21, 16  ;;  %v3948_v23 = vld [vmem:[%s4987_s6 + $0x1e0] sm:$0xff]  }
  0xbc   : > { %3585 = vmatpush3.bf16.msra.mxu0 %v3901_v5  ;;  %v3930_v5 = vld [vmem:[%s4987_s6 + $0x120] sm:$0xff]   ;;  %v1765_v46 = vshll.u32 %v4521_v21, 16  ;;  %v3944_v21 = vld [vmem:[%s4987_s6 + $0x1b0] sm:$0xff]  }
  0xbd   : > { %3586 = vmatprep.subr.bf16.mxu0 %v4000_v12  ;;  %v1764_v9 = vrot.slane %v1762_v28, 1 }
  0xbe   : > { %3625 = vmatpush3.bf16.msra.mxu1 %v3906_v38  ;;  %v3934_v38 = vld [vmem:[%s4987_s6 + $0x150] sm:$0xff]  }
  0xbf   : > { %3531 = vmatmul.mubr.bf16.gmra.mxu0 %v1073_v41  ;;  %3626 = vmatprep.subr.bf16.mxu1 %v4000_v12  ;;  %v1583_v41 = vsel %vm1371_vm4, %v1580_v32, %v1582_v48  ;;  %v3949_v32 = vld [vmem:[%s4987_s6 + $0x1a0] sm:$0xff]  }
  0xc0   : > { %3571 = vmatmul.mubr.bf16.gmra.mxu1 %v4403_v26  ;;  %3587 = vmatpush3.bf16.msra.mxu0 %v3904_v40  ;;  %v1376_v26 = vsel %vm1371_vm4, %v1373_v58, %v1375_v30  ;;  %v3937_v40 = vld [vmem:[%s4987_s6 + $0x148] sm:$0xff]   ;;  %v1771_v58 = vshrl.u32 %v4542_v29, 16 }
  0xc1   : > { %3588 = vmatprep.subr.bf16.mxu0 %v4000_v12  ;;  %3534 = vmatprep.mubr.msk.bf16.mxu0 %vm4001_vm15, %v4000_v12 }
  0xc2   : > { %3574 = vmatprep.mubr.msk.bf16.mxu1 %vm4001_vm15, %v4000_v12  ;;  %3627 = vmatpush3.bf16.msra.mxu1 %v3909_v43  ;;  %v3936_v43 = vld [vmem:[%s4987_s6 + $0x110] sm:$0xff]  }
  0xc3   : > { %3628 = vmatprep.subr.bf16.mxu1 %v4000_v12 }
  0xc4   : > { %3589 = vmatpush3.bf16.msra.mxu0 %v3907_v44  ;;  %v1379_v44 = vrot.slane %v4459_v45, 1 }
  0xc5   : > { %3590 = vmatprep.subr.bf16.mxu0 %v4000_v12 }
  0xc6   : > { %3629 = vmatpush3.bf16.msra.mxu1 %v3911_v52  ;;  %v3938_v52 = vld [vmem:[%s4987_s6 + $0x108] sm:$0xff]  }
  0xc7   : > { %3535 = vmatmul.mubr.bf16.gmra.mxu0 %v1081_v55  ;;  %3630 = vmatprep.subr.bf16.mxu1 %v4000_v12  ;;  %v3186_v55 = vcombine.low %v1933_v53, %v4494_v7 }
  0xc8   : > { %3575 = vmatmul.mubr.bf16.gmra.mxu1 %v4433_v6  ;;  %3591 = vmatpush3.bf16.msra.mxu0 %v3910_v54  ;;  %v1378_v6 = vsel %vm1371_vm4, %v1375_v30, %v1377_v36  ;;  %v1585_v54 = vsel %vm1371_vm4, %v1582_v48, %v1584_v51  ;;  %v4699_v48 = vld [vmem:[#allocation2 + $0xc] sm:$0xf] }
  0xc9   : > { %3538 = vmatprep.mubr.msk.bf16.mxu0 %vm4001_vm15, %v4000_v12  ;;  %3578 = vmatprep.mubr.msk.bf16.mxu1 %vm4001_vm15, %v4000_v12  ;;  %v1955_v61 = vrot.slane %v3186_v55, 2 }
  0xca   : > { %3592 = vmatprep.subr.bf16.mxu0 %v4000_v12  ;;  %3631 = vmatpush3.bf16.msra.mxu1 %v3914_v59  ;;  %v1381_v59 = vrot.slane %v4485_v63, 1  ;;  %v3943_v63 = vld [vmem:[%s4987_s6 + $0x1f8] sm:$0xff]  }
  0xcb   : > { %3632 = vmatprep.subr.bf16.mxu1 %v4000_v12 }
  0xcc   : > { %3593 = vmatpush3.bf16.msra.mxu0 %v3913_v50  ;;  %v1745_v50 = vshrl.u32 %v4497_v8, 16  ;;  %v1382_v2 = vsel %vm1371_vm4, %v1379_v44, %v1381_v59  ;;  %v3956_v59 = vld [vmem:[%s4987_s6 + $0x188] sm:$0xff]  }
  0xcd   : > { %3594 = vmatprep.subr.bf16.mxu0 %v4000_v12 }
  0xce   : > { %3633 = vmatpush3.bf16.msra.mxu1 %v3916_v62  ;;  %v1753_v62 = vshrl.u32 %v4509_v15, 16 }
  0xcf   : > { %3539 = vmatmul.mubr.bf16.gmra.mxu0 %v1089_v3  ;;  %3690 = vmatprep.subr.bf16.mxu1 %v4000_v12  ;;  %v1747_v3 = vrot.slane %v1745_v50, 1 }
  0xd0   : > { %3579 = vmatmul.mubr.bf16.gmra.mxu1 %v4459_v45  ;;  %3595 = vmatpush3.bf16.msra.mxu0 %v3915_v1  ;;  %v1380_v45 = vsel %vm1371_vm4, %v1377_v36, %v1379_v44  ;;  %v1956_v1 = vrot.slane %v4509_v15, 2  ;;  %v1755_v8 = vrot.slane %v1753_v62, 1  ;;  %v3951_v36 = vld [vmem:[%s4987_s6 + $0x198] sm:$0xff]   ;;  %v3954_v44 = vld [vmem:[%s4987_s6 + $0x190] sm:$0xff]  }
  0xd1   : > { %3542 = vmatprep.mubr.msk.bf16.mxu0 %vm4001_vm15, %v4000_v12  ;;  %3634 = vmatprep.mubr.msk.bf16.mxu1 %vm4001_vm15, %v4000_v12  ;;  %v1751_v15 = vor.u32 %v1750_v4, %v1747_v3  ;;  %v4734_v3 = vld [vmem:[#allocation2 + $0x18] sm:$0xff]   ;;  %v3960_v4 = vld [vmem:[%s4987_s6 + $0x180] sm:$0xff]  }
  0xd2   : > { %3596 = vmatprep.subr.bf16.mxu0 %v4000_v12  ;;  %v1957_v7 = vsel %vm1954_vm5, %v1955_v61, %v1956_v1  ;;  %v1759_v37 = vor.u32 %v1758_v10, %v1755_v8  ;;  %v2348_v28 = vshll.u32 %v4734_v3, 16 }
  0xd4   : > { %3597 = vmatpush3.bf16.msra.mxu0 %v3920_v11  ;;  %v3945_v11 = vld [vmem:[%s4987_s6 + $0x1f0] sm:$0xff]  }
  0xd5   : > { %3654 = vmatprep.subr.bf16.mxu0 %v4000_v12 }
  0xd7   : > { %3543 = vmatmul.mubr.bf16.gmra.mxu0 %v1097_v18  ;;  %v1767_v18 = vrot.slane %v1765_v46, 2 }
  0xd8   : > { %3635 = vmatmul.mubr.bf16.vlgmr.msra.gmra.mxu1 %v1577_v19  ;;  %3598 = vmatprep.mubr.msk.bf16.mxu0 %vm4001_vm15, %v4000_v12  ;;  %v3947_v19 = vld [vmem:[%s4987_s6 + $0x1e8] sm:$0xff]  }
  0xd9   : > { %3638 = vmatprep.mubr.msk.bf16.mxu1 %vm4001_vm15, %v4000_v12  ;;  %3691 = vmatpush3.bf16.msra.mxu1 %v3923_v56  ;;  %v1760_v56 = vsel %vm1743_vm6, %v1751_v15, %v1759_v37  ;;  %v1768_v22 = vor.u32 %v1767_v18, %v1764_v9  ;;  %v2345_v15 = vshrl.u32 %v4734_v3, 16  ;;  %v2350_v9 = vrot.slane %v2348_v28, 3  ;;  %v4753_v18 = vld [vmem:[#allocation2 + $0x20] sm:$0xff]  }
  0xda   : > { %3692 = vmatprep.subr.bf16.mxu1 %v4000_v12 }
  0xdd   : > { %3693 = vmatpush3.bf16.msra.mxu1 %v3925_v17  ;;  %v1959_v17 = vsel %vm1954_vm5, %v1956_v1, %v1958_v16 }
  0xde   : > { %3694 = vmatprep.subr.bf16.mxu1 %v4000_v12 }
  0xdf   : > { %3599 = vmatmul.mubr.bf16.vlgmr.msra.gmra.mxu0 %v1374_v25  ;;  %v1960_v25 = vrot.slane %v4542_v29, 2 }
  0xe0   : > { %3655 = vmatpush3.bf16.msra.mxu0 %v3921_v24  ;;  %3639 = vmatmul.mubr.bf16.gmra.mxu1 %v1579_v47  ;;  %v1774_v24 = vshll.u32 %v4542_v29, 16  ;;  %v1769_v47 = vsel %vm1743_vm6, %v1759_v37, %v1768_v22 }
  0xe1   : > { %3656 = vmatprep.subr.bf16.mxu0 %v4000_v12  ;;  %3602 = vmatprep.mubr.msk.bf16.mxu0 %vm4001_vm15, %v4000_v12  ;;  %v1961_v29 = vsel %vm1954_vm5, %v1958_v16, %v1960_v25  ;;  %v3961_v16 = vld [vmem:[%s4987_s6 + $0x238] sm:$0xff]  }
  0xe2   : > { %3642 = vmatprep.mubr.msk.bf16.mxu1 %vm4001_vm15, %v4000_v12  ;;  %3695 = vmatpush3.bf16.msra.mxu1 %v3928_v27  ;;  %v3946_v27 = vld [vmem:[%s4987_s6 + $0x1a8] sm:$0xff]   ;;  %v1776_v30 = vrot.slane %v1774_v24, 2 }
  0xe3   : > { %3696 = vmatprep.subr.bf16.mxu1 %v4000_v12 }
  0xe4   : > { %3657 = vmatpush3.bf16.msra.mxu0 %v3924_v13  ;;  %v1773_v13 = vrot.slane %v1771_v58, 1 }
  0xe5   : > { %3658 = vmatprep.subr.bf16.mxu0 %v4000_v12 }
  0xe6   : > { %3697 = vmatpush3.bf16.msra.mxu1 %v3929_v31  ;;  %v3950_v31 = vld [vmem:[%s4987_s6 + $0x1d8] sm:$0xff]  }
  0xe7   : > { %3603 = vmatmul.mubr.bf16.gmra.mxu0 %v1376_v26  ;;  %3698 = vmatprep.subr.bf16.mxu1 %v4000_v12  ;;  %v3952_v26 = vld [vmem:[%s4987_s6 + $0x1d0] sm:$0xff]  }
  0xe8   : > { %3643 = vmatmul.mubr.bf16.gmra.mxu1 %v1581_v14  ;;  %3659 = vmatpush3.bf16.msra.mxu0 %v3927_v34  ;;  %v1777_v34 = vor.u32 %v1776_v30, %v1773_v13  ;;  %v1783_v14 = vshll.u32 %v4567_v35, 16  ;;  %v4773_v30 = vld [vmem:[#allocation2 + $0x28] sm:$0xff]  }
  0xe9   : > { %3660 = vmatprep.subr.bf16.mxu0 %v4000_v12  ;;  %3606 = vmatprep.mubr.msk.bf16.mxu0 %vm4001_vm15, %v4000_v12 }
  0xea   : > { %3646 = vmatprep.mubr.msk.bf16.mxu1 %vm4001_vm15, %v4000_v12  ;;  %3699 = vmatpush3.bf16.msra.mxu1 %v3932_v20  ;;  %v1780_v20 = vshrl.u32 %v4567_v35, 16 }
  0xeb   : > { %3700 = vmatprep.subr.bf16.mxu1 %v4000_v12 }
  0xec   : > { %3661 = vmatpush3.bf16.msra.mxu0 %v3930_v5  ;;  %v1962_v5 = vrot.slane %v4567_v35, 2  ;;  %v3955_v35 = vld [vmem:[%s4987_s6 + $0x1c8] sm:$0xff]  }
  0xed   : > { %3662 = vmatprep.subr.bf16.mxu0 %v4000_v12 }
  0xee   : > { %3701 = vmatpush3.bf16.msra.mxu1 %v3934_v38  ;;  %v2102_v38 = vld [vmem:[#allocation2 + $0x8] sm:$0xc]  ;;  %v1963_v42 = vsel %vm1954_vm5, %v1960_v25, %v1962_v5 }
  0xef   : > { %3607 = vmatmul.mubr.bf16.gmra.mxu0 %v1378_v6  ;;  %3702 = vmatprep.subr.bf16.mxu1 %v4000_v12  ;;  %v1782_v6 = vrot.slane %v1780_v20, 1  ;;  %v3965_v25 = vld [vmem:[%s4987_s6 + $0x228] sm:$0xff]  }
  0xf0   : > { %3647 = vmatmul.mubr.bf16.gmra.mxu1 %v1583_v41  ;;  %3663 = vmatpush3.bf16.msra.mxu0 %v3933_v39  ;;  %v1778_v39 = vsel %vm1743_vm6, %v1768_v22, %v1777_v34  ;;  %v3953_v41 = vld [vmem:[#allocation2 + $0x2c] ss:$0 sps:$4 sm:$0x33]   ;;  %v2354_v22 = vshrl.u32 %v4753_v18, 16 }
  0xf1   : > { %3610 = vmatprep.mubr.msk.bf16.mxu0 %vm4001_vm15, %v4000_v12  ;;  %3650 = vmatprep.mubr.msk.bf16.mxu1 %vm4001_vm15, %v4000_v12  ;;  %v1789_v53 = vshrl.u32 %v3953_v41, 16 }
  0xf2   : > { %3664 = vmatprep.subr.bf16.mxu0 %v4000_v12  ;;  %3703 = vmatpush3.bf16.msra.mxu1 %v3937_v40  ;;  %v1785_v40 = vrot.slane %v1783_v14, 2  ;;  %v3968_v14 = vld [vmem:[%s4987_s6 + $0x218] sm:$0xff]  }
  0xf3   : > { %3704 = vmatprep.subr.bf16.mxu1 %v4000_v12  ;;  %v1791_v62 = vrot.slane %v1789_v53, 1 }
  0xf4   : > { %3665 = vmatpush3.bf16.msra.mxu0 %v3936_v43  ;;  %v4707_v43 = vld [vmem:[#allocation2 + $0x10] sm:$0xff]   ;;  %v1786_v51 = vor.u32 %v1785_v40, %v1782_v6  ;;  %v2163_v6 = vrot.slane %v4753_v18, 2 }
  0xf5   : > { %3666 = vmatprep.subr.bf16.mxu0 %v4000_v12  ;;  %v2336_v55 = vshrl.u32 %v4707_v43, 16  ;;  %v3969_v40 = vld [vmem:[%s4987_s6 + $0x210] sm:$0xff]  }
  0xf6   : > { %3705 = vmatpush3.bf16.msra.mxu1 %v3939_v49  ;;  %v4717_v49 = vcombine.low %v2102_v38, %v4699_v48  ;;  %v1787_v61 = vsel %vm1743_vm6, %v1777_v34, %v1786_v51  ;;  %v2363_v34 = vshrl.u32 %v4773_v30, 16 }
  0xf7   : > { %3611 = vmatmul.mubr.bf16.gmra.mxu0 %v1380_v45  ;;  %3762 = vmatprep.subr.bf16.mxu1 %v4000_v12  ;;  %v1792_v45 = vshll.u32 %v3953_v41, 16 }
  0xf8   : > { %3651 = vmatmul.mubr.bf16.gmra.mxu1 %v1585_v54  ;;  %3667 = vmatpush3.bf16.msra.mxu0 %v3938_v52  ;;  %v3957_v52 = vld [vmem:[%s4987_s6 + $0x1c0] sm:$0xff]   ;;  %v1964_v54 = vrot.slane %v3953_v41, 2  ;;  %v2328_v50 = vshrl.u32 %v4717_v49, 16  ;;  %v2331_v60 = vshll.u32 %v4717_v49, 16  ;;  %v2158_v58 = vrot.slane %v4717_v49, 2  ;;  %v3971_v49 = vld [vmem:[%s4987_s6 + $0x208] sm:$0xff]  }
  0xf9   : > { %3614 = vmatprep.mubr.msk.bf16.mxu0 %vm4001_vm15, %v4000_v12  ;;  %3706 = vmatprep.mubr.msk.bf16.mxu1 %vm4001_vm15, %v4000_v12  ;;  %v1794_v0 = vrot.slane %v1792_v45, 2  ;;  %v2165_v45 = vrot.slane %v4773_v30, 2 }
  0xfa   : > { %3668 = vmatprep.subr.bf16.mxu0 %v4000_v12  ;;  %v1965_v1 = vsel %vm1954_vm5, %v1962_v5, %v1964_v54  ;;  %v2333_v8 = vrot.slane %v2331_v60, 3  ;;  %v3972_v54 = vld [vmem:[%s4987_s6 + $0x200] sm:$0xff]   ;;  %v2545_v60 = vrot.slane %v4773_v30, 3 }
  0xfb   : > { %v1795_v10 = vor.u32 %v1794_v0, %v1791_v62  ;;  %v2543_v62 = vrot.slane %v4753_v18, 3  ;;  %v2516_v0 = vld [vmem:[#allocation2 + $0x8] sm:$0x8] }
  0xfc   : > { %3669 = vmatpush3.bf16.msra.mxu0 %v3941_v57  ;;  %v2339_v57 = vshll.u32 %v4707_v43, 16 }
  0xfd   : > { %3726 = vmatprep.subr.bf16.mxu0 %v4000_v12  ;;  %v1796_v37 = vsel %vm1743_vm6, %v1786_v51, %v1795_v10 }
  0xff   : > { %3615 = vmatmul.mubr.bf16.gmra.mxu0 %v1382_v2  ;;  %v2341_v2 = vrot.slane %v2339_v57, 3  ;;  %v2166_v57 = vsel %vm1954_vm5, %v2163_v6, %v2165_v45 }
 0x100   : > { %3707 = vmatmul.mubr.bf16.vlgmr.msra.gmra.mxu1 %v1957_v7  ;;  %3670 = vmatprep.mubr.msk.bf16.mxu0 %vm4001_vm15, %v4000_v12  ;;  %v2330_v7 = vrot.slane %v2328_v50, 2  ;;  %v3973_v50 = vld [vmem:[#allocation2 + $0x30] ss:$0 sps:$4 sm:$0x33]  }
 0x101   : > { %3710 = vmatprep.mubr.msk.bf16.mxu1 %vm4001_vm15, %v4000_v12  ;;  %3763 = vmatpush3.bf16.msra.mxu1 %v3943_v63  ;;  %v2338_v63 = vrot.slane %v2336_v55, 2 }
 0x102   : > { %3764 = vmatprep.subr.bf16.mxu1 %v4000_v12  ;;  %v2334_v46 = vor.u32 %v2333_v8, %v2330_v7 }
 0x105   : > { %3765 = vmatpush3.bf16.msra.mxu1 %v3945_v11  ;;  %v2342_v11 = vor.u32 %v2341_v2, %v2338_v63  ;;  %v2546_v63 = vsel %vm2537_vm8, %v2543_v62, %v2545_v60  ;;  %v3266_v2 = vcombine.low %v2516_v0, %v4699_v48 }
 0x106   : > { %3766 = vmatprep.subr.bf16.mxu1 %v4000_v12 }
 0x107   : > { %3671 = vmatmul.mubr.bf16.vlgmr.msra.gmra.mxu0 %v1760_v56  ;;  %v2347_v56 = vrot.slane %v2345_v15, 2  ;;  %v2538_v7 = vrot.slane %v3266_v2, 3  ;;  %v2541_v15 = vrot.slane %v4734_v3, 3 }
 0x108   : > { %3727 = vmatpush3.bf16.msra.mxu0 %v3942_v33  ;;  %3711 = vmatmul.mubr.bf16.gmra.mxu1 %v1959_v17  ;;  %v2343_v33 = vsel %vm2326_vm7, %v2334_v46, %v2342_v11  ;;  %v2159_v17 = vrot.slane %v4707_v43, 2 }
 0x109   : > { %3728 = vmatprep.subr.bf16.mxu0 %v4000_v12  ;;  %3674 = vmatprep.mubr.msk.bf16.mxu0 %vm4001_vm15, %v4000_v12 }
 0x10a   : > { %3714 = vmatprep.mubr.msk.bf16.mxu1 %vm4001_vm15, %v4000_v12  ;;  %3767 = vmatpush3.bf16.msra.mxu1 %v3947_v19  ;;  %v3963_v19 = vld [vmem:[%s4987_s6 + $0x230] sm:$0xff]   ;;  %v2160_v24 = vsel %vm1954_vm5, %v2158_v58, %v2159_v17 }
 0x10b   : > { %3768 = vmatprep.subr.bf16.mxu1 %v4000_v12 }
 0x10c   : > { %3729 = vmatpush3.bf16.msra.mxu0 %v3944_v21  ;;  %v2351_v21 = vor.u32 %v2350_v9, %v2347_v56 }
 0x10d   : > { %3730 = vmatprep.subr.bf16.mxu0 %v4000_v12 }
 0x10e   : > { %3769 = vmatpush3.bf16.msra.mxu1 %v3948_v23  ;;  %v2357_v23 = vshll.u32 %v4753_v18, 16 }
 0x10f   : > { %3675 = vmatmul.mubr.bf16.gmra.mxu0 %v1769_v47  ;;  %3770 = vmatprep.subr.bf16.mxu1 %v4000_v12  ;;  %v2356_v47 = vrot.slane %v2354_v22, 2 }
 0x110   : > { %3715 = vmatmul.mubr.bf16.gmra.mxu1 %v1961_v29  ;;  %3731 = vmatpush3.bf16.msra.mxu0 %v3946_v27  ;;  %v2352_v27 = vsel %vm2326_vm7, %v2342_v11, %v2351_v21  ;;  %v2359_v13 = vrot.slane %v2357_v23, 3  ;;  %v3966_v29 = vld [vmem:[%s4987_s6 + $0x220] sm:$0xff]  }
 0x111   : > { %3732 = vmatprep.subr.bf16.mxu0 %v4000_v12  ;;  %3678 = vmatprep.mubr.msk.bf16.mxu0 %vm4001_vm15, %v4000_v12 }
 0x112   : > { %3718 = vmatprep.mubr.msk.bf16.mxu1 %vm4001_vm15, %v4000_v12  ;;  %3771 = vmatpush3.bf16.msra.mxu1 %v3950_v31  ;;  %v2161_v31 = vrot.slane %v4734_v3, 2 }
 0x113   : > { %3772 = vmatprep.subr.bf16.mxu1 %v4000_v12 }
 0x114   : > { %3733 = vmatpush3.bf16.msra.mxu0 %v3949_v32  ;;  %v2360_v32 = vor.u32 %v2359_v13, %v2356_v47  ;;  %v2162_v20 = vsel %vm1954_vm5, %v2159_v17, %v2161_v31 }
 0x115   : > { %3734 = vmatprep.subr.bf16.mxu0 %v4000_v12 }
 0x116   : > { %3773 = vmatpush3.bf16.msra.mxu1 %v3952_v26  ;;  %v2366_v26 = vshll.u32 %v4773_v30, 16  ;;  %v2361_v5 = vsel %vm2326_vm7, %v2351_v21, %v2360_v32 }
 0x117   : > { %3679 = vmatmul.mubr.bf16.gmra.mxu0 %v1778_v39  ;;  %3774 = vmatprep.subr.bf16.mxu1 %v4000_v12  ;;  %v3970_v39 = vld [vmem:[#allocation2 + $0x30] ss:$0 sps:$4 sm:$0x77]  }
 0x118   : > { %3719 = vmatmul.mubr.bf16.gmra.mxu1 %v1963_v42  ;;  %3735 = vmatpush3.bf16.msra.mxu0 %v3951_v36  ;;  %v2365_v36 = vrot.slane %v2363_v34, 2  ;;  %v2368_v38 = vrot.slane %v2366_v26, 3  ;;  %v2375_v42 = vshll.u32 %v3970_v39, 16  ;;  %v2547_v8 = vrot.slane %v3970_v39, 3 }
 0x119   : > { %3682 = vmatprep.mubr.msk.bf16.mxu0 %vm4001_vm15, %v4000_v12  ;;  %3722 = vmatprep.mubr.msk.bf16.mxu1 %vm4001_vm15, %v4000_v12 }
 0x11a   : > { %3736 = vmatprep.subr.bf16.mxu0 %v4000_v12  ;;  %3775 = vmatpush3.bf16.msra.mxu1 %v3955_v35  ;;  %v2369_v41 = vor.u32 %v2368_v38, %v2365_v36  ;;  %v2372_v35 = vshrl.u32 %v3970_v39, 16  ;;  %v2377_v53 = vrot.slane %v2375_v42, 3  ;;  %v2548_v11 = vsel %vm2537_vm8, %v2545_v60, %v2547_v8 }
 0x11b   : > { %3776 = vmatprep.subr.bf16.mxu1 %v4000_v12 }
 0x11c   : > { %3737 = vmatpush3.bf16.msra.mxu0 %v3954_v44  ;;  %v2164_v44 = vsel %vm1954_vm5, %v2161_v31, %v2163_v6  ;;  %v2370_v51 = vsel %vm2326_vm7, %v2360_v32, %v2369_v41 }
 0x11d   : > { %3738 = vmatprep.subr.bf16.mxu0 %v4000_v12 }
 0x11e   : > { %3777 = vmatpush3.bf16.msra.mxu1 %v3957_v52  ;;  %v2374_v52 = vrot.slane %v2372_v35, 2 }
 0x11f   : > { %3683 = vmatmul.mubr.bf16.gmra.mxu0 %v1787_v61  ;;  %3834 = vmatprep.subr.bf16.mxu1 %v4000_v12  ;;  %v2167_v61 = vrot.slane %v3973_v50, 2 }
 0x120   : > { %3723 = vmatmul.mubr.bf16.gmra.mxu1 %v1965_v1  ;;  %3739 = vmatpush3.bf16.msra.mxu0 %v3956_v59  ;;  %v2378_v55 = vor.u32 %v2377_v53, %v2374_v52 }
 0x121   : > { %3686 = vmatprep.mubr.msk.bf16.mxu0 %vm4001_vm15, %v4000_v12  ;;  %3778 = vmatprep.mubr.msk.bf16.mxu1 %vm4001_vm15, %v4000_v12  ;;  %v2168_v1 = vsel %vm1954_vm5, %v2165_v45, %v2167_v61 }
 0x122   : > { %3740 = vmatprep.subr.bf16.mxu0 %v4000_v12  ;;  %v2379_v59 = vsel %vm2326_vm7, %v2369_v41, %v2378_v55 }
 0x124   : > { %3741 = vmatpush3.bf16.msra.mxu0 %v3960_v4  ;;  %v2539_v4 = vrot.slane %v4707_v43, 3  ;;  %v2544_v43 = vsel %vm2537_vm8, %v2541_v15, %v2543_v62 }
 0x125   : > { %3798 = vmatprep.subr.bf16.mxu0 %v4000_v12 }
 0x126   : > { %v2540_v10 = vsel %vm2537_vm8, %v2538_v7, %v2539_v4  ;;  %v2542_v48 = vsel %vm2537_vm8, %v2539_v4, %v2541_v15 }
 0x127   : > { %3687 = vmatmul.mubr.bf16.gmra.mxu0 %v1796_v37 }
 0x128   : > { %3779 = vmatmul.mubr.bf16.vlgmr.msra.gmra.mxu1 %v2343_v33  ;;  %3742 = vmatprep.mubr.msk.bf16.mxu0 %vm4001_vm15, %v4000_v12 }
 0x129   : > { %3782 = vmatprep.mubr.msk.bf16.mxu1 %vm4001_vm15, %v4000_v12  ;;  %3842 = vmatpush3.bf16.msra.mxu1 %v3961_v16 }
 0x12a   : > { %3835 = vmatprep.subr.bf16.mxu1 %v4000_v12 }
 0x12d   : > { %3843 = vmatpush3.bf16.msra.mxu1 %v3963_v19 }
 0x12e   : > { %3836 = vmatprep.subr.bf16.mxu1 %v4000_v12 }
 0x12f   : > { %3743 = vmatmul.mubr.bf16.vlgmr.msra.gmra.mxu0 %v2160_v24 }
 0x130   : > { %3799 = vmatpush3.bf16.msra.mxu0 %v3961_v16  ;;  %3783 = vmatmul.mubr.bf16.gmra.mxu1 %v2352_v27 }
 0x131   : > { %3800 = vmatprep.subr.bf16.mxu0 %v4000_v12  ;;  %3746 = vmatprep.mubr.msk.bf16.mxu0 %vm4001_vm15, %v4000_v12 }
 0x132   : > { %3786 = vmatprep.mubr.msk.bf16.mxu1 %vm4001_vm15, %v4000_v12  ;;  %3844 = vmatpush3.bf16.msra.mxu1 %v3965_v25 }
 0x133   : > { %3837 = vmatprep.subr.bf16.mxu1 %v4000_v12 }
 0x134   : > { %3801 = vmatpush3.bf16.msra.mxu0 %v3963_v19 }
 0x135   : > { %3802 = vmatprep.subr.bf16.mxu0 %v4000_v12 }
 0x136   : > { %3845 = vmatpush3.bf16.msra.mxu1 %v3966_v29 }
 0x137   : > { %3747 = vmatmul.mubr.bf16.gmra.mxu0 %v2162_v20  ;;  %3838 = vmatprep.subr.bf16.mxu1 %v4000_v12 }
 0x138   : > { %3787 = vmatmul.mubr.bf16.gmra.mxu1 %v2361_v5  ;;  %3803 = vmatpush3.bf16.msra.mxu0 %v3965_v25 }
 0x139   : > { %3804 = vmatprep.subr.bf16.mxu0 %v4000_v12  ;;  %3750 = vmatprep.mubr.msk.bf16.mxu0 %vm4001_vm15, %v4000_v12 }
 0x13a   : > { %3790 = vmatprep.mubr.msk.bf16.mxu1 %vm4001_vm15, %v4000_v12  ;;  %3846 = vmatpush3.bf16.msra.mxu1 %v3968_v14 }
 0x13b   : > { %3839 = vmatprep.subr.bf16.mxu1 %v4000_v12 }
 0x13c   : > { %3805 = vmatpush3.bf16.msra.mxu0 %v3966_v29 }
 0x13d   : > { %3806 = vmatprep.subr.bf16.mxu0 %v4000_v12 }
 0x13e   : > { %3847 = vmatpush3.bf16.msra.mxu1 %v3969_v40 }
 0x13f   : > { %3751 = vmatmul.mubr.bf16.gmra.mxu0 %v2164_v44  ;;  %3840 = vmatprep.subr.bf16.mxu1 %v4000_v12 }
 0x140   : > { %3791 = vmatmul.mubr.bf16.gmra.mxu1 %v2370_v51  ;;  %3807 = vmatpush3.bf16.msra.mxu0 %v3968_v14 }
 0x141   : > { %3754 = vmatprep.mubr.msk.bf16.mxu0 %vm4001_vm15, %v4000_v12  ;;  %3794 = vmatprep.mubr.msk.bf16.mxu1 %vm4001_vm15, %v4000_v12 }
 0x142   : > { %3808 = vmatprep.subr.bf16.mxu0 %v4000_v12  ;;  %3848 = vmatpush3.bf16.msra.mxu1 %v3971_v49 }
 0x143   : > { %3841 = vmatprep.subr.bf16.mxu1 %v4000_v12 }
 0x144   : > { %3809 = vmatpush3.bf16.msra.mxu0 %v3969_v40 }
 0x145   : > { %3810 = vmatprep.subr.bf16.mxu0 %v4000_v12 }
 0x146   : > { %3849 = vmatpush3.bf16.msra.mxu1 %v3972_v54 }
 0x147   : > { %3755 = vmatmul.mubr.bf16.gmra.mxu0 %v2166_v57 }
 0x148   : > { %3795 = vmatmul.mubr.bf16.gmra.mxu1 %v2379_v59  ;;  %3811 = vmatpush3.bf16.msra.mxu0 %v3971_v49 }
 0x149   : > { %3758 = vmatprep.mubr.msk.bf16.mxu0 %vm4001_vm15, %v4000_v12  ;;  %3826 = vmatprep.mubr.msk.bf16.mxu1 %vm4001_vm15, %v4000_v12 }
 0x14a   : > { %3812 = vmatprep.subr.bf16.mxu0 %v4000_v12 }
 0x14c   : > { %3813 = vmatpush3.bf16.msra.mxu0 %v3972_v54 }
 0x14f   : > { %3759 = vmatmul.mubr.bf16.gmra.mxu0 %v2168_v1 }
 0x150   : > { %3827 = vmatmul.mubr.bf16.vlgmr.msra.gmra.mxu1 %v2546_v63  ;;  %3814 = vmatprep.mubr.msk.bf16.mxu0 %vm4001_vm15, %v4000_v12 }
 0x151   : > { %3830 = vmatprep.mubr.msk.bf16.mxu1 %vm4001_vm15, %v4000_v12 }
 0x157   : > { %3815 = vmatmul.mubr.bf16.vlgmr.msra.gmra.mxu0 %v2540_v10 }
 0x158   : > { %3831 = vmatmul.mubr.bf16.gmra.mxu1 %v2548_v11  ;;  %3818 = vmatprep.mubr.msk.bf16.mxu0 %vm4001_vm15, %v4000_v12 }
 0x15f   : > { %3819 = vmatmul.mubr.bf16.gmra.mxu0 %v2542_v48 }
 0x160   : > { %3822 = vmatprep.mubr.msk.bf16.mxu0 %vm4001_vm15, %v4000_v12 }
 0x167   : > { %3823 = vmatmul.mubr.bf16.gmra.mxu0 %v2544_v43 }
 0x170   : > { %v1311_v28 = vpop.f32.mrf.mxu1 }
 0x172   : > { %v3564_v46 = vpop.f32.mrf.mxu1 }
 0x174   : > { %v1314_v16 = vpop.f32.mrf.mxu1 }
 0x176   : > { %v3565_v37 = vpop.f32.mrf.mxu1 }
 0x177   : > { %v1185_v33 = vpop.f32.mrf.mxu0 }
 0x178   : > { %v1312_v56 = vadd.f32 %v1311_v28, %v1185_v33  ;;  %v1319_v9 = vpop.f32.mrf.mxu1 }
 0x179   : > { %v3528_v18 = vpop.f32.mrf.mxu0 }
 0x17a   : > { %v3568_v19 = vpop.f32.mrf.mxu1 }
 0x17b   : > { %v1188_v17 = vpop.f32.mrf.mxu0 }
 0x17c   : > { %v1315_v3 = vadd.f32 %v1314_v16, %v1188_v17  ;;  %v1322_v21 = vpop.f32.mrf.mxu1 }
 0x17d   : > { %v3529_v22 = vpop.f32.mrf.mxu0 }
 0x17e   : > { %v3569_v23 = vpop.f32.mrf.mxu1 }
 0x17f   : > { %v1193_v58 = vpop.f32.mrf.mxu0 }
 0x180   : > { %v1320_v24 = vadd.f32 %v1319_v9, %v1193_v58  ;;  %v1327_v12 = vpop.f32.mrf.mxu1 }
 0x181   : > { %v3532_v25 = vpop.f32.mrf.mxu0 }
 0x182   : > { %v3572_v27 = vpop.f32.mrf.mxu1 }
 0x183   : > { %v1196_v47 = vpop.f32.mrf.mxu0 }
 0x184   : > { %v1323_v13 = vadd.f32 %v1322_v21, %v1196_v47  ;;  %v1330_v30 = vpop.f32.mrf.mxu1 }
 0x185   : > { %v3533_v31 = vpop.f32.mrf.mxu0 }
 0x186   : > { %v3573_v29 = vpop.f32.mrf.mxu1 }
 0x187   : > { %v1201_v32 = vpop.f32.mrf.mxu0 }
 0x188   : > { %v1328_v34 = vadd.f32 %v1327_v12, %v1201_v32  ;;  %v1335_v26 = vpop.f32.mrf.mxu1 }
 0x189   : > { %v3536_v20 = vpop.f32.mrf.mxu0 }
 0x18a   : > { %v3576_v14 = vpop.f32.mrf.mxu1 }
 0x18b   : > { %v1204_v5 = vpop.f32.mrf.mxu0 }
 0x18c   : > { %v1331_v36 = vadd.f32 %v1330_v30, %v1204_v5  ;;  %v1338_v38 = vpop.f32.mrf.mxu1 }
 0x18d   : > { %v3537_v39 = vpop.f32.mrf.mxu0 }
 0x18e   : > { %v3577_v6 = vpop.f32.mrf.mxu1 }
 0x18f   : > { %v1209_v40 = vpop.f32.mrf.mxu0 }
 0x190   : > { %v1336_v41 = vadd.f32 %v1335_v26, %v1209_v40  ;;  %v1343_v35 = vpop.f32.mrf.mxu1 }
 0x191   : > { %v3540_v42 = vpop.f32.mrf.mxu0 }
 0x192   : > { %v3580_v44 = vpop.f32.mrf.mxu1 }
 0x193   : > { %v1212_v49 = vpop.f32.mrf.mxu0 }
 0x194   : > { %v1339_v51 = vadd.f32 %v1338_v38, %v1212_v49  ;;  %v1346_v52 = vpop.f32.mrf.mxu1 }
 0x195   : > { %v3541_v53 = vpop.f32.mrf.mxu0 }
 0x196   : > { %v3581_v45 = vpop.f32.mrf.mxu1 }
 0x197   : > { %v1217_v54 = vpop.f32.mrf.mxu0 }
 0x198   : > { %v1344_v55 = vadd.f32 %v1343_v35, %v1217_v54  ;;  %v1673_v57 = vpop.f32.mrf.mxu1 }
 0x199   : > { %v3544_v59 = vpop.f32.mrf.mxu0 }
 0x19a   : > { %v3636_v50 = vpop.f32.mrf.mxu1 }
 0x19b   : > { %v1220_v60 = vpop.f32.mrf.mxu0 }
 0x19c   : > { %v1347_v61 = vadd.f32 %v1346_v52, %v1220_v60  ;;  %v1676_v62 = vpop.f32.mrf.mxu1 }
 0x19d   : > { %v3545_v0 = vpop.f32.mrf.mxu0 }
 0x19e   : > { %v3637_v1 = vpop.f32.mrf.mxu1 }
 0x19f   : > { %v1470_v63 = vpop.f32.mrf.mxu0 }
 0x1a0   : > { %v1509_v2 = vadd.f32 %v1470_v63, %v1312_v56  ;;  %v1681_v4 = vpop.f32.mrf.mxu1 }
 0x1a1   : > { %v3600_v7 = vpop.f32.mrf.mxu0 }
 0x1a2   : > { %v3640_v8 = vpop.f32.mrf.mxu1  ;;  %v1712_v10 = vadd.f32 %v1673_v57, %v1509_v2 }
 0x1a3   : > { %v1473_v11 = vpop.f32.mrf.mxu0 }
 0x1a4   : > { %v1510_v15 = vadd.f32 %v1473_v11, %v1315_v3  ;;  %v1684_v48 = vpop.f32.mrf.mxu1 }
 0x1a5   : > { %v3601_v43 = vpop.f32.mrf.mxu0 }
 0x1a6   : > { %v3641_v28 = vpop.f32.mrf.mxu1  ;;  %v1713_v46 = vadd.f32 %v1676_v62, %v1510_v15 }
 0x1a7   : > { %v1478_v16 = vpop.f32.mrf.mxu0 }
 0x1a8   : > { %v1511_v37 = vadd.f32 %v1478_v16, %v1320_v24  ;;  %v1689_v33 = vpop.f32.mrf.mxu1 }
 0x1a9   : > { %v3604_v9 = vpop.f32.mrf.mxu0 }
 0x1aa   : > { %v3644_v18 = vpop.f32.mrf.mxu1  ;;  %v1714_v19 = vadd.f32 %v1681_v4, %v1511_v37 }
 0x1ab   : > { %v1481_v17 = vpop.f32.mrf.mxu0 }
 0x1ac   : > { %v1512_v21 = vadd.f32 %v1481_v17, %v1323_v13  ;;  %v1692_v22 = vpop.f32.mrf.mxu1 }
 0x1ad   : > { %v3605_v56 = vpop.f32.mrf.mxu0 }
 0x1ae   : > { %v3645_v23 = vpop.f32.mrf.mxu1  ;;  %v1715_v58 = vadd.f32 %v1684_v48, %v1512_v21 }
 0x1af   : > { %v1486_v12 = vpop.f32.mrf.mxu0 }
 0x1b0   : > { %v1513_v25 = vadd.f32 %v1486_v12, %v1328_v34  ;;  %v1697_v27 = vpop.f32.mrf.mxu1 }
 0x1b1   : > { %v3608_v3 = vpop.f32.mrf.mxu0 }
 0x1b2   : > { %v3648_v47 = vpop.f32.mrf.mxu1  ;;  %v1716_v30 = vadd.f32 %v1689_v33, %v1513_v25 }
 0x1b3   : > { %v1489_v31 = vpop.f32.mrf.mxu0 }
 0x1b4   : > { %v1514_v29 = vadd.f32 %v1489_v31, %v1331_v36  ;;  %v1700_v32 = vpop.f32.mrf.mxu1 }
 0x1b5   : > { %v3609_v24 = vpop.f32.mrf.mxu0 }
 0x1b6   : > { %v3649_v26 = vpop.f32.mrf.mxu1  ;;  %v1717_v20 = vadd.f32 %v1692_v22, %v1514_v29 }
 0x1b7   : > { %v1494_v14 = vpop.f32.mrf.mxu0 }
 0x1b8   : > { %v1515_v5 = vadd.f32 %v1494_v14, %v1336_v41  ;;  %v1705_v38 = vpop.f32.mrf.mxu1 }
 0x1b9   : > { %v3612_v13 = vpop.f32.mrf.mxu0 }
 0x1ba   : > { %v3652_v39 = vpop.f32.mrf.mxu1  ;;  %v4848_v6 = vadd.f32 %v1697_v27, %v1515_v5 }
 0x1bb   : > { %v1497_v40 = vpop.f32.mrf.mxu0 }
 0x1bc   : > { %v1516_v35 = vadd.f32 %v1497_v40, %v1339_v51  ;;  %v1708_v34 = vpop.f32.mrf.mxu1 }
 0x1bd   : > { %v3613_v42 = vpop.f32.mrf.mxu0 }
 0x1be   : > { %v3653_v44 = vpop.f32.mrf.mxu1  ;;  %v4850_v49 = vadd.f32 %v1700_v32, %v1516_v35 }
 0x1bf   : > { %v1502_v52 = vpop.f32.mrf.mxu0 }
 0x1c0   : > { %v1517_v36 = vadd.f32 %v1502_v52, %v1344_v55  ;;  %v2053_v53 = vpop.f32.mrf.mxu1 }
 0x1c1   : > { %v3616_v45 = vpop.f32.mrf.mxu0 }
 0x1c2   : > { %v3708_v54 = vpop.f32.mrf.mxu1  ;;  %v4852_v57 = vadd.f32 %v1705_v38, %v1517_v36 }
 0x1c3   : > { %v1505_v41 = vpop.f32.mrf.mxu0 }
 0x1c4   : > { %v1518_v59 = vadd.f32 %v1505_v41, %v1347_v61  ;;  %v2056_v50 = vpop.f32.mrf.mxu1 }
 0x1c5   : > { %v3617_v60 = vpop.f32.mrf.mxu0 }
 0x1c6   : > { %v3709_v62 = vpop.f32.mrf.mxu1  ;;  %v4854_v0 = vadd.f32 %v1708_v34, %v1518_v59 }
 0x1c7   : > { %v1884_v51 = vpop.f32.mrf.mxu0 }
 0x1c8   : > { %v1923_v1 = vadd.f32 %v1884_v51, %v1712_v10  ;;  %v2061_v63 = vpop.f32.mrf.mxu1 }
 0x1c9   : > { %v3672_v2 = vpop.f32.mrf.mxu0 }
 0x1ca   : > { %v3712_v4 = vpop.f32.mrf.mxu1  ;;  %v4856_v7 = vadd.f32 %v2053_v53, %v1923_v1 }
 0x1cb   : > { %v1887_v55 = vpop.f32.mrf.mxu0 }
 0x1cc   : > { %v1924_v8 = vadd.f32 %v1887_v55, %v1713_v46  ;;  %v2064_v11 = vpop.f32.mrf.mxu1 }
 0x1cd   : > { %v3673_v15 = vpop.f32.mrf.mxu0 }
 0x1ce   : > { %v3713_v48 = vpop.f32.mrf.mxu1  ;;  %v4858_v43 = vadd.f32 %v2056_v50, %v1924_v8 }
 0x1cf   : > { %v1892_v61 = vpop.f32.mrf.mxu0 }
 0x1d0   : > { %v1925_v28 = vadd.f32 %v1892_v61, %v1714_v19  ;;  %v2069_v16 = vpop.f32.mrf.mxu1  ;;  %v4890_v61 = vpop.permute.xlu0 %2732 }
 0x1d1   : > { %v3676_v37 = vpop.f32.mrf.mxu0  ;;  %vm2761_vm10 = vcmp.eq.s32.totalorder %v4890_v61, 1 }
 0x1d2   : > { %v3716_v33 = vpop.f32.mrf.mxu1  ;;  %v4860_v9 = vadd.f32 %v2061_v63, %v1925_v28  ;;  %v4892_v37 = vpop.permute.xlu1 %2735 }
 0x1d3   : > { %v1895_v10 = vpop.f32.mrf.mxu0  ;;  %vm2762_vm12 = vcmp.eq.s32.totalorder %v4892_v37, 1 }
 0x1d4   : > { %v1926_v18 = vadd.f32 %v1895_v10, %v1715_v58  ;;  %v2072_v17 = vpop.f32.mrf.mxu1 }
 0x1d5   : > { %v3677_v21 = vpop.f32.mrf.mxu0 }
 0x1d6   : > { %v3717_v22 = vpop.f32.mrf.mxu1  ;;  %v4862_v56 = vadd.f32 %v2064_v11, %v1926_v18 }
 0x1d7   : > { %v1900_v46 = vpop.f32.mrf.mxu0  ;;  %v4897_v22 = vpop.permute.xlu0 %2738 }
 0x1d8   : > { %v1927_v23 = vadd.f32 %v1900_v46, %v1716_v30  ;;  %v2077_v12 = vpop.f32.mrf.mxu1  ;;  %vm2763_vm13 = vcmp.eq.s32.totalorder %v4897_v22, 1 }
 0x1d9   : > { %v3680_v25 = vpop.f32.mrf.mxu0 }
 0x1da   : > { %v3720_v27 = vpop.f32.mrf.mxu1  ;;  %v4864_v3 = vadd.f32 %v2069_v16, %v1927_v23  ;;  %v4899_v25 = vpop.permute.xlu1 %2741 }
 0x1db   : > { %v1903_v19 = vpop.f32.mrf.mxu0  ;;  %vm2764_vm14 = vcmp.eq.s32.totalorder %v4899_v25, 1 }
 0x1dc   : > { %v1928_v47 = vadd.f32 %v1903_v19, %v1717_v20  ;;  %v2080_v31 = vpop.f32.mrf.mxu1 }
 0x1dd   : > { %v3681_v29 = vpop.f32.mrf.mxu0 }
 0x1de   : > { %v3721_v32 = vpop.f32.mrf.mxu1  ;;  %v4866_v24 = vadd.f32 %v2072_v17, %v1928_v47 }
 0x1df   : > { %v1908_v58 = vpop.f32.mrf.mxu0 }
 0x1e0   : > { %v4868_v26 = vpop.f32.mrf.mxu1  ;;  %v1929_v18 = vadd.f32 %v1908_v58, %v4848_v6 }
 0x1e1   : > { %v3684_v14 = vpop.f32.mrf.mxu0 }
 0x1e2   : > { %v3724_v5 = vpop.f32.mrf.mxu1  ;;  %v2098_v19 = vadd.f32 %v2077_v12, %v1929_v18 }
 0x1e3   : > { %v1911_v38 = vpop.f32.mrf.mxu0 }
 0x1e4   : > { %v4870_v13 = vpop.f32.mrf.mxu1  ;;  %v1930_v27 = vadd.f32 %v1911_v38, %v4850_v49  ;;  %v4916_v49 = vld [vmem:[%s4988_s7] ss:$0 sm:$0xff] }
 0x1e5   : > { %v3685_v30 = vpop.f32.mrf.mxu0 }
 0x1e6   : > { %v3725_v39 = vpop.f32.mrf.mxu1  ;;  %v4902_v30 = vpop.permute.xlu0 %2744  ;;  %v2099_v58 = vadd.f32 %v2080_v31, %v1930_v27 }
 0x1e7   : > { %v1916_v40 = vpop.f32.mrf.mxu0  ;;  %vm2765_vm0 = vcmp.eq.s32.totalorder %v4902_v30, 1 }
 0x1e8   : > { %v4872_v35 = vpop.f32.mrf.mxu1  ;;  %v1931_v6 = vadd.f32 %v1916_v40, %v4852_v57 }
 0x1e9   : > { %v3688_v34 = vpop.f32.mrf.mxu0 }
 0x1ea   : > { %v3780_v20 = vpop.f32.mrf.mxu1  ;;  %v2100_v31 = vadd.f32 %v4868_v26, %v1931_v6 }
 0x1eb   : > { %v1919_v42 = vpop.f32.mrf.mxu0  ;;  %v4905_v20 = vpop.permute.xlu1 %2747 }
 0x1ec   : > { %v4874_v44 = vpop.f32.mrf.mxu1  ;;  %v1932_v12 = vadd.f32 %v1919_v42, %v4854_v0  ;;  %vm2766_vm2 = vcmp.eq.s32.totalorder %v4905_v20, 1 }
 0x1ed   : > { %v3689_v52 = vpop.f32.mrf.mxu0 }
 0x1ee   : > { %v3781_v36 = vpop.f32.mrf.mxu1  ;;  %v2101_v0 = vadd.f32 %v4870_v13, %v1932_v12 }
 0x1ef   : > { %v2256_v53 = vpop.f32.mrf.mxu0 }
 0x1f0   : > { %v4876_v45 = vpop.f32.mrf.mxu1 }
 0x1f1   : > { %v3744_v54 = vpop.f32.mrf.mxu0 }
 0x1f2   : > { %v3784_v41 = vpop.f32.mrf.mxu1 }
 0x1f3   : > { %v2259_v59 = vpop.f32.mrf.mxu0  ;;  %v2295_v41 = vadd.f32 %v2256_v53, %v4856_v7 }
 0x1f4   : > { %v4878_v50 = vpop.f32.mrf.mxu1  ;;  %v2296_v18 = vadd.f32 %v2259_v59, %v4858_v43 }
 0x1f5   : > { %v3745_v60 = vpop.f32.mrf.mxu0 }
 0x1f6   : > { %v3785_v62 = vpop.f32.mrf.mxu1 }
 0x1f7   : > { %v4880_v51 = vpop.f32.mrf.mxu0  ;;  %v2751_v62 = vpop.permute.xlu0 %2750 }
 0x1f8   : > { %v4882_v1 = vpop.f32.mrf.mxu1  ;;  %vm2767_vm15 = vcmp.eq.s32.totalorder %v2751_v62, 1 }
 0x1f9   : > { %v3748_v63 = vpop.f32.mrf.mxu0 }
 0x1fa   : > { %v3788_v2 = vpop.f32.mrf.mxu1 }
 0x1fb   : > { %v4884_v4 = vpop.f32.mrf.mxu0  ;;  %v2757_v59 = vpop.permute.xlu0 %2756 }
 0x1fc   : > { %v4886_v55 = vpop.f32.mrf.mxu1  ;;  %vm2769_vm11 = vcmp.eq.s32.totalorder %v2757_v59, 1 }
 0x1fd   : > { %v3749_v8 = vpop.f32.mrf.mxu0 }
 0x1fe   : > { %v3789_v11 = vpop.f32.mrf.mxu1  ;;  %v3387_v8 = vld [vmem:[%s4911_s15 + $0x18] sm:$0xff]  }
 0x1ff   : > { %v4888_v15 = vpop.f32.mrf.mxu0  ;;  %v3350_v7 = vunpack.c.h.bf16 %v3387_v8 }
 0x200   : > { %v2491_v48 = vpop.f32.mrf.mxu1 }
 0x201   : > { %v3752_v28 = vpop.f32.mrf.mxu0 }
 0x202   : > { %v3792_v16 = vpop.f32.mrf.mxu1 }
 0x203   : > { %v4894_v33 = vpop.f32.mrf.mxu0  ;;  %v2754_v16 = vpop.permute.xlu1 %2753 }
 0x204   : > { %v2494_v10 = vpop.f32.mrf.mxu1  ;;  %vm2768_vm9 = vcmp.eq.s32.totalorder %v2754_v16, 1 }
 0x205   : > { %v3753_v17 = vpop.f32.mrf.mxu0 }
 0x206   : > { %v3793_v21 = vpop.f32.mrf.mxu1  ;;  %v3349_v17 = vunpack.c.l.bf16 %v3387_v8 }
 0x207   : > { %v2280_v46 = vpop.f32.mrf.mxu0  ;;  %v2506_v21 = vadd.f32 %v4872_v35, %v2295_v41  ;;  %v2297_v35 = vadd.f32 %v4880_v51, %v4860_v9 }
 0x208   : > { %v2499_v23 = vpop.f32.mrf.mxu1  ;;  %v2301_v32 = vadd.f32 %v2280_v46, %v2098_v19 }
 0x209   : > { %v3756_v47 = vpop.f32.mrf.mxu0 }
 0x20a   : > { %v3796_v29 = vpop.f32.mrf.mxu1  ;;  %v2512_v54 = vadd.f32 %v2491_v48, %v2301_v32  ;;  %v3336_v32 = vld [vmem:[%s4911_s15] sm:$0xff]  }
 0x20b   : > { %v2283_v14 = vpop.f32.mrf.mxu0  ;;  %v3337_v51 = vunpack.c.l.bf16 %v3336_v32 }
 0x20c   : > { %v2502_v5 = vpop.f32.mrf.mxu1  ;;  %v2302_v52 = vadd.f32 %v2283_v14, %v2099_v58  ;;  %v2507_v58 = vadd.f32 %v4874_v44, %v2296_v18 }
 0x20d   : > { %v3757_v39 = vpop.f32.mrf.mxu0 }
 0x20e   : > { %v3797_v34 = vpop.f32.mrf.mxu1  ;;  %v2513_v48 = vadd.f32 %v2494_v10, %v2302_v52 }
 0x20f   : > { %v2288_v36 = vpop.f32.mrf.mxu0 }
 0x210   : > { %v2660_v57 = vpop.f32.mrf.mxu1  ;;  %v2303_v63 = vadd.f32 %v2288_v36, %v2100_v31  ;;  %v3388_v36 = vld [vmem:[%s4911_s15 + $0x20] sm:$0xff]  }
 0x211   : > { %v2681_v38 = vadd.f32 %v2660_v57, %v2512_v54  ;;  %v3760_v40 = vpop.f32.mrf.mxu0  ;;  %v3353_v41 = vunpack.c.l.bf16 %v3388_v36 }
 0x212   : > { %v3828_v60 = vpop.f32.mrf.mxu1  ;;  %v2514_v47 = vadd.f32 %v2499_v23, %v2303_v63  ;;  %v2298_v40 = vadd.f32 %v4884_v4, %v4862_v56 }
 0x213   : > { %v2717_v2 = vadd.f32 %v4916_v49, %v2681_v38  ;;  %v2291_v11 = vpop.f32.mrf.mxu0  ;;  %v2760_v38 = vpop.permute.xlu1 %2759  ;;  %v3338_v60 = vunpack.c.h.bf16 %v3336_v32 }
 0x214   : > { %v2663_v28 = vpop.f32.mrf.mxu1  ;;  %v2304_v27 = vadd.f32 %v2291_v11, %v2101_v0  ;;  %vm2770_vm1 = vcmp.eq.s32.totalorder %v2760_v38, 1 }
 0x215   : > { %v2682_v42 = vadd.f32 %v2663_v28, %v2513_v48  ;;  %v3761_v26 = vpop.f32.mrf.mxu0  ;;  %v2777_v46 = vsel %vm2767_vm15, %v2717_v2, 0.0  ;;  %v2508_v48 = vadd.f32 %v4876_v45, %v2297_v35  ;;  %v2299_v45 = vadd.f32 %v4888_v15, %v4864_v3 }
 0x216   : > { %v3829_v53 = vpop.f32.mrf.mxu1  ;;  %v2807_v39 = vadd.f32 %v3349_v17, %v2777_v46  ;;  %v2515_v57 = vadd.f32 %v2502_v5, %v2304_v27  ;;  %v3354_v5 = vunpack.c.h.bf16 %v3388_v36  ;;  %v2509_v17 = vadd.f32 %v4878_v50, %v2298_v40 }
 0x217   : > { %v2718_v19 = vadd.f32 %v4916_v49, %v2682_v42  ;;  %v2636_v10 = vpop.f32.mrf.mxu0  ;;  %v2510_v59 = vadd.f32 %v4882_v1, %v2299_v45 }
 0x218   : > { %v2675_v43 = vadd.f32 %v2636_v10, %v2506_v21  ;;  %v2668_v13 = vpop.f32.mrf.mxu1  ;;  %v3385_v21 = vld [vmem:[%s4911_s15 + $0x8] sm:$0xff]  }
 0x219   : > { %v2778_v29 = vsel %vm2768_vm9, %v2718_v19, 0.0  ;;  %v2683_v14 = vadd.f32 %v2668_v13, %v2514_v47  ;;  %v3816_v6 = vpop.f32.mrf.mxu0  ;;  %v3341_v47 = vunpack.c.l.bf16 %v3385_v21  ;;  %v2300_v13 = vadd.f32 %v4894_v33, %v4866_v24 }
 0x21a   : > { %v2808_v34 = vadd.f32 %v3350_v7, %v2778_v29  ;;  %v2711_v52 = vadd.f32 %v4916_v49, %v2675_v43  ;;  %v3832_v23 = vpop.f32.mrf.mxu1  ;;  %v3342_v43 = vunpack.c.h.bf16 %v3385_v21 }
 0x21b   : > { %v2719_v54 = vadd.f32 %v4916_v49, %v2683_v14  ;;  %v2639_v44 = vpop.f32.mrf.mxu0  ;;  %v2511_v24 = vadd.f32 %v4886_v55, %v2300_v13 }
 0x21c   : > { %v3373_v9 = vpack.c.bf16 %v2808_v34, %v2807_v39  ;;  %v2676_v12 = vadd.f32 %v2639_v44, %v2507_v58  ;;  %v2671_v31 = vpop.f32.mrf.mxu1  ;;  %v2771_v2 = vsel %vm2761_vm10, %v2711_v52, 0.0  ;;  %v3386_v39 = vld [vmem:[%s4911_s15 + $0x10] sm:$0xff]  }
 0x21d   : > { %v2684_v62 = vadd.f32 %v2671_v31, %v2515_v57  ;;  %v3817_v63 = vpop.f32.mrf.mxu0  ;;  %v2779_v28 = vsel %vm2769_vm11, %v2719_v54, 0.0  ;;  %v2801_v61 = vadd.f32 %v3337_v51, %v2771_v2  ;;  %v3345_v1 = vunpack.c.l.bf16 %v3386_v39 }
 0x21e   : > { %3391 = vst [vmem:[%s4938_s20 + $0x18] sm:$0xff] %v3373_v9   ;;  %v2712_v8 = vadd.f32 %v4916_v49, %v2676_v12  ;;  %v3833_v11 = vpop.f32.mrf.mxu1  ;;  %v2809_v37 = vadd.f32 %v3353_v41, %v2779_v28  ;;  %v3346_v25 = vunpack.c.h.bf16 %v3386_v39 }
 0x21f   : > { %v2720_v56 = vadd.f32 %v4916_v49, %v2684_v62  ;;  %v2644_v4 = vpop.f32.mrf.mxu0 }
 0x220   : > { %v2772_v16 = vsel %vm2762_vm12, %v2712_v8, 0.0  ;;  %v2677_v18 = vadd.f32 %v2644_v4, %v2508_v48 }
 0x221   : > { %v2802_v0 = vadd.f32 %v3338_v60, %v2772_v16  ;;  %v2780_v42 = vsel %vm2770_vm1, %v2720_v56, 0.0  ;;  %v3820_v26 = vpop.f32.mrf.mxu0 }
 0x222   : > { %v2810_v7 = vadd.f32 %v3354_v5, %v2780_v42  ;;  %v2713_v53 = vadd.f32 %v4916_v49, %v2677_v18 }
 0x223   : > { %v3358_v46 = vpack.c.bf16 %v2802_v0, %v2801_v61  ;;  %v2647_v27 = vpop.f32.mrf.mxu0 }
 0x224   : > { %v3378_v19 = vpack.c.bf16 %v2810_v7, %v2809_v37  ;;  %v2678_v10 = vadd.f32 %v2647_v27, %v2509_v17  ;;  %v2773_v3 = vsel %vm2763_vm13, %v2713_v53, 0.0 }
 0x225   : > { %3359 = vst [vmem:[%s4938_s20] sm:$0xff] %v3358_v46   ;;  %v3821_v50 = vpop.f32.mrf.mxu0  ;;  %v2803_v14 = vadd.f32 %v3341_v47, %v2773_v3 }
 0x226   : > { %3392 = vst [vmem:[%s4938_s20 + $0x20] sm:$0xff] %v3378_v19   ;;  %v2714_v15 = vadd.f32 %v4916_v49, %v2678_v10 }
 0x227   : > { %v2652_v29 = vpop.f32.mrf.mxu0 }
 0x228   : > { %v2774_v32 = vsel %vm2764_vm14, %v2714_v15, 0.0  ;;  %v2679_v22 = vadd.f32 %v2652_v29, %v2510_v59 }
 0x229   : > { %v2804_v6 = vadd.f32 %v3342_v43, %v2774_v32  ;;  %v3824_v58 = vpop.f32.mrf.mxu0 }
 0x22a   : > { %v2715_v35 = vadd.f32 %v4916_v49, %v2679_v22 }
 0x22b   : > { %v3363_v33 = vpack.c.bf16 %v2804_v6, %v2803_v14  ;;  %v2655_v34 = vpop.f32.mrf.mxu0 }
 0x22c   : > { %v2680_v52 = vadd.f32 %v2655_v34, %v2511_v24  ;;  %v2775_v23 = vsel %vm2765_vm0, %v2715_v35, 0.0 }
 0x22d   : > { %3389 = vst [vmem:[%s4938_s20 + $0x8] sm:$0xff] %v3363_v33   ;;  %v3825_v36 = vpop.f32.mrf.mxu0  ;;  %v2805_v57 = vadd.f32 %v3345_v1, %v2775_v23 }
 0x22e   : > { %v2716_v54 = vadd.f32 %v4916_v49, %v2680_v52 }
 0x230   : > { %v2776_v44 = vsel %vm2766_vm2, %v2716_v54, 0.0 }
 0x231   : > { %v2806_v9 = vadd.f32 %v3346_v25, %v2776_v44 }
 0x233   : > { %v3368_v51 = vpack.c.bf16 %v2806_v9, %v2805_v57 }
 0x235   : > { %3390 = vst [vmem:[%s4938_s20 + $0x10] sm:$0xff] %v3368_v51  }
 0x236 PF: > { %s19_s11 = sadd.s32 1, %s3997_s11   ;;  %s5003_s30 = smov %s3993_s10 }
 0x237   : > { %p16_p5 = scmp.ge.s32.totalorder %s19_s11, 4   ;;  %s5004_s10 = smov %s5006_s12 }
 0x239   :  { %18 = sbr.rel (!%p16_p5) target bundleno = 2 (0x2), region = 106 }

</bundles_post_ra>
